<compile_context>
chip_gen: v6e
topology: v6e:2x2x1
jax: 0.10.0
libtpu: 0.0.40
codegen_flags: <defaults>
</compile_context>

<pallas_src>
import functools

import jax
import jax.numpy as jnp
from jax.experimental import pallas as pl
from jax.experimental.pallas import tpu as pltpu


def _upconv_vpu_kernel(x_ref, w_ref, b_ref, o_ref, *, ksize, stride, Ho, Wo,
                       co_per_group):
    """One grid step = one image x one group of output channels.

    x_ref : (1, Cin, Hp, Wp)   upsampled + reflection-padded input (NCHW), VMEM, f32
    w_ref : (Cout*Cin*K*K,)    conv weights, OIHW flattened, SMEM (scalar reads)
    b_ref : (Cout,)            bias, SMEM
    o_ref : (1, Gco, Ho, Wo)   output block (NCHW), VMEM
    """
    cin = x_ref.shape[1]
    g = pl.program_id(1)
    co_base = g * co_per_group          # first output channel handled by this step

    accs = [jnp.zeros((Ho, Wo), jnp.float32) for _ in range(co_per_group)]

    # Direct convolution, fully unrolled at trace time.  Each (ci, kh, kw) tap is one
    # shifted (Ho, Wo) window load that is reused for every output channel in the
    # group; each update is a VPU vector * SMEM-scalar FMA (no MXU, no reshapes).
    for ci in range(cin):
        for kh in range(ksize):
            for kw in range(ksize):
                if stride == 1:
                    patch = x_ref[0, ci, kh:kh + Ho, kw:kw + Wo]
                else:
                    patch = x_ref[0, ci, pl.ds(kh, Ho, stride),
                                  pl.ds(kw, Wo, stride)]
                tap = (ci * ksize + kh) * ksize + kw
                for j in range(co_per_group):
                    w_idx = (co_base + j) * (cin * ksize * ksize) + tap
                    accs[j] = accs[j] + patch * w_ref[w_idx]

    for j in range(co_per_group):
        o_ref[0, j] = (accs[j] + b_ref[co_base + j]).astype(o_ref.dtype)


def upsample_conv_layer(x_nchw, weight_oihw, bias, *, kernel_size, stride,
                        upsample=None):
    """Forward pass matching UpsampleConvLayer.forward.

    x_nchw      : (N, Cin, H, W)
    weight_oihw : (Cout, Cin, K, K)   (PyTorch Conv2d layout)
    bias        : (Cout,)
    returns     : (N, Cout, Ho, Wo)   NCHW, like PyTorch
    """
    x = x_nchw
    if upsample:
        # torch.nn.functional.interpolate(mode='nearest', scale_factor=upsample),
        # applied while the tensor is still small.
        x = jnp.repeat(jnp.repeat(x, upsample, axis=2), upsample, axis=3)

    # ReflectionPad2d(kernel_size // 2)
    pad = kernel_size // 2
    if pad:
        x = jnp.pad(x, ((0, 0), (0, 0), (pad, pad), (pad, pad)), mode="reflect")

    x = x.astype(jnp.float32)           # f32 is the native VPU width (incl. v5e)
    N, Cin, Hp, Wp = x.shape
    Cout = weight_oihw.shape[0]
    K = kernel_size
    Ho = (Hp - K) // stride + 1
    Wo = (Wp - K) // stride + 1

    # Output-channel groups -> second "parallel" grid axis (keeps both v7x TCs busy at
    # batch 1-2) while also bounding live accumulator vregs per grid step.
    n_groups = 2 if (Cout % 2 == 0 and Cout >= 2) else 1
    co_per_group = Cout // n_groups

    w_flat = weight_oihw.astype(jnp.float32).reshape(-1)    # OIHW flattened, for SMEM
    b_vec = bias.astype(jnp.float32).reshape(-1)

    kernel = functools.partial(
        _upconv_vpu_kernel, ksize=K, stride=stride, Ho=Ho, Wo=Wo,
        co_per_group=co_per_group)

    cost = pl.CostEstimate(
        flops=2 * N * Ho * Wo * K * K * Cin * Cout,
        transcendentals=0,
        bytes_accessed=(x.size + w_flat.size + b_vec.size
                        + N * Cout * Ho * Wo) * 4)

    out = pl.pallas_call(
        kernel,
        out_shape=jax.ShapeDtypeStruct((N, Cout, Ho, Wo), x_nchw.dtype),
        grid_spec=pltpu.PrefetchScalarGridSpec(
            num_scalar_prefetch=0,
            grid=(N, n_groups),
            in_specs=[
                # Full padded image per step.  Constant along the group axis, so the
                # image is DMA'd once per batch element.  The last two block dims equal
                # the full array dims, so the (8,128) constraint holds for any size.
                pl.BlockSpec((1, Cin, Hp, Wp), lambda n, g: (n, 0, 0, 0)),
                # Small scalar tables -> SMEM (no padded VMEM weight tiles).
                pl.BlockSpec(memory_space=pltpu.MemorySpace.SMEM),
                pl.BlockSpec(memory_space=pltpu.MemorySpace.SMEM),
            ],
            out_specs=pl.BlockSpec((1, co_per_group, Ho, Wo),
                                   lambda n, g: (n, g, 0, 0)),
        ),
        compiler_params=pltpu.CompilerParams(
            dimension_semantics=("parallel", "parallel"),
            vmem_limit_bytes=48 * 1024 * 1024),
        cost_estimate=cost,
    )(x, w_flat, b_vec)
    return out


if __name__ == "__main__":
    # Module config: UpsampleConvLayer(in_channels=4, out_channels=8,
    #                                  kernel_size=3, stride=1, upsample=2)
    in_channels, out_channels, kernel_size, stride, upsample = 4, 8, 3, 1, 2

    key = jax.random.PRNGKey(0)
    kx, kw, kb = jax.random.split(key, 3)

    # Deterministic synthetic Conv2d parameters.
    fan_in = in_channels * kernel_size * kernel_size
    bound = 1.0 / (fan_in ** 0.5)
    weight = jax.random.uniform(
        kw, (out_channels, in_channels, kernel_size, kernel_size),
        minval=-bound, maxval=bound, dtype=jnp.float32)
    bias = jax.random.uniform(
        kb, (out_channels,), minval=-bound, maxval=bound, dtype=jnp.float32)

    # Small NCHW input.
    x = jax.random.normal(kx, (2, in_channels, 16, 16), dtype=jnp.float32)

    out = upsample_conv_layer(
        x, weight, bias, kernel_size=kernel_size, stride=stride, upsample=upsample)
    out = jax.block_until_ready(out)

    # Reference check against XLA's conv (same semantics as PyTorch Conv2d).
    x_ref = jnp.repeat(jnp.repeat(x, upsample, axis=2), upsample, axis=3)
    pad = kernel_size // 2
    x_ref = jnp.pad(x_ref, ((0, 0), (0, 0), (pad, pad), (pad, pad)), mode="reflect")
    ref = jax.lax.conv_general_dilated(
        x_ref, weight, window_strides=(stride, stride), padding="VALID",
        dimension_numbers=("NCHW", "OIHW", "NCHW")) + bias.reshape(1, -1, 1, 1)

    assert out.shape == (2, out_channels, 32, 32), out.shape
    assert jnp.allclose(out, ref, atol=1e-4, rtol=1e-4), \
        float(jnp.max(jnp.abs(out - ref)))
    print("KERNEL_OK")
</pallas_src>

<mosaic_0001>
module attributes {stable_mosaic.version = 11 : i64} {
  func.func @_upconv_vpu_kernel(%arg0: i32, %arg1: i32, %arg2: memref<1x4x34x34xf32, #tpu.memory_space<vmem>>, %arg3: memref<288xf32, #tpu.memory_space<smem>>, %arg4: memref<8xf32, #tpu.memory_space<smem>>, %arg5: memref<1x4x32x32xf32, #tpu.memory_space<vmem>>) attributes {dimension_semantics = [#tpu.dimension_semantics<parallel>, #tpu.dimension_semantics<parallel>], iteration_bounds = array<i64: 2, 2>, scalar_prefetch = 0 : i64, scratch_operands = 0 : i64, tpu.core_type = #tpu.core_type<tc>, window_params = [{transform_indices = @transform_0, window_bounds = array<i64: 1, 4, 34, 34>}, {transform_indices = @transform_1, window_bounds = array<i64: 288>}, {transform_indices = @transform_2, window_bounds = array<i64: 8>}, {transform_indices = @transform_3, window_bounds = array<i64: 1, 4, 32, 32>}]} {
    %c4_i32 = arith.constant 4 : i32
    %0 = arith.muli %arg1, %c4_i32 : i32
    %cst = arith.constant 0.000000e+00 : f32
    %1 = vector.broadcast %cst : f32 to vector<32x32xf32>
    %cst_0 = arith.constant 0.000000e+00 : f32
    %2 = vector.broadcast %cst_0 : f32 to vector<32x32xf32>
    %cst_1 = arith.constant 0.000000e+00 : f32
    %3 = vector.broadcast %cst_1 : f32 to vector<32x32xf32>
    %cst_2 = arith.constant 0.000000e+00 : f32
    %4 = vector.broadcast %cst_2 : f32 to vector<32x32xf32>
    %c0 = arith.constant 0 : index
    %c0_3 = arith.constant 0 : index
    %c0_4 = arith.constant 0 : index
    %c0_5 = arith.constant 0 : index
    %5 = vector.load %arg2[%c0, %c0_3, %c0_4, %c0_5] : memref<1x4x34x34xf32, #tpu.memory_space<vmem>>, vector<1x1x32x32xf32>
    %6 = vector.shape_cast %5 : vector<1x1x32x32xf32> to vector<32x32xf32>
    %c0_i32 = arith.constant 0 : i32
    %7 = arith.addi %0, %c0_i32 : i32
    %c36_i32 = arith.constant 36 : i32
    %8 = arith.muli %7, %c36_i32 : i32
    %c0_i32_6 = arith.constant 0 : i32
    %9 = arith.addi %8, %c0_i32_6 : i32
    %10 = arith.index_cast %9 : i32 to index
    %11 = memref.load %arg3[%10] : memref<288xf32, #tpu.memory_space<smem>>
    %12 = vector.broadcast %11 : f32 to vector<32x32xf32>
    %13 = arith.mulf %6, %12 : vector<32x32xf32>
    %14 = arith.addf %1, %13 : vector<32x32xf32>
    %c1_i32 = arith.constant 1 : i32
    %15 = arith.addi %0, %c1_i32 : i32
    %c36_i32_7 = arith.constant 36 : i32
    %16 = arith.muli %15, %c36_i32_7 : i32
    %c0_i32_8 = arith.constant 0 : i32
    %17 = arith.addi %16, %c0_i32_8 : i32
    %18 = arith.index_cast %17 : i32 to index
    %19 = memref.load %arg3[%18] : memref<288xf32, #tpu.memory_space<smem>>
    %20 = vector.broadcast %19 : f32 to vector<32x32xf32>
    %21 = arith.mulf %6, %20 : vector<32x32xf32>
    %22 = arith.addf %2, %21 : vector<32x32xf32>
    %c2_i32 = arith.constant 2 : i32
    %23 = arith.addi %0, %c2_i32 : i32
    %c36_i32_9 = arith.constant 36 : i32
    %24 = arith.muli %23, %c36_i32_9 : i32
    %c0_i32_10 = arith.constant 0 : i32
    %25 = arith.addi %24, %c0_i32_10 : i32
    %26 = arith.index_cast %25 : i32 to index
    %27 = memref.load %arg3[%26] : memref<288xf32, #tpu.memory_space<smem>>
    %28 = vector.broadcast %27 : f32 to vector<32x32xf32>
    %29 = arith.mulf %6, %28 : vector<32x32xf32>
    %30 = arith.addf %3, %29 : vector<32x32xf32>
    %c3_i32 = arith.constant 3 : i32
    %31 = arith.addi %0, %c3_i32 : i32
    %c36_i32_11 = arith.constant 36 : i32
    %32 = arith.muli %31, %c36_i32_11 : i32
    %c0_i32_12 = arith.constant 0 : i32
    %33 = arith.addi %32, %c0_i32_12 : i32
    %34 = arith.index_cast %33 : i32 to index
    %35 = memref.load %arg3[%34] : memref<288xf32, #tpu.memory_space<smem>>
    %36 = vector.broadcast %35 : f32 to vector<32x32xf32>
    %37 = arith.mulf %6, %36 : vector<32x32xf32>
    %38 = arith.addf %4, %37 : vector<32x32xf32>
    %c0_13 = arith.constant 0 : index
    %c0_14 = arith.constant 0 : index
    %c0_15 = arith.constant 0 : index
    %c1 = arith.constant 1 : index
    %39 = vector.load %arg2[%c0_13, %c0_14, %c0_15, %c1] : memref<1x4x34x34xf32, #tpu.memory_space<vmem>>, vector<1x1x32x32xf32>
    %40 = vector.shape_cast %39 : vector<1x1x32x32xf32> to vector<32x32xf32>
    %c0_i32_16 = arith.constant 0 : i32
    %41 = arith.addi %0, %c0_i32_16 : i32
    %c36_i32_17 = arith.constant 36 : i32
    %42 = arith.muli %41, %c36_i32_17 : i32
    %c1_i32_18 = arith.constant 1 : i32
    %43 = arith.addi %42, %c1_i32_18 : i32
    %44 = arith.index_cast %43 : i32 to index
    %45 = memref.load %arg3[%44] : memref<288xf32, #tpu.memory_space<smem>>
    %46 = vector.broadcast %45 : f32 to vector<32x32xf32>
    %47 = arith.mulf %40, %46 : vector<32x32xf32>
    %48 = arith.addf %14, %47 : vector<32x32xf32>
    %c1_i32_19 = arith.constant 1 : i32
    %49 = arith.addi %0, %c1_i32_19 : i32
    %c36_i32_20 = arith.constant 36 : i32
    %50 = arith.muli %49, %c36_i32_20 : i32
    %c1_i32_21 = arith.constant 1 : i32
    %51 = arith.addi %50, %c1_i32_21 : i32
    %52 = arith.index_cast %51 : i32 to index
    %53 = memref.load %arg3[%52] : memref<288xf32, #tpu.memory_space<smem>>
    %54 = vector.broadcast %53 : f32 to vector<32x32xf32>
    %55 = arith.mulf %40, %54 : vector<32x32xf32>
    %56 = arith.addf %22, %55 : vector<32x32xf32>
    %c2_i32_22 = arith.constant 2 : i32
    %57 = arith.addi %0, %c2_i32_22 : i32
    %c36_i32_23 = arith.constant 36 : i32
    %58 = arith.muli %57, %c36_i32_23 : i32
    %c1_i32_24 = arith.constant 1 : i32
    %59 = arith.addi %58, %c1_i32_24 : i32
    %60 = arith.index_cast %59 : i32 to index
    %61 = memref.load %arg3[%60] : memref<288xf32, #tpu.memory_space<smem>>
    %62 = vector.broadcast %61 : f32 to vector<32x32xf32>
    %63 = arith.mulf %40, %62 : vector<32x32xf32>
    %64 = arith.addf %30, %63 : vector<32x32xf32>
    %c3_i32_25 = arith.constant 3 : i32
    %65 = arith.addi %0, %c3_i32_25 : i32
    %c36_i32_26 = arith.constant 36 : i32
    %66 = arith.muli %65, %c36_i32_26 : i32
    %c1_i32_27 = arith.constant 1 : i32
    %67 = arith.addi %66, %c1_i32_27 : i32
    %68 = arith.index_cast %67 : i32 to index
    %69 = memref.load %arg3[%68] : memref<288xf32, #tpu.memory_space<smem>>
    %70 = vector.broadcast %69 : f32 to vector<32x32xf32>
    %71 = arith.mulf %40, %70 : vector<32x32xf32>
    %72 = arith.addf %38, %71 : vector<32x32xf32>
    %c0_28 = arith.constant 0 : index
    %c0_29 = arith.constant 0 : index
    %c0_30 = arith.constant 0 : index
    %c2 = arith.constant 2 : index
    %73 = vector.load %arg2[%c0_28, %c0_29, %c0_30, %c2] : memref<1x4x34x34xf32, #tpu.memory_space<vmem>>, vector<1x1x32x32xf32>
    %74 = vector.shape_cast %73 : vector<1x1x32x32xf32> to vector<32x32xf32>
    %c0_i32_31 = arith.constant 0 : i32
    %75 = arith.addi %0, %c0_i32_31 : i32
    %c36_i32_32 = arith.constant 36 : i32
    %76 = arith.muli %75, %c36_i32_32 : i32
    %c2_i32_33 = arith.constant 2 : i32
    %77 = arith.addi %76, %c2_i32_33 : i32
    %78 = arith.index_cast %77 : i32 to index
    %79 = memref.load %arg3[%78] : memref<288xf32, #tpu.memory_space<smem>>
    %80 = vector.broadcast %79 : f32 to vector<32x32xf32>
    %81 = arith.mulf %74, %80 : vector<32x32xf32>
    %82 = arith.addf %48, %81 : vector<32x32xf32>
    %c1_i32_34 = arith.constant 1 : i32
    %83 = arith.addi %0, %c1_i32_34 : i32
    %c36_i32_35 = arith.constant 36 : i32
    %84 = arith.muli %83, %c36_i32_35 : i32
    %c2_i32_36 = arith.constant 2 : i32
    %85 = arith.addi %84, %c2_i32_36 : i32
    %86 = arith.index_cast %85 : i32 to index
    %87 = memref.load %arg3[%86] : memref<288xf32, #tpu.memory_space<smem>>
    %88 = vector.broadcast %87 : f32 to vector<32x32xf32>
    %89 = arith.mulf %74, %88 : vector<32x32xf32>
    %90 = arith.addf %56, %89 : vector<32x32xf32>
    %c2_i32_37 = arith.constant 2 : i32
    %91 = arith.addi %0, %c2_i32_37 : i32
    %c36_i32_38 = arith.constant 36 : i32
    %92 = arith.muli %91, %c36_i32_38 : i32
    %c2_i32_39 = arith.constant 2 : i32
    %93 = arith.addi %92, %c2_i32_39 : i32
    %94 = arith.index_cast %93 : i32 to index
    %95 = memref.load %arg3[%94] : memref<288xf32, #tpu.memory_space<smem>>
    %96 = vector.broadcast %95 : f32 to vector<32x32xf32>
    %97 = arith.mulf %74, %96 : vector<32x32xf32>
    %98 = arith.addf %64, %97 : vector<32x32xf32>
    %c3_i32_40 = arith.constant 3 : i32
    %99 = arith.addi %0, %c3_i32_40 : i32
    %c36_i32_41 = arith.constant 36 : i32
    %100 = arith.muli %99, %c36_i32_41 : i32
    %c2_i32_42 = arith.constant 2 : i32
    %101 = arith.addi %100, %c2_i32_42 : i32
    %102 = arith.index_cast %101 : i32 to index
    %103 = memref.load %arg3[%102] : memref<288xf32, #tpu.memory_space<smem>>
    %104 = vector.broadcast %103 : f32 to vector<32x32xf32>
    %105 = arith.mulf %74, %104 : vector<32x32xf32>
    %106 = arith.addf %72, %105 : vector<32x32xf32>
    %c0_43 = arith.constant 0 : index
    %c0_44 = arith.constant 0 : index
    %c1_45 = arith.constant 1 : index
    %c0_46 = arith.constant 0 : index
    %107 = vector.load %arg2[%c0_43, %c0_44, %c1_45, %c0_46] : memref<1x4x34x34xf32, #tpu.memory_space<vmem>>, vector<1x1x32x32xf32>
    %108 = vector.shape_cast %107 : vector<1x1x32x32xf32> to vector<32x32xf32>
    %c0_i32_47 = arith.constant 0 : i32
    %109 = arith.addi %0, %c0_i32_47 : i32
    %c36_i32_48 = arith.constant 36 : i32
    %110 = arith.muli %109, %c36_i32_48 : i32
    %c3_i32_49 = arith.constant 3 : i32
    %111 = arith.addi %110, %c3_i32_49 : i32
    %112 = arith.index_cast %111 : i32 to index
    %113 = memref.load %arg3[%112] : memref<288xf32, #tpu.memory_space<smem>>
    %114 = vector.broadcast %113 : f32 to vector<32x32xf32>
    %115 = arith.mulf %108, %114 : vector<32x32xf32>
    %116 = arith.addf %82, %115 : vector<32x32xf32>
    %c1_i32_50 = arith.constant 1 : i32
    %117 = arith.addi %0, %c1_i32_50 : i32
    %c36_i32_51 = arith.constant 36 : i32
    %118 = arith.muli %117, %c36_i32_51 : i32
    %c3_i32_52 = arith.constant 3 : i32
    %119 = arith.addi %118, %c3_i32_52 : i32
    %120 = arith.index_cast %119 : i32 to index
    %121 = memref.load %arg3[%120] : memref<288xf32, #tpu.memory_space<smem>>
    %122 = vector.broadcast %121 : f32 to vector<32x32xf32>
    %123 = arith.mulf %108, %122 : vector<32x32xf32>
    %124 = arith.addf %90, %123 : vector<32x32xf32>
    %c2_i32_53 = arith.constant 2 : i32
    %125 = arith.addi %0, %c2_i32_53 : i32
    %c36_i32_54 = arith.constant 36 : i32
    %126 = arith.muli %125, %c36_i32_54 : i32
    %c3_i32_55 = arith.constant 3 : i32
    %127 = arith.addi %126, %c3_i32_55 : i32
    %128 = arith.index_cast %127 : i32 to index
    %129 = memref.load %arg3[%128] : memref<288xf32, #tpu.memory_space<smem>>
    %130 = vector.broadcast %129 : f32 to vector<32x32xf32>
    %131 = arith.mulf %108, %130 : vector<32x32xf32>
    %132 = arith.addf %98, %131 : vector<32x32xf32>
    %c3_i32_56 = arith.constant 3 : i32
    %133 = arith.addi %0, %c3_i32_56 : i32
    %c36_i32_57 = arith.constant 36 : i32
    %134 = arith.muli %133, %c36_i32_57 : i32
    %c3_i32_58 = arith.constant 3 : i32
    %135 = arith.addi %134, %c3_i32_58 : i32
    %136 = arith.index_cast %135 : i32 to index
    %137 = memref.load %arg3[%136] : memref<288xf32, #tpu.memory_space<smem>>
    %138 = vector.broadcast %137 : f32 to vector<32x32xf32>
    %139 = arith.mulf %108, %138 : vector<32x32xf32>
    %140 = arith.addf %106, %139 : vector<32x32xf32>
    %c0_59 = arith.constant 0 : index
    %c0_60 = arith.constant 0 : index
    %c1_61 = arith.constant 1 : index
    %c1_62 = arith.constant 1 : index
    %141 = vector.load %arg2[%c0_59, %c0_60, %c1_61, %c1_62] : memref<1x4x34x34xf32, #tpu.memory_space<vmem>>, vector<1x1x32x32xf32>
    %142 = vector.shape_cast %141 : vector<1x1x32x32xf32> to vector<32x32xf32>
    %c0_i32_63 = arith.constant 0 : i32
    %143 = arith.addi %0, %c0_i32_63 : i32
    %c36_i32_64 = arith.constant 36 : i32
    %144 = arith.muli %143, %c36_i32_64 : i32
    %c4_i32_65 = arith.constant 4 : i32
    %145 = arith.addi %144, %c4_i32_65 : i32
    %146 = arith.index_cast %145 : i32 to index
    %147 = memref.load %arg3[%146] : memref<288xf32, #tpu.memory_space<smem>>
    %148 = vector.broadcast %147 : f32 to vector<32x32xf32>
    %149 = arith.mulf %142, %148 : vector<32x32xf32>
    %150 = arith.addf %116, %149 : vector<32x32xf32>
    %c1_i32_66 = arith.constant 1 : i32
    %151 = arith.addi %0, %c1_i32_66 : i32
    %c36_i32_67 = arith.constant 36 : i32
    %152 = arith.muli %151, %c36_i32_67 : i32
    %c4_i32_68 = arith.constant 4 : i32
    %153 = arith.addi %152, %c4_i32_68 : i32
    %154 = arith.index_cast %153 : i32 to index
    %155 = memref.load %arg3[%154] : memref<288xf32, #tpu.memory_space<smem>>
    %156 = vector.broadcast %155 : f32 to vector<32x32xf32>
    %157 = arith.mulf %142, %156 : vector<32x32xf32>
    %158 = arith.addf %124, %157 : vector<32x32xf32>
    %c2_i32_69 = arith.constant 2 : i32
    %159 = arith.addi %0, %c2_i32_69 : i32
    %c36_i32_70 = arith.constant 36 : i32
    %160 = arith.muli %159, %c36_i32_70 : i32
    %c4_i32_71 = arith.constant 4 : i32
    %161 = arith.addi %160, %c4_i32_71 : i32
    %162 = arith.index_cast %161 : i32 to index
    %163 = memref.load %arg3[%162] : memref<288xf32, #tpu.memory_space<smem>>
    %164 = vector.broadcast %163 : f32 to vector<32x32xf32>
    %165 = arith.mulf %142, %164 : vector<32x32xf32>
    %166 = arith.addf %132, %165 : vector<32x32xf32>
    %c3_i32_72 = arith.constant 3 : i32
    %167 = arith.addi %0, %c3_i32_72 : i32
    %c36_i32_73 = arith.constant 36 : i32
    %168 = arith.muli %167, %c36_i32_73 : i32
    %c4_i32_74 = arith.constant 4 : i32
    %169 = arith.addi %168, %c4_i32_74 : i32
    %170 = arith.index_cast %169 : i32 to index
    %171 = memref.load %arg3[%170] : memref<288xf32, #tpu.memory_space<smem>>
    %172 = vector.broadcast %171 : f32 to vector<32x32xf32>
    %173 = arith.mulf %142, %172 : vector<32x32xf32>
    %174 = arith.addf %140, %173 : vector<32x32xf32>
    %c0_75 = arith.constant 0 : index
    %c0_76 = arith.constant 0 : index
    %c1_77 = arith.constant 1 : index
    %c2_78 = arith.constant 2 : index
    %175 = vector.load %arg2[%c0_75, %c0_76, %c1_77, %c2_78] : memref<1x4x34x34xf32, #tpu.memory_space<vmem>>, vector<1x1x32x32xf32>
    %176 = vector.shape_cast %175 : vector<1x1x32x32xf32> to vector<32x32xf32>
    %c0_i32_79 = arith.constant 0 : i32
    %177 = arith.addi %0, %c0_i32_79 : i32
    %c36_i32_80 = arith.constant 36 : i32
    %178 = arith.muli %177, %c36_i32_80 : i32
    %c5_i32 = arith.constant 5 : i32
    %179 = arith.addi %178, %c5_i32 : i32
    %180 = arith.index_cast %179 : i32 to index
    %181 = memref.load %arg3[%180] : memref<288xf32, #tpu.memory_space<smem>>
    %182 = vector.broadcast %181 : f32 to vector<32x32xf32>
    %183 = arith.mulf %176, %182 : vector<32x32xf32>
    %184 = arith.addf %150, %183 : vector<32x32xf32>
    %c1_i32_81 = arith.constant 1 : i32
    %185 = arith.addi %0, %c1_i32_81 : i32
    %c36_i32_82 = arith.constant 36 : i32
    %186 = arith.muli %185, %c36_i32_82 : i32
    %c5_i32_83 = arith.constant 5 : i32
    %187 = arith.addi %186, %c5_i32_83 : i32
    %188 = arith.index_cast %187 : i32 to index
    %189 = memref.load %arg3[%188] : memref<288xf32, #tpu.memory_space<smem>>
    %190 = vector.broadcast %189 : f32 to vector<32x32xf32>
    %191 = arith.mulf %176, %190 : vector<32x32xf32>
    %192 = arith.addf %158, %191 : vector<32x32xf32>
    %c2_i32_84 = arith.constant 2 : i32
    %193 = arith.addi %0, %c2_i32_84 : i32
    %c36_i32_85 = arith.constant 36 : i32
    %194 = arith.muli %193, %c36_i32_85 : i32
    %c5_i32_86 = arith.constant 5 : i32
    %195 = arith.addi %194, %c5_i32_86 : i32
    %196 = arith.index_cast %195 : i32 to index
    %197 = memref.load %arg3[%196] : memref<288xf32, #tpu.memory_space<smem>>
    %198 = vector.broadcast %197 : f32 to vector<32x32xf32>
    %199 = arith.mulf %176, %198 : vector<32x32xf32>
    %200 = arith.addf %166, %199 : vector<32x32xf32>
    %c3_i32_87 = arith.constant 3 : i32
    %201 = arith.addi %0, %c3_i32_87 : i32
    %c36_i32_88 = arith.constant 36 : i32
    %202 = arith.muli %201, %c36_i32_88 : i32
    %c5_i32_89 = arith.constant 5 : i32
    %203 = arith.addi %202, %c5_i32_89 : i32
    %204 = arith.index_cast %203 : i32 to index
    %205 = memref.load %arg3[%204] : memref<288xf32, #tpu.memory_space<smem>>
    %206 = vector.broadcast %205 : f32 to vector<32x32xf32>
    %207 = arith.mulf %176, %206 : vector<32x32xf32>
    %208 = arith.addf %174, %207 : vector<32x32xf32>
    %c0_90 = arith.constant 0 : index
    %c0_91 = arith.constant 0 : index
    %c2_92 = arith.constant 2 : index
    %c0_93 = arith.constant 0 : index
    %209 = vector.load %arg2[%c0_90, %c0_91, %c2_92, %c0_93] : memref<1x4x34x34xf32, #tpu.memory_space<vmem>>, vector<1x1x32x32xf32>
    %210 = vector.shape_cast %209 : vector<1x1x32x32xf32> to vector<32x32xf32>
    %c0_i32_94 = arith.constant 0 : i32
    %211 = arith.addi %0, %c0_i32_94 : i32
    %c36_i32_95 = arith.constant 36 : i32
    %212 = arith.muli %211, %c36_i32_95 : i32
    %c6_i32 = arith.constant 6 : i32
    %213 = arith.addi %212, %c6_i32 : i32
    %214 = arith.index_cast %213 : i32 to index
    %215 = memref.load %arg3[%214] : memref<288xf32, #tpu.memory_space<smem>>
    %216 = vector.broadcast %215 : f32 to vector<32x32xf32>
    %217 = arith.mulf %210, %216 : vector<32x32xf32>
    %218 = arith.addf %184, %217 : vector<32x32xf32>
    %c1_i32_96 = arith.constant 1 : i32
    %219 = arith.addi %0, %c1_i32_96 : i32
    %c36_i32_97 = arith.constant 36 : i32
    %220 = arith.muli %219, %c36_i32_97 : i32
    %c6_i32_98 = arith.constant 6 : i32
    %221 = arith.addi %220, %c6_i32_98 : i32
    %222 = arith.index_cast %221 : i32 to index
    %223 = memref.load %arg3[%222] : memref<288xf32, #tpu.memory_space<smem>>
    %224 = vector.broadcast %223 : f32 to vector<32x32xf32>
    %225 = arith.mulf %210, %224 : vector<32x32xf32>
    %226 = arith.addf %192, %225 : vector<32x32xf32>
    %c2_i32_99 = arith.constant 2 : i32
    %227 = arith.addi %0, %c2_i32_99 : i32
    %c36_i32_100 = arith.constant 36 : i32
    %228 = arith.muli %227, %c36_i32_100 : i32
    %c6_i32_101 = arith.constant 6 : i32
    %229 = arith.addi %228, %c6_i32_101 : i32
    %230 = arith.index_cast %229 : i32 to index
    %231 = memref.load %arg3[%230] : memref<288xf32, #tpu.memory_space<smem>>
    %232 = vector.broadcast %231 : f32 to vector<32x32xf32>
    %233 = arith.mulf %210, %232 : vector<32x32xf32>
    %234 = arith.addf %200, %233 : vector<32x32xf32>
    %c3_i32_102 = arith.constant 3 : i32
    %235 = arith.addi %0, %c3_i32_102 : i32
    %c36_i32_103 = arith.constant 36 : i32
    %236 = arith.muli %235, %c36_i32_103 : i32
    %c6_i32_104 = arith.constant 6 : i32
    %237 = arith.addi %236, %c6_i32_104 : i32
    %238 = arith.index_cast %237 : i32 to index
    %239 = memref.load %arg3[%238] : memref<288xf32, #tpu.memory_space<smem>>
    %240 = vector.broadcast %239 : f32 to vector<32x32xf32>
    %241 = arith.mulf %210, %240 : vector<32x32xf32>
    %242 = arith.addf %208, %241 : vector<32x32xf32>
    %c0_105 = arith.constant 0 : index
    %c0_106 = arith.constant 0 : index
    %c2_107 = arith.constant 2 : index
    %c1_108 = arith.constant 1 : index
    %243 = vector.load %arg2[%c0_105, %c0_106, %c2_107, %c1_108] : memref<1x4x34x34xf32, #tpu.memory_space<vmem>>, vector<1x1x32x32xf32>
    %244 = vector.shape_cast %243 : vector<1x1x32x32xf32> to vector<32x32xf32>
    %c0_i32_109 = arith.constant 0 : i32
    %245 = arith.addi %0, %c0_i32_109 : i32
    %c36_i32_110 = arith.constant 36 : i32
    %246 = arith.muli %245, %c36_i32_110 : i32
    %c7_i32 = arith.constant 7 : i32
    %247 = arith.addi %246, %c7_i32 : i32
    %248 = arith.index_cast %247 : i32 to index
    %249 = memref.load %arg3[%248] : memref<288xf32, #tpu.memory_space<smem>>
    %250 = vector.broadcast %249 : f32 to vector<32x32xf32>
    %251 = arith.mulf %244, %250 : vector<32x32xf32>
    %252 = arith.addf %218, %251 : vector<32x32xf32>
    %c1_i32_111 = arith.constant 1 : i32
    %253 = arith.addi %0, %c1_i32_111 : i32
    %c36_i32_112 = arith.constant 36 : i32
    %254 = arith.muli %253, %c36_i32_112 : i32
    %c7_i32_113 = arith.constant 7 : i32
    %255 = arith.addi %254, %c7_i32_113 : i32
    %256 = arith.index_cast %255 : i32 to index
    %257 = memref.load %arg3[%256] : memref<288xf32, #tpu.memory_space<smem>>
    %258 = vector.broadcast %257 : f32 to vector<32x32xf32>
    %259 = arith.mulf %244, %258 : vector<32x32xf32>
    %260 = arith.addf %226, %259 : vector<32x32xf32>
    %c2_i32_114 = arith.constant 2 : i32
    %261 = arith.addi %0, %c2_i32_114 : i32
    %c36_i32_115 = arith.constant 36 : i32
    %262 = arith.muli %261, %c36_i32_115 : i32
    %c7_i32_116 = arith.constant 7 : i32
    %263 = arith.addi %262, %c7_i32_116 : i32
    %264 = arith.index_cast %263 : i32 to index
    %265 = memref.load %arg3[%264] : memref<288xf32, #tpu.memory_space<smem>>
    %266 = vector.broadcast %265 : f32 to vector<32x32xf32>
    %267 = arith.mulf %244, %266 : vector<32x32xf32>
    %268 = arith.addf %234, %267 : vector<32x32xf32>
    %c3_i32_117 = arith.constant 3 : i32
    %269 = arith.addi %0, %c3_i32_117 : i32
    %c36_i32_118 = arith.constant 36 : i32
    %270 = arith.muli %269, %c36_i32_118 : i32
    %c7_i32_119 = arith.constant 7 : i32
    %271 = arith.addi %270, %c7_i32_119 : i32
    %272 = arith.index_cast %271 : i32 to index
    %273 = memref.load %arg3[%272] : memref<288xf32, #tpu.memory_space<smem>>
    %274 = vector.broadcast %273 : f32 to vector<32x32xf32>
    %275 = arith.mulf %244, %274 : vector<32x32xf32>
    %276 = arith.addf %242, %275 : vector<32x32xf32>
    %c0_120 = arith.constant 0 : index
    %c0_121 = arith.constant 0 : index
    %c2_122 = arith.constant 2 : index
    %c2_123 = arith.constant 2 : index
    %277 = vector.load %arg2[%c0_120, %c0_121, %c2_122, %c2_123] : memref<1x4x34x34xf32, #tpu.memory_space<vmem>>, vector<1x1x32x32xf32>
    %278 = vector.shape_cast %277 : vector<1x1x32x32xf32> to vector<32x32xf32>
    %c0_i32_124 = arith.constant 0 : i32
    %279 = arith.addi %0, %c0_i32_124 : i32
    %c36_i32_125 = arith.constant 36 : i32
    %280 = arith.muli %279, %c36_i32_125 : i32
    %c8_i32 = arith.constant 8 : i32
    %281 = arith.addi %280, %c8_i32 : i32
    %282 = arith.index_cast %281 : i32 to index
    %283 = memref.load %arg3[%282] : memref<288xf32, #tpu.memory_space<smem>>
    %284 = vector.broadcast %283 : f32 to vector<32x32xf32>
    %285 = arith.mulf %278, %284 : vector<32x32xf32>
    %286 = arith.addf %252, %285 : vector<32x32xf32>
    %c1_i32_126 = arith.constant 1 : i32
    %287 = arith.addi %0, %c1_i32_126 : i32
    %c36_i32_127 = arith.constant 36 : i32
    %288 = arith.muli %287, %c36_i32_127 : i32
    %c8_i32_128 = arith.constant 8 : i32
    %289 = arith.addi %288, %c8_i32_128 : i32
    %290 = arith.index_cast %289 : i32 to index
    %291 = memref.load %arg3[%290] : memref<288xf32, #tpu.memory_space<smem>>
    %292 = vector.broadcast %291 : f32 to vector<32x32xf32>
    %293 = arith.mulf %278, %292 : vector<32x32xf32>
    %294 = arith.addf %260, %293 : vector<32x32xf32>
    %c2_i32_129 = arith.constant 2 : i32
    %295 = arith.addi %0, %c2_i32_129 : i32
    %c36_i32_130 = arith.constant 36 : i32
    %296 = arith.muli %295, %c36_i32_130 : i32
    %c8_i32_131 = arith.constant 8 : i32
    %297 = arith.addi %296, %c8_i32_131 : i32
    %298 = arith.index_cast %297 : i32 to index
    %299 = memref.load %arg3[%298] : memref<288xf32, #tpu.memory_space<smem>>
    %300 = vector.broadcast %299 : f32 to vector<32x32xf32>
    %301 = arith.mulf %278, %300 : vector<32x32xf32>
    %302 = arith.addf %268, %301 : vector<32x32xf32>
    %c3_i32_132 = arith.constant 3 : i32
    %303 = arith.addi %0, %c3_i32_132 : i32
    %c36_i32_133 = arith.constant 36 : i32
    %304 = arith.muli %303, %c36_i32_133 : i32
    %c8_i32_134 = arith.constant 8 : i32
    %305 = arith.addi %304, %c8_i32_134 : i32
    %306 = arith.index_cast %305 : i32 to index
    %307 = memref.load %arg3[%306] : memref<288xf32, #tpu.memory_space<smem>>
    %308 = vector.broadcast %307 : f32 to vector<32x32xf32>
    %309 = arith.mulf %278, %308 : vector<32x32xf32>
    %310 = arith.addf %276, %309 : vector<32x32xf32>
    %c0_135 = arith.constant 0 : index
    %c1_136 = arith.constant 1 : index
    %c0_137 = arith.constant 0 : index
    %c0_138 = arith.constant 0 : index
    %311 = vector.load %arg2[%c0_135, %c1_136, %c0_137, %c0_138] : memref<1x4x34x34xf32, #tpu.memory_space<vmem>>, vector<1x1x32x32xf32>
    %312 = vector.shape_cast %311 : vector<1x1x32x32xf32> to vector<32x32xf32>
    %c0_i32_139 = arith.constant 0 : i32
    %313 = arith.addi %0, %c0_i32_139 : i32
    %c36_i32_140 = arith.constant 36 : i32
    %314 = arith.muli %313, %c36_i32_140 : i32
    %c9_i32 = arith.constant 9 : i32
    %315 = arith.addi %314, %c9_i32 : i32
    %316 = arith.index_cast %315 : i32 to index
    %317 = memref.load %arg3[%316] : memref<288xf32, #tpu.memory_space<smem>>
    %318 = vector.broadcast %317 : f32 to vector<32x32xf32>
    %319 = arith.mulf %312, %318 : vector<32x32xf32>
    %320 = arith.addf %286, %319 : vector<32x32xf32>
    %c1_i32_141 = arith.constant 1 : i32
    %321 = arith.addi %0, %c1_i32_141 : i32
    %c36_i32_142 = arith.constant 36 : i32
    %322 = arith.muli %321, %c36_i32_142 : i32
    %c9_i32_143 = arith.constant 9 : i32
    %323 = arith.addi %322, %c9_i32_143 : i32
    %324 = arith.index_cast %323 : i32 to index
    %325 = memref.load %arg3[%324] : memref<288xf32, #tpu.memory_space<smem>>
    %326 = vector.broadcast %325 : f32 to vector<32x32xf32>
    %327 = arith.mulf %312, %326 : vector<32x32xf32>
    %328 = arith.addf %294, %327 : vector<32x32xf32>
    %c2_i32_144 = arith.constant 2 : i32
    %329 = arith.addi %0, %c2_i32_144 : i32
    %c36_i32_145 = arith.constant 36 : i32
    %330 = arith.muli %329, %c36_i32_145 : i32
    %c9_i32_146 = arith.constant 9 : i32
    %331 = arith.addi %330, %c9_i32_146 : i32
    %332 = arith.index_cast %331 : i32 to index
    %333 = memref.load %arg3[%332] : memref<288xf32, #tpu.memory_space<smem>>
    %334 = vector.broadcast %333 : f32 to vector<32x32xf32>
    %335 = arith.mulf %312, %334 : vector<32x32xf32>
    %336 = arith.addf %302, %335 : vector<32x32xf32>
    %c3_i32_147 = arith.constant 3 : i32
    %337 = arith.addi %0, %c3_i32_147 : i32
    %c36_i32_148 = arith.constant 36 : i32
    %338 = arith.muli %337, %c36_i32_148 : i32
    %c9_i32_149 = arith.constant 9 : i32
    %339 = arith.addi %338, %c9_i32_149 : i32
    %340 = arith.index_cast %339 : i32 to index
    %341 = memref.load %arg3[%340] : memref<288xf32, #tpu.memory_space<smem>>
    %342 = vector.broadcast %341 : f32 to vector<32x32xf32>
    %343 = arith.mulf %312, %342 : vector<32x32xf32>
    %344 = arith.addf %310, %343 : vector<32x32xf32>
    %c0_150 = arith.constant 0 : index
    %c1_151 = arith.constant 1 : index
    %c0_152 = arith.constant 0 : index
    %c1_153 = arith.constant 1 : index
    %345 = vector.load %arg2[%c0_150, %c1_151, %c0_152, %c1_153] : memref<1x4x34x34xf32, #tpu.memory_space<vmem>>, vector<1x1x32x32xf32>
    %346 = vector.shape_cast %345 : vector<1x1x32x32xf32> to vector<32x32xf32>
    %c0_i32_154 = arith.constant 0 : i32
    %347 = arith.addi %0, %c0_i32_154 : i32
    %c36_i32_155 = arith.constant 36 : i32
    %348 = arith.muli %347, %c36_i32_155 : i32
    %c10_i32 = arith.constant 10 : i32
    %349 = arith.addi %348, %c10_i32 : i32
    %350 = arith.index_cast %349 : i32 to index
    %351 = memref.load %arg3[%350] : memref<288xf32, #tpu.memory_space<smem>>
    %352 = vector.broadcast %351 : f32 to vector<32x32xf32>
    %353 = arith.mulf %346, %352 : vector<32x32xf32>
    %354 = arith.addf %320, %353 : vector<32x32xf32>
    %c1_i32_156 = arith.constant 1 : i32
    %355 = arith.addi %0, %c1_i32_156 : i32
    %c36_i32_157 = arith.constant 36 : i32
    %356 = arith.muli %355, %c36_i32_157 : i32
    %c10_i32_158 = arith.constant 10 : i32
    %357 = arith.addi %356, %c10_i32_158 : i32
    %358 = arith.index_cast %357 : i32 to index
    %359 = memref.load %arg3[%358] : memref<288xf32, #tpu.memory_space<smem>>
    %360 = vector.broadcast %359 : f32 to vector<32x32xf32>
    %361 = arith.mulf %346, %360 : vector<32x32xf32>
    %362 = arith.addf %328, %361 : vector<32x32xf32>
    %c2_i32_159 = arith.constant 2 : i32
    %363 = arith.addi %0, %c2_i32_159 : i32
    %c36_i32_160 = arith.constant 36 : i32
    %364 = arith.muli %363, %c36_i32_160 : i32
    %c10_i32_161 = arith.constant 10 : i32
    %365 = arith.addi %364, %c10_i32_161 : i32
    %366 = arith.index_cast %365 : i32 to index
    %367 = memref.load %arg3[%366] : memref<288xf32, #tpu.memory_space<smem>>
    %368 = vector.broadcast %367 : f32 to vector<32x32xf32>
    %369 = arith.mulf %346, %368 : vector<32x32xf32>
    %370 = arith.addf %336, %369 : vector<32x32xf32>
    %c3_i32_162 = arith.constant 3 : i32
    %371 = arith.addi %0, %c3_i32_162 : i32
    %c36_i32_163 = arith.constant 36 : i32
    %372 = arith.muli %371, %c36_i32_163 : i32
    %c10_i32_164 = arith.constant 10 : i32
    %373 = arith.addi %372, %c10_i32_164 : i32
    %374 = arith.index_cast %373 : i32 to index
    %375 = memref.load %arg3[%374] : memref<288xf32, #tpu.memory_space<smem>>
    %376 = vector.broadcast %375 : f32 to vector<32x32xf32>
    %377 = arith.mulf %346, %376 : vector<32x32xf32>
    %378 = arith.addf %344, %377 : vector<32x32xf32>
    %c0_165 = arith.constant 0 : index
    %c1_166 = arith.constant 1 : index
    %c0_167 = arith.constant 0 : index
    %c2_168 = arith.constant 2 : index
    %379 = vector.load %arg2[%c0_165, %c1_166, %c0_167, %c2_168] : memref<1x4x34x34xf32, #tpu.memory_space<vmem>>, vector<1x1x32x32xf32>
    %380 = vector.shape_cast %379 : vector<1x1x32x32xf32> to vector<32x32xf32>
    %c0_i32_169 = arith.constant 0 : i32
    %381 = arith.addi %0, %c0_i32_169 : i32
    %c36_i32_170 = arith.constant 36 : i32
    %382 = arith.muli %381, %c36_i32_170 : i32
    %c11_i32 = arith.constant 11 : i32
    %383 = arith.addi %382, %c11_i32 : i32
    %384 = arith.index_cast %383 : i32 to index
    %385 = memref.load %arg3[%384] : memref<288xf32, #tpu.memory_space<smem>>
    %386 = vector.broadcast %385 : f32 to vector<32x32xf32>
    %387 = arith.mulf %380, %386 : vector<32x32xf32>
    %388 = arith.addf %354, %387 : vector<32x32xf32>
    %c1_i32_171 = arith.constant 1 : i32
    %389 = arith.addi %0, %c1_i32_171 : i32
    %c36_i32_172 = arith.constant 36 : i32
    %390 = arith.muli %389, %c36_i32_172 : i32
    %c11_i32_173 = arith.constant 11 : i32
    %391 = arith.addi %390, %c11_i32_173 : i32
    %392 = arith.index_cast %391 : i32 to index
    %393 = memref.load %arg3[%392] : memref<288xf32, #tpu.memory_space<smem>>
    %394 = vector.broadcast %393 : f32 to vector<32x32xf32>
    %395 = arith.mulf %380, %394 : vector<32x32xf32>
    %396 = arith.addf %362, %395 : vector<32x32xf32>
    %c2_i32_174 = arith.constant 2 : i32
    %397 = arith.addi %0, %c2_i32_174 : i32
    %c36_i32_175 = arith.constant 36 : i32
    %398 = arith.muli %397, %c36_i32_175 : i32
    %c11_i32_176 = arith.constant 11 : i32
    %399 = arith.addi %398, %c11_i32_176 : i32
    %400 = arith.index_cast %399 : i32 to index
    %401 = memref.load %arg3[%400] : memref<288xf32, #tpu.memory_space<smem>>
    %402 = vector.broadcast %401 : f32 to vector<32x32xf32>
    %403 = arith.mulf %380, %402 : vector<32x32xf32>
    %404 = arith.addf %370, %403 : vector<32x32xf32>
    %c3_i32_177 = arith.constant 3 : i32
    %405 = arith.addi %0, %c3_i32_177 : i32
    %c36_i32_178 = arith.constant 36 : i32
    %406 = arith.muli %405, %c36_i32_178 : i32
    %c11_i32_179 = arith.constant 11 : i32
    %407 = arith.addi %406, %c11_i32_179 : i32
    %408 = arith.index_cast %407 : i32 to index
    %409 = memref.load %arg3[%408] : memref<288xf32, #tpu.memory_space<smem>>
    %410 = vector.broadcast %409 : f32 to vector<32x32xf32>
    %411 = arith.mulf %380, %410 : vector<32x32xf32>
    %412 = arith.addf %378, %411 : vector<32x32xf32>
    %c0_180 = arith.constant 0 : index
    %c1_181 = arith.constant 1 : index
    %c1_182 = arith.constant 1 : index
    %c0_183 = arith.constant 0 : index
    %413 = vector.load %arg2[%c0_180, %c1_181, %c1_182, %c0_183] : memref<1x4x34x34xf32, #tpu.memory_space<vmem>>, vector<1x1x32x32xf32>
    %414 = vector.shape_cast %413 : vector<1x1x32x32xf32> to vector<32x32xf32>
    %c0_i32_184 = arith.constant 0 : i32
    %415 = arith.addi %0, %c0_i32_184 : i32
    %c36_i32_185 = arith.constant 36 : i32
    %416 = arith.muli %415, %c36_i32_185 : i32
    %c12_i32 = arith.constant 12 : i32
    %417 = arith.addi %416, %c12_i32 : i32
    %418 = arith.index_cast %417 : i32 to index
    %419 = memref.load %arg3[%418] : memref<288xf32, #tpu.memory_space<smem>>
    %420 = vector.broadcast %419 : f32 to vector<32x32xf32>
    %421 = arith.mulf %414, %420 : vector<32x32xf32>
    %422 = arith.addf %388, %421 : vector<32x32xf32>
    %c1_i32_186 = arith.constant 1 : i32
    %423 = arith.addi %0, %c1_i32_186 : i32
    %c36_i32_187 = arith.constant 36 : i32
    %424 = arith.muli %423, %c36_i32_187 : i32
    %c12_i32_188 = arith.constant 12 : i32
    %425 = arith.addi %424, %c12_i32_188 : i32
    %426 = arith.index_cast %425 : i32 to index
    %427 = memref.load %arg3[%426] : memref<288xf32, #tpu.memory_space<smem>>
    %428 = vector.broadcast %427 : f32 to vector<32x32xf32>
    %429 = arith.mulf %414, %428 : vector<32x32xf32>
    %430 = arith.addf %396, %429 : vector<32x32xf32>
    %c2_i32_189 = arith.constant 2 : i32
    %431 = arith.addi %0, %c2_i32_189 : i32
    %c36_i32_190 = arith.constant 36 : i32
    %432 = arith.muli %431, %c36_i32_190 : i32
    %c12_i32_191 = arith.constant 12 : i32
    %433 = arith.addi %432, %c12_i32_191 : i32
    %434 = arith.index_cast %433 : i32 to index
    %435 = memref.load %arg3[%434] : memref<288xf32, #tpu.memory_space<smem>>
    %436 = vector.broadcast %435 : f32 to vector<32x32xf32>
    %437 = arith.mulf %414, %436 : vector<32x32xf32>
    %438 = arith.addf %404, %437 : vector<32x32xf32>
    %c3_i32_192 = arith.constant 3 : i32
    %439 = arith.addi %0, %c3_i32_192 : i32
    %c36_i32_193 = arith.constant 36 : i32
    %440 = arith.muli %439, %c36_i32_193 : i32
    %c12_i32_194 = arith.constant 12 : i32
    %441 = arith.addi %440, %c12_i32_194 : i32
    %442 = arith.index_cast %441 : i32 to index
    %443 = memref.load %arg3[%442] : memref<288xf32, #tpu.memory_space<smem>>
    %444 = vector.broadcast %443 : f32 to vector<32x32xf32>
    %445 = arith.mulf %414, %444 : vector<32x32xf32>
    %446 = arith.addf %412, %445 : vector<32x32xf32>
    %c0_195 = arith.constant 0 : index
    %c1_196 = arith.constant 1 : index
    %c1_197 = arith.constant 1 : index
    %c1_198 = arith.constant 1 : index
    %447 = vector.load %arg2[%c0_195, %c1_196, %c1_197, %c1_198] : memref<1x4x34x34xf32, #tpu.memory_space<vmem>>, vector<1x1x32x32xf32>
    %448 = vector.shape_cast %447 : vector<1x1x32x32xf32> to vector<32x32xf32>
    %c0_i32_199 = arith.constant 0 : i32
    %449 = arith.addi %0, %c0_i32_199 : i32
    %c36_i32_200 = arith.constant 36 : i32
    %450 = arith.muli %449, %c36_i32_200 : i32
    %c13_i32 = arith.constant 13 : i32
    %451 = arith.addi %450, %c13_i32 : i32
    %452 = arith.index_cast %451 : i32 to index
    %453 = memref.load %arg3[%452] : memref<288xf32, #tpu.memory_space<smem>>
    %454 = vector.broadcast %453 : f32 to vector<32x32xf32>
    %455 = arith.mulf %448, %454 : vector<32x32xf32>
    %456 = arith.addf %422, %455 : vector<32x32xf32>
    %c1_i32_201 = arith.constant 1 : i32
    %457 = arith.addi %0, %c1_i32_201 : i32
    %c36_i32_202 = arith.constant 36 : i32
    %458 = arith.muli %457, %c36_i32_202 : i32
    %c13_i32_203 = arith.constant 13 : i32
    %459 = arith.addi %458, %c13_i32_203 : i32
    %460 = arith.index_cast %459 : i32 to index
    %461 = memref.load %arg3[%460] : memref<288xf32, #tpu.memory_space<smem>>
    %462 = vector.broadcast %461 : f32 to vector<32x32xf32>
    %463 = arith.mulf %448, %462 : vector<32x32xf32>
    %464 = arith.addf %430, %463 : vector<32x32xf32>
    %c2_i32_204 = arith.constant 2 : i32
    %465 = arith.addi %0, %c2_i32_204 : i32
    %c36_i32_205 = arith.constant 36 : i32
    %466 = arith.muli %465, %c36_i32_205 : i32
    %c13_i32_206 = arith.constant 13 : i32
    %467 = arith.addi %466, %c13_i32_206 : i32
    %468 = arith.index_cast %467 : i32 to index
    %469 = memref.load %arg3[%468] : memref<288xf32, #tpu.memory_space<smem>>
    %470 = vector.broadcast %469 : f32 to vector<32x32xf32>
    %471 = arith.mulf %448, %470 : vector<32x32xf32>
    %472 = arith.addf %438, %471 : vector<32x32xf32>
    %c3_i32_207 = arith.constant 3 : i32
    %473 = arith.addi %0, %c3_i32_207 : i32
    %c36_i32_208 = arith.constant 36 : i32
    %474 = arith.muli %473, %c36_i32_208 : i32
    %c13_i32_209 = arith.constant 13 : i32
    %475 = arith.addi %474, %c13_i32_209 : i32
    %476 = arith.index_cast %475 : i32 to index
    %477 = memref.load %arg3[%476] : memref<288xf32, #tpu.memory_space<smem>>
    %478 = vector.broadcast %477 : f32 to vector<32x32xf32>
    %479 = arith.mulf %448, %478 : vector<32x32xf32>
    %480 = arith.addf %446, %479 : vector<32x32xf32>
    %c0_210 = arith.constant 0 : index
    %c1_211 = arith.constant 1 : index
    %c1_212 = arith.constant 1 : index
    %c2_213 = arith.constant 2 : index
    %481 = vector.load %arg2[%c0_210, %c1_211, %c1_212, %c2_213] : memref<1x4x34x34xf32, #tpu.memory_space<vmem>>, vector<1x1x32x32xf32>
    %482 = vector.shape_cast %481 : vector<1x1x32x32xf32> to vector<32x32xf32>
    %c0_i32_214 = arith.constant 0 : i32
    %483 = arith.addi %0, %c0_i32_214 : i32
    %c36_i32_215 = arith.constant 36 : i32
    %484 = arith.muli %483, %c36_i32_215 : i32
    %c14_i32 = arith.constant 14 : i32
    %485 = arith.addi %484, %c14_i32 : i32
    %486 = arith.index_cast %485 : i32 to index
    %487 = memref.load %arg3[%486] : memref<288xf32, #tpu.memory_space<smem>>
    %488 = vector.broadcast %487 : f32 to vector<32x32xf32>
    %489 = arith.mulf %482, %488 : vector<32x32xf32>
    %490 = arith.addf %456, %489 : vector<32x32xf32>
    %c1_i32_216 = arith.constant 1 : i32
    %491 = arith.addi %0, %c1_i32_216 : i32
    %c36_i32_217 = arith.constant 36 : i32
    %492 = arith.muli %491, %c36_i32_217 : i32
    %c14_i32_218 = arith.constant 14 : i32
    %493 = arith.addi %492, %c14_i32_218 : i32
    %494 = arith.index_cast %493 : i32 to index
    %495 = memref.load %arg3[%494] : memref<288xf32, #tpu.memory_space<smem>>
    %496 = vector.broadcast %495 : f32 to vector<32x32xf32>
    %497 = arith.mulf %482, %496 : vector<32x32xf32>
    %498 = arith.addf %464, %497 : vector<32x32xf32>
    %c2_i32_219 = arith.constant 2 : i32
    %499 = arith.addi %0, %c2_i32_219 : i32
    %c36_i32_220 = arith.constant 36 : i32
    %500 = arith.muli %499, %c36_i32_220 : i32
    %c14_i32_221 = arith.constant 14 : i32
    %501 = arith.addi %500, %c14_i32_221 : i32
    %502 = arith.index_cast %501 : i32 to index
    %503 = memref.load %arg3[%502] : memref<288xf32, #tpu.memory_space<smem>>
    %504 = vector.broadcast %503 : f32 to vector<32x32xf32>
    %505 = arith.mulf %482, %504 : vector<32x32xf32>
    %506 = arith.addf %472, %505 : vector<32x32xf32>
    %c3_i32_222 = arith.constant 3 : i32
    %507 = arith.addi %0, %c3_i32_222 : i32
    %c36_i32_223 = arith.constant 36 : i32
    %508 = arith.muli %507, %c36_i32_223 : i32
    %c14_i32_224 = arith.constant 14 : i32
    %509 = arith.addi %508, %c14_i32_224 : i32
    %510 = arith.index_cast %509 : i32 to index
    %511 = memref.load %arg3[%510] : memref<288xf32, #tpu.memory_space<smem>>
    %512 = vector.broadcast %511 : f32 to vector<32x32xf32>
    %513 = arith.mulf %482, %512 : vector<32x32xf32>
    %514 = arith.addf %480, %513 : vector<32x32xf32>
    %c0_225 = arith.constant 0 : index
    %c1_226 = arith.constant 1 : index
    %c2_227 = arith.constant 2 : index
    %c0_228 = arith.constant 0 : index
    %515 = vector.load %arg2[%c0_225, %c1_226, %c2_227, %c0_228] : memref<1x4x34x34xf32, #tpu.memory_space<vmem>>, vector<1x1x32x32xf32>
    %516 = vector.shape_cast %515 : vector<1x1x32x32xf32> to vector<32x32xf32>
    %c0_i32_229 = arith.constant 0 : i32
    %517 = arith.addi %0, %c0_i32_229 : i32
    %c36_i32_230 = arith.constant 36 : i32
    %518 = arith.muli %517, %c36_i32_230 : i32
    %c15_i32 = arith.constant 15 : i32
    %519 = arith.addi %518, %c15_i32 : i32
    %520 = arith.index_cast %519 : i32 to index
    %521 = memref.load %arg3[%520] : memref<288xf32, #tpu.memory_space<smem>>
    %522 = vector.broadcast %521 : f32 to vector<32x32xf32>
    %523 = arith.mulf %516, %522 : vector<32x32xf32>
    %524 = arith.addf %490, %523 : vector<32x32xf32>
    %c1_i32_231 = arith.constant 1 : i32
    %525 = arith.addi %0, %c1_i32_231 : i32
    %c36_i32_232 = arith.constant 36 : i32
    %526 = arith.muli %525, %c36_i32_232 : i32
    %c15_i32_233 = arith.constant 15 : i32
    %527 = arith.addi %526, %c15_i32_233 : i32
    %528 = arith.index_cast %527 : i32 to index
    %529 = memref.load %arg3[%528] : memref<288xf32, #tpu.memory_space<smem>>
    %530 = vector.broadcast %529 : f32 to vector<32x32xf32>
    %531 = arith.mulf %516, %530 : vector<32x32xf32>
    %532 = arith.addf %498, %531 : vector<32x32xf32>
    %c2_i32_234 = arith.constant 2 : i32
    %533 = arith.addi %0, %c2_i32_234 : i32
    %c36_i32_235 = arith.constant 36 : i32
    %534 = arith.muli %533, %c36_i32_235 : i32
    %c15_i32_236 = arith.constant 15 : i32
    %535 = arith.addi %534, %c15_i32_236 : i32
    %536 = arith.index_cast %535 : i32 to index
    %537 = memref.load %arg3[%536] : memref<288xf32, #tpu.memory_space<smem>>
    %538 = vector.broadcast %537 : f32 to vector<32x32xf32>
    %539 = arith.mulf %516, %538 : vector<32x32xf32>
    %540 = arith.addf %506, %539 : vector<32x32xf32>
    %c3_i32_237 = arith.constant 3 : i32
    %541 = arith.addi %0, %c3_i32_237 : i32
    %c36_i32_238 = arith.constant 36 : i32
    %542 = arith.muli %541, %c36_i32_238 : i32
    %c15_i32_239 = arith.constant 15 : i32
    %543 = arith.addi %542, %c15_i32_239 : i32
    %544 = arith.index_cast %543 : i32 to index
    %545 = memref.load %arg3[%544] : memref<288xf32, #tpu.memory_space<smem>>
    %546 = vector.broadcast %545 : f32 to vector<32x32xf32>
    %547 = arith.mulf %516, %546 : vector<32x32xf32>
    %548 = arith.addf %514, %547 : vector<32x32xf32>
    %c0_240 = arith.constant 0 : index
    %c1_241 = arith.constant 1 : index
    %c2_242 = arith.constant 2 : index
    %c1_243 = arith.constant 1 : index
    %549 = vector.load %arg2[%c0_240, %c1_241, %c2_242, %c1_243] : memref<1x4x34x34xf32, #tpu.memory_space<vmem>>, vector<1x1x32x32xf32>
    %550 = vector.shape_cast %549 : vector<1x1x32x32xf32> to vector<32x32xf32>
    %c0_i32_244 = arith.constant 0 : i32
    %551 = arith.addi %0, %c0_i32_244 : i32
    %c36_i32_245 = arith.constant 36 : i32
    %552 = arith.muli %551, %c36_i32_245 : i32
    %c16_i32 = arith.constant 16 : i32
    %553 = arith.addi %552, %c16_i32 : i32
    %554 = arith.index_cast %553 : i32 to index
    %555 = memref.load %arg3[%554] : memref<288xf32, #tpu.memory_space<smem>>
    %556 = vector.broadcast %555 : f32 to vector<32x32xf32>
    %557 = arith.mulf %550, %556 : vector<32x32xf32>
    %558 = arith.addf %524, %557 : vector<32x32xf32>
    %c1_i32_246 = arith.constant 1 : i32
    %559 = arith.addi %0, %c1_i32_246 : i32
    %c36_i32_247 = arith.constant 36 : i32
    %560 = arith.muli %559, %c36_i32_247 : i32
    %c16_i32_248 = arith.constant 16 : i32
    %561 = arith.addi %560, %c16_i32_248 : i32
    %562 = arith.index_cast %561 : i32 to index
    %563 = memref.load %arg3[%562] : memref<288xf32, #tpu.memory_space<smem>>
    %564 = vector.broadcast %563 : f32 to vector<32x32xf32>
    %565 = arith.mulf %550, %564 : vector<32x32xf32>
    %566 = arith.addf %532, %565 : vector<32x32xf32>
    %c2_i32_249 = arith.constant 2 : i32
    %567 = arith.addi %0, %c2_i32_249 : i32
    %c36_i32_250 = arith.constant 36 : i32
    %568 = arith.muli %567, %c36_i32_250 : i32
    %c16_i32_251 = arith.constant 16 : i32
    %569 = arith.addi %568, %c16_i32_251 : i32
    %570 = arith.index_cast %569 : i32 to index
    %571 = memref.load %arg3[%570] : memref<288xf32, #tpu.memory_space<smem>>
    %572 = vector.broadcast %571 : f32 to vector<32x32xf32>
    %573 = arith.mulf %550, %572 : vector<32x32xf32>
    %574 = arith.addf %540, %573 : vector<32x32xf32>
    %c3_i32_252 = arith.constant 3 : i32
    %575 = arith.addi %0, %c3_i32_252 : i32
    %c36_i32_253 = arith.constant 36 : i32
    %576 = arith.muli %575, %c36_i32_253 : i32
    %c16_i32_254 = arith.constant 16 : i32
    %577 = arith.addi %576, %c16_i32_254 : i32
    %578 = arith.index_cast %577 : i32 to index
    %579 = memref.load %arg3[%578] : memref<288xf32, #tpu.memory_space<smem>>
    %580 = vector.broadcast %579 : f32 to vector<32x32xf32>
    %581 = arith.mulf %550, %580 : vector<32x32xf32>
    %582 = arith.addf %548, %581 : vector<32x32xf32>
    %c0_255 = arith.constant 0 : index
    %c1_256 = arith.constant 1 : index
    %c2_257 = arith.constant 2 : index
    %c2_258 = arith.constant 2 : index
    %583 = vector.load %arg2[%c0_255, %c1_256, %c2_257, %c2_258] : memref<1x4x34x34xf32, #tpu.memory_space<vmem>>, vector<1x1x32x32xf32>
    %584 = vector.shape_cast %583 : vector<1x1x32x32xf32> to vector<32x32xf32>
    %c0_i32_259 = arith.constant 0 : i32
    %585 = arith.addi %0, %c0_i32_259 : i32
    %c36_i32_260 = arith.constant 36 : i32
    %586 = arith.muli %585, %c36_i32_260 : i32
    %c17_i32 = arith.constant 17 : i32
    %587 = arith.addi %586, %c17_i32 : i32
    %588 = arith.index_cast %587 : i32 to index
    %589 = memref.load %arg3[%588] : memref<288xf32, #tpu.memory_space<smem>>
    %590 = vector.broadcast %589 : f32 to vector<32x32xf32>
    %591 = arith.mulf %584, %590 : vector<32x32xf32>
    %592 = arith.addf %558, %591 : vector<32x32xf32>
    %c1_i32_261 = arith.constant 1 : i32
    %593 = arith.addi %0, %c1_i32_261 : i32
    %c36_i32_262 = arith.constant 36 : i32
    %594 = arith.muli %593, %c36_i32_262 : i32
    %c17_i32_263 = arith.constant 17 : i32
    %595 = arith.addi %594, %c17_i32_263 : i32
    %596 = arith.index_cast %595 : i32 to index
    %597 = memref.load %arg3[%596] : memref<288xf32, #tpu.memory_space<smem>>
    %598 = vector.broadcast %597 : f32 to vector<32x32xf32>
    %599 = arith.mulf %584, %598 : vector<32x32xf32>
    %600 = arith.addf %566, %599 : vector<32x32xf32>
    %c2_i32_264 = arith.constant 2 : i32
    %601 = arith.addi %0, %c2_i32_264 : i32
    %c36_i32_265 = arith.constant 36 : i32
    %602 = arith.muli %601, %c36_i32_265 : i32
    %c17_i32_266 = arith.constant 17 : i32
    %603 = arith.addi %602, %c17_i32_266 : i32
    %604 = arith.index_cast %603 : i32 to index
    %605 = memref.load %arg3[%604] : memref<288xf32, #tpu.memory_space<smem>>
    %606 = vector.broadcast %605 : f32 to vector<32x32xf32>
    %607 = arith.mulf %584, %606 : vector<32x32xf32>
    %608 = arith.addf %574, %607 : vector<32x32xf32>
    %c3_i32_267 = arith.constant 3 : i32
    %609 = arith.addi %0, %c3_i32_267 : i32
    %c36_i32_268 = arith.constant 36 : i32
    %610 = arith.muli %609, %c36_i32_268 : i32
    %c17_i32_269 = arith.constant 17 : i32
    %611 = arith.addi %610, %c17_i32_269 : i32
    %612 = arith.index_cast %611 : i32 to index
    %613 = memref.load %arg3[%612] : memref<288xf32, #tpu.memory_space<smem>>
    %614 = vector.broadcast %613 : f32 to vector<32x32xf32>
    %615 = arith.mulf %584, %614 : vector<32x32xf32>
    %616 = arith.addf %582, %615 : vector<32x32xf32>
    %c0_270 = arith.constant 0 : index
    %c2_271 = arith.constant 2 : index
    %c0_272 = arith.constant 0 : index
    %c0_273 = arith.constant 0 : index
    %617 = vector.load %arg2[%c0_270, %c2_271, %c0_272, %c0_273] : memref<1x4x34x34xf32, #tpu.memory_space<vmem>>, vector<1x1x32x32xf32>
    %618 = vector.shape_cast %617 : vector<1x1x32x32xf32> to vector<32x32xf32>
    %c0_i32_274 = arith.constant 0 : i32
    %619 = arith.addi %0, %c0_i32_274 : i32
    %c36_i32_275 = arith.constant 36 : i32
    %620 = arith.muli %619, %c36_i32_275 : i32
    %c18_i32 = arith.constant 18 : i32
    %621 = arith.addi %620, %c18_i32 : i32
    %622 = arith.index_cast %621 : i32 to index
    %623 = memref.load %arg3[%622] : memref<288xf32, #tpu.memory_space<smem>>
    %624 = vector.broadcast %623 : f32 to vector<32x32xf32>
    %625 = arith.mulf %618, %624 : vector<32x32xf32>
    %626 = arith.addf %592, %625 : vector<32x32xf32>
    %c1_i32_276 = arith.constant 1 : i32
    %627 = arith.addi %0, %c1_i32_276 : i32
    %c36_i32_277 = arith.constant 36 : i32
    %628 = arith.muli %627, %c36_i32_277 : i32
    %c18_i32_278 = arith.constant 18 : i32
    %629 = arith.addi %628, %c18_i32_278 : i32
    %630 = arith.index_cast %629 : i32 to index
    %631 = memref.load %arg3[%630] : memref<288xf32, #tpu.memory_space<smem>>
    %632 = vector.broadcast %631 : f32 to vector<32x32xf32>
    %633 = arith.mulf %618, %632 : vector<32x32xf32>
    %634 = arith.addf %600, %633 : vector<32x32xf32>
    %c2_i32_279 = arith.constant 2 : i32
    %635 = arith.addi %0, %c2_i32_279 : i32
    %c36_i32_280 = arith.constant 36 : i32
    %636 = arith.muli %635, %c36_i32_280 : i32
    %c18_i32_281 = arith.constant 18 : i32
    %637 = arith.addi %636, %c18_i32_281 : i32
    %638 = arith.index_cast %637 : i32 to index
    %639 = memref.load %arg3[%638] : memref<288xf32, #tpu.memory_space<smem>>
    %640 = vector.broadcast %639 : f32 to vector<32x32xf32>
    %641 = arith.mulf %618, %640 : vector<32x32xf32>
    %642 = arith.addf %608, %641 : vector<32x32xf32>
    %c3_i32_282 = arith.constant 3 : i32
    %643 = arith.addi %0, %c3_i32_282 : i32
    %c36_i32_283 = arith.constant 36 : i32
    %644 = arith.muli %643, %c36_i32_283 : i32
    %c18_i32_284 = arith.constant 18 : i32
    %645 = arith.addi %644, %c18_i32_284 : i32
    %646 = arith.index_cast %645 : i32 to index
    %647 = memref.load %arg3[%646] : memref<288xf32, #tpu.memory_space<smem>>
    %648 = vector.broadcast %647 : f32 to vector<32x32xf32>
    %649 = arith.mulf %618, %648 : vector<32x32xf32>
    %650 = arith.addf %616, %649 : vector<32x32xf32>
    %c0_285 = arith.constant 0 : index
    %c2_286 = arith.constant 2 : index
    %c0_287 = arith.constant 0 : index
    %c1_288 = arith.constant 1 : index
    %651 = vector.load %arg2[%c0_285, %c2_286, %c0_287, %c1_288] : memref<1x4x34x34xf32, #tpu.memory_space<vmem>>, vector<1x1x32x32xf32>
    %652 = vector.shape_cast %651 : vector<1x1x32x32xf32> to vector<32x32xf32>
    %c0_i32_289 = arith.constant 0 : i32
    %653 = arith.addi %0, %c0_i32_289 : i32
    %c36_i32_290 = arith.constant 36 : i32
    %654 = arith.muli %653, %c36_i32_290 : i32
    %c19_i32 = arith.constant 19 : i32
    %655 = arith.addi %654, %c19_i32 : i32
    %656 = arith.index_cast %655 : i32 to index
    %657 = memref.load %arg3[%656] : memref<288xf32, #tpu.memory_space<smem>>
    %658 = vector.broadcast %657 : f32 to vector<32x32xf32>
    %659 = arith.mulf %652, %658 : vector<32x32xf32>
    %660 = arith.addf %626, %659 : vector<32x32xf32>
    %c1_i32_291 = arith.constant 1 : i32
    %661 = arith.addi %0, %c1_i32_291 : i32
    %c36_i32_292 = arith.constant 36 : i32
    %662 = arith.muli %661, %c36_i32_292 : i32
    %c19_i32_293 = arith.constant 19 : i32
    %663 = arith.addi %662, %c19_i32_293 : i32
    %664 = arith.index_cast %663 : i32 to index
    %665 = memref.load %arg3[%664] : memref<288xf32, #tpu.memory_space<smem>>
    %666 = vector.broadcast %665 : f32 to vector<32x32xf32>
    %667 = arith.mulf %652, %666 : vector<32x32xf32>
    %668 = arith.addf %634, %667 : vector<32x32xf32>
    %c2_i32_294 = arith.constant 2 : i32
    %669 = arith.addi %0, %c2_i32_294 : i32
    %c36_i32_295 = arith.constant 36 : i32
    %670 = arith.muli %669, %c36_i32_295 : i32
    %c19_i32_296 = arith.constant 19 : i32
    %671 = arith.addi %670, %c19_i32_296 : i32
    %672 = arith.index_cast %671 : i32 to index
    %673 = memref.load %arg3[%672] : memref<288xf32, #tpu.memory_space<smem>>
    %674 = vector.broadcast %673 : f32 to vector<32x32xf32>
    %675 = arith.mulf %652, %674 : vector<32x32xf32>
    %676 = arith.addf %642, %675 : vector<32x32xf32>
    %c3_i32_297 = arith.constant 3 : i32
    %677 = arith.addi %0, %c3_i32_297 : i32
    %c36_i32_298 = arith.constant 36 : i32
    %678 = arith.muli %677, %c36_i32_298 : i32
    %c19_i32_299 = arith.constant 19 : i32
    %679 = arith.addi %678, %c19_i32_299 : i32
    %680 = arith.index_cast %679 : i32 to index
    %681 = memref.load %arg3[%680] : memref<288xf32, #tpu.memory_space<smem>>
    %682 = vector.broadcast %681 : f32 to vector<32x32xf32>
    %683 = arith.mulf %652, %682 : vector<32x32xf32>
    %684 = arith.addf %650, %683 : vector<32x32xf32>
    %c0_300 = arith.constant 0 : index
    %c2_301 = arith.constant 2 : index
    %c0_302 = arith.constant 0 : index
    %c2_303 = arith.constant 2 : index
    %685 = vector.load %arg2[%c0_300, %c2_301, %c0_302, %c2_303] : memref<1x4x34x34xf32, #tpu.memory_space<vmem>>, vector<1x1x32x32xf32>
    %686 = vector.shape_cast %685 : vector<1x1x32x32xf32> to vector<32x32xf32>
    %c0_i32_304 = arith.constant 0 : i32
    %687 = arith.addi %0, %c0_i32_304 : i32
    %c36_i32_305 = arith.constant 36 : i32
    %688 = arith.muli %687, %c36_i32_305 : i32
    %c20_i32 = arith.constant 20 : i32
    %689 = arith.addi %688, %c20_i32 : i32
    %690 = arith.index_cast %689 : i32 to index
    %691 = memref.load %arg3[%690] : memref<288xf32, #tpu.memory_space<smem>>
    %692 = vector.broadcast %691 : f32 to vector<32x32xf32>
    %693 = arith.mulf %686, %692 : vector<32x32xf32>
    %694 = arith.addf %660, %693 : vector<32x32xf32>
    %c1_i32_306 = arith.constant 1 : i32
    %695 = arith.addi %0, %c1_i32_306 : i32
    %c36_i32_307 = arith.constant 36 : i32
    %696 = arith.muli %695, %c36_i32_307 : i32
    %c20_i32_308 = arith.constant 20 : i32
    %697 = arith.addi %696, %c20_i32_308 : i32
    %698 = arith.index_cast %697 : i32 to index
    %699 = memref.load %arg3[%698] : memref<288xf32, #tpu.memory_space<smem>>
    %700 = vector.broadcast %699 : f32 to vector<32x32xf32>
    %701 = arith.mulf %686, %700 : vector<32x32xf32>
    %702 = arith.addf %668, %701 : vector<32x32xf32>
    %c2_i32_309 = arith.constant 2 : i32
    %703 = arith.addi %0, %c2_i32_309 : i32
    %c36_i32_310 = arith.constant 36 : i32
    %704 = arith.muli %703, %c36_i32_310 : i32
    %c20_i32_311 = arith.constant 20 : i32
    %705 = arith.addi %704, %c20_i32_311 : i32
    %706 = arith.index_cast %705 : i32 to index
    %707 = memref.load %arg3[%706] : memref<288xf32, #tpu.memory_space<smem>>
    %708 = vector.broadcast %707 : f32 to vector<32x32xf32>
    %709 = arith.mulf %686, %708 : vector<32x32xf32>
    %710 = arith.addf %676, %709 : vector<32x32xf32>
    %c3_i32_312 = arith.constant 3 : i32
    %711 = arith.addi %0, %c3_i32_312 : i32
    %c36_i32_313 = arith.constant 36 : i32
    %712 = arith.muli %711, %c36_i32_313 : i32
    %c20_i32_314 = arith.constant 20 : i32
    %713 = arith.addi %712, %c20_i32_314 : i32
    %714 = arith.index_cast %713 : i32 to index
    %715 = memref.load %arg3[%714] : memref<288xf32, #tpu.memory_space<smem>>
    %716 = vector.broadcast %715 : f32 to vector<32x32xf32>
    %717 = arith.mulf %686, %716 : vector<32x32xf32>
    %718 = arith.addf %684, %717 : vector<32x32xf32>
    %c0_315 = arith.constant 0 : index
    %c2_316 = arith.constant 2 : index
    %c1_317 = arith.constant 1 : index
    %c0_318 = arith.constant 0 : index
    %719 = vector.load %arg2[%c0_315, %c2_316, %c1_317, %c0_318] : memref<1x4x34x34xf32, #tpu.memory_space<vmem>>, vector<1x1x32x32xf32>
    %720 = vector.shape_cast %719 : vector<1x1x32x32xf32> to vector<32x32xf32>
    %c0_i32_319 = arith.constant 0 : i32
    %721 = arith.addi %0, %c0_i32_319 : i32
    %c36_i32_320 = arith.constant 36 : i32
    %722 = arith.muli %721, %c36_i32_320 : i32
    %c21_i32 = arith.constant 21 : i32
    %723 = arith.addi %722, %c21_i32 : i32
    %724 = arith.index_cast %723 : i32 to index
    %725 = memref.load %arg3[%724] : memref<288xf32, #tpu.memory_space<smem>>
    %726 = vector.broadcast %725 : f32 to vector<32x32xf32>
    %727 = arith.mulf %720, %726 : vector<32x32xf32>
    %728 = arith.addf %694, %727 : vector<32x32xf32>
    %c1_i32_321 = arith.constant 1 : i32
    %729 = arith.addi %0, %c1_i32_321 : i32
    %c36_i32_322 = arith.constant 36 : i32
    %730 = arith.muli %729, %c36_i32_322 : i32
    %c21_i32_323 = arith.constant 21 : i32
    %731 = arith.addi %730, %c21_i32_323 : i32
    %732 = arith.index_cast %731 : i32 to index
    %733 = memref.load %arg3[%732] : memref<288xf32, #tpu.memory_space<smem>>
    %734 = vector.broadcast %733 : f32 to vector<32x32xf32>
    %735 = arith.mulf %720, %734 : vector<32x32xf32>
    %736 = arith.addf %702, %735 : vector<32x32xf32>
    %c2_i32_324 = arith.constant 2 : i32
    %737 = arith.addi %0, %c2_i32_324 : i32
    %c36_i32_325 = arith.constant 36 : i32
    %738 = arith.muli %737, %c36_i32_325 : i32
    %c21_i32_326 = arith.constant 21 : i32
    %739 = arith.addi %738, %c21_i32_326 : i32
    %740 = arith.index_cast %739 : i32 to index
    %741 = memref.load %arg3[%740] : memref<288xf32, #tpu.memory_space<smem>>
    %742 = vector.broadcast %741 : f32 to vector<32x32xf32>
    %743 = arith.mulf %720, %742 : vector<32x32xf32>
    %744 = arith.addf %710, %743 : vector<32x32xf32>
    %c3_i32_327 = arith.constant 3 : i32
    %745 = arith.addi %0, %c3_i32_327 : i32
    %c36_i32_328 = arith.constant 36 : i32
    %746 = arith.muli %745, %c36_i32_328 : i32
    %c21_i32_329 = arith.constant 21 : i32
    %747 = arith.addi %746, %c21_i32_329 : i32
    %748 = arith.index_cast %747 : i32 to index
    %749 = memref.load %arg3[%748] : memref<288xf32, #tpu.memory_space<smem>>
    %750 = vector.broadcast %749 : f32 to vector<32x32xf32>
    %751 = arith.mulf %720, %750 : vector<32x32xf32>
    %752 = arith.addf %718, %751 : vector<32x32xf32>
    %c0_330 = arith.constant 0 : index
    %c2_331 = arith.constant 2 : index
    %c1_332 = arith.constant 1 : index
    %c1_333 = arith.constant 1 : index
    %753 = vector.load %arg2[%c0_330, %c2_331, %c1_332, %c1_333] : memref<1x4x34x34xf32, #tpu.memory_space<vmem>>, vector<1x1x32x32xf32>
    %754 = vector.shape_cast %753 : vector<1x1x32x32xf32> to vector<32x32xf32>
    %c0_i32_334 = arith.constant 0 : i32
    %755 = arith.addi %0, %c0_i32_334 : i32
    %c36_i32_335 = arith.constant 36 : i32
    %756 = arith.muli %755, %c36_i32_335 : i32
    %c22_i32 = arith.constant 22 : i32
    %757 = arith.addi %756, %c22_i32 : i32
    %758 = arith.index_cast %757 : i32 to index
    %759 = memref.load %arg3[%758] : memref<288xf32, #tpu.memory_space<smem>>
    %760 = vector.broadcast %759 : f32 to vector<32x32xf32>
    %761 = arith.mulf %754, %760 : vector<32x32xf32>
    %762 = arith.addf %728, %761 : vector<32x32xf32>
    %c1_i32_336 = arith.constant 1 : i32
    %763 = arith.addi %0, %c1_i32_336 : i32
    %c36_i32_337 = arith.constant 36 : i32
    %764 = arith.muli %763, %c36_i32_337 : i32
    %c22_i32_338 = arith.constant 22 : i32
    %765 = arith.addi %764, %c22_i32_338 : i32
    %766 = arith.index_cast %765 : i32 to index
    %767 = memref.load %arg3[%766] : memref<288xf32, #tpu.memory_space<smem>>
    %768 = vector.broadcast %767 : f32 to vector<32x32xf32>
    %769 = arith.mulf %754, %768 : vector<32x32xf32>
    %770 = arith.addf %736, %769 : vector<32x32xf32>
    %c2_i32_339 = arith.constant 2 : i32
    %771 = arith.addi %0, %c2_i32_339 : i32
    %c36_i32_340 = arith.constant 36 : i32
    %772 = arith.muli %771, %c36_i32_340 : i32
    %c22_i32_341 = arith.constant 22 : i32
    %773 = arith.addi %772, %c22_i32_341 : i32
    %774 = arith.index_cast %773 : i32 to index
    %775 = memref.load %arg3[%774] : memref<288xf32, #tpu.memory_space<smem>>
    %776 = vector.broadcast %775 : f32 to vector<32x32xf32>
    %777 = arith.mulf %754, %776 : vector<32x32xf32>
    %778 = arith.addf %744, %777 : vector<32x32xf32>
    %c3_i32_342 = arith.constant 3 : i32
    %779 = arith.addi %0, %c3_i32_342 : i32
    %c36_i32_343 = arith.constant 36 : i32
    %780 = arith.muli %779, %c36_i32_343 : i32
    %c22_i32_344 = arith.constant 22 : i32
    %781 = arith.addi %780, %c22_i32_344 : i32
    %782 = arith.index_cast %781 : i32 to index
    %783 = memref.load %arg3[%782] : memref<288xf32, #tpu.memory_space<smem>>
    %784 = vector.broadcast %783 : f32 to vector<32x32xf32>
    %785 = arith.mulf %754, %784 : vector<32x32xf32>
    %786 = arith.addf %752, %785 : vector<32x32xf32>
    %c0_345 = arith.constant 0 : index
    %c2_346 = arith.constant 2 : index
    %c1_347 = arith.constant 1 : index
    %c2_348 = arith.constant 2 : index
    %787 = vector.load %arg2[%c0_345, %c2_346, %c1_347, %c2_348] : memref<1x4x34x34xf32, #tpu.memory_space<vmem>>, vector<1x1x32x32xf32>
    %788 = vector.shape_cast %787 : vector<1x1x32x32xf32> to vector<32x32xf32>
    %c0_i32_349 = arith.constant 0 : i32
    %789 = arith.addi %0, %c0_i32_349 : i32
    %c36_i32_350 = arith.constant 36 : i32
    %790 = arith.muli %789, %c36_i32_350 : i32
    %c23_i32 = arith.constant 23 : i32
    %791 = arith.addi %790, %c23_i32 : i32
    %792 = arith.index_cast %791 : i32 to index
    %793 = memref.load %arg3[%792] : memref<288xf32, #tpu.memory_space<smem>>
    %794 = vector.broadcast %793 : f32 to vector<32x32xf32>
    %795 = arith.mulf %788, %794 : vector<32x32xf32>
    %796 = arith.addf %762, %795 : vector<32x32xf32>
    %c1_i32_351 = arith.constant 1 : i32
    %797 = arith.addi %0, %c1_i32_351 : i32
    %c36_i32_352 = arith.constant 36 : i32
    %798 = arith.muli %797, %c36_i32_352 : i32
    %c23_i32_353 = arith.constant 23 : i32
    %799 = arith.addi %798, %c23_i32_353 : i32
    %800 = arith.index_cast %799 : i32 to index
    %801 = memref.load %arg3[%800] : memref<288xf32, #tpu.memory_space<smem>>
    %802 = vector.broadcast %801 : f32 to vector<32x32xf32>
    %803 = arith.mulf %788, %802 : vector<32x32xf32>
    %804 = arith.addf %770, %803 : vector<32x32xf32>
    %c2_i32_354 = arith.constant 2 : i32
    %805 = arith.addi %0, %c2_i32_354 : i32
    %c36_i32_355 = arith.constant 36 : i32
    %806 = arith.muli %805, %c36_i32_355 : i32
    %c23_i32_356 = arith.constant 23 : i32
    %807 = arith.addi %806, %c23_i32_356 : i32
    %808 = arith.index_cast %807 : i32 to index
    %809 = memref.load %arg3[%808] : memref<288xf32, #tpu.memory_space<smem>>
    %810 = vector.broadcast %809 : f32 to vector<32x32xf32>
    %811 = arith.mulf %788, %810 : vector<32x32xf32>
    %812 = arith.addf %778, %811 : vector<32x32xf32>
    %c3_i32_357 = arith.constant 3 : i32
    %813 = arith.addi %0, %c3_i32_357 : i32
    %c36_i32_358 = arith.constant 36 : i32
    %814 = arith.muli %813, %c36_i32_358 : i32
    %c23_i32_359 = arith.constant 23 : i32
    %815 = arith.addi %814, %c23_i32_359 : i32
    %816 = arith.index_cast %815 : i32 to index
    %817 = memref.load %arg3[%816] : memref<288xf32, #tpu.memory_space<smem>>
    %818 = vector.broadcast %817 : f32 to vector<32x32xf32>
    %819 = arith.mulf %788, %818 : vector<32x32xf32>
    %820 = arith.addf %786, %819 : vector<32x32xf32>
    %c0_360 = arith.constant 0 : index
    %c2_361 = arith.constant 2 : index
    %c2_362 = arith.constant 2 : index
    %c0_363 = arith.constant 0 : index
    %821 = vector.load %arg2[%c0_360, %c2_361, %c2_362, %c0_363] : memref<1x4x34x34xf32, #tpu.memory_space<vmem>>, vector<1x1x32x32xf32>
    %822 = vector.shape_cast %821 : vector<1x1x32x32xf32> to vector<32x32xf32>
    %c0_i32_364 = arith.constant 0 : i32
    %823 = arith.addi %0, %c0_i32_364 : i32
    %c36_i32_365 = arith.constant 36 : i32
    %824 = arith.muli %823, %c36_i32_365 : i32
    %c24_i32 = arith.constant 24 : i32
    %825 = arith.addi %824, %c24_i32 : i32
    %826 = arith.index_cast %825 : i32 to index
    %827 = memref.load %arg3[%826] : memref<288xf32, #tpu.memory_space<smem>>
    %828 = vector.broadcast %827 : f32 to vector<32x32xf32>
    %829 = arith.mulf %822, %828 : vector<32x32xf32>
    %830 = arith.addf %796, %829 : vector<32x32xf32>
    %c1_i32_366 = arith.constant 1 : i32
    %831 = arith.addi %0, %c1_i32_366 : i32
    %c36_i32_367 = arith.constant 36 : i32
    %832 = arith.muli %831, %c36_i32_367 : i32
    %c24_i32_368 = arith.constant 24 : i32
    %833 = arith.addi %832, %c24_i32_368 : i32
    %834 = arith.index_cast %833 : i32 to index
    %835 = memref.load %arg3[%834] : memref<288xf32, #tpu.memory_space<smem>>
    %836 = vector.broadcast %835 : f32 to vector<32x32xf32>
    %837 = arith.mulf %822, %836 : vector<32x32xf32>
    %838 = arith.addf %804, %837 : vector<32x32xf32>
    %c2_i32_369 = arith.constant 2 : i32
    %839 = arith.addi %0, %c2_i32_369 : i32
    %c36_i32_370 = arith.constant 36 : i32
    %840 = arith.muli %839, %c36_i32_370 : i32
    %c24_i32_371 = arith.constant 24 : i32
    %841 = arith.addi %840, %c24_i32_371 : i32
    %842 = arith.index_cast %841 : i32 to index
    %843 = memref.load %arg3[%842] : memref<288xf32, #tpu.memory_space<smem>>
    %844 = vector.broadcast %843 : f32 to vector<32x32xf32>
    %845 = arith.mulf %822, %844 : vector<32x32xf32>
    %846 = arith.addf %812, %845 : vector<32x32xf32>
    %c3_i32_372 = arith.constant 3 : i32
    %847 = arith.addi %0, %c3_i32_372 : i32
    %c36_i32_373 = arith.constant 36 : i32
    %848 = arith.muli %847, %c36_i32_373 : i32
    %c24_i32_374 = arith.constant 24 : i32
    %849 = arith.addi %848, %c24_i32_374 : i32
    %850 = arith.index_cast %849 : i32 to index
    %851 = memref.load %arg3[%850] : memref<288xf32, #tpu.memory_space<smem>>
    %852 = vector.broadcast %851 : f32 to vector<32x32xf32>
    %853 = arith.mulf %822, %852 : vector<32x32xf32>
    %854 = arith.addf %820, %853 : vector<32x32xf32>
    %c0_375 = arith.constant 0 : index
    %c2_376 = arith.constant 2 : index
    %c2_377 = arith.constant 2 : index
    %c1_378 = arith.constant 1 : index
    %855 = vector.load %arg2[%c0_375, %c2_376, %c2_377, %c1_378] : memref<1x4x34x34xf32, #tpu.memory_space<vmem>>, vector<1x1x32x32xf32>
    %856 = vector.shape_cast %855 : vector<1x1x32x32xf32> to vector<32x32xf32>
    %c0_i32_379 = arith.constant 0 : i32
    %857 = arith.addi %0, %c0_i32_379 : i32
    %c36_i32_380 = arith.constant 36 : i32
    %858 = arith.muli %857, %c36_i32_380 : i32
    %c25_i32 = arith.constant 25 : i32
    %859 = arith.addi %858, %c25_i32 : i32
    %860 = arith.index_cast %859 : i32 to index
    %861 = memref.load %arg3[%860] : memref<288xf32, #tpu.memory_space<smem>>
    %862 = vector.broadcast %861 : f32 to vector<32x32xf32>
    %863 = arith.mulf %856, %862 : vector<32x32xf32>
    %864 = arith.addf %830, %863 : vector<32x32xf32>
    %c1_i32_381 = arith.constant 1 : i32
    %865 = arith.addi %0, %c1_i32_381 : i32
    %c36_i32_382 = arith.constant 36 : i32
    %866 = arith.muli %865, %c36_i32_382 : i32
    %c25_i32_383 = arith.constant 25 : i32
    %867 = arith.addi %866, %c25_i32_383 : i32
    %868 = arith.index_cast %867 : i32 to index
    %869 = memref.load %arg3[%868] : memref<288xf32, #tpu.memory_space<smem>>
    %870 = vector.broadcast %869 : f32 to vector<32x32xf32>
    %871 = arith.mulf %856, %870 : vector<32x32xf32>
    %872 = arith.addf %838, %871 : vector<32x32xf32>
    %c2_i32_384 = arith.constant 2 : i32
    %873 = arith.addi %0, %c2_i32_384 : i32
    %c36_i32_385 = arith.constant 36 : i32
    %874 = arith.muli %873, %c36_i32_385 : i32
    %c25_i32_386 = arith.constant 25 : i32
    %875 = arith.addi %874, %c25_i32_386 : i32
    %876 = arith.index_cast %875 : i32 to index
    %877 = memref.load %arg3[%876] : memref<288xf32, #tpu.memory_space<smem>>
    %878 = vector.broadcast %877 : f32 to vector<32x32xf32>
    %879 = arith.mulf %856, %878 : vector<32x32xf32>
    %880 = arith.addf %846, %879 : vector<32x32xf32>
    %c3_i32_387 = arith.constant 3 : i32
    %881 = arith.addi %0, %c3_i32_387 : i32
    %c36_i32_388 = arith.constant 36 : i32
    %882 = arith.muli %881, %c36_i32_388 : i32
    %c25_i32_389 = arith.constant 25 : i32
    %883 = arith.addi %882, %c25_i32_389 : i32
    %884 = arith.index_cast %883 : i32 to index
    %885 = memref.load %arg3[%884] : memref<288xf32, #tpu.memory_space<smem>>
    %886 = vector.broadcast %885 : f32 to vector<32x32xf32>
    %887 = arith.mulf %856, %886 : vector<32x32xf32>
    %888 = arith.addf %854, %887 : vector<32x32xf32>
    %c0_390 = arith.constant 0 : index
    %c2_391 = arith.constant 2 : index
    %c2_392 = arith.constant 2 : index
    %c2_393 = arith.constant 2 : index
    %889 = vector.load %arg2[%c0_390, %c2_391, %c2_392, %c2_393] : memref<1x4x34x34xf32, #tpu.memory_space<vmem>>, vector<1x1x32x32xf32>
    %890 = vector.shape_cast %889 : vector<1x1x32x32xf32> to vector<32x32xf32>
    %c0_i32_394 = arith.constant 0 : i32
    %891 = arith.addi %0, %c0_i32_394 : i32
    %c36_i32_395 = arith.constant 36 : i32
    %892 = arith.muli %891, %c36_i32_395 : i32
    %c26_i32 = arith.constant 26 : i32
    %893 = arith.addi %892, %c26_i32 : i32
    %894 = arith.index_cast %893 : i32 to index
    %895 = memref.load %arg3[%894] : memref<288xf32, #tpu.memory_space<smem>>
    %896 = vector.broadcast %895 : f32 to vector<32x32xf32>
    %897 = arith.mulf %890, %896 : vector<32x32xf32>
    %898 = arith.addf %864, %897 : vector<32x32xf32>
    %c1_i32_396 = arith.constant 1 : i32
    %899 = arith.addi %0, %c1_i32_396 : i32
    %c36_i32_397 = arith.constant 36 : i32
    %900 = arith.muli %899, %c36_i32_397 : i32
    %c26_i32_398 = arith.constant 26 : i32
    %901 = arith.addi %900, %c26_i32_398 : i32
    %902 = arith.index_cast %901 : i32 to index
    %903 = memref.load %arg3[%902] : memref<288xf32, #tpu.memory_space<smem>>
    %904 = vector.broadcast %903 : f32 to vector<32x32xf32>
    %905 = arith.mulf %890, %904 : vector<32x32xf32>
    %906 = arith.addf %872, %905 : vector<32x32xf32>
    %c2_i32_399 = arith.constant 2 : i32
    %907 = arith.addi %0, %c2_i32_399 : i32
    %c36_i32_400 = arith.constant 36 : i32
    %908 = arith.muli %907, %c36_i32_400 : i32
    %c26_i32_401 = arith.constant 26 : i32
    %909 = arith.addi %908, %c26_i32_401 : i32
    %910 = arith.index_cast %909 : i32 to index
    %911 = memref.load %arg3[%910] : memref<288xf32, #tpu.memory_space<smem>>
    %912 = vector.broadcast %911 : f32 to vector<32x32xf32>
    %913 = arith.mulf %890, %912 : vector<32x32xf32>
    %914 = arith.addf %880, %913 : vector<32x32xf32>
    %c3_i32_402 = arith.constant 3 : i32
    %915 = arith.addi %0, %c3_i32_402 : i32
    %c36_i32_403 = arith.constant 36 : i32
    %916 = arith.muli %915, %c36_i32_403 : i32
    %c26_i32_404 = arith.constant 26 : i32
    %917 = arith.addi %916, %c26_i32_404 : i32
    %918 = arith.index_cast %917 : i32 to index
    %919 = memref.load %arg3[%918] : memref<288xf32, #tpu.memory_space<smem>>
    %920 = vector.broadcast %919 : f32 to vector<32x32xf32>
    %921 = arith.mulf %890, %920 : vector<32x32xf32>
    %922 = arith.addf %888, %921 : vector<32x32xf32>
    %c0_405 = arith.constant 0 : index
    %c3 = arith.constant 3 : index
    %c0_406 = arith.constant 0 : index
    %c0_407 = arith.constant 0 : index
    %923 = vector.load %arg2[%c0_405, %c3, %c0_406, %c0_407] : memref<1x4x34x34xf32, #tpu.memory_space<vmem>>, vector<1x1x32x32xf32>
    %924 = vector.shape_cast %923 : vector<1x1x32x32xf32> to vector<32x32xf32>
    %c0_i32_408 = arith.constant 0 : i32
    %925 = arith.addi %0, %c0_i32_408 : i32
    %c36_i32_409 = arith.constant 36 : i32
    %926 = arith.muli %925, %c36_i32_409 : i32
    %c27_i32 = arith.constant 27 : i32
    %927 = arith.addi %926, %c27_i32 : i32
    %928 = arith.index_cast %927 : i32 to index
    %929 = memref.load %arg3[%928] : memref<288xf32, #tpu.memory_space<smem>>
    %930 = vector.broadcast %929 : f32 to vector<32x32xf32>
    %931 = arith.mulf %924, %930 : vector<32x32xf32>
    %932 = arith.addf %898, %931 : vector<32x32xf32>
    %c1_i32_410 = arith.constant 1 : i32
    %933 = arith.addi %0, %c1_i32_410 : i32
    %c36_i32_411 = arith.constant 36 : i32
    %934 = arith.muli %933, %c36_i32_411 : i32
    %c27_i32_412 = arith.constant 27 : i32
    %935 = arith.addi %934, %c27_i32_412 : i32
    %936 = arith.index_cast %935 : i32 to index
    %937 = memref.load %arg3[%936] : memref<288xf32, #tpu.memory_space<smem>>
    %938 = vector.broadcast %937 : f32 to vector<32x32xf32>
    %939 = arith.mulf %924, %938 : vector<32x32xf32>
    %940 = arith.addf %906, %939 : vector<32x32xf32>
    %c2_i32_413 = arith.constant 2 : i32
    %941 = arith.addi %0, %c2_i32_413 : i32
    %c36_i32_414 = arith.constant 36 : i32
    %942 = arith.muli %941, %c36_i32_414 : i32
    %c27_i32_415 = arith.constant 27 : i32
    %943 = arith.addi %942, %c27_i32_415 : i32
    %944 = arith.index_cast %943 : i32 to index
    %945 = memref.load %arg3[%944] : memref<288xf32, #tpu.memory_space<smem>>
    %946 = vector.broadcast %945 : f32 to vector<32x32xf32>
    %947 = arith.mulf %924, %946 : vector<32x32xf32>
    %948 = arith.addf %914, %947 : vector<32x32xf32>
    %c3_i32_416 = arith.constant 3 : i32
    %949 = arith.addi %0, %c3_i32_416 : i32
    %c36_i32_417 = arith.constant 36 : i32
    %950 = arith.muli %949, %c36_i32_417 : i32
    %c27_i32_418 = arith.constant 27 : i32
    %951 = arith.addi %950, %c27_i32_418 : i32
    %952 = arith.index_cast %951 : i32 to index
    %953 = memref.load %arg3[%952] : memref<288xf32, #tpu.memory_space<smem>>
    %954 = vector.broadcast %953 : f32 to vector<32x32xf32>
    %955 = arith.mulf %924, %954 : vector<32x32xf32>
    %956 = arith.addf %922, %955 : vector<32x32xf32>
    %c0_419 = arith.constant 0 : index
    %c3_420 = arith.constant 3 : index
    %c0_421 = arith.constant 0 : index
    %c1_422 = arith.constant 1 : index
    %957 = vector.load %arg2[%c0_419, %c3_420, %c0_421, %c1_422] : memref<1x4x34x34xf32, #tpu.memory_space<vmem>>, vector<1x1x32x32xf32>
    %958 = vector.shape_cast %957 : vector<1x1x32x32xf32> to vector<32x32xf32>
    %c0_i32_423 = arith.constant 0 : i32
    %959 = arith.addi %0, %c0_i32_423 : i32
    %c36_i32_424 = arith.constant 36 : i32
    %960 = arith.muli %959, %c36_i32_424 : i32
    %c28_i32 = arith.constant 28 : i32
    %961 = arith.addi %960, %c28_i32 : i32
    %962 = arith.index_cast %961 : i32 to index
    %963 = memref.load %arg3[%962] : memref<288xf32, #tpu.memory_space<smem>>
    %964 = vector.broadcast %963 : f32 to vector<32x32xf32>
    %965 = arith.mulf %958, %964 : vector<32x32xf32>
    %966 = arith.addf %932, %965 : vector<32x32xf32>
    %c1_i32_425 = arith.constant 1 : i32
    %967 = arith.addi %0, %c1_i32_425 : i32
    %c36_i32_426 = arith.constant 36 : i32
    %968 = arith.muli %967, %c36_i32_426 : i32
    %c28_i32_427 = arith.constant 28 : i32
    %969 = arith.addi %968, %c28_i32_427 : i32
    %970 = arith.index_cast %969 : i32 to index
    %971 = memref.load %arg3[%970] : memref<288xf32, #tpu.memory_space<smem>>
    %972 = vector.broadcast %971 : f32 to vector<32x32xf32>
    %973 = arith.mulf %958, %972 : vector<32x32xf32>
    %974 = arith.addf %940, %973 : vector<32x32xf32>
    %c2_i32_428 = arith.constant 2 : i32
    %975 = arith.addi %0, %c2_i32_428 : i32
    %c36_i32_429 = arith.constant 36 : i32
    %976 = arith.muli %975, %c36_i32_429 : i32
    %c28_i32_430 = arith.constant 28 : i32
    %977 = arith.addi %976, %c28_i32_430 : i32
    %978 = arith.index_cast %977 : i32 to index
    %979 = memref.load %arg3[%978] : memref<288xf32, #tpu.memory_space<smem>>
    %980 = vector.broadcast %979 : f32 to vector<32x32xf32>
    %981 = arith.mulf %958, %980 : vector<32x32xf32>
    %982 = arith.addf %948, %981 : vector<32x32xf32>
    %c3_i32_431 = arith.constant 3 : i32
    %983 = arith.addi %0, %c3_i32_431 : i32
    %c36_i32_432 = arith.constant 36 : i32
    %984 = arith.muli %983, %c36_i32_432 : i32
    %c28_i32_433 = arith.constant 28 : i32
    %985 = arith.addi %984, %c28_i32_433 : i32
    %986 = arith.index_cast %985 : i32 to index
    %987 = memref.load %arg3[%986] : memref<288xf32, #tpu.memory_space<smem>>
    %988 = vector.broadcast %987 : f32 to vector<32x32xf32>
    %989 = arith.mulf %958, %988 : vector<32x32xf32>
    %990 = arith.addf %956, %989 : vector<32x32xf32>
    %c0_434 = arith.constant 0 : index
    %c3_435 = arith.constant 3 : index
    %c0_436 = arith.constant 0 : index
    %c2_437 = arith.constant 2 : index
    %991 = vector.load %arg2[%c0_434, %c3_435, %c0_436, %c2_437] : memref<1x4x34x34xf32, #tpu.memory_space<vmem>>, vector<1x1x32x32xf32>
    %992 = vector.shape_cast %991 : vector<1x1x32x32xf32> to vector<32x32xf32>
    %c0_i32_438 = arith.constant 0 : i32
    %993 = arith.addi %0, %c0_i32_438 : i32
    %c36_i32_439 = arith.constant 36 : i32
    %994 = arith.muli %993, %c36_i32_439 : i32
    %c29_i32 = arith.constant 29 : i32
    %995 = arith.addi %994, %c29_i32 : i32
    %996 = arith.index_cast %995 : i32 to index
    %997 = memref.load %arg3[%996] : memref<288xf32, #tpu.memory_space<smem>>
    %998 = vector.broadcast %997 : f32 to vector<32x32xf32>
    %999 = arith.mulf %992, %998 : vector<32x32xf32>
    %1000 = arith.addf %966, %999 : vector<32x32xf32>
    %c1_i32_440 = arith.constant 1 : i32
    %1001 = arith.addi %0, %c1_i32_440 : i32
    %c36_i32_441 = arith.constant 36 : i32
    %1002 = arith.muli %1001, %c36_i32_441 : i32
    %c29_i32_442 = arith.constant 29 : i32
    %1003 = arith.addi %1002, %c29_i32_442 : i32
    %1004 = arith.index_cast %1003 : i32 to index
    %1005 = memref.load %arg3[%1004] : memref<288xf32, #tpu.memory_space<smem>>
    %1006 = vector.broadcast %1005 : f32 to vector<32x32xf32>
    %1007 = arith.mulf %992, %1006 : vector<32x32xf32>
    %1008 = arith.addf %974, %1007 : vector<32x32xf32>
    %c2_i32_443 = arith.constant 2 : i32
    %1009 = arith.addi %0, %c2_i32_443 : i32
    %c36_i32_444 = arith.constant 36 : i32
    %1010 = arith.muli %1009, %c36_i32_444 : i32
    %c29_i32_445 = arith.constant 29 : i32
    %1011 = arith.addi %1010, %c29_i32_445 : i32
    %1012 = arith.index_cast %1011 : i32 to index
    %1013 = memref.load %arg3[%1012] : memref<288xf32, #tpu.memory_space<smem>>
    %1014 = vector.broadcast %1013 : f32 to vector<32x32xf32>
    %1015 = arith.mulf %992, %1014 : vector<32x32xf32>
    %1016 = arith.addf %982, %1015 : vector<32x32xf32>
    %c3_i32_446 = arith.constant 3 : i32
    %1017 = arith.addi %0, %c3_i32_446 : i32
    %c36_i32_447 = arith.constant 36 : i32
    %1018 = arith.muli %1017, %c36_i32_447 : i32
    %c29_i32_448 = arith.constant 29 : i32
    %1019 = arith.addi %1018, %c29_i32_448 : i32
    %1020 = arith.index_cast %1019 : i32 to index
    %1021 = memref.load %arg3[%1020] : memref<288xf32, #tpu.memory_space<smem>>
    %1022 = vector.broadcast %1021 : f32 to vector<32x32xf32>
    %1023 = arith.mulf %992, %1022 : vector<32x32xf32>
    %1024 = arith.addf %990, %1023 : vector<32x32xf32>
    %c0_449 = arith.constant 0 : index
    %c3_450 = arith.constant 3 : index
    %c1_451 = arith.constant 1 : index
    %c0_452 = arith.constant 0 : index
    %1025 = vector.load %arg2[%c0_449, %c3_450, %c1_451, %c0_452] : memref<1x4x34x34xf32, #tpu.memory_space<vmem>>, vector<1x1x32x32xf32>
    %1026 = vector.shape_cast %1025 : vector<1x1x32x32xf32> to vector<32x32xf32>
    %c0_i32_453 = arith.constant 0 : i32
    %1027 = arith.addi %0, %c0_i32_453 : i32
    %c36_i32_454 = arith.constant 36 : i32
    %1028 = arith.muli %1027, %c36_i32_454 : i32
    %c30_i32 = arith.constant 30 : i32
    %1029 = arith.addi %1028, %c30_i32 : i32
    %1030 = arith.index_cast %1029 : i32 to index
    %1031 = memref.load %arg3[%1030] : memref<288xf32, #tpu.memory_space<smem>>
    %1032 = vector.broadcast %1031 : f32 to vector<32x32xf32>
    %1033 = arith.mulf %1026, %1032 : vector<32x32xf32>
    %1034 = arith.addf %1000, %1033 : vector<32x32xf32>
    %c1_i32_455 = arith.constant 1 : i32
    %1035 = arith.addi %0, %c1_i32_455 : i32
    %c36_i32_456 = arith.constant 36 : i32
    %1036 = arith.muli %1035, %c36_i32_456 : i32
    %c30_i32_457 = arith.constant 30 : i32
    %1037 = arith.addi %1036, %c30_i32_457 : i32
    %1038 = arith.index_cast %1037 : i32 to index
    %1039 = memref.load %arg3[%1038] : memref<288xf32, #tpu.memory_space<smem>>
    %1040 = vector.broadcast %1039 : f32 to vector<32x32xf32>
    %1041 = arith.mulf %1026, %1040 : vector<32x32xf32>
    %1042 = arith.addf %1008, %1041 : vector<32x32xf32>
    %c2_i32_458 = arith.constant 2 : i32
    %1043 = arith.addi %0, %c2_i32_458 : i32
    %c36_i32_459 = arith.constant 36 : i32
    %1044 = arith.muli %1043, %c36_i32_459 : i32
    %c30_i32_460 = arith.constant 30 : i32
    %1045 = arith.addi %1044, %c30_i32_460 : i32
    %1046 = arith.index_cast %1045 : i32 to index
    %1047 = memref.load %arg3[%1046] : memref<288xf32, #tpu.memory_space<smem>>
    %1048 = vector.broadcast %1047 : f32 to vector<32x32xf32>
    %1049 = arith.mulf %1026, %1048 : vector<32x32xf32>
    %1050 = arith.addf %1016, %1049 : vector<32x32xf32>
    %c3_i32_461 = arith.constant 3 : i32
    %1051 = arith.addi %0, %c3_i32_461 : i32
    %c36_i32_462 = arith.constant 36 : i32
    %1052 = arith.muli %1051, %c36_i32_462 : i32
    %c30_i32_463 = arith.constant 30 : i32
    %1053 = arith.addi %1052, %c30_i32_463 : i32
    %1054 = arith.index_cast %1053 : i32 to index
    %1055 = memref.load %arg3[%1054] : memref<288xf32, #tpu.memory_space<smem>>
    %1056 = vector.broadcast %1055 : f32 to vector<32x32xf32>
    %1057 = arith.mulf %1026, %1056 : vector<32x32xf32>
    %1058 = arith.addf %1024, %1057 : vector<32x32xf32>
    %c0_464 = arith.constant 0 : index
    %c3_465 = arith.constant 3 : index
    %c1_466 = arith.constant 1 : index
    %c1_467 = arith.constant 1 : index
    %1059 = vector.load %arg2[%c0_464, %c3_465, %c1_466, %c1_467] : memref<1x4x34x34xf32, #tpu.memory_space<vmem>>, vector<1x1x32x32xf32>
    %1060 = vector.shape_cast %1059 : vector<1x1x32x32xf32> to vector<32x32xf32>
    %c0_i32_468 = arith.constant 0 : i32
    %1061 = arith.addi %0, %c0_i32_468 : i32
    %c36_i32_469 = arith.constant 36 : i32
    %1062 = arith.muli %1061, %c36_i32_469 : i32
    %c31_i32 = arith.constant 31 : i32
    %1063 = arith.addi %1062, %c31_i32 : i32
    %1064 = arith.index_cast %1063 : i32 to index
    %1065 = memref.load %arg3[%1064] : memref<288xf32, #tpu.memory_space<smem>>
    %1066 = vector.broadcast %1065 : f32 to vector<32x32xf32>
    %1067 = arith.mulf %1060, %1066 : vector<32x32xf32>
    %1068 = arith.addf %1034, %1067 : vector<32x32xf32>
    %c1_i32_470 = arith.constant 1 : i32
    %1069 = arith.addi %0, %c1_i32_470 : i32
    %c36_i32_471 = arith.constant 36 : i32
    %1070 = arith.muli %1069, %c36_i32_471 : i32
    %c31_i32_472 = arith.constant 31 : i32
    %1071 = arith.addi %1070, %c31_i32_472 : i32
    %1072 = arith.index_cast %1071 : i32 to index
    %1073 = memref.load %arg3[%1072] : memref<288xf32, #tpu.memory_space<smem>>
    %1074 = vector.broadcast %1073 : f32 to vector<32x32xf32>
    %1075 = arith.mulf %1060, %1074 : vector<32x32xf32>
    %1076 = arith.addf %1042, %1075 : vector<32x32xf32>
    %c2_i32_473 = arith.constant 2 : i32
    %1077 = arith.addi %0, %c2_i32_473 : i32
    %c36_i32_474 = arith.constant 36 : i32
    %1078 = arith.muli %1077, %c36_i32_474 : i32
    %c31_i32_475 = arith.constant 31 : i32
    %1079 = arith.addi %1078, %c31_i32_475 : i32
    %1080 = arith.index_cast %1079 : i32 to index
    %1081 = memref.load %arg3[%1080] : memref<288xf32, #tpu.memory_space<smem>>
    %1082 = vector.broadcast %1081 : f32 to vector<32x32xf32>
    %1083 = arith.mulf %1060, %1082 : vector<32x32xf32>
    %1084 = arith.addf %1050, %1083 : vector<32x32xf32>
    %c3_i32_476 = arith.constant 3 : i32
    %1085 = arith.addi %0, %c3_i32_476 : i32
    %c36_i32_477 = arith.constant 36 : i32
    %1086 = arith.muli %1085, %c36_i32_477 : i32
    %c31_i32_478 = arith.constant 31 : i32
    %1087 = arith.addi %1086, %c31_i32_478 : i32
    %1088 = arith.index_cast %1087 : i32 to index
    %1089 = memref.load %arg3[%1088] : memref<288xf32, #tpu.memory_space<smem>>
    %1090 = vector.broadcast %1089 : f32 to vector<32x32xf32>
    %1091 = arith.mulf %1060, %1090 : vector<32x32xf32>
    %1092 = arith.addf %1058, %1091 : vector<32x32xf32>
    %c0_479 = arith.constant 0 : index
    %c3_480 = arith.constant 3 : index
    %c1_481 = arith.constant 1 : index
    %c2_482 = arith.constant 2 : index
    %1093 = vector.load %arg2[%c0_479, %c3_480, %c1_481, %c2_482] : memref<1x4x34x34xf32, #tpu.memory_space<vmem>>, vector<1x1x32x32xf32>
    %1094 = vector.shape_cast %1093 : vector<1x1x32x32xf32> to vector<32x32xf32>
    %c0_i32_483 = arith.constant 0 : i32
    %1095 = arith.addi %0, %c0_i32_483 : i32
    %c36_i32_484 = arith.constant 36 : i32
    %1096 = arith.muli %1095, %c36_i32_484 : i32
    %c32_i32 = arith.constant 32 : i32
    %1097 = arith.addi %1096, %c32_i32 : i32
    %1098 = arith.index_cast %1097 : i32 to index
    %1099 = memref.load %arg3[%1098] : memref<288xf32, #tpu.memory_space<smem>>
    %1100 = vector.broadcast %1099 : f32 to vector<32x32xf32>
    %1101 = arith.mulf %1094, %1100 : vector<32x32xf32>
    %1102 = arith.addf %1068, %1101 : vector<32x32xf32>
    %c1_i32_485 = arith.constant 1 : i32
    %1103 = arith.addi %0, %c1_i32_485 : i32
    %c36_i32_486 = arith.constant 36 : i32
    %1104 = arith.muli %1103, %c36_i32_486 : i32
    %c32_i32_487 = arith.constant 32 : i32
    %1105 = arith.addi %1104, %c32_i32_487 : i32
    %1106 = arith.index_cast %1105 : i32 to index
    %1107 = memref.load %arg3[%1106] : memref<288xf32, #tpu.memory_space<smem>>
    %1108 = vector.broadcast %1107 : f32 to vector<32x32xf32>
    %1109 = arith.mulf %1094, %1108 : vector<32x32xf32>
    %1110 = arith.addf %1076, %1109 : vector<32x32xf32>
    %c2_i32_488 = arith.constant 2 : i32
    %1111 = arith.addi %0, %c2_i32_488 : i32
    %c36_i32_489 = arith.constant 36 : i32
    %1112 = arith.muli %1111, %c36_i32_489 : i32
    %c32_i32_490 = arith.constant 32 : i32
    %1113 = arith.addi %1112, %c32_i32_490 : i32
    %1114 = arith.index_cast %1113 : i32 to index
    %1115 = memref.load %arg3[%1114] : memref<288xf32, #tpu.memory_space<smem>>
    %1116 = vector.broadcast %1115 : f32 to vector<32x32xf32>
    %1117 = arith.mulf %1094, %1116 : vector<32x32xf32>
    %1118 = arith.addf %1084, %1117 : vector<32x32xf32>
    %c3_i32_491 = arith.constant 3 : i32
    %1119 = arith.addi %0, %c3_i32_491 : i32
    %c36_i32_492 = arith.constant 36 : i32
    %1120 = arith.muli %1119, %c36_i32_492 : i32
    %c32_i32_493 = arith.constant 32 : i32
    %1121 = arith.addi %1120, %c32_i32_493 : i32
    %1122 = arith.index_cast %1121 : i32 to index
    %1123 = memref.load %arg3[%1122] : memref<288xf32, #tpu.memory_space<smem>>
    %1124 = vector.broadcast %1123 : f32 to vector<32x32xf32>
    %1125 = arith.mulf %1094, %1124 : vector<32x32xf32>
    %1126 = arith.addf %1092, %1125 : vector<32x32xf32>
    %c0_494 = arith.constant 0 : index
    %c3_495 = arith.constant 3 : index
    %c2_496 = arith.constant 2 : index
    %c0_497 = arith.constant 0 : index
    %1127 = vector.load %arg2[%c0_494, %c3_495, %c2_496, %c0_497] : memref<1x4x34x34xf32, #tpu.memory_space<vmem>>, vector<1x1x32x32xf32>
    %1128 = vector.shape_cast %1127 : vector<1x1x32x32xf32> to vector<32x32xf32>
    %c0_i32_498 = arith.constant 0 : i32
    %1129 = arith.addi %0, %c0_i32_498 : i32
    %c36_i32_499 = arith.constant 36 : i32
    %1130 = arith.muli %1129, %c36_i32_499 : i32
    %c33_i32 = arith.constant 33 : i32
    %1131 = arith.addi %1130, %c33_i32 : i32
    %1132 = arith.index_cast %1131 : i32 to index
    %1133 = memref.load %arg3[%1132] : memref<288xf32, #tpu.memory_space<smem>>
    %1134 = vector.broadcast %1133 : f32 to vector<32x32xf32>
    %1135 = arith.mulf %1128, %1134 : vector<32x32xf32>
    %1136 = arith.addf %1102, %1135 : vector<32x32xf32>
    %c1_i32_500 = arith.constant 1 : i32
    %1137 = arith.addi %0, %c1_i32_500 : i32
    %c36_i32_501 = arith.constant 36 : i32
    %1138 = arith.muli %1137, %c36_i32_501 : i32
    %c33_i32_502 = arith.constant 33 : i32
    %1139 = arith.addi %1138, %c33_i32_502 : i32
    %1140 = arith.index_cast %1139 : i32 to index
    %1141 = memref.load %arg3[%1140] : memref<288xf32, #tpu.memory_space<smem>>
    %1142 = vector.broadcast %1141 : f32 to vector<32x32xf32>
    %1143 = arith.mulf %1128, %1142 : vector<32x32xf32>
    %1144 = arith.addf %1110, %1143 : vector<32x32xf32>
    %c2_i32_503 = arith.constant 2 : i32
    %1145 = arith.addi %0, %c2_i32_503 : i32
    %c36_i32_504 = arith.constant 36 : i32
    %1146 = arith.muli %1145, %c36_i32_504 : i32
    %c33_i32_505 = arith.constant 33 : i32
    %1147 = arith.addi %1146, %c33_i32_505 : i32
    %1148 = arith.index_cast %1147 : i32 to index
    %1149 = memref.load %arg3[%1148] : memref<288xf32, #tpu.memory_space<smem>>
    %1150 = vector.broadcast %1149 : f32 to vector<32x32xf32>
    %1151 = arith.mulf %1128, %1150 : vector<32x32xf32>
    %1152 = arith.addf %1118, %1151 : vector<32x32xf32>
    %c3_i32_506 = arith.constant 3 : i32
    %1153 = arith.addi %0, %c3_i32_506 : i32
    %c36_i32_507 = arith.constant 36 : i32
    %1154 = arith.muli %1153, %c36_i32_507 : i32
    %c33_i32_508 = arith.constant 33 : i32
    %1155 = arith.addi %1154, %c33_i32_508 : i32
    %1156 = arith.index_cast %1155 : i32 to index
    %1157 = memref.load %arg3[%1156] : memref<288xf32, #tpu.memory_space<smem>>
    %1158 = vector.broadcast %1157 : f32 to vector<32x32xf32>
    %1159 = arith.mulf %1128, %1158 : vector<32x32xf32>
    %1160 = arith.addf %1126, %1159 : vector<32x32xf32>
    %c0_509 = arith.constant 0 : index
    %c3_510 = arith.constant 3 : index
    %c2_511 = arith.constant 2 : index
    %c1_512 = arith.constant 1 : index
    %1161 = vector.load %arg2[%c0_509, %c3_510, %c2_511, %c1_512] : memref<1x4x34x34xf32, #tpu.memory_space<vmem>>, vector<1x1x32x32xf32>
    %1162 = vector.shape_cast %1161 : vector<1x1x32x32xf32> to vector<32x32xf32>
    %c0_i32_513 = arith.constant 0 : i32
    %1163 = arith.addi %0, %c0_i32_513 : i32
    %c36_i32_514 = arith.constant 36 : i32
    %1164 = arith.muli %1163, %c36_i32_514 : i32
    %c34_i32 = arith.constant 34 : i32
    %1165 = arith.addi %1164, %c34_i32 : i32
    %1166 = arith.index_cast %1165 : i32 to index
    %1167 = memref.load %arg3[%1166] : memref<288xf32, #tpu.memory_space<smem>>
    %1168 = vector.broadcast %1167 : f32 to vector<32x32xf32>
    %1169 = arith.mulf %1162, %1168 : vector<32x32xf32>
    %1170 = arith.addf %1136, %1169 : vector<32x32xf32>
    %c1_i32_515 = arith.constant 1 : i32
    %1171 = arith.addi %0, %c1_i32_515 : i32
    %c36_i32_516 = arith.constant 36 : i32
    %1172 = arith.muli %1171, %c36_i32_516 : i32
    %c34_i32_517 = arith.constant 34 : i32
    %1173 = arith.addi %1172, %c34_i32_517 : i32
    %1174 = arith.index_cast %1173 : i32 to index
    %1175 = memref.load %arg3[%1174] : memref<288xf32, #tpu.memory_space<smem>>
    %1176 = vector.broadcast %1175 : f32 to vector<32x32xf32>
    %1177 = arith.mulf %1162, %1176 : vector<32x32xf32>
    %1178 = arith.addf %1144, %1177 : vector<32x32xf32>
    %c2_i32_518 = arith.constant 2 : i32
    %1179 = arith.addi %0, %c2_i32_518 : i32
    %c36_i32_519 = arith.constant 36 : i32
    %1180 = arith.muli %1179, %c36_i32_519 : i32
    %c34_i32_520 = arith.constant 34 : i32
    %1181 = arith.addi %1180, %c34_i32_520 : i32
    %1182 = arith.index_cast %1181 : i32 to index
    %1183 = memref.load %arg3[%1182] : memref<288xf32, #tpu.memory_space<smem>>
    %1184 = vector.broadcast %1183 : f32 to vector<32x32xf32>
    %1185 = arith.mulf %1162, %1184 : vector<32x32xf32>
    %1186 = arith.addf %1152, %1185 : vector<32x32xf32>
    %c3_i32_521 = arith.constant 3 : i32
    %1187 = arith.addi %0, %c3_i32_521 : i32
    %c36_i32_522 = arith.constant 36 : i32
    %1188 = arith.muli %1187, %c36_i32_522 : i32
    %c34_i32_523 = arith.constant 34 : i32
    %1189 = arith.addi %1188, %c34_i32_523 : i32
    %1190 = arith.index_cast %1189 : i32 to index
    %1191 = memref.load %arg3[%1190] : memref<288xf32, #tpu.memory_space<smem>>
    %1192 = vector.broadcast %1191 : f32 to vector<32x32xf32>
    %1193 = arith.mulf %1162, %1192 : vector<32x32xf32>
    %1194 = arith.addf %1160, %1193 : vector<32x32xf32>
    %c0_524 = arith.constant 0 : index
    %c3_525 = arith.constant 3 : index
    %c2_526 = arith.constant 2 : index
    %c2_527 = arith.constant 2 : index
    %1195 = vector.load %arg2[%c0_524, %c3_525, %c2_526, %c2_527] : memref<1x4x34x34xf32, #tpu.memory_space<vmem>>, vector<1x1x32x32xf32>
    %1196 = vector.shape_cast %1195 : vector<1x1x32x32xf32> to vector<32x32xf32>
    %c0_i32_528 = arith.constant 0 : i32
    %1197 = arith.addi %0, %c0_i32_528 : i32
    %c36_i32_529 = arith.constant 36 : i32
    %1198 = arith.muli %1197, %c36_i32_529 : i32
    %c35_i32 = arith.constant 35 : i32
    %1199 = arith.addi %1198, %c35_i32 : i32
    %1200 = arith.index_cast %1199 : i32 to index
    %1201 = memref.load %arg3[%1200] : memref<288xf32, #tpu.memory_space<smem>>
    %1202 = vector.broadcast %1201 : f32 to vector<32x32xf32>
    %1203 = arith.mulf %1196, %1202 : vector<32x32xf32>
    %1204 = arith.addf %1170, %1203 : vector<32x32xf32>
    %c1_i32_530 = arith.constant 1 : i32
    %1205 = arith.addi %0, %c1_i32_530 : i32
    %c36_i32_531 = arith.constant 36 : i32
    %1206 = arith.muli %1205, %c36_i32_531 : i32
    %c35_i32_532 = arith.constant 35 : i32
    %1207 = arith.addi %1206, %c35_i32_532 : i32
    %1208 = arith.index_cast %1207 : i32 to index
    %1209 = memref.load %arg3[%1208] : memref<288xf32, #tpu.memory_space<smem>>
    %1210 = vector.broadcast %1209 : f32 to vector<32x32xf32>
    %1211 = arith.mulf %1196, %1210 : vector<32x32xf32>
    %1212 = arith.addf %1178, %1211 : vector<32x32xf32>
    %c2_i32_533 = arith.constant 2 : i32
    %1213 = arith.addi %0, %c2_i32_533 : i32
    %c36_i32_534 = arith.constant 36 : i32
    %1214 = arith.muli %1213, %c36_i32_534 : i32
    %c35_i32_535 = arith.constant 35 : i32
    %1215 = arith.addi %1214, %c35_i32_535 : i32
    %1216 = arith.index_cast %1215 : i32 to index
    %1217 = memref.load %arg3[%1216] : memref<288xf32, #tpu.memory_space<smem>>
    %1218 = vector.broadcast %1217 : f32 to vector<32x32xf32>
    %1219 = arith.mulf %1196, %1218 : vector<32x32xf32>
    %1220 = arith.addf %1186, %1219 : vector<32x32xf32>
    %c3_i32_536 = arith.constant 3 : i32
    %1221 = arith.addi %0, %c3_i32_536 : i32
    %c36_i32_537 = arith.constant 36 : i32
    %1222 = arith.muli %1221, %c36_i32_537 : i32
    %c35_i32_538 = arith.constant 35 : i32
    %1223 = arith.addi %1222, %c35_i32_538 : i32
    %1224 = arith.index_cast %1223 : i32 to index
    %1225 = memref.load %arg3[%1224] : memref<288xf32, #tpu.memory_space<smem>>
    %1226 = vector.broadcast %1225 : f32 to vector<32x32xf32>
    %1227 = arith.mulf %1196, %1226 : vector<32x32xf32>
    %1228 = arith.addf %1194, %1227 : vector<32x32xf32>
    %c0_i32_539 = arith.constant 0 : i32
    %1229 = arith.addi %0, %c0_i32_539 : i32
    %1230 = arith.index_cast %1229 : i32 to index
    %1231 = memref.load %arg4[%1230] : memref<8xf32, #tpu.memory_space<smem>>
    %1232 = vector.broadcast %1231 : f32 to vector<32x32xf32>
    %1233 = arith.addf %1204, %1232 : vector<32x32xf32>
    %c0_540 = arith.constant 0 : index
    %c0_541 = arith.constant 0 : index
    %c0_542 = arith.constant 0 : index
    %c0_543 = arith.constant 0 : index
    %1234 = vector.load %arg5[%c0_540, %c0_541, %c0_542, %c0_543] : memref<1x4x32x32xf32, #tpu.memory_space<vmem>>, vector<1x1x32x32xf32>
    %1235 = vector.shape_cast %1234 : vector<1x1x32x32xf32> to vector<32x32xf32>
    %1236 = vector.shape_cast %1233 : vector<32x32xf32> to vector<1x1x32x32xf32>
    tpu.vector_store %arg5[%c0_540, %c0_541, %c0_542, %c0_543], %1236 {strides = array<i32>} : memref<1x4x32x32xf32, #tpu.memory_space<vmem>>, vector<1x1x32x32xf32>,
    %c1_i32_544 = arith.constant 1 : i32
    %1237 = arith.addi %0, %c1_i32_544 : i32
    %1238 = arith.index_cast %1237 : i32 to index
    %1239 = memref.load %arg4[%1238] : memref<8xf32, #tpu.memory_space<smem>>
    %1240 = vector.broadcast %1239 : f32 to vector<32x32xf32>
    %1241 = arith.addf %1212, %1240 : vector<32x32xf32>
    %c0_545 = arith.constant 0 : index
    %c1_546 = arith.constant 1 : index
    %c0_547 = arith.constant 0 : index
    %c0_548 = arith.constant 0 : index
    %1242 = vector.load %arg5[%c0_545, %c1_546, %c0_547, %c0_548] : memref<1x4x32x32xf32, #tpu.memory_space<vmem>>, vector<1x1x32x32xf32>
    %1243 = vector.shape_cast %1242 : vector<1x1x32x32xf32> to vector<32x32xf32>
    %1244 = vector.shape_cast %1241 : vector<32x32xf32> to vector<1x1x32x32xf32>
    tpu.vector_store %arg5[%c0_545, %c1_546, %c0_547, %c0_548], %1244 {strides = array<i32>} : memref<1x4x32x32xf32, #tpu.memory_space<vmem>>, vector<1x1x32x32xf32>,
    %c2_i32_549 = arith.constant 2 : i32
    %1245 = arith.addi %0, %c2_i32_549 : i32
    %1246 = arith.index_cast %1245 : i32 to index
    %1247 = memref.load %arg4[%1246] : memref<8xf32, #tpu.memory_space<smem>>
    %1248 = vector.broadcast %1247 : f32 to vector<32x32xf32>
    %1249 = arith.addf %1220, %1248 : vector<32x32xf32>
    %c0_550 = arith.constant 0 : index
    %c2_551 = arith.constant 2 : index
    %c0_552 = arith.constant 0 : index
    %c0_553 = arith.constant 0 : index
    %1250 = vector.load %arg5[%c0_550, %c2_551, %c0_552, %c0_553] : memref<1x4x32x32xf32, #tpu.memory_space<vmem>>, vector<1x1x32x32xf32>
    %1251 = vector.shape_cast %1250 : vector<1x1x32x32xf32> to vector<32x32xf32>
    %1252 = vector.shape_cast %1249 : vector<32x32xf32> to vector<1x1x32x32xf32>
    tpu.vector_store %arg5[%c0_550, %c2_551, %c0_552, %c0_553], %1252 {strides = array<i32>} : memref<1x4x32x32xf32, #tpu.memory_space<vmem>>, vector<1x1x32x32xf32>,
    %c3_i32_554 = arith.constant 3 : i32
    %1253 = arith.addi %0, %c3_i32_554 : i32
    %1254 = arith.index_cast %1253 : i32 to index
    %1255 = memref.load %arg4[%1254] : memref<8xf32, #tpu.memory_space<smem>>
    %1256 = vector.broadcast %1255 : f32 to vector<32x32xf32>
    %1257 = arith.addf %1228, %1256 : vector<32x32xf32>
    %c0_555 = arith.constant 0 : index
    %c3_556 = arith.constant 3 : index
    %c0_557 = arith.constant 0 : index
    %c0_558 = arith.constant 0 : index
    %1258 = vector.load %arg5[%c0_555, %c3_556, %c0_557, %c0_558] : memref<1x4x32x32xf32, #tpu.memory_space<vmem>>, vector<1x1x32x32xf32>
    %1259 = vector.shape_cast %1258 : vector<1x1x32x32xf32> to vector<32x32xf32>
    %1260 = vector.shape_cast %1257 : vector<32x32xf32> to vector<1x1x32x32xf32>
    tpu.vector_store %arg5[%c0_555, %c3_556, %c0_557, %c0_558], %1260 {strides = array<i32>} : memref<1x4x32x32xf32, #tpu.memory_space<vmem>>, vector<1x1x32x32xf32>,
    return
  }
  func.func @transform_0(%arg0: i32, %arg1: i32) -> (i32, i32, i32, i32) {
    %c0_i32 = arith.constant 0 : i32
    %c0_i32_0 = arith.constant 0 : i32
    %c0_i32_1 = arith.constant 0 : i32
    %c0_i32_2 = arith.constant 0 : i32
    return %arg0, %c0_i32, %c0_i32_0, %c0_i32_1 : i32, i32, i32, i32
  }
  func.func @transform_1(%arg0: i32, %arg1: i32) -> i32 {
    %c0_i32 = arith.constant 0 : i32
    %c0_i32_0 = arith.constant 0 : i32
    return %c0_i32 : i32
  }
  func.func @transform_2(%arg0: i32, %arg1: i32) -> i32 {
    %c0_i32 = arith.constant 0 : i32
    %c0_i32_0 = arith.constant 0 : i32
    return %c0_i32 : i32
  }
  func.func @transform_3(%arg0: i32, %arg1: i32) -> (i32, i32, i32, i32) {
    %c0_i32 = arith.constant 0 : i32
    %c0_i32_0 = arith.constant 0 : i32
    %c0_i32_1 = arith.constant 0 : i32
    return %arg0, %arg1, %c0_i32, %c0_i32_0 : i32, i32, i32, i32
  }
}

</mosaic_0001>

<bundles_post_ra>
// kernel: tpu_custom_call.1
= control target key start
LH: loop header
LB: loop body
LE: loop exit
PB: predicated region body
PF: predicated region fallthrough
CT: control target
= control target key end

     0   :  { %s7195_s0 = inlined_call_operand.vmem [shape: f32[2,4,34,34], index: 0, kind: input, shape index: {}]   ;;  %s7196_s1 = inlined_call_operand.vmem [shape: f32[288], index: 1, kind: input, shape index: {}]   ;;  %s7197_s2 = inlined_call_operand.vmem [shape: f32[8], index: 2, kind: input, shape index: {}]   ;;  %s7198_s3 = inlined_call_operand.hbm [shape: f32[2,8,32,32], index: 3, kind: output, shape index: {}]  }
   0x1   :  { %7221 = sst [smem:[#allocation206_spill]] %s7195_s0 }
   0x2   :  { %7222 = sst [smem:[#allocation207_spill]] %s7196_s1 }
   0x3   :  { %7223 = sst [smem:[#allocation208_spill]] %s7197_s2 }
   0x4   :  { %8 = vsyncpa [#allocation4], 0 }
   0x5   :  { %9 = vsyncpa [#allocation6], 0 }
   0x6   :  { %10 = vsyncpa [#allocation3], 0 }
   0x7   :  { %12 = vsyncpa [#allocation3 + $0x1], 0  ;;  %s3905_s12 = smov 0   ;;  %s3907_s13 = smov 0  }
   0x8   :  { %s3909_s14 = smov 0   ;;  %s3911_s15 = smov 0  }
   0x9   :  { %s3913_s16 = smov 0   ;;  %s3915_s17 = smov 0  }
   0xa   :  { %s3917_s18 = smov 0   ;;  %s3919_s19 = smov 0  }
   0xb LB: > { %7224 = sst [smem:[#allocation11_spill]] %s3868_s17  ;;  %s3545_s20 = sadd.s32 4294967295, %s3876_s19   ;;  %s3876_s19 = sphi %s3919_s19, %s18_s19   ;;  %s3872_s18 = sphi %s3917_s18, %s7812_s18   ;;  %s3868_s17 = sphi %s3915_s17, %s7811_s17   ;;  %s3864_s16 = sphi %s3913_s16, %s7810_s16   ;;  %s3860_s15 = sphi %s3911_s15, %s7809_s15   ;;  %s3856_s14 = sphi %s3909_s14, %s7815_s14   ;;  %s3852_s13 = sphi %s3907_s13, %s7814_s13   ;;  %s3848_s12 = sphi %s3905_s12, %s7813_s12  }
   0xc   : > { %7225 = sst [smem:[#allocation12_spill]] %s3872_s18  ;;  %s3546_s21 = sadd.s32 4294967294, %s3876_s19  }
   0xd   : > { %s27_s22 = sadd.s32 1, %s3868_s17  ;;  %s30_s23 = sadd.s32 1, %s3872_s18 }
   0xe   : > { %p28_p0 = scmp.ge.s32.totalorder %s27_s22, 2  ;;  %s107_s24 = sadd.s32 1, %s3856_s14 }
   0xf   : > { %p117_p1 = scmp.ne.s32.totalorder %s3856_s14, %s3852_s13  ;;  %p118_p2 = scmp.eq.s32.totalorder %s3545_s20, 3 }
  0x10   : > { %s7817_s22 = smov (%p28_p0, %s27_s22), 0  ;;  %s7819_s23 = smov (!%p28_p0, %s30_s23), %s3872_s18 }
  0x11   : > { %7226 = sst [smem:[#allocation13_spill]] %s7817_s22  ;;  %s103_s25 = ssub.s32 %s3868_s17, %s7817_s22 }
  0x12   : > { %p3957_p3 = por %p118_p2, %p117_p1  ;;  %p32_p4 = scmp.ge.s32.totalorder %s7819_s23, 2 }
  0x13   : > { %p123_p5 = scmp.ne.s32.totalorder %s3852_s13, %s3848_s12  ;;  %p124_p6 = scmp.eq.s32.totalorder %s3546_s21, 3 }
  0x14   : > { %s7227_s26 = scalar_select %p3957_p3, 1, 0 }
  0x15   : > { %p3547_p7 = scmp.ge.s32.totalorder %s3876_s19, 1  ;;  %s7821_s23 = smov (%p32_p4, %s7819_s23), 0 }
  0x16   : > { %7228 = sst [smem:[#allocation14_spill]] %s7821_s23  ;;  %p3966_p8 = por %p124_p6, %p123_p5 }
  0x17   : > { %p131_p9 = scmp.lt.s32.totalorder %s3876_s19, 5  ;;  %s102_s28 = ssub.s32 %s3872_s18, %s7821_s23 }
  0x18   : > { %s7229_s27 = scalar_select %p3966_p8, 1, 0 }
  0x19   : > { %s104_s29 = sor.u32 %s103_s25, %s102_s28  ;;  %p3973_p10 = pnand %p3547_p7, %p131_p9 }
  0x1a   : > { %p105_p11 = scmp.eq.s32.totalorder %s104_s29, 0  ;;  %p3977_p12 = scmp.eq.s32.totalorder %s3545_s20, 0 }
  0x1b   : > { %s7230_s30 = scalar_select %p3973_p10, 1, 0 }
  0x1c   : > { %s7231_s4 = scalar_select %p3977_p12, 1, 0 }
  0x1d   : > { %p3624_p13 = pneg %p3973_p10  ;;  %s7232_s1 = sld [smem:[#allocation207_spill]] }
  0x1e   : > { %s3987_s8 = scalar_select %p105_p11, %s3856_s14, %s107_s24  }
  0x1f   : > { %p3991_p0 = pnand %p3977_p12, %p3624_p13  ;;  %s7234_s2 = sld [smem:[#allocation208_spill]] }
  0x21   : > { %p3748_p2 = pneg %p3991_p0 }
  0x23   : > { %s144_s7 = sshll.u32 %s7232_s1, 4  ;;  %s145_s7 = int_to_ptr.vmem [resolvable:$true] %s144_s7 }
  0x24   : > { %s3746_s21 = scalar_lea.vmem %s145_s7, 48  ;;  %s3753_s24 = scalar_lea.vmem %s145_s7, 64 }
  0x25   : > { %s155_s20 = sshll.u32 %s7234_s2, 4  ;;  %p3747_p1 = scmp.ne.s32.totalorder %s145_s7, %s3746_s21  ;;  %s156_s20 = int_to_ptr.vmem [resolvable:$true] %s155_s20 }
  0x26   : > { %p3754_p6 = scmp.lt.s32.totalorder %s145_s7, %s145_s7  ;;  %p3755_p7 = scmp.lt.s32.totalorder %s3753_s24, %s3746_s21 }
  0x27   : > { %p3749_p4 = pnand %p3748_p2, %p3747_p1 }
  0x28   : > { %p3756_p9 = por %p3755_p7, %p3754_p6 }
  0x29   : > { %p3750_p5 = pneg %p3749_p4 }
  0x2b   : > { %p3757_p11 = pnand %p3756_p9, %p3750_p5 }
  0x2d   : > { %3760 = shalt.err (!%p3757_p11)
}
  0x2e   : > { %s3878_s25 = smov [#allocation2]   ;;  %s3761_s28 = scalar_lea.vmem %s156_s20, 16 }
  0x2f   : > { %3627 = dma.vmem_to_smem (!%p3991_p0), %s145_s7, 48, %s3878_s25, [#allocation4]  }
  0x30   : > { %p3762_p13 = scmp.ne.s32.totalorder %s156_s20, %s3761_s28  ;;  %p3769_p12 = scmp.lt.s32.totalorder %s156_s20, %s156_s20 }
  0x31   : > { %p3770_p1 = scmp.lt.s32.totalorder %s3761_s28, %s3761_s28 }
  0x32   : > { %p3764_p8 = pnand %p3762_p13, %p3748_p2 }
  0x33   : > { %p3771_p4 = por %p3770_p1, %p3769_p12 }
  0x34   : > { %p3765_p3 = pneg %p3764_p8 }
  0x36   : > { %p3772_p10 = pnand %p3771_p4, %p3765_p3 }
  0x38   : > { %3775 = shalt.err (!%p3772_p10)
}
  0x39   : > { %s3879_s29 = smov [#allocation5]   ;;  %p7235_p5 = scmp.ne.s32.totalorder %s7230_s30, 0 }
  0x3a   : > { %3630 = dma.vmem_to_smem (!%p3991_p0), %s156_s20, 16, %s3879_s29, [#allocation6]  }
  0x3b   : > { %176 = sbr.rel (%p7235_p5) target bundleno = 983 (0x3d7), region = 32 }
  0x40   : > { %p7236_p6 = scmp.ne.s32.totalorder %s7231_s4, 0 }
  0x42   : > { %3835 = dma.done.wait (%p7236_p6), [#allocation4], 48  }
  0x43   : > { %3837 = vsyncadd (%p7236_p6), [#allocation4], 4294967248 }
  0x44   : > { %3839 = dma.done.wait (%p7236_p6), [#allocation6], 16  }
  0x45   : > { %3841 = vsyncadd (%p7236_p6), [#allocation6], 4294967280 }
  0x46   : > { %186 = sfence }
  0x47   : > { %p205_p3 = scmp.lt.s32.totalorder %s3864_s16, 1  ;;  %s4022_s30 = smul.u32 144, %s3860_s15  ;;  %vm3392_vm0 = vcmask 261120  }
  0x48   : > { %s4025_s5 = sshll.u32 %s3860_s15, 2  ;;  %s7237_s0 = sld [smem:[#allocation206_spill]] }
  0x49   : > { %s206_s6 = scalar_select %p205_p3, %s3864_s16, 1 }
  0x4a   : > { %s263_s7 = sadd.s32 1, %s4022_s30  ;;  %s7205_s9 = sadd.s32 1, %s4025_s5 }
  0x4b   : > { %s3613_s4 = smul.u32 160, %s206_s6  ;;  %s264_s10 = sld [smem:[#allocation2 + %s263_s7]] }
  0x4c   : > { %s4032_s11 = smul.u32 36, %s7205_s9  ;;  %s7204_s20 = sadd.s32 2, %s4025_s5 }
  0x4d   : > { %s4043_s29 = smul.u32 36, %s7204_s20  ;;  %s7211_s21 = smov 127  }
  0x4e   : > { %s4038_s25 = scalar_lea.vmem %s7237_s0, %s3613_s4  ;;  %s290_s28 = sadd.s32 1, %s4032_s11 }
  0x4f   : > { %v4046_v0 = vld [vmem:[%s4038_s25 + $0x10] sm:$0xff]  ;;  %v4049_v1 = vld [vmem:[%s4038_s25] sm:$0xff]  ;;  %s291_s6 = sld [smem:[#allocation2 + %s290_s28]]  ;;  %v4052_v3 = vld [vmem:[%s4038_s25 + $0x18] sm:$0xff]  ;;  %s317_s7 = sadd.s32 1, %s4043_s29 }
  0x50   : > { %v4055_v4 = vld [vmem:[%s4038_s25 + $0x8] sm:$0xff]  ;;  %s7203_s4 = sadd.s32 3, %s4025_s5  ;;  %v4143_v49 = vld [vmem:[%s4038_s25 + $0x19] sm:$0xff]  ;;  %v4146_v50 = vld [vmem:[%s4038_s25 + $0x11] sm:$0xff]  ;;  %s483_s20 = sadd.s32 3, %s4022_s30 }
  0x51   : > { %v265_v2 = vstv %s264_s10  ;;  %s318_s10 = sld [smem:[#allocation2 + %s317_s7]]  ;;  %s4067_s24 = smul.u32 36, %s7203_s4  ;;  %v4133_v44 = vld [vmem:[%s4038_s25 + $0x9] sm:$0xff]  ;;  %v4136_v46 = vld [vmem:[%s4038_s25 + $0x1] sm:$0xff] }
  0x52   : > { %v268_v5 = vmul.f32 %v265_v2, %v4046_v0  ;;  %v266_v6 = vmul.f32 %v265_v2, %v4049_v1  ;;  %v269_v7 = vmul.f32 %v265_v2, %v4052_v3  ;;  %v267_v8 = vmul.f32 %v265_v2, %v4055_v4  ;;  %s371_s7 = sadd.s32 2, %s4022_s30  ;;  %s7206_s4 = smov 126  }
  0x53   : > { %s344_s28 = sadd.s32 1, %s4067_s24  ;;  %s872_s9 = sadd.s32 7, %s4067_s24 }
  0x54   : > { %278 = vrot.lane.b32.xlu1 %v268_v5, %s7211_s21  ;;  %274 = vrot.lane.b32.xlu0 %v266_v6, %s7211_s21  ;;  %s494_s0 = sadd.s32 3, %s4032_s11  ;;  %s780_s1 = sadd.s32 6, %s4067_s24 }
  0x55   : > { %v292_v9 = vstv %s291_s6  ;;  %s345_s6 = sld [smem:[#allocation2 + %s344_s28]]  ;;  %s398_s28 = sadd.s32 2, %s4032_s11 }
  0x56   : > { %v294_v10 = vmul.f32 %v292_v9, %v4055_v4  ;;  %v293_v11 = vmul.f32 %v292_v9, %v4049_v1  ;;  %v296_v12 = vmul.f32 %v292_v9, %v4052_v3  ;;  %v295_v13 = vmul.f32 %v292_v9, %v4046_v0  ;;  %s1012_s2 = sadd.s32 9, %s4022_s30  ;;  %s7395_s17 = smov 127  }
  0x57   : > { %v319_v14 = vstv %s318_s10  ;;  %s372_s10 = sld [smem:[#allocation2 + %s371_s7]]  ;;  %s425_s7 = sadd.s32 2, %s4043_s29 }
  0x58   : > { %280 = vrot.lane.b32.xlu1 %v269_v7, %s7211_s21  ;;  %276 = vrot.lane.b32.xlu0 %v267_v8, %s7211_s21  ;;  %v321_v15 = vmul.f32 %v319_v14, %v4055_v4  ;;  %v320_v16 = vmul.f32 %v319_v14, %v4049_v1  ;;  %v323_v17 = vmul.f32 %v319_v14, %v4052_v3  ;;  %s5267_s18 = sld [smem:[#allocation2 + %s1012_s2]]  ;;  %p7807_p10 = scmp.ne.s32.totalorder %s7227_s26, 0 }
  0x59   : > { %v322_v18 = vmul.f32 %v319_v14, %v4046_v0 }
  0x5b   : > { %v346_v19 = vstv %s345_s6  ;;  %s399_s6 = sld [smem:[#allocation2 + %s398_s28]]  ;;  %s452_s28 = sadd.s32 2, %s4067_s24 }
  0x5c   : > { %303 = vrot.lane.b32.xlu1 %v294_v10, %s7211_s21  ;;  %301 = vrot.lane.b32.xlu0 %v293_v11, %s7211_s21  ;;  %v348_v20 = vmul.f32 %v346_v19, %v4055_v4  ;;  %v347_v21 = vmul.f32 %v346_v19, %v4049_v1  ;;  %v350_v22 = vmul.f32 %v346_v19, %v4052_v3 }
  0x5d   : > { %v349_v23 = vmul.f32 %v346_v19, %v4046_v0  ;;  %v373_v24 = vstv %s372_s10  ;;  %s426_s10 = sld [smem:[#allocation2 + %s425_s7]]  ;;  %s527_s7 = sadd.s32 4, %s4022_s30 }
  0x5e   : > { %v375_v25 = vmul.f32 %v373_v24, %v4055_v4  ;;  %v374_v26 = vmul.f32 %v373_v24, %v4049_v1  ;;  %v377_v27 = vmul.f32 %v373_v24, %v4052_v3  ;;  %v376_v28 = vmul.f32 %v373_v24, %v4046_v0 }
  0x60   : > { %307 = vrot.lane.b32.xlu1 %v296_v12, %s7211_s21  ;;  %305 = vrot.lane.b32.xlu0 %v295_v13, %s7211_s21 }
  0x61   : > { %v400_v29 = vstv %s399_s6  ;;  %s453_s6 = sld [smem:[#allocation2 + %s452_s28]]  ;;  %s554_s28 = sadd.s32 4, %s4032_s11 }
  0x62   : > { %v402_v30 = vmul.f32 %v400_v29, %v4055_v4  ;;  %v401_v31 = vmul.f32 %v400_v29, %v4049_v1  ;;  %v404_v32 = vmul.f32 %v400_v29, %v4052_v3  ;;  %v403_v33 = vmul.f32 %v400_v29, %v4046_v0 }
  0x63   : > { %v427_v34 = vstv %s426_s10  ;;  %s528_s10 = sld [smem:[#allocation2 + %s527_s7]]  ;;  %s581_s7 = sadd.s32 4, %s4043_s29 }
  0x64   : > { %330 = vrot.lane.b32.xlu1 %v321_v15, %s7211_s21  ;;  %328 = vrot.lane.b32.xlu0 %v320_v16, %s7211_s21  ;;  %v429_v35 = vmul.f32 %v427_v34, %v4055_v4  ;;  %v428_v36 = vmul.f32 %v427_v34, %v4049_v1  ;;  %v431_v37 = vmul.f32 %v427_v34, %v4052_v3 }
  0x65   : > { %v430_v38 = vmul.f32 %v427_v34, %v4046_v0  ;;  %v4228_v34 = vld [vmem:[%s4038_s25 + $0x2] sm:$0xff] }
  0x67   : > { %v454_v39 = vstv %s453_s6  ;;  %s555_s6 = sld [smem:[#allocation2 + %s554_s28]]  ;;  %s608_s28 = sadd.s32 4, %s4067_s24 }
  0x68   : > { %334 = vrot.lane.b32.xlu1 %v323_v17, %s7211_s21  ;;  %332 = vrot.lane.b32.xlu0 %v322_v18, %s7211_s21  ;;  %v456_v40 = vmul.f32 %v454_v39, %v4055_v4  ;;  %v455_v41 = vmul.f32 %v454_v39, %v4049_v1  ;;  %v458_v42 = vmul.f32 %v454_v39, %v4052_v3 }
  0x69   : > { %v457_v43 = vmul.f32 %v454_v39, %v4046_v0  ;;  %v529_v45 = vstv %s528_s10  ;;  %s582_s10 = sld [smem:[#allocation2 + %s581_s7]]  ;;  %s635_s7 = sadd.s32 5, %s4022_s30  ;;  %v4239_v39 = vld [vmem:[%s4038_s25 + $0x1a] sm:$0xff] }
  0x6a   : > { %v531_v47 = vmul.f32 %v529_v45, %v4133_v44  ;;  %v530_v48 = vmul.f32 %v529_v45, %v4136_v46  ;;  %v533_v51 = vmul.f32 %v529_v45, %v4143_v49  ;;  %v532_v52 = vmul.f32 %v529_v45, %v4146_v50 }
  0x6c   : > { %357 = vrot.lane.b32.xlu1 %v348_v20, %s7211_s21  ;;  %355 = vrot.lane.b32.xlu0 %v347_v21, %s7211_s21 }
  0x6d   : > { %v556_v53 = vstv %s555_s6  ;;  %s609_s6 = sld [smem:[#allocation2 + %s608_s28]]  ;;  %s662_s28 = sadd.s32 5, %s4032_s11 }
  0x6e   : > { %v558_v54 = vmul.f32 %v556_v53, %v4133_v44  ;;  %v557_v55 = vmul.f32 %v556_v53, %v4136_v46  ;;  %v560_v56 = vmul.f32 %v556_v53, %v4143_v49  ;;  %v559_v57 = vmul.f32 %v556_v53, %v4146_v50 }
  0x6f   : > { %v583_v58 = vstv %s582_s10  ;;  %s636_s10 = sld [smem:[#allocation2 + %s635_s7]]  ;;  %s689_s7 = sadd.s32 5, %s4043_s29 }
  0x70   : > { %361 = vrot.lane.b32.xlu1 %v350_v22, %s7211_s21  ;;  %359 = vrot.lane.b32.xlu0 %v349_v23, %s7211_s21  ;;  %v585_v59 = vmul.f32 %v583_v58, %v4133_v44  ;;  %v584_v60 = vmul.f32 %v583_v58, %v4136_v46  ;;  %v587_v61 = vmul.f32 %v583_v58, %v4143_v49 }
  0x71   : > { %v586_v62 = vmul.f32 %v583_v58, %v4146_v50 }
  0x73   : > { %v610_v63 = vstv %s609_s6  ;;  %s663_s6 = sld [smem:[#allocation2 + %s662_s28]]  ;;  %s716_s28 = sadd.s32 5, %s4067_s24 }
  0x74   : > { %384 = vrot.lane.b32.xlu1 %v375_v25, %s7206_s4  ;;  %382 = vrot.lane.b32.xlu0 %v374_v26, %s7206_s4  ;;  %v612_v2 = vmul.f32 %v610_v63, %v4133_v44  ;;  %v611_v5 = vmul.f32 %v610_v63, %v4136_v46  ;;  %v614_v6 = vmul.f32 %v610_v63, %v4143_v49 }
  0x75   : > { %v613_v7 = vmul.f32 %v610_v63, %v4146_v50  ;;  %v637_v8 = vstv %s636_s10  ;;  %s690_s10 = sld [smem:[#allocation2 + %s689_s7]]  ;;  %s791_s7 = sadd.s32 7, %s4022_s30 }
  0x76   : > { %v639_v9 = vmul.f32 %v637_v8, %v4133_v44  ;;  %v638_v10 = vmul.f32 %v637_v8, %v4136_v46  ;;  %v641_v11 = vmul.f32 %v637_v8, %v4143_v49  ;;  %v640_v12 = vmul.f32 %v637_v8, %v4146_v50 }
  0x78   : > { %388 = vrot.lane.b32.xlu1 %v377_v27, %s7206_s4  ;;  %386 = vrot.lane.b32.xlu0 %v376_v28, %s7206_s4 }
  0x79   : > { %v664_v13 = vstv %s663_s6  ;;  %s717_s6 = sld [smem:[#allocation2 + %s716_s28]]  ;;  %s818_s28 = sadd.s32 7, %s4032_s11 }
  0x7a   : > { %v666_v14 = vmul.f32 %v664_v13, %v4133_v44  ;;  %v665_v15 = vmul.f32 %v664_v13, %v4136_v46  ;;  %v668_v16 = vmul.f32 %v664_v13, %v4143_v49  ;;  %v667_v17 = vmul.f32 %v664_v13, %v4146_v50 }
  0x7b   : > { %v691_v18 = vstv %s690_s10  ;;  %s792_s10 = sld [smem:[#allocation2 + %s791_s7]]  ;;  %s845_s7 = sadd.s32 7, %s4043_s29 }
  0x7c   : > { %411 = vrot.lane.b32.xlu1 %v402_v30, %s7206_s4  ;;  %409 = vrot.lane.b32.xlu0 %v401_v31, %s7206_s4  ;;  %v693_v19 = vmul.f32 %v691_v18, %v4133_v44  ;;  %v692_v20 = vmul.f32 %v691_v18, %v4136_v46  ;;  %v695_v21 = vmul.f32 %v691_v18, %v4143_v49 }
  0x7d   : > { %v694_v22 = vmul.f32 %v691_v18, %v4146_v50 }
  0x7f   : > { %v718_v23 = vstv %s717_s6  ;;  %s819_s6 = sld [smem:[#allocation2 + %s818_s28]] }
  0x80   : > { %415 = vrot.lane.b32.xlu1 %v404_v32, %s7206_s4  ;;  %413 = vrot.lane.b32.xlu0 %v403_v33, %s7206_s4  ;;  %v720_v26 = vmul.f32 %v718_v23, %v4133_v44  ;;  %v719_v27 = vmul.f32 %v718_v23, %v4136_v46  ;;  %v722_v30 = vmul.f32 %v718_v23, %v4143_v49  ;;  %v4225_v32 = vld [vmem:[%s4038_s25 + $0xa] sm:$0xff]  ;;  %s217_s28 = sld [smem:[#allocation2 + %s4022_s30]] }
  0x81   : > { %v721_v31 = vmul.f32 %v718_v23, %v4146_v50  ;;  %v793_v33 = vstv %s792_s10  ;;  %s846_s10 = sld [smem:[#allocation2 + %s845_s7]] }
  0x82   : > { %s229_s7 = sld [smem:[#allocation2 + %s4032_s11]] }
  0x84   : > { %438 = vrot.lane.b32.xlu1 %v429_v35, %s7206_s4  ;;  %436 = vrot.lane.b32.xlu0 %v428_v36, %s7206_s4 }
  0x87   : > { %v847_v58 = vstv %s846_s10  ;;  %s4293_s10 = sld [smem:[#allocation2 + %s4043_s29]] }
  0x88   : > { %442 = vrot.lane.b32.xlu1 %v431_v37, %s7206_s4  ;;  %440 = vrot.lane.b32.xlu0 %v430_v38, %s7206_s4  ;;  %v795_v37 = vmul.f32 %v793_v33, %v4225_v32  ;;  %v794_v38 = vmul.f32 %v793_v33, %v4228_v34  ;;  %v848_v63 = vmul.f32 %v847_v58, %v4228_v34 }
  0x8c   : > { %465 = vrot.lane.b32.xlu1 %v456_v40, %s7206_s4  ;;  %463 = vrot.lane.b32.xlu0 %v455_v41, %s7206_s4  ;;  %v4242_v40 = vld [vmem:[%s4038_s25 + $0x12] sm:$0xff] }
  0x8d   : > { %v796_v45 = vmul.f32 %v793_v33, %v4242_v40  ;;  %v850_v13 = vmul.f32 %v847_v58, %v4242_v40 }
  0x90   : > { %469 = vrot.lane.b32.xlu1 %v458_v42, %s7206_s4  ;;  %467 = vrot.lane.b32.xlu0 %v457_v43, %s7206_s4  ;;  %v797_v43 = vmul.f32 %v793_v33, %v4239_v39 }
  0x94   : > { %540 = vrot.lane.b32.xlu1 %v531_v47, %s7211_s21  ;;  %538 = vrot.lane.b32.xlu0 %v530_v48, %s7211_s21  ;;  %v820_v47 = vstv %s819_s6  ;;  %s484_s6 = sld [smem:[#allocation2 + %s483_s20]] }
  0x95   : > { %v821_v53 = vmul.f32 %v820_v47, %v4228_v34  ;;  %s4282_s20 = sld [smem:[#allocation2 + %s494_s0]] }
  0x98   : > { %544 = vrot.lane.b32.xlu1 %v533_v51, %s7211_s21  ;;  %542 = vrot.lane.b32.xlu0 %v532_v52, %s7211_s21  ;;  %v822_v52 = vmul.f32 %v820_v47, %v4225_v32 }
  0x9a   : > { %v485_v8 = vstv %s484_s6  ;;  %s926_s6 = sadd.s32 8, %s4032_s11 }
  0x9b   : > { %v486_v18 = vmul.f32 %v485_v8, %v4136_v46 }
  0x9c   : > { %567 = vrot.lane.b32.xlu1 %v558_v54, %s7211_s21  ;;  %565 = vrot.lane.b32.xlu0 %v557_v55, %s7211_s21 }
  0xa0   : > { %571 = vrot.lane.b32.xlu1 %v560_v56, %s7211_s21  ;;  %569 = vrot.lane.b32.xlu0 %v559_v57, %s7211_s21  ;;  %v824_v56 = vmul.f32 %v820_v47, %v4239_v39  ;;  %v823_v57 = vmul.f32 %v820_v47, %v4242_v40 }
  0xa4   : > { %594 = vrot.lane.b32.xlu1 %v585_v59, %s7211_s21  ;;  %592 = vrot.lane.b32.xlu0 %v584_v60, %s7211_s21  ;;  %v218_v59 = vstv %s217_s28  ;;  %s505_s28 = sadd.s32 3, %s4043_s29 }
  0xa8   : > { %598 = vrot.lane.b32.xlu1 %v587_v61, %s7211_s21  ;;  %596 = vrot.lane.b32.xlu0 %v586_v62, %s7211_s21  ;;  %v849_v62 = vmul.f32 %v847_v58, %v4225_v32 }
  0xac   : > { %621 = vrot.lane.b32.xlu1 %v612_v2, %s7211_s21  ;;  %619 = vrot.lane.b32.xlu0 %v611_v5, %s7211_s21  ;;  %v219_v2 = vmul.f32 %v218_v59, %v4049_v1  ;;  %v220_v5 = vmul.f32 %v218_v59, %v4055_v4 }
  0xb0   : > { %625 = vrot.lane.b32.xlu1 %v614_v6, %s7211_s21  ;;  %623 = vrot.lane.b32.xlu0 %v613_v7, %s7211_s21 }
  0xb4   : > { %648 = vrot.lane.b32.xlu1 %v639_v9, %s7206_s4  ;;  %646 = vrot.lane.b32.xlu0 %v638_v10, %s7206_s4  ;;  %v221_v9 = vmul.f32 %v218_v59, %v4046_v0  ;;  %v230_v10 = vstv %s229_s7  ;;  %s4329_s7 = sld [smem:[#allocation2 + %s4067_s24]] }
  0xb5   : > { %v233_v47 = vmul.f32 %v230_v10, %v4046_v0 }
  0xb8   : > { %652 = vrot.lane.b32.xlu1 %v641_v11, %s7206_s4  ;;  %650 = vrot.lane.b32.xlu0 %v640_v12, %s7206_s4  ;;  %v222_v11 = vmul.f32 %v218_v59, %v4052_v3  ;;  %v851_v12 = vmul.f32 %v847_v58, %v4239_v39 }
  0xbc   : > { %675 = vrot.lane.b32.xlu1 %v666_v14, %s7206_s4  ;;  %673 = vrot.lane.b32.xlu0 %v665_v15, %s7206_s4 }
  0xc0   : > { %679 = vrot.lane.b32.xlu1 %v668_v16, %s7206_s4  ;;  %677 = vrot.lane.b32.xlu0 %v667_v17, %s7206_s4  ;;  %v487_v17 = vmul.f32 %v485_v8, %v4133_v44 }
  0xc4   : > { %702 = vrot.lane.b32.xlu1 %v693_v19, %s7206_s4  ;;  %700 = vrot.lane.b32.xlu0 %v692_v20, %s7206_s4  ;;  %v232_v19 = vmul.f32 %v230_v10, %v4055_v4 }
  0xc6   : > { %v4207_v24 = vpop.permute.xlu1 %278  ;;  %v4209_v25 = vpop.permute.xlu0 %274 }
  0xc7   : > { %v286_v15 = vadd.f32 %v4209_v25, %v219_v2  ;;  %v288_v33 = vadd.f32 %v4207_v24, %v221_v9 }
  0xc8   : > { %706 = vrot.lane.b32.xlu1 %v695_v21, %s7206_s4  ;;  %704 = vrot.lane.b32.xlu0 %v694_v22, %s7206_s4  ;;  %v231_v22 = vmul.f32 %v230_v10, %v4049_v1 }
  0xca   : > { %v4215_v28 = vpop.permute.xlu1 %280  ;;  %v4217_v29 = vpop.permute.xlu0 %276 }
  0xcb   : > { %v287_v16 = vadd.f32 %v4217_v29, %v220_v5  ;;  %v489_v29 = vmul.f32 %v485_v8, %v4143_v49 }
  0xcc   : > { %729 = vrot.lane.b32.xlu1 %v720_v26, %s7206_s4  ;;  %727 = vrot.lane.b32.xlu0 %v719_v27, %s7206_s4 }
  0xce   : > { %v4230_v35 = vpop.permute.xlu1 %303  ;;  %v4232_v36 = vpop.permute.xlu0 %301 }
  0xcf   : > { %v314_v2 = vadd.f32 %v4230_v35, %v232_v19  ;;  %v313_v5 = vadd.f32 %v4232_v36, %v231_v22 }
  0xd0   : > { %733 = vrot.lane.b32.xlu1 %v722_v30, %s7206_s4  ;;  %731 = vrot.lane.b32.xlu0 %v721_v31, %s7206_s4  ;;  %s873_s4 = sld [smem:[#allocation2 + %s872_s9]]  ;;  %s899_s9 = sadd.s32 8, %s4022_s30  ;;  %v488_v30 = vmul.f32 %v485_v8, %v4146_v50  ;;  %v496_v31 = vstv %s4282_s20 }
  0xd1   : > { %s4300_s0 = sld [smem:[#allocation2 + %s899_s9]]  ;;  %s516_s9 = sadd.s32 3, %s4067_s24  ;;  %v500_v36 = vmul.f32 %v496_v31, %v4143_v49 }
  0xd2   : > { %v4244_v41 = vpop.permute.xlu1 %307  ;;  %v4246_v42 = vpop.permute.xlu0 %305  ;;  %s4336_s20 = sld [smem:[#allocation2 + %s926_s6]]  ;;  %s980_s6 = sadd.s32 8, %s4067_s24 }
  0xd4   : > { %804 = vrot.lane.b32.xlu1 %v795_v37, %s7211_s21  ;;  %802 = vrot.lane.b32.xlu0 %v794_v38, %s7211_s21  ;;  %v289_v37 = vadd.f32 %v4215_v28, %v222_v11 }
  0xd6   : > { %v4254_v48 = vpop.permute.xlu1 %330  ;;  %v4256_v51 = vpop.permute.xlu0 %328  ;;  %v874_v14 = vstv %s873_s4  ;;  %s4316_s4 = sld [smem:[#allocation2 + %s505_s28]]  ;;  %s7238_s28 = smov 126  }
  0xd7   : > { %v876_v27 = vmul.f32 %v874_v14, %v4225_v32  ;;  %v875_v25 = vmul.f32 %v874_v14, %v4228_v34  ;;  %v878_v28 = vmul.f32 %v874_v14, %v4239_v39  ;;  %v877_v58 = vmul.f32 %v874_v14, %v4242_v40 }
  0xd8   : > { %808 = vrot.lane.b32.xlu1 %v797_v43, %s7211_s21  ;;  %806 = vrot.lane.b32.xlu0 %v796_v45, %s7211_s21  ;;  %v234_v45 = vmul.f32 %v230_v10, %v4052_v3  ;;  %v901_v59 = vstv %s4300_s0  ;;  %s953_s0 = sadd.s32 8, %s4043_s29 }
  0xd9   : > { %v902_v35 = vmul.f32 %v901_v59, %v4228_v34 }
  0xda   : > { %v4264_v54 = vpop.permute.xlu1 %334  ;;  %v4266_v55 = vpop.permute.xlu0 %332  ;;  %v316_v19 = vadd.f32 %v4244_v41, %v234_v45  ;;  %v904_v41 = vmul.f32 %v901_v59, %v4242_v40 }
  0xdc   : > { %831 = vrot.lane.b32.xlu1 %v822_v52, %s7211_s21  ;;  %829 = vrot.lane.b32.xlu0 %v821_v53, %s7211_s21 }
  0xde   : > { %v4274_v60 = vpop.permute.xlu1 %357  ;;  %v4276_v61 = vpop.permute.xlu0 %355 }
  0xe0   : > { %835 = vrot.lane.b32.xlu1 %v824_v56, %s7211_s21  ;;  %833 = vrot.lane.b32.xlu0 %v823_v57, %s7211_s21  ;;  %v242_v56 = vstv %s4293_s10  ;;  %s4356_s10 = sld [smem:[#allocation2 + %s516_s9]] }
  0xe1   : > { %v244_v10 = vmul.f32 %v242_v56, %v4055_v4 }
  0xe2   : > { %v4287_v6 = vpop.permute.xlu1 %361  ;;  %v4289_v7 = vpop.permute.xlu0 %359 }
  0xe4   : > { %858 = vrot.lane.b32.xlu1 %v849_v62, %s7211_s21  ;;  %856 = vrot.lane.b32.xlu0 %v848_v63, %s7211_s21  ;;  %v498_v62 = vmul.f32 %v496_v31, %v4133_v44  ;;  %v497_v63 = vmul.f32 %v496_v31, %v4136_v46 }
  0xe6   : > { %v385_v20 = vpop.permute.xlu1 %384  ;;  %v383_v21 = vpop.permute.xlu0 %382 }
  0xe7   : > { %v395_v23 = vadd.f32 %v385_v20, %v287_v16  ;;  %v394_v26 = vadd.f32 %v383_v21, %v286_v15  ;;  %v903_v16 = vmul.f32 %v901_v59, %v4225_v32  ;;  %v315_v20 = vadd.f32 %v4246_v42, %v233_v47 }
  0xe8   : > { %862 = vrot.lane.b32.xlu1 %v851_v12, %s7211_s21  ;;  %860 = vrot.lane.b32.xlu0 %v850_v13, %s7211_s21  ;;  %v243_v13 = vmul.f32 %v242_v56, %v4049_v1  ;;  %v928_v42 = vstv %s4336_s20  ;;  %v341_v47 = vadd.f32 %v4254_v48, %v244_v10  ;;  %s1056_s20 = sadd.s32 10, %s4022_s30 }
  0xe9   : > { %v4321_v38 = vadd.f32 %v487_v17, %v395_v23  ;;  %v4323_v43 = vadd.f32 %v486_v18, %v394_v26  ;;  %v499_v17 = vmul.f32 %v496_v31, %v4146_v50  ;;  %v507_v18 = vstv %s4316_s4  ;;  %s4373_s4 = sld [smem:[#allocation2 + %s953_s0]] }
  0xea   : > { %v389_v52 = vpop.permute.xlu1 %388  ;;  %v387_v53 = vpop.permute.xlu0 %386  ;;  %v246_v23 = vmul.f32 %v242_v56, %v4052_v3  ;;  %v245_v26 = vmul.f32 %v242_v56, %v4046_v0  ;;  %v508_v45 = vmul.f32 %v507_v18, %v4136_v46  ;;  %v929_v48 = vmul.f32 %v928_v42, %v4228_v34  ;;  %s1057_s9 = sld [smem:[#allocation2 + %s1056_s20]] }
  0xeb   : > { %v397_v57 = vadd.f32 %v389_v52, %v289_v37  ;;  %v396_v24 = vadd.f32 %v387_v53, %v288_v33  ;;  %v905_v33 = vmul.f32 %v901_v59, %v4239_v39  ;;  %v509_v37 = vmul.f32 %v507_v18, %v4133_v44 }
  0xec   : > { %885 = vrot.lane.b32.xlu1 %v876_v27, %s7211_s21  ;;  %883 = vrot.lane.b32.xlu0 %v875_v25, %s7211_s21  ;;  %v340_v52 = vadd.f32 %v4256_v51, %v243_v13  ;;  %v511_v51 = vmul.f32 %v507_v18, %v4143_v49 }
  0xed   : > { %v4342_v8 = vadd.f32 %v489_v29, %v397_v57  ;;  %v4344_v9 = vadd.f32 %v488_v30, %v396_v24  ;;  %v254_v29 = vstv %s4329_s7  ;;  %s981_s7 = sld [smem:[#allocation2 + %s980_s6]] }
  0xee   : > { %v412_v11 = vpop.permute.xlu1 %411  ;;  %v410_v12 = vpop.permute.xlu0 %409  ;;  %v256_v57 = vmul.f32 %v254_v29, %v4055_v4  ;;  %v518_v4 = vstv %s4356_s10  ;;  %s1083_s10 = sadd.s32 10, %s4032_s11 }
  0xef   : > { %v422_v14 = vadd.f32 %v412_v11, %v314_v2  ;;  %v421_v15 = vadd.f32 %v410_v12, %v313_v5  ;;  %v510_v2 = vmul.f32 %v507_v18, %v4146_v50  ;;  %v343_v5 = vadd.f32 %v4264_v54, %v246_v23  ;;  %s1084_s0 = sld [smem:[#allocation2 + %s1083_s10]] }
  0xf0   : > { %889 = vrot.lane.b32.xlu1 %v878_v28, %s7211_s21  ;;  %887 = vrot.lane.b32.xlu0 %v877_v58, %s7211_s21  ;;  %v255_v58 = vmul.f32 %v254_v29, %v4049_v1  ;;  %v342_v1 = vadd.f32 %v4266_v55, %v245_v26  ;;  %v258_v12 = vmul.f32 %v254_v29, %v4052_v3  ;;  %v955_v55 = vstv %s4373_s4  ;;  %s1110_s4 = sadd.s32 10, %s4043_s29 }
  0xf1   : > { %v4361_v21 = vadd.f32 %v498_v62, %v422_v14  ;;  %v4363_v22 = vadd.f32 %v497_v63, %v421_v15  ;;  %v930_v63 = vmul.f32 %v928_v42, %v4225_v32  ;;  %v257_v15 = vmul.f32 %v254_v29, %v4046_v0  ;;  %s1111_s6 = sld [smem:[#allocation2 + %s1110_s4]] }
  0xf2   : > { %v416_v27 = vpop.permute.xlu1 %415  ;;  %v414_v25 = vpop.permute.xlu0 %413  ;;  %v931_v54 = vmul.f32 %v928_v42, %v4242_v40  ;;  %v519_v3 = vmul.f32 %v518_v4, %v4136_v46  ;;  %v368_v18 = vadd.f32 %v4274_v60, %v256_v57  ;;  %v957_v29 = vmul.f32 %v955_v55, %v4225_v32 }
  0xf3   : > { %v424_v30 = vadd.f32 %v416_v27, %v316_v19  ;;  %v423_v31 = vadd.f32 %v414_v25, %v315_v20  ;;  %v367_v19 = vadd.f32 %v4276_v61, %v255_v58  ;;  %v522_v46 = vmul.f32 %v518_v4, %v4143_v49 }
  0xf4   : > { %912 = vrot.lane.b32.xlu1 %v903_v16, %s7238_s28  ;;  %910 = vrot.lane.b32.xlu0 %v902_v35, %s7238_s28  ;;  %v521_v60 = vmul.f32 %v518_v4, %v4146_v50  ;;  %v370_v61 = vadd.f32 %v4287_v6, %v258_v12  ;;  %v959_v49 = vmul.f32 %v955_v55, %v4239_v39  ;;  %v982_v6 = vstv %s981_s7  ;;  %s1137_s7 = sadd.s32 10, %s4067_s24 }
  0xf5   : > { %v4379_v53 = vadd.f32 %v500_v36, %v424_v30  ;;  %v4381_v56 = vadd.f32 %v499_v17, %v423_v31  ;;  %v932_v36 = vmul.f32 %v928_v42, %v4239_v39  ;;  %v520_v17 = vmul.f32 %v518_v4, %v4133_v44  ;;  %s1138_s20 = sld [smem:[#allocation2 + %s1137_s7]] }
  0xf6   : > { %v439_v24 = vpop.permute.xlu1 %438  ;;  %v437_v28 = vpop.permute.xlu0 %436  ;;  %v956_v44 = vmul.f32 %v955_v55, %v4228_v34  ;;  %v369_v30 = vadd.f32 %v4289_v7, %v257_v15  ;;  %v958_v50 = vmul.f32 %v955_v55, %v4242_v40  ;;  %v1085_v15 = vstv %s1084_s0  ;;  %s1191_s0 = sadd.s32 11, %s4032_s11 }
  0xf7   : > { %v449_v59 = vadd.f32 %v439_v24, %v341_v47  ;;  %v448_v62 = vadd.f32 %v437_v28, %v340_v52  ;;  %v984_v24 = vmul.f32 %v982_v6, %v4225_v32  ;;  %v983_v28 = vmul.f32 %v982_v6, %v4228_v34  ;;  %v4456_v34 = vld [vmem:[%s4038_s25 + $0x28] sm:$0xff]  ;;  %s1192_s4 = sld [smem:[#allocation2 + %s1191_s0]] }
  0xf8   : > { %916 = vrot.lane.b32.xlu1 %v905_v33, %s7238_s28  ;;  %914 = vrot.lane.b32.xlu0 %v904_v41, %s7238_s28  ;;  %v1058_v32 = vstv %s1057_s9  ;;  %s1164_s9 = sadd.s32 11, %s4022_s30 }
  0xf9   : > { %v4394_v10 = vadd.f32 %v509_v37, %v449_v59  ;;  %v4396_v11 = vadd.f32 %v508_v45, %v448_v62  ;;  %v986_v62 = vmul.f32 %v982_v6, %v4239_v39  ;;  %v1059_v39 = vmul.f32 %v4456_v34, %v1058_v32  ;;  %s1165_s10 = sld [smem:[#allocation2 + %s1164_s9]] }
  0xfa   : > { %v443_v13 = vpop.permute.xlu1 %442  ;;  %v441_v14 = vpop.permute.xlu0 %440 }
  0xfb   : > { %v451_v16 = vadd.f32 %v443_v13, %v343_v5  ;;  %v450_v35 = vadd.f32 %v441_v14, %v342_v1  ;;  %v4467_v5 = vld [vmem:[%s4038_s25 + $0x40] sm:$0xff] }
  0xfc   : > { %939 = vrot.lane.b32.xlu1 %v930_v63, %s7238_s28  ;;  %937 = vrot.lane.b32.xlu0 %v929_v48, %s7238_s28  ;;  %v985_v63 = vmul.f32 %v982_v6, %v4242_v40  ;;  %v4453_v48 = vld [vmem:[%s4038_s25 + $0x30] sm:$0xff]  ;;  %v4470_v40 = vld [vmem:[%s4038_s25 + $0x38] sm:$0xff]  ;;  %v1062_v13 = vmul.f32 %v4467_v5, %v1058_v32 }
  0xfd   : > { %v4410_v0 = vadd.f32 %v511_v51, %v451_v16  ;;  %v4412_v20 = vadd.f32 %v510_v2, %v450_v35  ;;  %v1060_v4 = vmul.f32 %v4453_v48, %v1058_v32  ;;  %v1061_v14 = vmul.f32 %v4470_v40, %v1058_v32 }
  0xfe   : > { %v466_v23 = vpop.permute.xlu1 %465  ;;  %v464_v26 = vpop.permute.xlu0 %463 }
  0xff   : > { %v476_v27 = vadd.f32 %v466_v23, %v368_v18  ;;  %v475_v25 = vadd.f32 %v464_v26, %v367_v19  ;;  %v1088_v18 = vmul.f32 %v4470_v40, %v1085_v15  ;;  %v1112_v19 = vstv %s1111_s6  ;;  %s1218_s6 = sadd.s32 11, %s4043_s29 }
 0x100   : > { %943 = vrot.lane.b32.xlu1 %v932_v36, %s7238_s28  ;;  %941 = vrot.lane.b32.xlu0 %v931_v54, %s7238_s28  ;;  %v1087_v36 = vmul.f32 %v4453_v48, %v1085_v15  ;;  %v1086_v54 = vmul.f32 %v4456_v34, %v1085_v15  ;;  %s1219_s7 = sld [smem:[#allocation2 + %s1218_s6]] }
 0x101   : > { %v4422_v31 = vadd.f32 %v520_v17, %v476_v27  ;;  %v4424_v33 = vadd.f32 %v519_v3, %v475_v25  ;;  %v1089_v3 = vmul.f32 %v4467_v5, %v1085_v15  ;;  %v1114_v27 = vmul.f32 %v4453_v48, %v1112_v19 }
 0x102   : > { %v470_v41 = vpop.permute.xlu1 %469  ;;  %v468_v42 = vpop.permute.xlu0 %467  ;;  %v1113_v25 = vmul.f32 %v4456_v34, %v1112_v19  ;;  %v1193_v15 = vstv %s1192_s4  ;;  %s1347_s4 = sadd.s32 13, %s4032_s11 }
 0x103   : > { %v478_v37 = vadd.f32 %v470_v41, %v370_v61  ;;  %v477_v45 = vadd.f32 %v468_v42, %v369_v30  ;;  %v1139_v61 = vstv %s1138_s20  ;;  %s1245_s20 = sadd.s32 11, %s4067_s24  ;;  %s1348_s6 = sld [smem:[#allocation2 + %s1347_s4]] }
 0x104   : > { %966 = vrot.lane.b32.xlu1 %v957_v29, %s7238_s28  ;;  %964 = vrot.lane.b32.xlu0 %v956_v44, %s7238_s28  ;;  %v1141_v42 = vmul.f32 %v4453_v48, %v1139_v61  ;;  %v1142_v6 = vmul.f32 %v4470_v40, %v1139_v61  ;;  %s1246_s9 = sld [smem:[#allocation2 + %s1245_s20]] }
 0x105   : > { %v4431_v7 = vadd.f32 %v522_v46, %v478_v37  ;;  %v4433_v47 = vadd.f32 %v521_v60, %v477_v45  ;;  %v1116_v46 = vmul.f32 %v4467_v5, %v1112_v19  ;;  %v1115_v60 = vmul.f32 %v4470_v40, %v1112_v19 }
 0x106   : > { %v4435_v52 = vpop.permute.xlu1 %540  ;;  %v4437_v57 = vpop.permute.xlu0 %538  ;;  %v1140_v37 = vmul.f32 %v4456_v34, %v1139_v61 }
 0x108   : > { %970 = vrot.lane.b32.xlu1 %v959_v49, %s7238_s28  ;;  %968 = vrot.lane.b32.xlu0 %v958_v50, %s7238_s28  ;;  %v1143_v50 = vmul.f32 %v4467_v5, %v1139_v61 }
 0x10a   : > { %v4443_v58 = vpop.permute.xlu1 %544  ;;  %v4445_v59 = vpop.permute.xlu0 %542 }
 0x10c   : > { %993 = vrot.lane.b32.xlu1 %v984_v24, %s7238_s28  ;;  %991 = vrot.lane.b32.xlu0 %v983_v28, %s7238_s28  ;;  %v1166_v24 = vstv %s1165_s10  ;;  %s1320_s10 = sadd.s32 13, %s4022_s30 }
 0x10d   : > { %v1167_v32 = vmul.f32 %v4456_v34, %v1166_v24  ;;  %s1321_s0 = sld [smem:[#allocation2 + %s1320_s10]] }
 0x10e   : > { %v4458_v51 = vpop.permute.xlu1 %567  ;;  %v4460_v2 = vpop.permute.xlu0 %565 }
 0x110   : > { %997 = vrot.lane.b32.xlu1 %v986_v62, %s7238_s28  ;;  %995 = vrot.lane.b32.xlu0 %v985_v63, %s7238_s28  ;;  %v1168_v63 = vmul.f32 %v4453_v48, %v1166_v24 }
 0x112   : > { %v4472_v1 = vpop.permute.xlu1 %571  ;;  %v4474_v12 = vpop.permute.xlu0 %569 }
 0x114   : > { %1069 = vrot.lane.b32.xlu1 %v1060_v4, %s7211_s21  ;;  %1067 = vrot.lane.b32.xlu0 %v1059_v39, %s7211_s21 }
 0x116   : > { %v4481_v16 = vpop.permute.xlu1 %594  ;;  %v4483_v35 = vpop.permute.xlu0 %592 }
 0x118   : > { %1073 = vrot.lane.b32.xlu1 %v1062_v13, %s7211_s21  ;;  %1071 = vrot.lane.b32.xlu0 %v1061_v14, %s7211_s21  ;;  %v1170_v13 = vmul.f32 %v4467_v5, %v1166_v24  ;;  %v1169_v14 = vmul.f32 %v4470_v40, %v1166_v24 }
 0x11a   : > { %v4489_v55 = vpop.permute.xlu1 %598  ;;  %v4491_v17 = vpop.permute.xlu0 %596 }
 0x11c   : > { %1096 = vrot.lane.b32.xlu1 %v1087_v36, %s7211_s21  ;;  %1094 = vrot.lane.b32.xlu0 %v1086_v54, %s7211_s21 }
 0x11e   : > { %v4498_v23 = vpop.permute.xlu1 %621  ;;  %v4500_v26 = vpop.permute.xlu0 %619 }
 0x120   : > { %1100 = vrot.lane.b32.xlu1 %v1089_v3, %s7211_s21  ;;  %1098 = vrot.lane.b32.xlu0 %v1088_v18, %s7211_s21  ;;  %v1195_v3 = vmul.f32 %v4453_v48, %v1193_v15  ;;  %v1194_v18 = vmul.f32 %v4456_v34, %v1193_v15 }
 0x122   : > { %v4506_v29 = vpop.permute.xlu1 %625  ;;  %v4508_v44 = vpop.permute.xlu0 %623 }
 0x124   : > { %1123 = vrot.lane.b32.xlu1 %v1114_v27, %s7211_s21  ;;  %1121 = vrot.lane.b32.xlu0 %v1113_v25, %s7211_s21  ;;  %v1197_v25 = vmul.f32 %v4467_v5, %v1193_v15 }
 0x126   : > { %v4515_v30 = vpop.permute.xlu1 %648  ;;  %v4517_v41 = vpop.permute.xlu0 %646 }
 0x128   : > { %1127 = vrot.lane.b32.xlu1 %v1116_v46, %s7211_s21  ;;  %1125 = vrot.lane.b32.xlu0 %v1115_v60, %s7211_s21  ;;  %v1196_v46 = vmul.f32 %v4470_v40, %v1193_v15  ;;  %v1220_v60 = vstv %s1219_s7  ;;  %s1374_s7 = sadd.s32 13, %s4043_s29 }
 0x129   : > { %s1375_s20 = sld [smem:[#allocation2 + %s1374_s7]] }
 0x12a   : > { %v4523_v45 = vpop.permute.xlu1 %652  ;;  %v4525_v49 = vpop.permute.xlu0 %650 }
 0x12c   : > { %1150 = vrot.lane.b32.xlu1 %v1141_v42, %s7211_s21  ;;  %1148 = vrot.lane.b32.xlu0 %v1140_v37, %s7211_s21  ;;  %v1222_v37 = vmul.f32 %v4453_v48, %v1220_v60 }
 0x12e   : > { %v4532_v28 = vpop.permute.xlu1 %675  ;;  %v4534_v62 = vpop.permute.xlu0 %673 }
 0x130   : > { %1154 = vrot.lane.b32.xlu1 %v1143_v50, %s7211_s21  ;;  %1152 = vrot.lane.b32.xlu0 %v1142_v6, %s7211_s21  ;;  %v1221_v50 = vmul.f32 %v4456_v34, %v1220_v60 }
 0x132   : > { %v4540_v4 = vpop.permute.xlu1 %679  ;;  %v4542_v39 = vpop.permute.xlu0 %677 }
 0x133   : > { %7239 = vst [vmem:[#allocation15_spill] sm:$0xff] %v4540_v4  ;;  %7240 = vst [vmem:[#allocation16_spill] sm:$0xff] %v4542_v39 }
 0x134   : > { %1177 = vrot.lane.b32.xlu1 %v1168_v63, %s7238_s28  ;;  %1175 = vrot.lane.b32.xlu0 %v1167_v32, %s7238_s28  ;;  %v1224_v63 = vmul.f32 %v4467_v5, %v1220_v60  ;;  %v1223_v32 = vmul.f32 %v4470_v40, %v1220_v60 }
 0x136   : > { %v4549_v36 = vpop.permute.xlu1 %702  ;;  %v4551_v54 = vpop.permute.xlu0 %700 }
 0x137   : > { %7241 = vst [vmem:[#allocation17_spill] sm:$0xff] %v4549_v36  ;;  %7242 = vst [vmem:[#allocation18_spill] sm:$0xff] %v4551_v54  ;;  %v1014_v36 = vstv %s5267_s18  ;;  %s1276_s18 = sadd.s32 12, %s4022_s30 }
 0x138   : > { %1181 = vrot.lane.b32.xlu1 %v1170_v13, %s7238_s28  ;;  %1179 = vrot.lane.b32.xlu0 %v1169_v14, %s7238_s28  ;;  %v1247_v13 = vstv %s1246_s9  ;;  %s1401_s9 = sadd.s32 13, %s4067_s24 }
 0x139   : > { %v1251_v60 = vmul.f32 %v4467_v5, %v1247_v13  ;;  %s1402_s10 = sld [smem:[#allocation2 + %s1401_s9]] }
 0x13a   : > { %v4557_v19 = vpop.permute.xlu1 %706  ;;  %v4559_v27 = vpop.permute.xlu0 %704 }
 0x13b   : > { %7243 = vst [vmem:[#allocation19_spill] sm:$0xff] %v4557_v19  ;;  %7244 = vst [vmem:[#allocation20_spill] sm:$0xff] %v4559_v27 }
 0x13c   : > { %1204 = vrot.lane.b32.xlu1 %v1195_v3, %s7238_s28  ;;  %1202 = vrot.lane.b32.xlu0 %v1194_v18, %s7238_s28  ;;  %v1249_v3 = vmul.f32 %v4453_v48, %v1247_v13  ;;  %v1248_v18 = vmul.f32 %v4456_v34, %v1247_v13  ;;  %v1322_v48 = vstv %s1321_s0  ;;  %v4604_v34 = vld [vmem:[%s4038_s25 + $0x29] sm:$0xff]  ;;  %s1428_s0 = sadd.s32 14, %s4022_s30 }
 0x13d   : > { %v1323_v5 = vmul.f32 %v4604_v34, %v1322_v48  ;;  %s1429_s4 = sld [smem:[#allocation2 + %s1428_s0]] }
 0x13e   : > { %v4566_v61 = vpop.permute.xlu1 %729  ;;  %v4568_v42 = vpop.permute.xlu0 %727 }
 0x13f   : > { %7245 = vst [vmem:[#allocation21_spill] sm:$0xff] %v4566_v61  ;;  %7246 = vst [vmem:[#allocation22_spill] sm:$0xff] %v4568_v42 }
 0x140   : > { %1208 = vrot.lane.b32.xlu1 %v1197_v25, %s7238_s28  ;;  %1206 = vrot.lane.b32.xlu0 %v1196_v46, %s7238_s28 }
 0x142   : > { %v4574_v6 = vpop.permute.xlu1 %733  ;;  %v4576_v24 = vpop.permute.xlu0 %731 }
 0x143   : > { %7247 = vst [vmem:[#allocation23_spill] sm:$0xff] %v4574_v6  ;;  %7248 = vst [vmem:[#allocation24_spill] sm:$0xff] %v4576_v24 }
 0x144   : > { %1231 = vrot.lane.b32.xlu1 %v1222_v37, %s7238_s28  ;;  %1229 = vrot.lane.b32.xlu0 %v1221_v50, %s7238_s28  ;;  %v1250_v37 = vmul.f32 %v4470_v40, %v1247_v13  ;;  %v4601_v50 = vld [vmem:[%s4038_s25 + $0x31] sm:$0xff]  ;;  %v4618_v40 = vld [vmem:[%s4038_s25 + $0x39] sm:$0xff] }
 0x146   : > { %v4583_v14 = vpop.permute.xlu1 %804  ;;  %v4585_v15 = vpop.permute.xlu0 %802 }
 0x147   : > { %7249 = vst [vmem:[#allocation25_spill] sm:$0xff] %v4583_v14  ;;  %7250 = vst [vmem:[#allocation26_spill] sm:$0xff] %v4585_v15  ;;  %v3711_v15 = vld [vmem:[%s4038_s25 + $0x2] sm:$0xff] }
 0x148   : > { %1235 = vrot.lane.b32.xlu1 %v1224_v63, %s7238_s28  ;;  %1233 = vrot.lane.b32.xlu0 %v1223_v32, %s7238_s28 }
 0x14a   : > { %v4591_v25 = vpop.permute.xlu1 %808  ;;  %v4593_v46 = vpop.permute.xlu0 %806 }
 0x14b   : > { %7251 = vst [vmem:[#allocation27_spill] sm:$0xff] %v4591_v25  ;;  %7252 = vst [vmem:[#allocation28_spill] sm:$0xff] %v4593_v46 }
 0x14c   : > { %1258 = vrot.lane.b32.xlu1 %v1249_v3, %s7238_s28  ;;  %1256 = vrot.lane.b32.xlu0 %v1248_v18, %s7238_s28  ;;  %v1324_v3 = vmul.f32 %v4601_v50, %v1322_v48  ;;  %v4615_v18 = vld [vmem:[%s4038_s25 + $0x41] sm:$0xff] }
 0x14e   : > { %v4606_v63 = vpop.permute.xlu1 %831  ;;  %v4608_v32 = vpop.permute.xlu0 %829 }
 0x14f   : > { %7253 = vst [vmem:[#allocation29_spill] sm:$0xff] %v4606_v63  ;;  %7254 = vst [vmem:[#allocation30_spill] sm:$0xff] %v4608_v32  ;;  %v1349_v32 = vstv %s1348_s6  ;;  %s1455_s6 = sadd.s32 14, %s4032_s11 }
 0x150   : > { %1262 = vrot.lane.b32.xlu1 %v1251_v60, %s7238_s28  ;;  %1260 = vrot.lane.b32.xlu0 %v1250_v37, %s7238_s28  ;;  %v1326_v60 = vmul.f32 %v4615_v18, %v1322_v48  ;;  %v1325_v37 = vmul.f32 %v4618_v40, %v1322_v48  ;;  %v1353_v48 = vmul.f32 %v4615_v18, %v1349_v32  ;;  %s1456_s7 = sld [smem:[#allocation2 + %s1455_s6]] }
 0x152   : > { %v4620_v13 = vpop.permute.xlu1 %835  ;;  %v4622_v46 = vpop.permute.xlu0 %833 }
 0x153   : > { %7255 = vst [vmem:[#allocation31_spill] sm:$0xff] %v4620_v13  ;;  %7256 = vst [vmem:[#allocation32_spill] sm:$0xff] %v4622_v46  ;;  %v1351_v46 = vmul.f32 %v4601_v50, %v1349_v32 }
 0x154   : > { %1333 = vrot.lane.b32.xlu1 %v1324_v3, %s7211_s21  ;;  %1331 = vrot.lane.b32.xlu0 %v1323_v5, %s7211_s21  ;;  %v1350_v3 = vmul.f32 %v4604_v34, %v1349_v32 }
 0x156   : > { %v4629_v63 = vpop.permute.xlu1 %858  ;;  %v4631_v25 = vpop.permute.xlu0 %856 }
 0x157   : > { %7257 = vst [vmem:[#allocation33_spill] sm:$0xff] %v4629_v63  ;;  %7258 = vst [vmem:[#allocation34_spill] sm:$0xff] %v4631_v25  ;;  %v1376_v25 = vstv %s1375_s20  ;;  %s1482_s20 = sadd.s32 14, %s4043_s29 }
 0x158   : > { %1337 = vrot.lane.b32.xlu1 %v1326_v60, %s7211_s21  ;;  %1335 = vrot.lane.b32.xlu0 %v1325_v37, %s7211_s21  ;;  %v1352_v60 = vmul.f32 %v4618_v40, %v1349_v32  ;;  %v1380_v32 = vmul.f32 %v4615_v18, %v1376_v25  ;;  %s1483_s9 = sld [smem:[#allocation2 + %s1482_s20]] }
 0x15a   : > { %v4637_v13 = vpop.permute.xlu1 %862  ;;  %v4639_v5 = vpop.permute.xlu0 %860 }
 0x15b   : > { %7259 = vst [vmem:[#allocation35_spill] sm:$0xff] %v4637_v13  ;;  %7260 = vst [vmem:[#allocation36_spill] sm:$0xff] %v4639_v5  ;;  %v1378_v5 = vmul.f32 %v4601_v50, %v1376_v25 }
 0x15c   : > { %1360 = vrot.lane.b32.xlu1 %v1351_v46, %s7211_s21  ;;  %1358 = vrot.lane.b32.xlu0 %v1350_v3, %s7211_s21  ;;  %v1377_v46 = vmul.f32 %v4604_v34, %v1376_v25 }
 0x15e   : > { %v4646_v37 = vpop.permute.xlu1 %885  ;;  %v4648_v63 = vpop.permute.xlu0 %883 }
 0x15f   : > { %7261 = vst [vmem:[#allocation37_spill] sm:$0xff] %v4646_v37  ;;  %7262 = vst [vmem:[#allocation38_spill] sm:$0xff] %v4648_v63  ;;  %v1403_v63 = vstv %s1402_s10  ;;  %s1509_s10 = sadd.s32 14, %s4067_s24 }
 0x160   : > { %1364 = vrot.lane.b32.xlu1 %v1353_v48, %s7211_s21  ;;  %1362 = vrot.lane.b32.xlu0 %v1352_v60, %s7211_s21  ;;  %v1379_v48 = vmul.f32 %v4618_v40, %v1376_v25  ;;  %v1407_v25 = vmul.f32 %v4615_v18, %v1403_v63  ;;  %s1510_s0 = sld [smem:[#allocation2 + %s1509_s10]] }
 0x162   : > { %v4654_v13 = vpop.permute.xlu1 %889  ;;  %v4656_v3 = vpop.permute.xlu0 %887 }
 0x163   : > { %7263 = vst [vmem:[#allocation39_spill] sm:$0xff] %v4654_v13  ;;  %7264 = vst [vmem:[#allocation40_spill] sm:$0xff] %v4656_v3  ;;  %v1405_v3 = vmul.f32 %v4601_v50, %v1403_v63 }
 0x164   : > { %1387 = vrot.lane.b32.xlu1 %v1378_v5, %s7211_s21  ;;  %1385 = vrot.lane.b32.xlu0 %v1377_v46, %s7211_s21  ;;  %v1404_v5 = vmul.f32 %v4604_v34, %v1403_v63 }
 0x166   : > { %v4663_v60 = vpop.permute.xlu1 %912  ;;  %v4665_v37 = vpop.permute.xlu0 %910 }
 0x167   : > { %7265 = vst [vmem:[#allocation41_spill] sm:$0xff] %v4663_v60  ;;  %7266 = vst [vmem:[#allocation42_spill] sm:$0xff] %v4665_v37  ;;  %v1430_v37 = vstv %s1429_s4  ;;  %s1584_s4 = sadd.s32 16, %s4022_s30 }
 0x168   : > { %1391 = vrot.lane.b32.xlu1 %v1380_v32, %s7211_s21  ;;  %1389 = vrot.lane.b32.xlu0 %v1379_v48, %s7211_s21  ;;  %v1406_v32 = vmul.f32 %v4618_v40, %v1403_v63  ;;  %v1434_v63 = vmul.f32 %v4615_v18, %v1430_v37  ;;  %s1585_s6 = sld [smem:[#allocation2 + %s1584_s4]] }
 0x16a   : > { %v4671_v13 = vpop.permute.xlu1 %916  ;;  %v4673_v46 = vpop.permute.xlu0 %914 }
 0x16b   : > { %7267 = vst [vmem:[#allocation43_spill] sm:$0xff] %v4671_v13  ;;  %7268 = vst [vmem:[#allocation44_spill] sm:$0xff] %v4673_v46  ;;  %v1432_v46 = vmul.f32 %v4601_v50, %v1430_v37 }
 0x16c   : > { %1414 = vrot.lane.b32.xlu1 %v1405_v3, %s7211_s21  ;;  %1412 = vrot.lane.b32.xlu0 %v1404_v5, %s7211_s21  ;;  %v1431_v3 = vmul.f32 %v4604_v34, %v1430_v37 }
 0x16e   : > { %v4680_v48 = vpop.permute.xlu1 %939  ;;  %v4682_v60 = vpop.permute.xlu0 %937 }
 0x16f   : > { %7269 = vst [vmem:[#allocation45_spill] sm:$0xff] %v4680_v48  ;;  %7270 = vst [vmem:[#allocation46_spill] sm:$0xff] %v4682_v60  ;;  %v1457_v60 = vstv %s1456_s7  ;;  %s1611_s7 = sadd.s32 16, %s4032_s11 }
 0x170   : > { %1418 = vrot.lane.b32.xlu1 %v1407_v25, %s7211_s21  ;;  %1416 = vrot.lane.b32.xlu0 %v1406_v32, %s7211_s21  ;;  %v1433_v25 = vmul.f32 %v4618_v40, %v1430_v37  ;;  %v1461_v37 = vmul.f32 %v4615_v18, %v1457_v60  ;;  %s1612_s20 = sld [smem:[#allocation2 + %s1611_s7]] }
 0x172   : > { %v4688_v13 = vpop.permute.xlu1 %943  ;;  %v4690_v5 = vpop.permute.xlu0 %941 }
 0x173   : > { %7271 = vst [vmem:[#allocation47_spill] sm:$0xff] %v4688_v13  ;;  %7272 = vst [vmem:[#allocation48_spill] sm:$0xff] %v4690_v5  ;;  %v1459_v5 = vmul.f32 %v4601_v50, %v1457_v60 }
 0x174   : > { %1441 = vrot.lane.b32.xlu1 %v1432_v46, %s7238_s28  ;;  %1439 = vrot.lane.b32.xlu0 %v1431_v3, %s7238_s28  ;;  %v1458_v46 = vmul.f32 %v4604_v34, %v1457_v60 }
 0x176   : > { %v4697_v32 = vpop.permute.xlu1 %966  ;;  %v4699_v48 = vpop.permute.xlu0 %964 }
 0x177   : > { %7273 = vst [vmem:[#allocation49_spill] sm:$0xff] %v4697_v32  ;;  %7274 = vst [vmem:[#allocation50_spill] sm:$0xff] %v4699_v48  ;;  %v1484_v48 = vstv %s1483_s9  ;;  %s1638_s9 = sadd.s32 16, %s4043_s29 }
 0x178   : > { %1445 = vrot.lane.b32.xlu1 %v1434_v63, %s7238_s28  ;;  %1443 = vrot.lane.b32.xlu0 %v1433_v25, %s7238_s28  ;;  %v1460_v63 = vmul.f32 %v4618_v40, %v1457_v60  ;;  %v1488_v60 = vmul.f32 %v4615_v18, %v1484_v48  ;;  %s1639_s10 = sld [smem:[#allocation2 + %s1638_s9]] }
 0x17a   : > { %v4705_v13 = vpop.permute.xlu1 %970  ;;  %v4707_v3 = vpop.permute.xlu0 %968 }
 0x17b   : > { %7275 = vst [vmem:[#allocation51_spill] sm:$0xff] %v4705_v13  ;;  %7276 = vst [vmem:[#allocation52_spill] sm:$0xff] %v4707_v3  ;;  %v1486_v3 = vmul.f32 %v4601_v50, %v1484_v48 }
 0x17c   : > { %1468 = vrot.lane.b32.xlu1 %v1459_v5, %s7238_s28  ;;  %1466 = vrot.lane.b32.xlu0 %v1458_v46, %s7238_s28  ;;  %v1485_v5 = vmul.f32 %v4604_v34, %v1484_v48 }
 0x17e   : > { %v4714_v25 = vpop.permute.xlu1 %993  ;;  %v4716_v32 = vpop.permute.xlu0 %991 }
 0x17f   : > { %7277 = vst [vmem:[#allocation53_spill] sm:$0xff] %v4714_v25  ;;  %7278 = vst [vmem:[#allocation54_spill] sm:$0xff] %v4716_v32 }
 0x180   : > { %1472 = vrot.lane.b32.xlu1 %v1461_v37, %s7238_s28  ;;  %1470 = vrot.lane.b32.xlu0 %v1460_v63, %s7238_s28  ;;  %v1487_v37 = vmul.f32 %v4618_v40, %v1484_v48  ;;  %v1511_v63 = vstv %s1510_s0  ;;  %s1665_s0 = sadd.s32 16, %s4067_s24 }
 0x181   : > { %v1515_v48 = vmul.f32 %v4615_v18, %v1511_v63  ;;  %s1666_s4 = sld [smem:[#allocation2 + %s1665_s0]] }
 0x182   : > { %v4722_v13 = vpop.permute.xlu1 %997  ;;  %v4724_v46 = vpop.permute.xlu0 %995 }
 0x183   : > { %7279 = vst [vmem:[#allocation55_spill] sm:$0xff] %v4722_v13  ;;  %7280 = vst [vmem:[#allocation56_spill] sm:$0xff] %v4724_v46 }
 0x184   : > { %1495 = vrot.lane.b32.xlu1 %v1486_v3, %s7238_s28  ;;  %1493 = vrot.lane.b32.xlu0 %v1485_v5, %s7238_s28  ;;  %v1513_v3 = vmul.f32 %v4601_v50, %v1511_v63  ;;  %v1512_v5 = vmul.f32 %v4604_v34, %v1511_v63  ;;  %v1586_v50 = vstv %s1585_s6  ;;  %v4752_v34 = vld [vmem:[%s4038_s25 + $0x2a] sm:$0xff]  ;;  %s1692_s6 = sadd.s32 17, %s4022_s30 }
 0x185   : > { %v1587_v18 = vmul.f32 %v4752_v34, %v1586_v50  ;;  %s1693_s7 = sld [smem:[#allocation2 + %s1692_s6]] }
 0x186   : > { %v4731_v32 = vpop.permute.xlu1 %1069  ;;  %v4733_v25 = vpop.permute.xlu0 %1067 }
 0x187   : > { %7281 = vst [vmem:[#allocation57_spill] sm:$0xff] %v4731_v32  ;;  %7282 = vst [vmem:[#allocation58_spill] sm:$0xff] %v4733_v25 }
 0x188   : > { %1499 = vrot.lane.b32.xlu1 %v1488_v60, %s7238_s28  ;;  %1497 = vrot.lane.b32.xlu0 %v1487_v37, %s7238_s28  ;;  %v1514_v60 = vmul.f32 %v4618_v40, %v1511_v63  ;;  %v4749_v37 = vld [vmem:[%s4038_s25 + $0x32] sm:$0xff]  ;;  %v4766_v40 = vld [vmem:[%s4038_s25 + $0x3a] sm:$0xff] }
 0x18a   : > { %v4739_v46 = vpop.permute.xlu1 %1073  ;;  %v4741_v13 = vpop.permute.xlu0 %1071 }
 0x18b   : > { %7283 = vst [vmem:[#allocation59_spill] sm:$0xff] %v4739_v46  ;;  %7284 = vst [vmem:[#allocation60_spill] sm:$0xff] %v4741_v13 }
 0x18c   : > { %1522 = vrot.lane.b32.xlu1 %v1513_v3, %s7238_s28  ;;  %1520 = vrot.lane.b32.xlu0 %v1512_v5, %s7238_s28  ;;  %v1588_v3 = vmul.f32 %v4749_v37, %v1586_v50  ;;  %v4763_v5 = vld [vmem:[%s4038_s25 + $0x42] sm:$0xff] }
 0x18e   : > { %v4754_v46 = vpop.permute.xlu1 %1096  ;;  %v4756_v13 = vpop.permute.xlu0 %1094 }
 0x18f   : > { %7285 = vst [vmem:[#allocation61_spill] sm:$0xff] %v4754_v46  ;;  %7286 = vst [vmem:[#allocation62_spill] sm:$0xff] %v4756_v13  ;;  %v1613_v13 = vstv %s1612_s20  ;;  %s1719_s20 = sadd.s32 17, %s4032_s11 }
 0x190   : > { %1526 = vrot.lane.b32.xlu1 %v1515_v48, %s7238_s28  ;;  %1524 = vrot.lane.b32.xlu0 %v1514_v60, %s7238_s28  ;;  %v1590_v48 = vmul.f32 %v4763_v5, %v1586_v50  ;;  %v1589_v60 = vmul.f32 %v4766_v40, %v1586_v50  ;;  %v1617_v50 = vmul.f32 %v4763_v5, %v1613_v13  ;;  %s1720_s9 = sld [smem:[#allocation2 + %s1719_s20]] }
 0x192   : > { %v4768_v63 = vpop.permute.xlu1 %1100  ;;  %v4770_v25 = vpop.permute.xlu0 %1098 }
 0x193   : > { %7287 = vst [vmem:[#allocation63_spill] sm:$0xff] %v4768_v63  ;;  %7288 = vst [vmem:[#allocation64_spill] sm:$0xff] %v4770_v25  ;;  %v1615_v25 = vmul.f32 %v4749_v37, %v1613_v13 }
 0x194   : > { %1597 = vrot.lane.b32.xlu1 %v1588_v3, %s7211_s21  ;;  %1595 = vrot.lane.b32.xlu0 %v1587_v18, %s7211_s21  ;;  %v1614_v3 = vmul.f32 %v4752_v34, %v1613_v13 }
 0x196   : > { %v4777_v46 = vpop.permute.xlu1 %1123  ;;  %v4779_v32 = vpop.permute.xlu0 %1121 }
 0x197   : > { %7289 = vst [vmem:[#allocation65_spill] sm:$0xff] %v4777_v46  ;;  %7290 = vst [vmem:[#allocation66_spill] sm:$0xff] %v4779_v32  ;;  %v1640_v32 = vstv %s1639_s10  ;;  %s1746_s10 = sadd.s32 17, %s4043_s29 }
 0x198   : > { %1601 = vrot.lane.b32.xlu1 %v1590_v48, %s7211_s21  ;;  %1599 = vrot.lane.b32.xlu0 %v1589_v60, %s7211_s21  ;;  %v1616_v48 = vmul.f32 %v4766_v40, %v1613_v13  ;;  %v1644_v13 = vmul.f32 %v4763_v5, %v1640_v32  ;;  %s1747_s0 = sld [smem:[#allocation2 + %s1746_s10]] }
 0x19a   : > { %v4785_v63 = vpop.permute.xlu1 %1127  ;;  %v4787_v18 = vpop.permute.xlu0 %1125 }
 0x19b   : > { %7291 = vst [vmem:[#allocation67_spill] sm:$0xff] %v4785_v63  ;;  %7292 = vst [vmem:[#allocation68_spill] sm:$0xff] %v4787_v18  ;;  %v1642_v18 = vmul.f32 %v4749_v37, %v1640_v32 }
 0x19c   : > { %1624 = vrot.lane.b32.xlu1 %v1615_v25, %s7211_s21  ;;  %1622 = vrot.lane.b32.xlu0 %v1614_v3, %s7211_s21  ;;  %v1641_v25 = vmul.f32 %v4752_v34, %v1640_v32 }
 0x19e   : > { %v4794_v60 = vpop.permute.xlu1 %1150  ;;  %v4796_v46 = vpop.permute.xlu0 %1148 }
 0x19f   : > { %7293 = vst [vmem:[#allocation69_spill] sm:$0xff] %v4794_v60  ;;  %7294 = vst [vmem:[#allocation70_spill] sm:$0xff] %v4796_v46  ;;  %v1667_v46 = vstv %s1666_s4  ;;  %s1773_s4 = sadd.s32 17, %s4067_s24 }
 0x1a0   : > { %1628 = vrot.lane.b32.xlu1 %v1617_v50, %s7211_s21  ;;  %1626 = vrot.lane.b32.xlu0 %v1616_v48, %s7211_s21  ;;  %v1643_v50 = vmul.f32 %v4766_v40, %v1640_v32  ;;  %v1671_v32 = vmul.f32 %v4763_v5, %v1667_v46  ;;  %s1774_s6 = sld [smem:[#allocation2 + %s1773_s4]] }
 0x1a2   : > { %v4802_v63 = vpop.permute.xlu1 %1154  ;;  %v4804_v3 = vpop.permute.xlu0 %1152 }
 0x1a3   : > { %7295 = vst [vmem:[#allocation71_spill] sm:$0xff] %v4802_v63  ;;  %7296 = vst [vmem:[#allocation72_spill] sm:$0xff] %v4804_v3  ;;  %v1669_v3 = vmul.f32 %v4749_v37, %v1667_v46 }
 0x1a4   : > { %1651 = vrot.lane.b32.xlu1 %v1642_v18, %s7211_s21  ;;  %1649 = vrot.lane.b32.xlu0 %v1641_v25, %s7211_s21  ;;  %v1668_v18 = vmul.f32 %v4752_v34, %v1667_v46 }
 0x1a6   : > { %v4811_v48 = vpop.permute.xlu1 %1177  ;;  %v4813_v60 = vpop.permute.xlu0 %1175 }
 0x1a7   : > { %7297 = vst [vmem:[#allocation73_spill] sm:$0xff] %v4811_v48  ;;  %7298 = vst [vmem:[#allocation74_spill] sm:$0xff] %v4813_v60  ;;  %v1694_v60 = vstv %s1693_s7  ;;  %s1849_s7 = sadd.s32 19, %s4022_s30 }
 0x1a8   : > { %1655 = vrot.lane.b32.xlu1 %v1644_v13, %s7211_s21  ;;  %1653 = vrot.lane.b32.xlu0 %v1643_v50, %s7211_s21  ;;  %v1670_v13 = vmul.f32 %v4766_v40, %v1667_v46  ;;  %v1698_v46 = vmul.f32 %v4763_v5, %v1694_v60  ;;  %s1850_s20 = sld [smem:[#allocation2 + %s1849_s7]] }
 0x1aa   : > { %v4819_v63 = vpop.permute.xlu1 %1181  ;;  %v4821_v25 = vpop.permute.xlu0 %1179 }
 0x1ab   : > { %7299 = vst [vmem:[#allocation75_spill] sm:$0xff] %v4819_v63  ;;  %7300 = vst [vmem:[#allocation76_spill] sm:$0xff] %v4821_v25  ;;  %v1696_v25 = vmul.f32 %v4749_v37, %v1694_v60 }
 0x1ac   : > { %1678 = vrot.lane.b32.xlu1 %v1669_v3, %s7211_s21  ;;  %1676 = vrot.lane.b32.xlu0 %v1668_v18, %s7211_s21  ;;  %v1695_v3 = vmul.f32 %v4752_v34, %v1694_v60 }
 0x1ae   : > { %v4828_v50 = vpop.permute.xlu1 %1204  ;;  %v4830_v48 = vpop.permute.xlu0 %1202 }
 0x1af   : > { %7301 = vst [vmem:[#allocation77_spill] sm:$0xff] %v4828_v50  ;;  %7302 = vst [vmem:[#allocation78_spill] sm:$0xff] %v4830_v48  ;;  %v1721_v48 = vstv %s1720_s9  ;;  %s1876_s9 = sadd.s32 19, %s4032_s11 }
 0x1b0   : > { %1682 = vrot.lane.b32.xlu1 %v1671_v32, %s7211_s21  ;;  %1680 = vrot.lane.b32.xlu0 %v1670_v13, %s7211_s21  ;;  %v1697_v32 = vmul.f32 %v4766_v40, %v1694_v60  ;;  %v1725_v60 = vmul.f32 %v4763_v5, %v1721_v48  ;;  %s1877_s10 = sld [smem:[#allocation2 + %s1876_s9]] }
 0x1b2   : > { %v4836_v63 = vpop.permute.xlu1 %1208  ;;  %v4838_v18 = vpop.permute.xlu0 %1206 }
 0x1b3   : > { %7303 = vst [vmem:[#allocation79_spill] sm:$0xff] %v4836_v63  ;;  %7304 = vst [vmem:[#allocation80_spill] sm:$0xff] %v4838_v18  ;;  %v1723_v18 = vmul.f32 %v4749_v37, %v1721_v48 }
 0x1b4   : > { %1705 = vrot.lane.b32.xlu1 %v1696_v25, %s7238_s28  ;;  %1703 = vrot.lane.b32.xlu0 %v1695_v3, %s7238_s28  ;;  %v1722_v25 = vmul.f32 %v4752_v34, %v1721_v48 }
 0x1b6   : > { %v4845_v13 = vpop.permute.xlu1 %1231  ;;  %v4847_v50 = vpop.permute.xlu0 %1229 }
 0x1b7   : > { %7305 = vst [vmem:[#allocation81_spill] sm:$0xff] %v4845_v13  ;;  %7306 = vst [vmem:[#allocation82_spill] sm:$0xff] %v4847_v50  ;;  %v1748_v50 = vstv %s1747_s0  ;;  %s1903_s0 = sadd.s32 19, %s4043_s29 }
 0x1b8   : > { %1709 = vrot.lane.b32.xlu1 %v1698_v46, %s7238_s28  ;;  %1707 = vrot.lane.b32.xlu0 %v1697_v32, %s7238_s28  ;;  %v1724_v46 = vmul.f32 %v4766_v40, %v1721_v48  ;;  %v1752_v48 = vmul.f32 %v4763_v5, %v1748_v50  ;;  %s1904_s4 = sld [smem:[#allocation2 + %s1903_s0]] }
 0x1ba   : > { %v4853_v63 = vpop.permute.xlu1 %1235  ;;  %v4855_v3 = vpop.permute.xlu0 %1233 }
 0x1bb   : > { %7307 = vst [vmem:[#allocation83_spill] sm:$0xff] %v4853_v63  ;;  %7308 = vst [vmem:[#allocation84_spill] sm:$0xff] %v4855_v3  ;;  %v1750_v3 = vmul.f32 %v4749_v37, %v1748_v50 }
 0x1bc   : > { %1732 = vrot.lane.b32.xlu1 %v1723_v18, %s7238_s28  ;;  %1730 = vrot.lane.b32.xlu0 %v1722_v25, %s7238_s28  ;;  %v1749_v18 = vmul.f32 %v4752_v34, %v1748_v50 }
 0x1be   : > { %v4862_v32 = vpop.permute.xlu1 %1258  ;;  %v4864_v13 = vpop.permute.xlu0 %1256 }
 0x1bf   : > { %7309 = vst [vmem:[#allocation85_spill] sm:$0xff] %v4862_v32  ;;  %7310 = vst [vmem:[#allocation86_spill] sm:$0xff] %v4864_v13 }
 0x1c0   : > { %1736 = vrot.lane.b32.xlu1 %v1725_v60, %s7238_s28  ;;  %1734 = vrot.lane.b32.xlu0 %v1724_v46, %s7238_s28  ;;  %v1751_v60 = vmul.f32 %v4766_v40, %v1748_v50  ;;  %v1775_v46 = vstv %s1774_s6  ;;  %s1930_s6 = sadd.s32 19, %s4067_s24 }
 0x1c1   : > { %v1779_v50 = vmul.f32 %v4763_v5, %v1775_v46  ;;  %s1931_s7 = sld [smem:[#allocation2 + %s1930_s6]] }
 0x1c2   : > { %v4870_v63 = vpop.permute.xlu1 %1262  ;;  %v4872_v25 = vpop.permute.xlu0 %1260 }
 0x1c3   : > { %7311 = vst [vmem:[#allocation87_spill] sm:$0xff] %v4870_v63  ;;  %7312 = vst [vmem:[#allocation88_spill] sm:$0xff] %v4872_v25 }
 0x1c4   : > { %1759 = vrot.lane.b32.xlu1 %v1750_v3, %s7238_s28  ;;  %1757 = vrot.lane.b32.xlu0 %v1749_v18, %s7238_s28  ;;  %v1777_v3 = vmul.f32 %v4749_v37, %v1775_v46  ;;  %v1776_v18 = vmul.f32 %v4752_v34, %v1775_v46  ;;  %v1851_v37 = vstv %s1850_s20  ;;  %v4900_v34 = vld [vmem:[%s4038_s25 + $0x50] sm:$0xff]  ;;  %s1957_s20 = sadd.s32 20, %s4022_s30 }
 0x1c5   : > { %v1852_v5 = vmul.f32 %v4900_v34, %v1851_v37  ;;  %s1958_s9 = sld [smem:[#allocation2 + %s1957_s20]] }
 0x1c6   : > { %v4879_v13 = vpop.permute.xlu1 %1333  ;;  %v4881_v32 = vpop.permute.xlu0 %1331 }
 0x1c7   : > { %7313 = vst [vmem:[#allocation89_spill] sm:$0xff] %v4879_v13  ;;  %7314 = vst [vmem:[#allocation90_spill] sm:$0xff] %v4881_v32 }
 0x1c8   : > { %1763 = vrot.lane.b32.xlu1 %v1752_v48, %s7238_s28  ;;  %1761 = vrot.lane.b32.xlu0 %v1751_v60, %s7238_s28  ;;  %v1778_v48 = vmul.f32 %v4766_v40, %v1775_v46  ;;  %v4897_v60 = vld [vmem:[%s4038_s25 + $0x58] sm:$0xff]  ;;  %v4914_v40 = vld [vmem:[%s4038_s25 + $0x60] sm:$0xff] }
 0x1ca   : > { %v4887_v25 = vpop.permute.xlu1 %1337  ;;  %v4889_v63 = vpop.permute.xlu0 %1335 }
 0x1cb   : > { %7315 = vst [vmem:[#allocation91_spill] sm:$0xff] %v4887_v25  ;;  %7316 = vst [vmem:[#allocation92_spill] sm:$0xff] %v4889_v63 }
 0x1cc   : > { %1786 = vrot.lane.b32.xlu1 %v1777_v3, %s7238_s28  ;;  %1784 = vrot.lane.b32.xlu0 %v1776_v18, %s7238_s28  ;;  %v1853_v3 = vmul.f32 %v4897_v60, %v1851_v37  ;;  %v4911_v18 = vld [vmem:[%s4038_s25 + $0x68] sm:$0xff] }
 0x1ce   : > { %v4902_v25 = vpop.permute.xlu1 %1360  ;;  %v4904_v63 = vpop.permute.xlu0 %1358 }
 0x1cf   : > { %7317 = vst [vmem:[#allocation93_spill] sm:$0xff] %v4902_v25  ;;  %7318 = vst [vmem:[#allocation94_spill] sm:$0xff] %v4904_v63  ;;  %v1878_v63 = vstv %s1877_s10  ;;  %s1984_s10 = sadd.s32 20, %s4032_s11 }
 0x1d0   : > { %1790 = vrot.lane.b32.xlu1 %v1779_v50, %s7238_s28  ;;  %1788 = vrot.lane.b32.xlu0 %v1778_v48, %s7238_s28  ;;  %v1855_v50 = vmul.f32 %v4911_v18, %v1851_v37  ;;  %v1854_v48 = vmul.f32 %v4914_v40, %v1851_v37  ;;  %v1882_v37 = vmul.f32 %v4911_v18, %v1878_v63  ;;  %s1985_s0 = sld [smem:[#allocation2 + %s1984_s10]] }
 0x1d2   : > { %v4916_v46 = vpop.permute.xlu1 %1364  ;;  %v4918_v32 = vpop.permute.xlu0 %1362 }
 0x1d3   : > { %7319 = vst [vmem:[#allocation95_spill] sm:$0xff] %v4916_v46  ;;  %7320 = vst [vmem:[#allocation96_spill] sm:$0xff] %v4918_v32  ;;  %v1880_v32 = vmul.f32 %v4897_v60, %v1878_v63 }
 0x1d4   : > { %1862 = vrot.lane.b32.xlu1 %v1853_v3, %s7211_s21  ;;  %1860 = vrot.lane.b32.xlu0 %v1852_v5, %s7211_s21  ;;  %v1879_v3 = vmul.f32 %v4900_v34, %v1878_v63 }
 0x1d6   : > { %v4925_v25 = vpop.permute.xlu1 %1387  ;;  %v4927_v13 = vpop.permute.xlu0 %1385 }
 0x1d7   : > { %7321 = vst [vmem:[#allocation97_spill] sm:$0xff] %v4925_v25  ;;  %7322 = vst [vmem:[#allocation98_spill] sm:$0xff] %v4927_v13  ;;  %v1905_v13 = vstv %s1904_s4  ;;  %s2011_s4 = sadd.s32 20, %s4043_s29 }
 0x1d8   : > { %1866 = vrot.lane.b32.xlu1 %v1855_v50, %s7211_s21  ;;  %1864 = vrot.lane.b32.xlu0 %v1854_v48, %s7211_s21  ;;  %v1881_v50 = vmul.f32 %v4914_v40, %v1878_v63  ;;  %v1909_v63 = vmul.f32 %v4911_v18, %v1905_v13  ;;  %s2012_s6 = sld [smem:[#allocation2 + %s2011_s4]] }
 0x1da   : > { %v4933_v46 = vpop.permute.xlu1 %1391  ;;  %v4935_v5 = vpop.permute.xlu0 %1389 }
 0x1db   : > { %7323 = vst [vmem:[#allocation99_spill] sm:$0xff] %v4933_v46  ;;  %7324 = vst [vmem:[#allocation100_spill] sm:$0xff] %v4935_v5  ;;  %v1907_v5 = vmul.f32 %v4897_v60, %v1905_v13 }
 0x1dc   : > { %1889 = vrot.lane.b32.xlu1 %v1880_v32, %s7211_s21  ;;  %1887 = vrot.lane.b32.xlu0 %v1879_v3, %s7211_s21  ;;  %v1906_v32 = vmul.f32 %v4900_v34, %v1905_v13 }
 0x1de   : > { %v4942_v48 = vpop.permute.xlu1 %1414  ;;  %v4944_v25 = vpop.permute.xlu0 %1412 }
 0x1df   : > { %7325 = vst [vmem:[#allocation101_spill] sm:$0xff] %v4942_v48  ;;  %7326 = vst [vmem:[#allocation102_spill] sm:$0xff] %v4944_v25  ;;  %v1932_v25 = vstv %s1931_s7  ;;  %s2038_s7 = sadd.s32 20, %s4067_s24 }
 0x1e0   : > { %1893 = vrot.lane.b32.xlu1 %v1882_v37, %s7211_s21  ;;  %1891 = vrot.lane.b32.xlu0 %v1881_v50, %s7211_s21  ;;  %v1908_v37 = vmul.f32 %v4914_v40, %v1905_v13  ;;  %v1936_v13 = vmul.f32 %v4911_v18, %v1932_v25  ;;  %s2039_s20 = sld [smem:[#allocation2 + %s2038_s7]] }
 0x1e2   : > { %v4950_v46 = vpop.permute.xlu1 %1418  ;;  %v4952_v3 = vpop.permute.xlu0 %1416 }
 0x1e3   : > { %7327 = vst [vmem:[#allocation103_spill] sm:$0xff] %v4950_v46  ;;  %7328 = vst [vmem:[#allocation104_spill] sm:$0xff] %v4952_v3  ;;  %v1934_v3 = vmul.f32 %v4897_v60, %v1932_v25 }
 0x1e4   : > { %1916 = vrot.lane.b32.xlu1 %v1907_v5, %s7211_s21  ;;  %1914 = vrot.lane.b32.xlu0 %v1906_v32, %s7211_s21  ;;  %v1933_v5 = vmul.f32 %v4900_v34, %v1932_v25 }
 0x1e6   : > { %v4959_v50 = vpop.permute.xlu1 %1441  ;;  %v4961_v48 = vpop.permute.xlu0 %1439 }
 0x1e7   : > { %7329 = vst [vmem:[#allocation105_spill] sm:$0xff] %v4959_v50  ;;  %7330 = vst [vmem:[#allocation106_spill] sm:$0xff] %v4961_v48  ;;  %v1959_v48 = vstv %s1958_s9  ;;  %s2113_s9 = sadd.s32 22, %s4022_s30 }
 0x1e8   : > { %1920 = vrot.lane.b32.xlu1 %v1909_v63, %s7211_s21  ;;  %1918 = vrot.lane.b32.xlu0 %v1908_v37, %s7211_s21  ;;  %v1935_v63 = vmul.f32 %v4914_v40, %v1932_v25  ;;  %v1963_v25 = vmul.f32 %v4911_v18, %v1959_v48  ;;  %s2114_s10 = sld [smem:[#allocation2 + %s2113_s9]] }
 0x1ea   : > { %v4967_v46 = vpop.permute.xlu1 %1445  ;;  %v4969_v32 = vpop.permute.xlu0 %1443 }
 0x1eb   : > { %7331 = vst [vmem:[#allocation107_spill] sm:$0xff] %v4967_v46  ;;  %7332 = vst [vmem:[#allocation108_spill] sm:$0xff] %v4969_v32  ;;  %v1961_v32 = vmul.f32 %v4897_v60, %v1959_v48 }
 0x1ec   : > { %1943 = vrot.lane.b32.xlu1 %v1934_v3, %s7211_s21  ;;  %1941 = vrot.lane.b32.xlu0 %v1933_v5, %s7211_s21  ;;  %v1960_v3 = vmul.f32 %v4900_v34, %v1959_v48 }
 0x1ee   : > { %v4976_v37 = vpop.permute.xlu1 %1468  ;;  %v4978_v50 = vpop.permute.xlu0 %1466 }
 0x1ef   : > { %7333 = vst [vmem:[#allocation109_spill] sm:$0xff] %v4976_v37  ;;  %7334 = vst [vmem:[#allocation110_spill] sm:$0xff] %v4978_v50  ;;  %v1986_v50 = vstv %s1985_s0  ;;  %s2140_s0 = sadd.s32 22, %s4032_s11 }
 0x1f0   : > { %1947 = vrot.lane.b32.xlu1 %v1936_v13, %s7211_s21  ;;  %1945 = vrot.lane.b32.xlu0 %v1935_v63, %s7211_s21  ;;  %v1962_v13 = vmul.f32 %v4914_v40, %v1959_v48  ;;  %v1990_v48 = vmul.f32 %v4911_v18, %v1986_v50  ;;  %s2141_s4 = sld [smem:[#allocation2 + %s2140_s0]] }
 0x1f2   : > { %v4984_v46 = vpop.permute.xlu1 %1472  ;;  %v4986_v5 = vpop.permute.xlu0 %1470 }
 0x1f3   : > { %7335 = vst [vmem:[#allocation111_spill] sm:$0xff] %v4984_v46  ;;  %7336 = vst [vmem:[#allocation112_spill] sm:$0xff] %v4986_v5  ;;  %v1988_v5 = vmul.f32 %v4897_v60, %v1986_v50 }
 0x1f4   : > { %1970 = vrot.lane.b32.xlu1 %v1961_v32, %s7238_s28  ;;  %1968 = vrot.lane.b32.xlu0 %v1960_v3, %s7238_s28  ;;  %v1987_v32 = vmul.f32 %v4900_v34, %v1986_v50 }
 0x1f6   : > { %v4993_v63 = vpop.permute.xlu1 %1495  ;;  %v4995_v37 = vpop.permute.xlu0 %1493 }
 0x1f7   : > { %7337 = vst [vmem:[#allocation113_spill] sm:$0xff] %v4993_v63  ;;  %7338 = vst [vmem:[#allocation114_spill] sm:$0xff] %v4995_v37  ;;  %v2013_v37 = vstv %s2012_s6  ;;  %s2167_s6 = sadd.s32 22, %s4043_s29 }
 0x1f8   : > { %1974 = vrot.lane.b32.xlu1 %v1963_v25, %s7238_s28  ;;  %1972 = vrot.lane.b32.xlu0 %v1962_v13, %s7238_s28  ;;  %v1989_v25 = vmul.f32 %v4914_v40, %v1986_v50  ;;  %v2017_v50 = vmul.f32 %v4911_v18, %v2013_v37  ;;  %s2168_s7 = sld [smem:[#allocation2 + %s2167_s6]] }
 0x1fa   : > { %v5001_v46 = vpop.permute.xlu1 %1499  ;;  %v5003_v3 = vpop.permute.xlu0 %1497 }
 0x1fb   : > { %7339 = vst [vmem:[#allocation115_spill] sm:$0xff] %v5001_v46  ;;  %7340 = vst [vmem:[#allocation116_spill] sm:$0xff] %v5003_v3  ;;  %v2015_v3 = vmul.f32 %v4897_v60, %v2013_v37 }
 0x1fc   : > { %1997 = vrot.lane.b32.xlu1 %v1988_v5, %s7238_s28  ;;  %1995 = vrot.lane.b32.xlu0 %v1987_v32, %s7238_s28  ;;  %v2014_v5 = vmul.f32 %v4900_v34, %v2013_v37 }
 0x1fe   : > { %v5010_v13 = vpop.permute.xlu1 %1522  ;;  %v5012_v63 = vpop.permute.xlu0 %1520 }
 0x1ff   : > { %7341 = vst [vmem:[#allocation117_spill] sm:$0xff] %v5010_v13  ;;  %7342 = vst [vmem:[#allocation118_spill] sm:$0xff] %v5012_v63 }
 0x200   : > { %2001 = vrot.lane.b32.xlu1 %v1990_v48, %s7238_s28  ;;  %1999 = vrot.lane.b32.xlu0 %v1989_v25, %s7238_s28  ;;  %v2016_v48 = vmul.f32 %v4914_v40, %v2013_v37  ;;  %v2040_v25 = vstv %s2039_s20  ;;  %s2194_s20 = sadd.s32 22, %s4067_s24 }
 0x201   : > { %v2044_v37 = vmul.f32 %v4911_v18, %v2040_v25  ;;  %s2195_s9 = sld [smem:[#allocation2 + %s2194_s20]] }
 0x202   : > { %v5018_v46 = vpop.permute.xlu1 %1526  ;;  %v5020_v32 = vpop.permute.xlu0 %1524 }
 0x203   : > { %7343 = vst [vmem:[#allocation119_spill] sm:$0xff] %v5018_v46  ;;  %7344 = vst [vmem:[#allocation120_spill] sm:$0xff] %v5020_v32 }
 0x204   : > { %2024 = vrot.lane.b32.xlu1 %v2015_v3, %s7238_s28  ;;  %2022 = vrot.lane.b32.xlu0 %v2014_v5, %s7238_s28  ;;  %v2042_v3 = vmul.f32 %v4897_v60, %v2040_v25  ;;  %v2041_v5 = vmul.f32 %v4900_v34, %v2040_v25  ;;  %v2115_v60 = vstv %s2114_s10  ;;  %v5048_v34 = vld [vmem:[%s4038_s25 + $0x51] sm:$0xff]  ;;  %s2221_s10 = sadd.s32 23, %s4022_s30 }
 0x205   : > { %v2116_v18 = vmul.f32 %v5048_v34, %v2115_v60  ;;  %s2222_s0 = sld [smem:[#allocation2 + %s2221_s10]] }
 0x206   : > { %v5027_v63 = vpop.permute.xlu1 %1597  ;;  %v5029_v13 = vpop.permute.xlu0 %1595 }
 0x207   : > { %7345 = vst [vmem:[#allocation121_spill] sm:$0xff] %v5027_v63  ;;  %7346 = vst [vmem:[#allocation122_spill] sm:$0xff] %v5029_v13 }
 0x208   : > { %2028 = vrot.lane.b32.xlu1 %v2017_v50, %s7238_s28  ;;  %2026 = vrot.lane.b32.xlu0 %v2016_v48, %s7238_s28  ;;  %v2043_v50 = vmul.f32 %v4914_v40, %v2040_v25  ;;  %v5045_v48 = vld [vmem:[%s4038_s25 + $0x59] sm:$0xff]  ;;  %v5062_v40 = vld [vmem:[%s4038_s25 + $0x61] sm:$0xff] }
 0x20a   : > { %v5035_v32 = vpop.permute.xlu1 %1601  ;;  %v5037_v46 = vpop.permute.xlu0 %1599 }
 0x20b   : > { %7347 = vst [vmem:[#allocation123_spill] sm:$0xff] %v5035_v32  ;;  %7348 = vst [vmem:[#allocation124_spill] sm:$0xff] %v5037_v46 }
 0x20c   : > { %2051 = vrot.lane.b32.xlu1 %v2042_v3, %s7238_s28  ;;  %2049 = vrot.lane.b32.xlu0 %v2041_v5, %s7238_s28  ;;  %v2117_v3 = vmul.f32 %v5045_v48, %v2115_v60  ;;  %v5059_v5 = vld [vmem:[%s4038_s25 + $0x69] sm:$0xff] }
 0x20e   : > { %v5050_v32 = vpop.permute.xlu1 %1624  ;;  %v5052_v46 = vpop.permute.xlu0 %1622 }
 0x20f   : > { %7349 = vst [vmem:[#allocation125_spill] sm:$0xff] %v5050_v32  ;;  %7350 = vst [vmem:[#allocation126_spill] sm:$0xff] %v5052_v46  ;;  %v2142_v46 = vstv %s2141_s4  ;;  %s2248_s4 = sadd.s32 23, %s4032_s11 }
 0x210   : > { %2055 = vrot.lane.b32.xlu1 %v2044_v37, %s7238_s28  ;;  %2053 = vrot.lane.b32.xlu0 %v2043_v50, %s7238_s28  ;;  %v2119_v37 = vmul.f32 %v5059_v5, %v2115_v60  ;;  %v2118_v50 = vmul.f32 %v5062_v40, %v2115_v60  ;;  %v2146_v60 = vmul.f32 %v5059_v5, %v2142_v46  ;;  %s2249_s6 = sld [smem:[#allocation2 + %s2248_s4]] }
 0x212   : > { %v5064_v25 = vpop.permute.xlu1 %1628  ;;  %v5066_v13 = vpop.permute.xlu0 %1626 }
 0x213   : > { %7351 = vst [vmem:[#allocation127_spill] sm:$0xff] %v5064_v25  ;;  %7352 = vst [vmem:[#allocation128_spill] sm:$0xff] %v5066_v13  ;;  %v2144_v13 = vmul.f32 %v5045_v48, %v2142_v46 }
 0x214   : > { %2126 = vrot.lane.b32.xlu1 %v2117_v3, %s7211_s21  ;;  %2124 = vrot.lane.b32.xlu0 %v2116_v18, %s7211_s21  ;;  %v2143_v3 = vmul.f32 %v5048_v34, %v2142_v46 }
 0x216   : > { %v5073_v32 = vpop.permute.xlu1 %1651  ;;  %v5075_v63 = vpop.permute.xlu0 %1649 }
 0x217   : > { %7353 = vst [vmem:[#allocation129_spill] sm:$0xff] %v5073_v32  ;;  %7354 = vst [vmem:[#allocation130_spill] sm:$0xff] %v5075_v63  ;;  %v2169_v63 = vstv %s2168_s7  ;;  %s2275_s7 = sadd.s32 23, %s4043_s29 }
 0x218   : > { %2130 = vrot.lane.b32.xlu1 %v2119_v37, %s7211_s21  ;;  %2128 = vrot.lane.b32.xlu0 %v2118_v50, %s7211_s21  ;;  %v2145_v37 = vmul.f32 %v5062_v40, %v2142_v46  ;;  %v2173_v46 = vmul.f32 %v5059_v5, %v2169_v63  ;;  %s2276_s20 = sld [smem:[#allocation2 + %s2275_s7]] }
 0x21a   : > { %v5081_v25 = vpop.permute.xlu1 %1655  ;;  %v5083_v18 = vpop.permute.xlu0 %1653 }
 0x21b   : > { %7355 = vst [vmem:[#allocation131_spill] sm:$0xff] %v5081_v25  ;;  %7356 = vst [vmem:[#allocation132_spill] sm:$0xff] %v5083_v18  ;;  %v2171_v18 = vmul.f32 %v5045_v48, %v2169_v63 }
 0x21c   : > { %2153 = vrot.lane.b32.xlu1 %v2144_v13, %s7211_s21  ;;  %2151 = vrot.lane.b32.xlu0 %v2143_v3, %s7211_s21  ;;  %v2170_v13 = vmul.f32 %v5048_v34, %v2169_v63 }
 0x21e   : > { %v5090_v50 = vpop.permute.xlu1 %1678  ;;  %v5092_v32 = vpop.permute.xlu0 %1676 }
 0x21f   : > { %7357 = vst [vmem:[#allocation133_spill] sm:$0xff] %v5090_v50  ;;  %7358 = vst [vmem:[#allocation134_spill] sm:$0xff] %v5092_v32  ;;  %v2196_v32 = vstv %s2195_s9  ;;  %s2302_s9 = sadd.s32 23, %s4067_s24 }
 0x220   : > { %2157 = vrot.lane.b32.xlu1 %v2146_v60, %s7211_s21  ;;  %2155 = vrot.lane.b32.xlu0 %v2145_v37, %s7211_s21  ;;  %v2172_v60 = vmul.f32 %v5062_v40, %v2169_v63  ;;  %v2200_v63 = vmul.f32 %v5059_v5, %v2196_v32  ;;  %s2303_s10 = sld [smem:[#allocation2 + %s2302_s9]] }
 0x222   : > { %v5098_v25 = vpop.permute.xlu1 %1682  ;;  %v5100_v3 = vpop.permute.xlu0 %1680 }
 0x223   : > { %7359 = vst [vmem:[#allocation135_spill] sm:$0xff] %v5098_v25  ;;  %7360 = vst [vmem:[#allocation136_spill] sm:$0xff] %v5100_v3  ;;  %v2198_v3 = vmul.f32 %v5045_v48, %v2196_v32 }
 0x224   : > { %2180 = vrot.lane.b32.xlu1 %v2171_v18, %s7211_s21  ;;  %2178 = vrot.lane.b32.xlu0 %v2170_v13, %s7211_s21  ;;  %v2197_v18 = vmul.f32 %v5048_v34, %v2196_v32 }
 0x226   : > { %v5107_v37 = vpop.permute.xlu1 %1705  ;;  %v5109_v50 = vpop.permute.xlu0 %1703 }
 0x227   : > { %7361 = vst [vmem:[#allocation137_spill] sm:$0xff] %v5107_v37  ;;  %7362 = vst [vmem:[#allocation138_spill] sm:$0xff] %v5109_v50  ;;  %v2223_v50 = vstv %s2222_s0  ;;  %s2377_s0 = sadd.s32 25, %s4022_s30 }
 0x228   : > { %2184 = vrot.lane.b32.xlu1 %v2173_v46, %s7211_s21  ;;  %2182 = vrot.lane.b32.xlu0 %v2172_v60, %s7211_s21  ;;  %v2199_v46 = vmul.f32 %v5062_v40, %v2196_v32  ;;  %v2227_v32 = vmul.f32 %v5059_v5, %v2223_v50  ;;  %s2378_s4 = sld [smem:[#allocation2 + %s2377_s0]] }
 0x22a   : > { %v5115_v25 = vpop.permute.xlu1 %1709  ;;  %v5117_v13 = vpop.permute.xlu0 %1707 }
 0x22b   : > { %7363 = vst [vmem:[#allocation139_spill] sm:$0xff] %v5115_v25  ;;  %7364 = vst [vmem:[#allocation140_spill] sm:$0xff] %v5117_v13  ;;  %v2225_v13 = vmul.f32 %v5045_v48, %v2223_v50 }
 0x22c   : > { %2207 = vrot.lane.b32.xlu1 %v2198_v3, %s7211_s21  ;;  %2205 = vrot.lane.b32.xlu0 %v2197_v18, %s7211_s21  ;;  %v2224_v3 = vmul.f32 %v5048_v34, %v2223_v50 }
 0x22e   : > { %v5124_v60 = vpop.permute.xlu1 %1732  ;;  %v5126_v37 = vpop.permute.xlu0 %1730 }
 0x22f   : > { %7365 = vst [vmem:[#allocation141_spill] sm:$0xff] %v5124_v60  ;;  %7366 = vst [vmem:[#allocation142_spill] sm:$0xff] %v5126_v37  ;;  %v2250_v37 = vstv %s2249_s6  ;;  %s2404_s6 = sadd.s32 25, %s4032_s11 }
 0x230   : > { %2211 = vrot.lane.b32.xlu1 %v2200_v63, %s7211_s21  ;;  %2209 = vrot.lane.b32.xlu0 %v2199_v46, %s7211_s21  ;;  %v2226_v63 = vmul.f32 %v5062_v40, %v2223_v50  ;;  %v2254_v50 = vmul.f32 %v5059_v5, %v2250_v37  ;;  %s2405_s7 = sld [smem:[#allocation2 + %s2404_s6]]  ;;  %s758_s6 = sadd.s32 6, %s4032_s11 }
 0x232   : > { %v5132_v25 = vpop.permute.xlu1 %1736  ;;  %v5134_v18 = vpop.permute.xlu0 %1734 }
 0x233   : > { %7367 = vst [vmem:[#allocation143_spill] sm:$0xff] %v5132_v25  ;;  %7368 = vst [vmem:[#allocation144_spill] sm:$0xff] %v5134_v18  ;;  %v2252_v18 = vmul.f32 %v5045_v48, %v2250_v37 }
 0x234   : > { %2234 = vrot.lane.b32.xlu1 %v2225_v13, %s7238_s28  ;;  %2232 = vrot.lane.b32.xlu0 %v2224_v3, %s7238_s28  ;;  %v2251_v13 = vmul.f32 %v5048_v34, %v2250_v37 }
 0x236   : > { %v5141_v46 = vpop.permute.xlu1 %1759  ;;  %v5143_v60 = vpop.permute.xlu0 %1757 }
 0x237   : > { %7369 = vst [vmem:[#allocation145_spill] sm:$0xff] %v5141_v46  ;;  %7370 = vst [vmem:[#allocation146_spill] sm:$0xff] %v5143_v60  ;;  %v2277_v60 = vstv %s2276_s20  ;;  %s2431_s20 = sadd.s32 25, %s4043_s29 }
 0x238   : > { %2238 = vrot.lane.b32.xlu1 %v2227_v32, %s7238_s28  ;;  %2236 = vrot.lane.b32.xlu0 %v2226_v63, %s7238_s28  ;;  %v2253_v32 = vmul.f32 %v5062_v40, %v2250_v37  ;;  %v2281_v37 = vmul.f32 %v5059_v5, %v2277_v60  ;;  %s2432_s9 = sld [smem:[#allocation2 + %s2431_s20]] }
 0x23a   : > { %v5149_v25 = vpop.permute.xlu1 %1763  ;;  %v5151_v3 = vpop.permute.xlu0 %1761 }
 0x23b   : > { %7371 = vst [vmem:[#allocation147_spill] sm:$0xff] %v5149_v25  ;;  %7372 = vst [vmem:[#allocation148_spill] sm:$0xff] %v5151_v3  ;;  %v2279_v3 = vmul.f32 %v5045_v48, %v2277_v60 }
 0x23c   : > { %2261 = vrot.lane.b32.xlu1 %v2252_v18, %s7238_s28  ;;  %2259 = vrot.lane.b32.xlu0 %v2251_v13, %s7238_s28  ;;  %v2278_v18 = vmul.f32 %v5048_v34, %v2277_v60 }
 0x23e   : > { %v5158_v63 = vpop.permute.xlu1 %1786  ;;  %v5160_v46 = vpop.permute.xlu0 %1784 }
 0x23f   : > { %7373 = vst [vmem:[#allocation149_spill] sm:$0xff] %v5158_v63  ;;  %7374 = vst [vmem:[#allocation150_spill] sm:$0xff] %v5160_v46 }
 0x240   : > { %2265 = vrot.lane.b32.xlu1 %v2254_v50, %s7238_s28  ;;  %2263 = vrot.lane.b32.xlu0 %v2253_v32, %s7238_s28  ;;  %v2280_v50 = vmul.f32 %v5062_v40, %v2277_v60  ;;  %v2304_v32 = vstv %s2303_s10  ;;  %s2458_s10 = sadd.s32 25, %s4067_s24 }
 0x241   : > { %v2308_v60 = vmul.f32 %v5059_v5, %v2304_v32  ;;  %s2459_s0 = sld [smem:[#allocation2 + %s2458_s10]] }
 0x242   : > { %v5166_v25 = vpop.permute.xlu1 %1790  ;;  %v5168_v13 = vpop.permute.xlu0 %1788  ;;  %s759_s10 = sld [smem:[#allocation2 + %s758_s6]]  ;;  %s1023_s6 = sadd.s32 9, %s4032_s11 }
 0x243   : > { %7375 = vst [vmem:[#allocation151_spill] sm:$0xff] %v5166_v25  ;;  %7376 = vst [vmem:[#allocation152_spill] sm:$0xff] %v5168_v13 }
 0x244   : > { %2288 = vrot.lane.b32.xlu1 %v2279_v3, %s7238_s28  ;;  %2286 = vrot.lane.b32.xlu0 %v2278_v18, %s7238_s28  ;;  %v2306_v3 = vmul.f32 %v5045_v48, %v2304_v32  ;;  %v2305_v18 = vmul.f32 %v5048_v34, %v2304_v32  ;;  %v2379_v48 = vstv %s2378_s4  ;;  %v5196_v34 = vld [vmem:[%s4038_s25 + $0x52] sm:$0xff]  ;;  %s747_s4 = sadd.s32 6, %s4022_s30 }
 0x245   : > { %v2380_v5 = vmul.f32 %v5196_v34, %v2379_v48  ;;  %s748_s20 = sld [smem:[#allocation2 + %s747_s4]] }
 0x246   : > { %v5175_v46 = vpop.permute.xlu1 %1862  ;;  %v5177_v63 = vpop.permute.xlu0 %1860  ;;  %s5264_s4 = sld [smem:[#allocation2 + %s780_s1]]  ;;  %s2512_s1 = sadd.s32 26, %s4032_s11 }
 0x247   : > { %7377 = vst [vmem:[#allocation153_spill] sm:$0xff] %v5175_v46  ;;  %7378 = vst [vmem:[#allocation154_spill] sm:$0xff] %v5177_v63 }
 0x248   : > { %2292 = vrot.lane.b32.xlu1 %v2281_v37, %s7238_s28  ;;  %2290 = vrot.lane.b32.xlu0 %v2280_v50, %s7238_s28  ;;  %v2307_v37 = vmul.f32 %v5062_v40, %v2304_v32  ;;  %v5193_v50 = vld [vmem:[%s4038_s25 + $0x5a] sm:$0xff]  ;;  %v5210_v40 = vld [vmem:[%s4038_s25 + $0x62] sm:$0xff] }
 0x24a   : > { %v5183_v13 = vpop.permute.xlu1 %1866  ;;  %v5185_v25 = vpop.permute.xlu0 %1864 }
 0x24b   : > { %7379 = vst [vmem:[#allocation155_spill] sm:$0xff] %v5183_v13  ;;  %7380 = vst [vmem:[#allocation156_spill] sm:$0xff] %v5185_v25 }
 0x24c   : > { %2315 = vrot.lane.b32.xlu1 %v2306_v3, %s7238_s28  ;;  %2313 = vrot.lane.b32.xlu0 %v2305_v18, %s7238_s28  ;;  %v2381_v3 = vmul.f32 %v5193_v50, %v2379_v48  ;;  %v5207_v18 = vld [vmem:[%s4038_s25 + $0x6a] sm:$0xff]  ;;  %v782_v19 = vstv %s5264_s4  ;;  %s2566_s4 = sadd.s32 26, %s4067_s24 }
 0x24d   : > { %v5333_v39 = vmul.f32 %v3711_v15, %v782_v19 }
 0x24e   : > { %v5198_v13 = vpop.permute.xlu1 %1889  ;;  %v5200_v25 = vpop.permute.xlu0 %1887 }
 0x24f   : > { %7381 = vst [vmem:[#allocation157_spill] sm:$0xff] %v5198_v13  ;;  %7382 = vst [vmem:[#allocation158_spill] sm:$0xff] %v5200_v25  ;;  %v2406_v25 = vstv %s2405_s7  ;;  %s2485_s7 = sadd.s32 26, %s4022_s30 }
 0x250   : > { %2319 = vrot.lane.b32.xlu1 %v2308_v60, %s7238_s28  ;;  %2317 = vrot.lane.b32.xlu0 %v2307_v37, %s7238_s28  ;;  %v2383_v60 = vmul.f32 %v5207_v18, %v2379_v48  ;;  %v2382_v37 = vmul.f32 %v5210_v40, %v2379_v48  ;;  %v2410_v48 = vmul.f32 %v5207_v18, %v2406_v25  ;;  %s2486_s23 = sld [smem:[#allocation2 + %s2485_s7]] }
 0x251   : > { %s5275_s7 = sld [smem:[#allocation2 + %s1023_s6]]  ;;  %7411 = vst [vmem:[#allocation186_spill] sm:$0xff] %v5333_v39 }
 0x252   : > { %v5212_v32 = vpop.permute.xlu1 %1893  ;;  %v5214_v63 = vpop.permute.xlu0 %1891  ;;  %s5290_s6 = sld [smem:[#allocation2 + %s2512_s1]] }
 0x253   : > { %7383 = vst [vmem:[#allocation159_spill] sm:$0xff] %v5212_v32  ;;  %7384 = vst [vmem:[#allocation160_spill] sm:$0xff] %v5214_v63  ;;  %v2408_v63 = vmul.f32 %v5193_v50, %v2406_v25 }
 0x254   : > { %2390 = vrot.lane.b32.xlu1 %v2381_v3, %s7211_s21  ;;  %2388 = vrot.lane.b32.xlu0 %v2380_v5, %s7211_s21  ;;  %v2407_v3 = vmul.f32 %v5196_v34, %v2406_v25 }
 0x256   : > { %v5221_v13 = vpop.permute.xlu1 %1916  ;;  %v5223_v46 = vpop.permute.xlu0 %1914 }
 0x257   : > { %7385 = vst [vmem:[#allocation161_spill] sm:$0xff] %v5221_v13  ;;  %7386 = vst [vmem:[#allocation162_spill] sm:$0xff] %v5223_v46 }
 0x258   : > { %2394 = vrot.lane.b32.xlu1 %v2383_v60, %s7211_s21  ;;  %2392 = vrot.lane.b32.xlu0 %v2382_v37, %s7211_s21  ;;  %v2409_v60 = vmul.f32 %v5210_v40, %v2406_v25  ;;  %v2433_v37 = vstv %s2432_s9  ;;  %s769_s9 = sadd.s32 6, %s4043_s29 }
 0x259   : > { %s770_s22 = sld [smem:[#allocation2 + %s769_s9]] }
 0x25a   : > { %v5229_v5 = vpop.permute.xlu1 %1920  ;;  %v5231_v32 = vpop.permute.xlu0 %1918 }
 0x25b   : > { %7387 = vst [vmem:[#allocation163_spill] sm:$0xff] %v5229_v5  ;;  %7388 = vst [vmem:[#allocation164_spill] sm:$0xff] %v5231_v32 }
 0x25c   : > { %2417 = vrot.lane.b32.xlu1 %v2408_v63, %s7211_s21  ;;  %2415 = vrot.lane.b32.xlu0 %v2407_v3, %s7211_s21  ;;  %v2435_v63 = vmul.f32 %v5193_v50, %v2433_v37  ;;  %v2434_v3 = vmul.f32 %v5196_v34, %v2433_v37 }
 0x25e   : > { %v5238_v46 = vpop.permute.xlu1 %1943  ;;  %v5240_v5 = vpop.permute.xlu0 %1941 }
 0x25f   : > { %7389 = vst [vmem:[#allocation165_spill] sm:$0xff] %v5238_v46  ;;  %7390 = vst [vmem:[#allocation166_spill] sm:$0xff] %v5240_v5  ;;  %v749_v46 = vstv %s748_s20  ;;  %v771_v24 = vstv %s770_s22  ;;  %s2539_s22 = sadd.s32 26, %s4043_s29  ;;  %s1287_s20 = sadd.s32 12, %s4032_s11 }
 0x260   : > { %2421 = vrot.lane.b32.xlu1 %v2410_v48, %s7211_s21  ;;  %2419 = vrot.lane.b32.xlu0 %v2409_v60, %s7211_s21  ;;  %v2437_v48 = vmul.f32 %v5207_v18, %v2433_v37  ;;  %v2436_v60 = vmul.f32 %v5210_v40, %v2433_v37  ;;  %v5296_v14 = vmul.f32 %v3711_v15, %v749_v46 }
 0x262   : > { %v5248_v32 = vpop.permute.xlu1 %1947  ;;  %v5250_v25 = vpop.permute.xlu0 %1945 }
 0x263   : > { %7391 = vst [vmem:[#allocation167_spill] sm:$0xff] %v5248_v32  ;;  %7392 = vst [vmem:[#allocation168_spill] sm:$0xff] %v5250_v25  ;;  %v2460_v32 = vstv %s2459_s0  ;;  %s1045_s0 = sadd.s32 9, %s4067_s24 }
 0x264   : > { %2444 = vrot.lane.b32.xlu1 %v2435_v63, %s7211_s21  ;;  %2442 = vrot.lane.b32.xlu0 %v2434_v3, %s7211_s21  ;;  %s1034_s21 = sadd.s32 9, %s4043_s29  ;;  %v2462_v37 = vmul.f32 %v5193_v50, %v2460_v32  ;;  %v2461_v63 = vmul.f32 %v5196_v34, %v2460_v32  ;;  %s5284_s9 = sld [smem:[#allocation2 + %s1045_s0]] }
 0x265   : > { %s5282_s2 = sld [smem:[#allocation2 + %s1034_s21]]  ;;  %s1298_s0 = sadd.s32 12, %s4043_s29 }
 0x266   : > { %v5260_v25 = vpop.permute.xlu1 %1970  ;;  %v5262_v5 = vpop.permute.xlu0 %1968  ;;  %s5366_s21 = sld [smem:[#allocation2 + %s2539_s22]]  ;;  %s1540_s22 = sadd.s32 15, %s4022_s30 }
 0x267   : > { %7393 = vst [vmem:[#allocation169_spill] sm:$0xff] %v5260_v25  ;;  %7394 = vst [vmem:[#allocation170_spill] sm:$0xff] %v5262_v5  ;;  %v2487_v25 = vstv %s2486_s23  ;;  %s5352_s23 = sld [smem:[#allocation2 + %s1276_s18]] }
 0x268   : > { %2448 = vrot.lane.b32.xlu1 %v2437_v48, %s7395_s17  ;;  %2446 = vrot.lane.b32.xlu0 %v2436_v60, %s7395_s17  ;;  %v760_v48 = vstv %s759_s10  ;;  %v2464_v60 = vmul.f32 %v5207_v18, %v2460_v32  ;;  %s5403_s10 = sld [smem:[#allocation2 + %s1287_s20]]  ;;  %s1551_s20 = sadd.s32 15, %s4032_s11 }
 0x269   : > { %v5311_v54 = vmul.f32 %v3711_v15, %v760_v48  ;;  %s5449_s1 = sld [smem:[#allocation2 + %s1298_s0]]  ;;  %s1562_s0 = sadd.s32 15, %s4043_s29 }
 0x26a   : > { %v5277_v3 = vpop.permute.xlu1 %1974  ;;  %v5279_v5 = vpop.permute.xlu0 %1972 }
 0x26b   : > { %7396 = vst [vmem:[#allocation171_spill] sm:$0xff] %v5277_v3  ;;  %7397 = vst [vmem:[#allocation172_spill] sm:$0xff] %v5279_v5  ;;  %v2463_v3 = vmul.f32 %v5210_v40, %v2460_v32  ;;  %v3710_v5 = vld [vmem:[%s4038_s25 + $0xa] sm:$0xff]  ;;  %v3713_v32 = vld [vmem:[%s4038_s25 + $0x12] sm:$0xff]  ;;  %v1036_v39 = vstv %s5282_s2  ;;  %s1309_s2 = sadd.s32 12, %s4067_s24 }
 0x26c   : > { %2471 = vrot.lane.b32.xlu1 %v2462_v37, %s7395_s17  ;;  %2469 = vrot.lane.b32.xlu0 %v2461_v63, %s7395_s17  ;;  %v5293_v13 = vmul.f32 %v3710_v5, %v749_v46  ;;  %v3712_v63 = vld [vmem:[%s4038_s25 + $0x1a] sm:$0xff]  ;;  %v5306_v61 = vmul.f32 %v3713_v32, %v749_v46  ;;  %v5308_v27 = vmul.f32 %v3710_v5, %v760_v48 }
 0x26d   : > { %v5303_v42 = vmul.f32 %v3712_v63, %v749_v46  ;;  %7403 = vst [vmem:[#allocation178_spill] sm:$0xff] %v5311_v54  ;;  %v5320_v46 = vmul.f32 %v3713_v32, %v760_v48  ;;  %v5324_v54 = vmul.f32 %v3711_v15, %v771_v24 }
 0x26e   : > { %v5298_v6 = vpop.permute.xlu1 %1997  ;;  %v5300_v37 = vpop.permute.xlu0 %1995  ;;  %7401 = vst [vmem:[#allocation176_spill] sm:$0xff] %v5306_v61  ;;  %7402 = vst [vmem:[#allocation177_spill] sm:$0xff] %v5308_v27  ;;  %v5322_v27 = vmul.f32 %v3710_v5, %v771_v24  ;;  %v5331_v61 = vmul.f32 %v3710_v5, %v782_v19  ;;  %v1025_v5 = vstv %s5275_s7  ;;  %s5438_s7 = sld [smem:[#allocation2 + %s2566_s4]] }
 0x26f   : > { %7398 = vst [vmem:[#allocation173_spill] sm:$0xff] %v5298_v6  ;;  %7399 = vst [vmem:[#allocation174_spill] sm:$0xff] %v5300_v37  ;;  %v2489_v37 = vmul.f32 %v5193_v50, %v2487_v25  ;;  %v2488_v6 = vmul.f32 %v5196_v34, %v2487_v25  ;;  %s5625_s4 = sld [smem:[#allocation2 + %s1551_s20]]  ;;  %s1816_s20 = sadd.s32 18, %s4032_s11 }
 0x270   : > { %7400 = vst [vmem:[#allocation175_spill] sm:$0xff] %v5303_v42  ;;  %2475 = vrot.lane.b32.xlu1 %v2464_v60, %s7395_s17  ;;  %2473 = vrot.lane.b32.xlu0 %v2463_v3, %s7395_s17  ;;  %v5318_v42 = vmul.f32 %v3712_v63, %v760_v48  ;;  %7405 = vst [vmem:[#allocation180_spill] sm:$0xff] %v5320_v46  ;;  %v5327_v60 = vmul.f32 %v3712_v63, %v771_v24  ;;  %v3714_v46 = vld [vmem:[%s4038_s25 + $0x30] sm:$0xff] }
 0x271   : > { %7406 = vst [vmem:[#allocation181_spill] sm:$0xff] %v5322_v27  ;;  %7407 = vst [vmem:[#allocation182_spill] sm:$0xff] %v5324_v54  ;;  %v5329_v3 = vmul.f32 %v3713_v32, %v771_v24  ;;  %v5340_v27 = vmul.f32 %v3712_v63, %v782_v19  ;;  %v5342_v54 = vmul.f32 %v3713_v32, %v782_v19  ;;  %v3716_v32 = vld [vmem:[%s4038_s25 + $0x40] sm:$0xff] }
 0x272   : > { %7404 = vst [vmem:[#allocation179_spill] sm:$0xff] %v5318_v42  ;;  %7408 = vst [vmem:[#allocation183_spill] sm:$0xff] %v5327_v60  ;;  %v5335_v4 = vpop.permute.xlu1 %2001  ;;  %v5337_v48 = vpop.permute.xlu0 %1999  ;;  %v5345_v24 = vmul.f32 %v3714_v46, %v1014_v36  ;;  %v2491_v19 = vmul.f32 %v5207_v18, %v2487_v25  ;;  %v2490_v63 = vmul.f32 %v5210_v40, %v2487_v25 }
 0x273   : > { %7409 = vst [vmem:[#allocation184_spill] sm:$0xff] %v5329_v3  ;;  %7410 = vst [vmem:[#allocation185_spill] sm:$0xff] %v5331_v61  ;;  %v3715_v61 = vld [vmem:[%s4038_s25 + $0x28] sm:$0xff] }
 0x274   : > { %7412 = vst [vmem:[#allocation187_spill] sm:$0xff] %v5335_v4  ;;  %7413 = vst [vmem:[#allocation188_spill] sm:$0xff] %v5337_v48  ;;  %v5349_v15 = vmul.f32 %v3715_v61, %v1014_v36  ;;  %2498 = vrot.lane.b32.xlu1 %v2489_v37, %s7238_s28  ;;  %2496 = vrot.lane.b32.xlu0 %v2488_v6, %s7238_s28  ;;  %v5359_v48 = vmul.f32 %v3716_v32, %v1014_v36  ;;  %v3717_v4 = vld [vmem:[%s4038_s25 + $0x38] sm:$0xff] }
 0x275   : > { %7414 = vst [vmem:[#allocation189_spill] sm:$0xff] %v5340_v27  ;;  %7415 = vst [vmem:[#allocation190_spill] sm:$0xff] %v5342_v54  ;;  %v1047_v54 = vstv %s5284_s9  ;;  %v5368_v27 = vmul.f32 %v3714_v46, %v1025_v5  ;;  %v5370_v3 = vmul.f32 %v3715_v61, %v1025_v5  ;;  %v5372_v37 = vmul.f32 %v3716_v32, %v1025_v5  ;;  %s5501_s9 = sld [smem:[#allocation2 + %s1309_s2]]  ;;  %s1573_s2 = sadd.s32 15, %s4067_s24 }
 0x276   : > { %7416 = vst [vmem:[#allocation191_spill] sm:$0xff] %v5345_v24  ;;  %7417 = vst [vmem:[#allocation192_spill] sm:$0xff] %v5349_v15  ;;  %v5362_v24 = vmul.f32 %v3717_v4, %v1014_v36  ;;  %v2514_v15 = vstv %s5290_s6  ;;  %v5374_v6 = vmul.f32 %v3717_v4, %v1025_v5  ;;  %v5377_v25 = vpop.permute.xlu1 %2024  ;;  %v5379_v60 = vpop.permute.xlu0 %2022  ;;  %v5383_v36 = vmul.f32 %v3715_v61, %v1036_v39  ;;  %s2642_s6 = sadd.s32 28, %s4022_s30 }
 0x277   : > { %7418 = vst [vmem:[#allocation193_spill] sm:$0xff] %v5359_v48  ;;  %7420 = vst [vmem:[#allocation195_spill] sm:$0xff] %v5368_v27  ;;  %v5381_v48 = vmul.f32 %v3714_v46, %v1036_v39  ;;  %v5387_v42 = vmul.f32 %v3717_v4, %v1036_v39  ;;  %v5389_v27 = vmul.f32 %v3714_v46, %v1047_v54  ;;  %s5531_s18 = sld [smem:[#allocation2 + %s2642_s6]] }
 0x278   : > { %7419 = vst [vmem:[#allocation194_spill] sm:$0xff] %v5362_v24  ;;  %7421 = vst [vmem:[#allocation196_spill] sm:$0xff] %v5377_v25  ;;  %v5385_v24 = vmul.f32 %v3716_v32, %v1036_v39  ;;  %2502 = vrot.lane.b32.xlu1 %v2491_v19, %s7238_s28  ;;  %2500 = vrot.lane.b32.xlu0 %v2490_v63, %s7238_s28  ;;  %v2516_v5 = vmul.f32 %v5193_v50, %v2514_v15  ;;  %s5708_s6 = sld [smem:[#allocation2 + %s1573_s2]]  ;;  %s1838_s2 = sadd.s32 18, %s4067_s24 }
 0x279   : > { %7422 = vst [vmem:[#allocation197_spill] sm:$0xff] %v5379_v60  ;;  %7423 = vst [vmem:[#allocation198_spill] sm:$0xff] %v5383_v36  ;;  %v2515_v25 = vmul.f32 %v5196_v34, %v2514_v15  ;;  %v551_v60 = vadd.f32 %v4435_v52, %v4321_v38  ;;  %v5397_v36 = vmul.f32 %v3715_v61, %v1047_v54 }
 0x27a   : > { %7424 = vst [vmem:[#allocation199_spill] sm:$0xff] %v5385_v24  ;;  %v5399_v24 = vmul.f32 %v3716_v32, %v1047_v54  ;;  %v5401_v39 = vmul.f32 %v3717_v4, %v1047_v54  ;;  %v550_v46 = vadd.f32 %v4437_v57, %v4323_v43  ;;  %v553_v19 = vadd.f32 %v4443_v58, %v4342_v8  ;;  %v5413_v52 = vpop.permute.xlu1 %2028  ;;  %v5415_v4 = vpop.permute.xlu0 %2026  ;;  %v7433_v32 = vld [vmem:[#allocation175_spill] sm:$0xff] }
 0x27b   : > { %v552_v63 = vadd.f32 %v4445_v59, %v4344_v9  ;;  %v578_v38 = vadd.f32 %v4458_v51, %v4361_v21  ;;  %7425 = vst [vmem:[#allocation200_spill] sm:$0xff] %v5413_v52  ;;  %7426 = vst [vmem:[#allocation201_spill] sm:$0xff] %v5415_v4  ;;  %v577_v54 = vadd.f32 %v4460_v2, %v4363_v22  ;;  %v2541_v58 = vstv %s5366_s21  ;;  %s5582_s21 = sld [smem:[#allocation2 + %s1540_s22]]  ;;  %v5711_v4 = vld [vmem:[%s4038_s25 + $0x42] sm:$0xff]  ;;  %s1805_s22 = sadd.s32 18, %s4022_s30 }
 0x27c   : > { %v580_v43 = vadd.f32 %v4472_v1, %v4379_v53  ;;  %v579_v8 = vadd.f32 %v4474_v12, %v4381_v56  ;;  %v605_v9 = vadd.f32 %v4481_v16, %v4394_v10  ;;  %v604_v21 = vadd.f32 %v4483_v35, %v4396_v11  ;;  %2525 = vrot.lane.b32.xlu1 %v2516_v5, %s7238_s28  ;;  %v5465_v16 = vld [vmem:[%s4038_s25 + $0x31] sm:$0xff]  ;;  %v7434_v5 = vld [vmem:[#allocation176_spill] sm:$0xff] }
 0x27d   : > { %2523 = vrot.lane.b32.xlu0 %v2515_v25, %s7238_s28  ;;  %v2518_v57 = vmul.f32 %v5207_v18, %v2514_v15  ;;  %v2517_v22 = vmul.f32 %v5210_v40, %v2514_v15  ;;  %v607_v53 = vadd.f32 %v4489_v55, %v4410_v0  ;;  %v659_v56 = vadd.f32 %v4515_v30, %v551_v60  ;;  %v7432_v60 = vld [vmem:[#allocation16_spill] sm:$0xff] }
 0x27e   : > { %v1278_v10 = vstv %s5352_s23  ;;  %v606_v11 = vadd.f32 %v4491_v17, %v4412_v20  ;;  %v632_v59 = vadd.f32 %v4498_v23, %v4422_v31  ;;  %v5446_v51 = vadd.f32 %v4500_v26, %v4424_v33  ;;  %v5451_v2 = vpop.permute.xlu1 %2051  ;;  %v5453_v1 = vpop.permute.xlu0 %2049  ;;  %v5479_v23 = vld [vmem:[%s4038_s25 + $0x29] sm:$0xff]  ;;  %s2669_s23 = sadd.s32 28, %s4032_s11 }
 0x27f   : > { %v658_v0 = vadd.f32 %v4517_v41, %v550_v46  ;;  %7427 = vst [vmem:[#allocation202_spill] sm:$0xff] %v5451_v2  ;;  %7428 = vst [vmem:[#allocation203_spill] sm:$0xff] %v5453_v1  ;;  %v634_v20 = vadd.f32 %v4506_v29, %v4431_v7  ;;  %v5459_v31 = vadd.f32 %v4508_v44, %v4433_v47  ;;  %v1289_v29 = vstv %s5403_s10  ;;  %v5490_v41 = vld [vmem:[%s4038_s25 + $0x41] sm:$0xff]  ;;  %s5604_s10 = sld [smem:[#allocation2 + %s2669_s23]]  ;;  %v7473_v1 = vld [vmem:[#allocation34_spill] sm:$0xff] }
 0x280   : > { %v661_v33 = vadd.f32 %v4523_v45, %v553_v19  ;;  %v660_v12 = vadd.f32 %v4525_v49, %v552_v63  ;;  %v5468_v35 = vmul.f32 %v5465_v16, %v1278_v10  ;;  %2529 = vrot.lane.b32.xlu1 %v2518_v57, %s7238_s28  ;;  %v2543_v7 = vmul.f32 %v5193_v50, %v2541_v58  ;;  %v5496_v49 = vld [vmem:[%s4038_s25 + $0x39] sm:$0xff] }
 0x281   : > { %2527 = vrot.lane.b32.xlu0 %v2517_v22, %s7238_s28  ;;  %v2542_v47 = vmul.f32 %v5196_v34, %v2541_v58  ;;  %v686_v55 = vadd.f32 %v4532_v28, %v578_v38  ;;  %v5476_v17 = vadd.f32 %v5293_v13, %v659_v56  ;;  %v5482_v26 = vmul.f32 %v5479_v23, %v1278_v10 }
 0x282   : > { %v685_v44 = vadd.f32 %v4534_v62, %v577_v54  ;;  %v5487_v30 = vadd.f32 %v5296_v14, %v658_v0  ;;  %v5493_v45 = vmul.f32 %v5490_v41, %v1278_v10  ;;  %v5499_v28 = vmul.f32 %v5496_v49, %v1278_v10  ;;  %v5503_v61 = vpop.permute.xlu1 %2055  ;;  %v5505_v13 = vpop.permute.xlu0 %2053  ;;  %v7431_v62 = vld [vmem:[#allocation15_spill] sm:$0xff]  ;;  %v7435_v54 = vld [vmem:[#allocation17_spill] sm:$0xff]  ;;  %v7437_v10 = vld [vmem:[#allocation18_spill] sm:$0xff] }
 0x283   : > { %7429 = vst [vmem:[#allocation204_spill] sm:$0xff] %v5503_v61  ;;  %7430 = vst [vmem:[#allocation205_spill] sm:$0xff] %v5505_v13  ;;  %v688_v14 = vadd.f32 %v7431_v62, %v580_v43  ;;  %v687_v15 = vadd.f32 %v7432_v60, %v579_v8  ;;  %v5511_v25 = vadd.f32 %v7433_v32, %v661_v33  ;;  %v7436_v8 = vld [vmem:[#allocation177_spill] sm:$0xff]  ;;  %v2568_v56 = vstv %s5438_s7  ;;  %v7438_v33 = vld [vmem:[#allocation178_spill] sm:$0xff]  ;;  %s2696_s7 = sadd.s32 28, %s4043_s29 }
 0x284   : > { %v5514_v46 = vadd.f32 %v7434_v5, %v660_v12  ;;  %v5517_v19 = vmul.f32 %v5465_v16, %v1289_v29  ;;  %2552 = vrot.lane.b32.xlu1 %v2543_v7, %s7238_s28  ;;  %v2545_v63 = vmul.f32 %v5207_v18, %v2541_v58  ;;  %v2544_v38 = vmul.f32 %v5210_v40, %v2541_v58  ;;  %v7442_v60 = vld [vmem:[#allocation179_spill] sm:$0xff]  ;;  %v7443_v5 = vld [vmem:[#allocation180_spill] sm:$0xff] }
 0x285   : > { %2550 = vrot.lane.b32.xlu0 %v2542_v47, %s7238_s28  ;;  %v713_v43 = vadd.f32 %v7435_v54, %v605_v9  ;;  %v5525_v57 = vadd.f32 %v7436_v8, %v686_v55  ;;  %v5528_v22 = vmul.f32 %v5479_v23, %v1289_v29  ;;  %v712_v0 = vadd.f32 %v7437_v10, %v604_v21  ;;  %v7441_v55 = vld [vmem:[#allocation19_spill] sm:$0xff]  ;;  %v7444_v21 = vld [vmem:[#allocation20_spill] sm:$0xff] }
 0x286   : > { %v765_v12 = vadd.f32 %v7438_v33, %v685_v44  ;;  %v5536_v7 = vmul.f32 %v5490_v41, %v1289_v29  ;;  %v1300_v58 = vstv %s5449_s1  ;;  %v5539_v47 = vpop.permute.xlu1 %2126  ;;  %v5541_v9 = vpop.permute.xlu0 %2124  ;;  %v715_v62 = vadd.f32 %v7441_v55, %v607_v53  ;;  %v7445_v33 = vld [vmem:[#allocation21_spill] sm:$0xff]  ;;  %v7474_v13 = vld [vmem:[#allocation35_spill] sm:$0xff]  ;;  %s5664_s1 = sld [smem:[#allocation2 + %s1562_s0]]  ;;  %s1827_s0 = sadd.s32 18, %s4043_s29 }
 0x287   : > { %7439 = vst [vmem:[#allocation15_spill] sm:$0xff] %v5539_v47  ;;  %7440 = vst [vmem:[#allocation16_spill] sm:$0xff] %v5541_v9  ;;  %v768_v32 = vadd.f32 %v7442_v60, %v688_v14  ;;  %v767_v54 = vadd.f32 %v7443_v5, %v687_v15  ;;  %v5547_v8 = vmul.f32 %v5496_v49, %v1289_v29  ;;  %v7446_v55 = vld [vmem:[#allocation181_spill] sm:$0xff]  ;;  %v7447_v15 = vld [vmem:[#allocation22_spill] sm:$0xff]  ;;  %v1311_v9 = vstv %s5501_s9  ;;  %s5680_s9 = sld [smem:[#allocation2 + %s2696_s7]] }
 0x288   : > { %v714_v44 = vadd.f32 %v7444_v21, %v606_v11  ;;  %2556 = vrot.lane.b32.xlu1 %v2545_v63, %s7238_s28  ;;  %v2570_v10 = vmul.f32 %v5193_v50, %v2568_v56  ;;  %v2569_v53 = vmul.f32 %v5196_v34, %v2568_v56  ;;  %v740_v14 = vadd.f32 %v7445_v33, %v632_v59  ;;  %v7448_v5 = vld [vmem:[#allocation23_spill] sm:$0xff]  ;;  %v7449_v21 = vld [vmem:[#allocation182_spill] sm:$0xff] }
 0x289   : > { %2554 = vrot.lane.b32.xlu0 %v2544_v38, %s7238_s28  ;;  %v777_v60 = vadd.f32 %v7446_v55, %v713_v43  ;;  %v5558_v29 = vmul.f32 %v5465_v16, %v1300_v58  ;;  %v5561_v11 = vmul.f32 %v5479_v23, %v1300_v58  ;;  %v739_v63 = vadd.f32 %v7447_v15, %v5446_v51  ;;  %v7452_v43 = vld [vmem:[#allocation24_spill] sm:$0xff]  ;;  %v7453_v55 = vld [vmem:[#allocation183_spill] sm:$0xff] }
 0x28a   : > { %v742_v38 = vadd.f32 %v7448_v5, %v634_v20  ;;  %v776_v50 = vadd.f32 %v7449_v21, %v712_v0  ;;  %v5568_v34 = vpop.permute.xlu1 %2130  ;;  %v5570_v59 = vpop.permute.xlu0 %2128  ;;  %v741_v33 = vadd.f32 %v7452_v43, %v5459_v31  ;;  %v779_v47 = vadd.f32 %v7453_v55, %v715_v62  ;;  %v7454_v0 = vld [vmem:[#allocation184_spill] sm:$0xff]  ;;  %v7455_v62 = vld [vmem:[#allocation185_spill] sm:$0xff]  ;;  %v5598_v55 = vld [vmem:[%s4038_s25 + $0x80] sm:$0xff] }
 0x28b   : > { %7450 = vst [vmem:[#allocation175_spill] sm:$0xff] %v5568_v34  ;;  %7451 = vst [vmem:[#allocation176_spill] sm:$0xff] %v5570_v59  ;;  %v5577_v51 = vmul.f32 %v5490_v41, %v1300_v58  ;;  %v5580_v20 = vmul.f32 %v5496_v49, %v1300_v58  ;;  %v778_v15 = vadd.f32 %v7454_v0, %v714_v44  ;;  %v2644_v44 = vstv %s5531_s18  ;;  %v5602_v0 = vld [vmem:[%s4038_s25 + $0x78] sm:$0xff]  ;;  %s2723_s18 = sadd.s32 28, %s4067_s24 }
 0x28c   : > { %2579 = vrot.lane.b32.xlu1 %v2570_v10, %s7238_s28  ;;  %v2572_v31 = vmul.f32 %v5207_v18, %v2568_v56  ;;  %v2571_v5 = vmul.f32 %v5210_v40, %v2568_v56  ;;  %v788_v21 = vadd.f32 %v7455_v62, %v740_v14  ;;  %v5592_v43 = vmul.f32 %v5465_v16, %v1311_v9  ;;  %v7457_v10 = vld [vmem:[#allocation186_spill] sm:$0xff]  ;;  %v7463_v62 = vld [vmem:[#allocation25_spill] sm:$0xff]  ;;  %s5762_s23 = sld [smem:[#allocation2 + %s2723_s18]] }
 0x28d   : > { %2577 = vrot.lane.b32.xlu0 %v2569_v53, %s7238_s28  ;;  %v5595_v58 = vmul.f32 %v5479_v23, %v1311_v9  ;;  %v787_v18 = vadd.f32 %v7457_v10, %v739_v63  ;;  %v7458_v53 = vld [vmem:[#allocation189_spill] sm:$0xff]  ;;  %v5609_v56 = vmul.f32 %v5490_v41, %v1311_v9  ;;  %v5612_v16 = vmul.f32 %v5496_v49, %v1311_v9  ;;  %v7464_v34 = vld [vmem:[#allocation26_spill] sm:$0xff]  ;;  %v7467_v49 = vld [vmem:[#allocation28_spill] sm:$0xff] }
 0x28e   : > { %v790_v40 = vadd.f32 %v7458_v53, %v742_v38  ;;  %v5614_v23 = vpop.permute.xlu1 %2153  ;;  %v5616_v14 = vpop.permute.xlu0 %2151  ;;  %v815_v59 = vadd.f32 %v7463_v62, %v5476_v17  ;;  %v814_v63 = vadd.f32 %v7464_v34, %v5487_v30  ;;  %v7465_v38 = vld [vmem:[#allocation27_spill] sm:$0xff]  ;;  %v7466_v41 = vld [vmem:[#allocation190_spill] sm:$0xff]  ;;  %v816_v9 = vadd.f32 %v7467_v49, %v5514_v46  ;;  %v7468_v34 = vld [vmem:[#allocation29_spill] sm:$0xff] }
 0x28f   : > { %7456 = vst [vmem:[#allocation17_spill] sm:$0xff] %v5595_v58  ;;  %7459 = vst [vmem:[#allocation177_spill] sm:$0xff] %v5609_v56  ;;  %v817_v10 = vadd.f32 %v7465_v38, %v5511_v25  ;;  %v789_v53 = vadd.f32 %v7466_v41, %v741_v33  ;;  %v2646_v17 = vmul.f32 %v5598_v55, %v2644_v44  ;;  %v7469_v62 = vld [vmem:[#allocation30_spill] sm:$0xff]  ;;  %v7470_v38 = vld [vmem:[#allocation31_spill] sm:$0xff] }
 0x290   : > { %7460 = vst [vmem:[#allocation18_spill] sm:$0xff] %v5612_v16  ;;  %7461 = vst [vmem:[#allocation178_spill] sm:$0xff] %v5614_v23  ;;  %2583 = vrot.lane.b32.xlu1 %v2572_v31, %s7238_s28  ;;  %v2645_v30 = vmul.f32 %v5602_v0, %v2644_v44  ;;  %v842_v25 = vadd.f32 %v7468_v34, %v5525_v57  ;;  %v841_v33 = vadd.f32 %v7469_v62, %v765_v12  ;;  %v5640_v49 = vld [vmem:[%s4038_s25 + $0x90] sm:$0xff]  ;;  %v5643_v31 = vld [vmem:[%s4038_s25 + $0x88] sm:$0xff] }
 0x291   : > { %7462 = vst [vmem:[#allocation19_spill] sm:$0xff] %v5616_v14  ;;  %2581 = vrot.lane.b32.xlu0 %v2571_v5, %s7238_s28  ;;  %v844_v41 = vadd.f32 %v7470_v38, %v768_v32  ;;  %v7471_v14 = vld [vmem:[#allocation32_spill] sm:$0xff]  ;;  %v7472_v5 = vld [vmem:[#allocation33_spill] sm:$0xff]  ;;  %v868_v2 = vadd.f32 %v7473_v1, %v776_v50  ;;  %v5648_v61 = vadd.f32 %v7474_v13, %v779_v47  ;;  %v1542_v1 = vstv %s5582_s21  ;;  %v7481_v13 = vld [vmem:[#allocation38_spill] sm:$0xff]  ;;  %s5785_s21 = sld [smem:[#allocation2 + %s1805_s22]]  ;;  %s2069_s22 = sadd.s32 21, %s4022_s30 }
 0x292   : > { %v843_v46 = vadd.f32 %v7471_v14, %v767_v54  ;;  %v869_v23 = vadd.f32 %v7472_v5, %v777_v60  ;;  %v7475_v57 = vld [vmem:[#allocation36_spill] sm:$0xff]  ;;  %v5653_v12 = vpop.permute.xlu1 %2157  ;;  %v5655_v32 = vpop.permute.xlu0 %2155  ;;  %v7478_v54 = vld [vmem:[#allocation37_spill] sm:$0xff]  ;;  %v7480_v60 = vld [vmem:[#allocation42_spill] sm:$0xff]  ;;  %v5667_v47 = vadd.f32 %v7481_v13, %v787_v18  ;;  %v2648_v50 = vmul.f32 %v5640_v49, %v2644_v44 }
 0x293   : > { %v5651_v34 = vadd.f32 %v7475_v57, %v778_v15  ;;  %7476 = vst [vmem:[#allocation179_spill] sm:$0xff] %v5653_v12  ;;  %7477 = vst [vmem:[#allocation180_spill] sm:$0xff] %v5655_v32  ;;  %v5659_v14 = vadd.f32 %v7478_v54, %v788_v21  ;;  %v7479_v62 = vld [vmem:[#allocation41_spill] sm:$0xff]  ;;  %v922_v5 = vadd.f32 %v7480_v60, %v814_v63  ;;  %v7483_v63 = vld [vmem:[#allocation40_spill] sm:$0xff]  ;;  %v2671_v18 = vstv %s5604_s10  ;;  %s2750_s10 = sadd.s32 29, %s4022_s30 }
 0x294   : > { %v923_v38 = vadd.f32 %v7479_v62, %v815_v59  ;;  %2655 = vrot.lane.b32.xlu1 %v2646_v17, %s7395_s17  ;;  %v2647_v15 = vmul.f32 %v5643_v31, %v2644_v44  ;;  %v7482_v59 = vld [vmem:[#allocation39_spill] sm:$0xff]  ;;  %v5676_v57 = vadd.f32 %v7483_v63, %v789_v53  ;;  %v7485_v60 = vld [vmem:[#allocation44_spill] sm:$0xff]  ;;  %v7486_v13 = vld [vmem:[#allocation45_spill] sm:$0xff]  ;;  %v1553_v12 = vstv %s5625_s4  ;;  %s5821_s4 = sld [smem:[#allocation2 + %s1816_s20]]  ;;  %s2080_s20 = sadd.s32 21, %s4032_s11 }
 0x295   : > { %2653 = vrot.lane.b32.xlu0 %v2645_v30, %s7395_s17  ;;  %v898_v21 = vadd.f32 %v7482_v59, %v790_v40  ;;  %v7484_v54 = vld [vmem:[#allocation43_spill] sm:$0xff]  ;;  %v924_v17 = vadd.f32 %v7485_v60, %v816_v9  ;;  %v950_v30 = vadd.f32 %v7486_v13, %v842_v25  ;;  %v5685_v32 = vld [vmem:[%s4038_s25 + $0x32] sm:$0xff]  ;;  %v5691_v40 = vld [vmem:[%s4038_s25 + $0x2a] sm:$0xff]  ;;  %v5714_v52 = vmul.f32 %v5711_v4, %v1542_v1  ;;  %s5834_s7 = sld [smem:[#allocation2 + %s2750_s10]] }
 0x296   : > { %v925_v62 = vadd.f32 %v7484_v54, %v817_v10  ;;  %v5688_v44 = vmul.f32 %v5685_v32, %v1542_v1  ;;  %v5694_v53 = vmul.f32 %v5691_v40, %v1542_v1  ;;  %v5696_v59 = vpop.permute.xlu1 %2180  ;;  %v5698_v10 = vpop.permute.xlu0 %2178  ;;  %v7491_v63 = vld [vmem:[#allocation46_spill] sm:$0xff]  ;;  %v7492_v9 = vld [vmem:[#allocation191_spill] sm:$0xff]  ;;  %v7493_v25 = vld [vmem:[#allocation192_spill] sm:$0xff]  ;;  %v5735_v56 = vmul.f32 %v5685_v32, %v1553_v12 }
 0x297   : > { %7489 = vst [vmem:[#allocation181_spill] sm:$0xff] %v5696_v59  ;;  %7490 = vst [vmem:[#allocation22_spill] sm:$0xff] %v5698_v10  ;;  %v949_v54 = vadd.f32 %v7491_v63, %v841_v33  ;;  %v5702_v60 = vadd.f32 %v7492_v9, %v923_v38  ;;  %v5705_v13 = vadd.f32 %v7493_v25, %v922_v5  ;;  %v7495_v63 = vld [vmem:[#allocation47_spill] sm:$0xff]  ;;  %v7496_v9 = vld [vmem:[#allocation48_spill] sm:$0xff] }
 0x298   : > { %7487 = vst [vmem:[#allocation20_spill] sm:$0xff] %v5688_v44  ;;  %7488 = vst [vmem:[#allocation21_spill] sm:$0xff] %v5694_v53  ;;  %2659 = vrot.lane.b32.xlu1 %v2648_v50, %s7395_s17  ;;  %v2673_v33 = vmul.f32 %v5598_v55, %v2671_v18  ;;  %v2672_v38 = vmul.f32 %v5602_v0, %v2671_v18  ;;  %v952_v5 = vadd.f32 %v7495_v63, %v844_v41  ;;  %v7497_v10 = vld [vmem:[#allocation193_spill] sm:$0xff]  ;;  %v3725_v53 = vld [vmem:[%s4038_s25 + $0x3a] sm:$0xff] }
 0x299   : > { %7494 = vst [vmem:[#allocation23_spill] sm:$0xff] %v5714_v52  ;;  %2657 = vrot.lane.b32.xlu0 %v2647_v15, %s7395_s17  ;;  %v951_v25 = vadd.f32 %v7496_v9, %v843_v46  ;;  %v5723_v59 = vadd.f32 %v7497_v10, %v925_v62  ;;  %v5726_v44 = vmul.f32 %v3725_v53, %v1542_v1  ;;  %v7498_v52 = vld [vmem:[#allocation194_spill] sm:$0xff]  ;;  %v7499_v50 = vld [vmem:[#allocation195_spill] sm:$0xff]  ;;  %v7502_v1 = vld [vmem:[#allocation49_spill] sm:$0xff] }
 0x29a   : > { %v5729_v16 = vadd.f32 %v7498_v52, %v924_v17  ;;  %v5732_v15 = vadd.f32 %v7499_v50, %v950_v30  ;;  %v5738_v58 = vmul.f32 %v5691_v40, %v1553_v12  ;;  %v5740_v41 = vpop.permute.xlu1 %2184  ;;  %v5742_v46 = vpop.permute.xlu0 %2182  ;;  %v977_v62 = vadd.f32 %v7502_v1, %v869_v23  ;;  %v7503_v50 = vld [vmem:[#allocation50_spill] sm:$0xff] }
 0x29b   : > { %7500 = vst [vmem:[#allocation182_spill] sm:$0xff] %v5740_v41  ;;  %7501 = vst [vmem:[#allocation24_spill] sm:$0xff] %v5742_v46  ;;  %v1030_v52 = vadd.f32 %v5370_v3, %v949_v54  ;;  %v5748_v17 = vmul.f32 %v5711_v4, %v1553_v12  ;;  %v1564_v30 = vstv %s5664_s1  ;;  %v5751_v10 = vmul.f32 %v3725_v53, %v1553_v12  ;;  %v7504_v12 = vld [vmem:[#allocation51_spill] sm:$0xff]  ;;  %s5853_s1 = sld [smem:[#allocation2 + %s1827_s0]]  ;;  %s2091_s0 = sadd.s32 21, %s4043_s29 }
 0x29c   : > { %2682 = vrot.lane.b32.xlu1 %v2673_v33, %s7395_s17  ;;  %v2675_v63 = vmul.f32 %v5640_v49, %v2671_v18  ;;  %v2674_v9 = vmul.f32 %v5643_v31, %v2671_v18  ;;  %v976_v46 = vadd.f32 %v7503_v50, %v868_v2  ;;  %v1033_v23 = vadd.f32 %v5372_v37, %v952_v5 }
 0x29d   : > { %2680 = vrot.lane.b32.xlu0 %v2672_v38, %s7395_s17  ;;  %v1032_v3 = vadd.f32 %v5374_v6, %v951_v25  ;;  %v2698_v54 = vstv %s5680_s9  ;;  %v979_v33 = vadd.f32 %v7504_v12, %v5648_v61  ;;  %v7505_v38 = vld [vmem:[#allocation52_spill] sm:$0xff]  ;;  %v5769_v41 = vmul.f32 %v5685_v32, %v1564_v30  ;;  %v7510_v6 = vld [vmem:[#allocation53_spill] sm:$0xff]  ;;  %v7511_v25 = vld [vmem:[#allocation54_spill] sm:$0xff]  ;;  %s2777_s9 = sadd.s32 29, %s4032_s11 }
 0x29e   : > { %v978_v1 = vadd.f32 %v7505_v38, %v5651_v34  ;;  %v5772_v18 = vmul.f32 %v5691_v40, %v1564_v30  ;;  %v5774_v2 = vpop.permute.xlu1 %2207  ;;  %v5776_v37 = vpop.permute.xlu0 %2205  ;;  %v1004_v5 = vadd.f32 %v7510_v6, %v5659_v14  ;;  %v1003_v61 = vadd.f32 %v7511_v25, %v5667_v47  ;;  %v7512_v12 = vld [vmem:[#allocation55_spill] sm:$0xff]  ;;  %v7513_v14 = vld [vmem:[#allocation56_spill] sm:$0xff]  ;;  %v7514_v47 = vld [vmem:[#allocation198_spill] sm:$0xff]  ;;  %s5909_s18 = sld [smem:[#allocation2 + %s2777_s9]] }
 0x29f   : > { %7506 = vst [vmem:[#allocation183_spill] sm:$0xff] %v5769_v41  ;;  %7508 = vst [vmem:[#allocation185_spill] sm:$0xff] %v5774_v2  ;;  %v1042_v50 = vadd.f32 %v5381_v48, %v977_v62  ;;  %v1575_v34 = vstv %s5708_s6  ;;  %v1006_v38 = vadd.f32 %v7512_v12, %v898_v21  ;;  %v2699_v2 = vmul.f32 %v5602_v0, %v2698_v54  ;;  %v7515_v62 = vld [vmem:[#allocation199_spill] sm:$0xff]  ;;  %s5895_s6 = sld [smem:[#allocation2 + %s1838_s2]]  ;;  %s2102_s2 = sadd.s32 21, %s4067_s24 }
 0x2a0   : > { %7507 = vst [vmem:[#allocation184_spill] sm:$0xff] %v5772_v18  ;;  %7509 = vst [vmem:[#allocation186_spill] sm:$0xff] %v5776_v37  ;;  %2686 = vrot.lane.b32.xlu1 %v2675_v63, %s7395_s17  ;;  %v2700_v37 = vmul.f32 %v5598_v55, %v2698_v54  ;;  %v1005_v6 = vadd.f32 %v7513_v14, %v5676_v57  ;;  %v1041_v25 = vadd.f32 %v7514_v47, %v976_v46 }
 0x2a1   : > { %2684 = vrot.lane.b32.xlu0 %v2674_v9, %s7395_s17  ;;  %v5795_v48 = vmul.f32 %v5711_v4, %v1564_v30  ;;  %v5797_v21 = vmul.f32 %v3725_v53, %v1564_v30  ;;  %v1044_v12 = vadd.f32 %v7515_v62, %v979_v33  ;;  %v1043_v63 = vadd.f32 %v5387_v42, %v978_v1  ;;  %v7527_v62 = vld [vmem:[#allocation64_spill] sm:$0xff] }
 0x2a2   : > { %v5803_v9 = vmul.f32 %v5685_v32, %v1575_v34  ;;  %v5806_v18 = vmul.f32 %v5691_v40, %v1575_v34  ;;  %v5808_v41 = vpop.permute.xlu1 %2211  ;;  %v5810_v57 = vpop.permute.xlu0 %2209  ;;  %v1053_v46 = vadd.f32 %v5389_v27, %v1004_v5  ;;  %v1052_v30 = vadd.f32 %v5397_v36, %v1003_v61  ;;  %v7518_v27 = vld [vmem:[#allocation57_spill] sm:$0xff]  ;;  %v7521_v61 = vld [vmem:[#allocation60_spill] sm:$0xff] }
 0x2a3   : > { %7516 = vst [vmem:[#allocation189_spill] sm:$0xff] %v5808_v41  ;;  %7517 = vst [vmem:[#allocation25_spill] sm:$0xff] %v5810_v57  ;;  %v5816_v33 = vmul.f32 %v5711_v4, %v1575_v34  ;;  %v5818_v42 = vmul.f32 %v3725_v53, %v1575_v34  ;;  %v1055_v32 = vadd.f32 %v5399_v24, %v1006_v38  ;;  %v7519_v4 = vld [vmem:[#allocation58_spill] sm:$0xff]  ;;  %v2725_v24 = vstv %s5762_s23  ;;  %v7530_v41 = vld [vmem:[#allocation73_spill] sm:$0xff]  ;;  %s2804_s23 = sadd.s32 29, %s4043_s29 }
 0x2a4   : > { %2709 = vrot.lane.b32.xlu1 %v2700_v37, %s7395_s17  ;;  %v2702_v40 = vmul.f32 %v5640_v49, %v2698_v54  ;;  %v2701_v1 = vmul.f32 %v5643_v31, %v2698_v54  ;;  %v1080_v36 = vadd.f32 %v7518_v27, %v5702_v60  ;;  %v1079_v5 = vadd.f32 %v7519_v4, %v5705_v13  ;;  %v7520_v37 = vld [vmem:[#allocation59_spill] sm:$0xff]  ;;  %v7522_v54 = vld [vmem:[#allocation61_spill] sm:$0xff]  ;;  %v7523_v60 = vld [vmem:[#allocation62_spill] sm:$0xff]  ;;  %s5976_s10 = sld [smem:[#allocation2 + %s2804_s23]]  ;;  %s2333_s23 = sadd.s32 24, %s4022_s30 }
 0x2a5   : > { %2707 = vrot.lane.b32.xlu0 %v2699_v2, %s7395_s17  ;;  %v1054_v53 = vadd.f32 %v5401_v39, %v1005_v6  ;;  %v1082_v2 = vadd.f32 %v7520_v37, %v5723_v59  ;;  %v1081_v34 = vadd.f32 %v7521_v61, %v5729_v16  ;;  %v1107_v38 = vadd.f32 %v7522_v54, %v5732_v15  ;;  %v7526_v39 = vld [vmem:[#allocation63_spill] sm:$0xff]  ;;  %v7528_v4 = vld [vmem:[#allocation65_spill] sm:$0xff]  ;;  %v7529_v59 = vld [vmem:[#allocation66_spill] sm:$0xff] }
 0x2a6   : > { %v1106_v14 = vadd.f32 %v7523_v60, %v1030_v52  ;;  %v5843_v47 = vpop.permute.xlu1 %2234  ;;  %v5845_v13 = vpop.permute.xlu0 %2232  ;;  %v1109_v6 = vadd.f32 %v7526_v39, %v1033_v23  ;;  %v1108_v27 = vadd.f32 %v7527_v62, %v1032_v3  ;;  %v1134_v57 = vadd.f32 %v7528_v4, %v1042_v50  ;;  %v7531_v23 = vld [vmem:[#allocation67_spill] sm:$0xff]  ;;  %v7532_v50 = vld [vmem:[#allocation68_spill] sm:$0xff]  ;;  %v7533_v54 = vld [vmem:[#allocation69_spill] sm:$0xff] }
 0x2a7   : > { %7524 = vst [vmem:[#allocation26_spill] sm:$0xff] %v5843_v47  ;;  %7525 = vst [vmem:[#allocation27_spill] sm:$0xff] %v5845_v13  ;;  %v1133_v37 = vadd.f32 %v7529_v59, %v1041_v25  ;;  %v1188_v16 = vadd.f32 %v7530_v41, %v1080_v36  ;;  %v1807_v61 = vstv %s5785_s21  ;;  %v2727_v15 = vmul.f32 %v5598_v55, %v2725_v24  ;;  %v7534_v36 = vld [vmem:[#allocation74_spill] sm:$0xff]  ;;  %v7536_v62 = vld [vmem:[#allocation71_spill] sm:$0xff]  ;;  %s5963_s21 = sld [smem:[#allocation2 + %s2069_s22]] }
 0x2a8   : > { %2713 = vrot.lane.b32.xlu1 %v2702_v40, %s7395_s17  ;;  %v2726_v52 = vmul.f32 %v5602_v0, %v2725_v24  ;;  %v1136_v3 = vadd.f32 %v7531_v23, %v1044_v12  ;;  %v1135_v25 = vadd.f32 %v7532_v50, %v1043_v63  ;;  %v1161_v41 = vadd.f32 %v7533_v54, %v1053_v46  ;;  %v7535_v39 = vld [vmem:[#allocation70_spill] sm:$0xff]  ;;  %v7537_v4 = vld [vmem:[#allocation72_spill] sm:$0xff]  ;;  %v7538_v13 = vld [vmem:[#allocation75_spill] sm:$0xff] }
 0x2a9   : > { %2711 = vrot.lane.b32.xlu0 %v2701_v1, %s7395_s17  ;;  %v1187_v60 = vadd.f32 %v7534_v36, %v1079_v5  ;;  %v1160_v40 = vadd.f32 %v7535_v39, %v1052_v30  ;;  %v5866_v1 = vadd.f32 %v7536_v62, %v1055_v32  ;;  %v5869_v59 = vadd.f32 %v7537_v4, %v1054_v53  ;;  %v7541_v63 = vld [vmem:[#allocation76_spill] sm:$0xff]  ;;  %v7542_v5 = vld [vmem:[#allocation77_spill] sm:$0xff]  ;;  %v5880_v30 = vld [vmem:[%s4038_s25 + $0x58] sm:$0xff] }
 0x2aa   : > { %v1190_v47 = vadd.f32 %v7538_v13, %v1082_v2  ;;  %v5872_v12 = vpop.permute.xlu1 %2238  ;;  %v5874_v23 = vpop.permute.xlu0 %2236  ;;  %v1189_v46 = vadd.f32 %v7541_v63, %v1081_v34  ;;  %v1215_v50 = vadd.f32 %v7542_v5, %v1107_v38  ;;  %v5883_v32 = vmul.f32 %v5880_v30, %v1807_v61  ;;  %v5886_v53 = vld [vmem:[%s4038_s25 + $0x50] sm:$0xff]  ;;  %v7543_v36 = vld [vmem:[#allocation78_spill] sm:$0xff]  ;;  %v3728_v4 = vld [vmem:[%s4038_s25 + $0x68] sm:$0xff] }
 0x2ab   : > { %7539 = vst [vmem:[#allocation190_spill] sm:$0xff] %v5872_v12  ;;  %7540 = vst [vmem:[#allocation28_spill] sm:$0xff] %v5874_v23  ;;  %v5889_v2 = vmul.f32 %v5886_v53, %v1807_v61  ;;  %v5892_v13 = vadd.f32 %v5468_v35, %v1188_v16  ;;  %v1818_v54 = vstv %s5821_s4  ;;  %v2729_v34 = vmul.f32 %v5640_v49, %v2725_v24  ;;  %v7545_v63 = vld [vmem:[#allocation79_spill] sm:$0xff]  ;;  %v7546_v5 = vld [vmem:[#allocation80_spill] sm:$0xff]  ;;  %s5998_s4 = sld [smem:[#allocation2 + %s2080_s20]]  ;;  %s2933_s20 = sadd.s32 31, %s4032_s11 }
 0x2ac   : > { %2736 = vrot.lane.b32.xlu1 %v2727_v15, %s7395_s17  ;;  %v2728_v38 = vmul.f32 %v5643_v31, %v2725_v24  ;;  %v1214_v39 = vadd.f32 %v7543_v36, %v1106_v14  ;;  %v5903_v62 = vadd.f32 %v5482_v26, %v1187_v60  ;;  %v5906_v35 = vmul.f32 %v3728_v4, %v1807_v61  ;;  %v3729_v24 = vld [vmem:[%s4038_s25 + $0x60] sm:$0xff] }
 0x2ad   : > { %2734 = vrot.lane.b32.xlu0 %v2726_v52, %s7395_s17  ;;  %v2752_v16 = vstv %s5834_s7  ;;  %v1217_v15 = vadd.f32 %v7545_v63, %v1109_v6  ;;  %v1216_v52 = vadd.f32 %v7546_v5, %v1108_v27  ;;  %v5914_v23 = vadd.f32 %v5493_v45, %v1190_v47  ;;  %v7551_v45 = vld [vmem:[#allocation81_spill] sm:$0xff]  ;;  %s2831_s7 = sadd.s32 29, %s4067_s24 }
 0x2ae   : > { %7544 = vst [vmem:[#allocation29_spill] sm:$0xff] %v5906_v35  ;;  %v5917_v12 = vmul.f32 %v3729_v24, %v1807_v61  ;;  %v5919_v14 = vpop.permute.xlu1 %2261  ;;  %v5921_v26 = vpop.permute.xlu0 %2259  ;;  %v1285_v60 = vadd.f32 %v5499_v28, %v1189_v46  ;;  %v1295_v36 = vadd.f32 %v5517_v19, %v1215_v50  ;;  %v5926_v35 = vmul.f32 %v5880_v30, %v1818_v54  ;;  %v7552_v46 = vld [vmem:[#allocation82_spill] sm:$0xff]  ;;  %s6038_s9 = sld [smem:[#allocation2 + %s2831_s7]]  ;;  %s2355_s7 = sadd.s32 24, %s4043_s29 }
 0x2af   : > { %7547 = vst [vmem:[#allocation30_spill] sm:$0xff] %v5919_v14  ;;  %7548 = vst [vmem:[#allocation31_spill] sm:$0xff] %v5921_v26  ;;  %v5929_v6 = vmul.f32 %v5886_v53, %v1818_v54  ;;  %v1242_v47 = vadd.f32 %v7551_v45, %v1134_v57  ;;  %v1829_v27 = vstv %s5853_s1  ;;  %v2754_v61 = vmul.f32 %v5598_v55, %v2752_v16  ;;  %v7553_v57 = vld [vmem:[#allocation83_spill] sm:$0xff]  ;;  %v7554_v26 = vld [vmem:[#allocation84_spill] sm:$0xff]  ;;  %s6027_s1 = sld [smem:[#allocation2 + %s2091_s0]] }
 0x2b0   : > { %7549 = vst [vmem:[#allocation32_spill] sm:$0xff] %v5926_v35  ;;  %2740 = vrot.lane.b32.xlu1 %v2729_v34, %s7395_s17  ;;  %v2753_v28 = vmul.f32 %v5602_v0, %v2752_v16  ;;  %v1241_v19 = vadd.f32 %v7552_v46, %v1133_v37  ;;  %v1294_v50 = vadd.f32 %v5528_v22, %v1214_v39  ;;  %v7557_v22 = vld [vmem:[#allocation85_spill] sm:$0xff] }
 0x2b1   : > { %7550 = vst [vmem:[#allocation33_spill] sm:$0xff] %v5929_v6  ;;  %2738 = vrot.lane.b32.xlu0 %v2728_v38, %s7395_s17  ;;  %v5939_v63 = vmul.f32 %v3728_v4, %v1818_v54  ;;  %v5941_v5 = vmul.f32 %v3729_v24, %v1818_v54  ;;  %v1244_v45 = vadd.f32 %v7553_v57, %v1136_v3  ;;  %v7558_v54 = vld [vmem:[#allocation86_spill] sm:$0xff] }
 0x2b2   : > { %v1243_v34 = vadd.f32 %v7554_v26, %v1135_v25  ;;  %v1297_v38 = vadd.f32 %v5536_v7, %v1217_v15  ;;  %v1296_v14 = vadd.f32 %v5547_v8, %v1216_v52  ;;  %v5948_v6 = vpop.permute.xlu1 %2265  ;;  %v5950_v35 = vpop.permute.xlu0 %2263  ;;  %v1269_v37 = vadd.f32 %v7557_v22, %v1161_v41  ;;  %v7560_v52 = vld [vmem:[#allocation88_spill] sm:$0xff] }
 0x2b3   : > { %7555 = vst [vmem:[#allocation34_spill] sm:$0xff] %v5948_v6  ;;  %7556 = vst [vmem:[#allocation35_spill] sm:$0xff] %v5950_v35  ;;  %v1268_v39 = vadd.f32 %v7558_v54, %v1160_v40  ;;  %v5956_v46 = vmul.f32 %v5880_v30, %v1829_v27  ;;  %v5959_v3 = vmul.f32 %v5886_v53, %v1829_v27  ;;  %v1840_v8 = vstv %s5895_s6  ;;  %v7559_v40 = vld [vmem:[#allocation87_spill] sm:$0xff]  ;;  %s6063_s6 = sld [smem:[#allocation2 + %s2102_s2]]  ;;  %s2960_s2 = sadd.s32 31, %s4043_s29 }
 0x2b4   : > { %v1306_v7 = vadd.f32 %v5558_v29, %v1242_v47  ;;  %2763 = vrot.lane.b32.xlu1 %v2754_v61, %s7238_s28  ;;  %v2756_v25 = vmul.f32 %v5640_v49, %v2752_v16  ;;  %v2755_v41 = vmul.f32 %v5643_v31, %v2752_v16  ;;  %v1271_v15 = vadd.f32 %v7559_v40, %v5866_v1  ;;  %v7569_v40 = vld [vmem:[#allocation90_spill] sm:$0xff] }
 0x2b5   : > { %2761 = vrot.lane.b32.xlu0 %v2753_v28, %s7238_s28  ;;  %v1270_v26 = vadd.f32 %v7560_v52, %v5869_v59  ;;  %v1305_v57 = vadd.f32 %v5561_v11, %v1241_v19  ;;  %v2779_v29 = vstv %s5909_s18  ;;  %v1308_v47 = vadd.f32 %v5577_v51, %v1244_v45  ;;  %v7563_v11 = vld [vmem:[#allocation17_spill] sm:$0xff]  ;;  %s2906_s18 = sadd.s32 31, %s4022_s30 }
 0x2b6   : > { %v1307_v61 = vadd.f32 %v5580_v20, %v1243_v34  ;;  %v5980_v28 = vmul.f32 %v3728_v4, %v1829_v27  ;;  %v5982_v22 = vmul.f32 %v3729_v24, %v1829_v27  ;;  %v5984_v16 = vpop.permute.xlu1 %2288  ;;  %v5986_v1 = vpop.permute.xlu0 %2286  ;;  %v1317_v59 = vadd.f32 %v5592_v43, %v1269_v37  ;;  %v7565_v45 = vld [vmem:[#allocation89_spill] sm:$0xff]  ;;  %s6113_s22 = sld [smem:[#allocation2 + %s2906_s18]] }
 0x2b7   : > { %7561 = vst [vmem:[#allocation36_spill] sm:$0xff] %v5984_v16  ;;  %7562 = vst [vmem:[#allocation37_spill] sm:$0xff] %v5986_v1  ;;  %v1316_v19 = vadd.f32 %v7563_v11, %v1268_v39  ;;  %v5991_v54 = vmul.f32 %v5880_v30, %v1840_v8  ;;  %v5994_v51 = vmul.f32 %v5886_v53, %v1840_v8  ;;  %v7566_v34 = vld [vmem:[#allocation177_spill] sm:$0xff]  ;;  %v7567_v53 = vld [vmem:[#allocation18_spill] sm:$0xff] }
 0x2b8   : > { %v5996_v20 = vmul.f32 %v3728_v4, %v1840_v8  ;;  %2767 = vrot.lane.b32.xlu1 %v2756_v25, %s7238_s28  ;;  %v2781_v27 = vmul.f32 %v5598_v55, %v2779_v29  ;;  %v2780_v43 = vmul.f32 %v5602_v0, %v2779_v29  ;;  %v1344_v30 = vadd.f32 %v7565_v45, %v5892_v13  ;;  %v7570_v25 = vld [vmem:[#allocation91_spill] sm:$0xff]  ;;  %v7571_v11 = vld [vmem:[#allocation92_spill] sm:$0xff]  ;;  %v7572_v16 = vld [vmem:[#allocation93_spill] sm:$0xff] }
 0x2b9   : > { %2765 = vrot.lane.b32.xlu0 %v2755_v41, %s7238_s28  ;;  %v1319_v37 = vadd.f32 %v7566_v34, %v1271_v15  ;;  %v1318_v39 = vadd.f32 %v7567_v53, %v1270_v26  ;;  %v6008_v4 = vmul.f32 %v3729_v24, %v1840_v8  ;;  %v1343_v52 = vadd.f32 %v7569_v40, %v5903_v62  ;;  %v7575_v24 = vld [vmem:[#allocation94_spill] sm:$0xff]  ;;  %v7576_v15 = vld [vmem:[#allocation95_spill] sm:$0xff]  ;;  %v7577_v62 = vld [vmem:[#allocation96_spill] sm:$0xff] }
 0x2ba   : > { %7564 = vst [vmem:[#allocation41_spill] sm:$0xff] %v5996_v20  ;;  %v1346_v41 = vadd.f32 %v7570_v25, %v5914_v23  ;;  %v1345_v1 = vadd.f32 %v7571_v11, %v1285_v60  ;;  %v1371_v35 = vadd.f32 %v7572_v16, %v1295_v36  ;;  %v6017_v6 = vpop.permute.xlu1 %2292  ;;  %v6019_v13 = vpop.permute.xlu0 %2290  ;;  %v1370_v8 = vadd.f32 %v7575_v24, %v1294_v50  ;;  %v7578_v34 = vld [vmem:[#allocation97_spill] sm:$0xff]  ;;  %v7579_v53 = vld [vmem:[#allocation98_spill] sm:$0xff] }
 0x2bb   : > { %7568 = vst [vmem:[#allocation42_spill] sm:$0xff] %v6008_v4  ;;  %7573 = vst [vmem:[#allocation38_spill] sm:$0xff] %v6017_v6  ;;  %v1373_v26 = vadd.f32 %v7576_v15, %v1297_v38  ;;  %v1372_v45 = vadd.f32 %v7577_v62, %v1296_v14  ;;  %v1398_v23 = vadd.f32 %v7578_v34, %v1306_v7  ;;  %v7580_v40 = vld [vmem:[#allocation105_spill] sm:$0xff]  ;;  %v7581_v25 = vld [vmem:[#allocation106_spill] sm:$0xff]  ;;  %v2071_v14 = vstv %s5963_s21  ;;  %s6143_s21 = sld [smem:[#allocation2 + %s2333_s23]]  ;;  %s2598_s23 = sadd.s32 27, %s4022_s30 }
 0x2bc   : > { %7574 = vst [vmem:[#allocation39_spill] sm:$0xff] %v6019_v13  ;;  %v1397_v60 = vadd.f32 %v7579_v53, %v1305_v57  ;;  %2790 = vrot.lane.b32.xlu1 %v2781_v27, %s7238_s28  ;;  %v2783_v36 = vmul.f32 %v5640_v49, %v2779_v29  ;;  %v2782_v16 = vmul.f32 %v5643_v31, %v2779_v29  ;;  %v2806_v7 = vstv %s5976_s10  ;;  %v7582_v57 = vld [vmem:[#allocation99_spill] sm:$0xff]  ;;  %v7583_v27 = vld [vmem:[#allocation100_spill] sm:$0xff]  ;;  %v7585_v62 = vld [vmem:[#allocation102_spill] sm:$0xff]  ;;  %s2344_s10 = sadd.s32 24, %s4032_s11 }
 0x2bd   : > { %2788 = vrot.lane.b32.xlu0 %v2780_v43, %s7238_s28  ;;  %v1452_v50 = vadd.f32 %v7580_v40, %v1344_v30  ;;  %v1451_v38 = vadd.f32 %v7581_v25, %v1343_v52  ;;  %v1400_v11 = vadd.f32 %v7582_v57, %v1308_v47  ;;  %v1399_v24 = vadd.f32 %v7583_v27, %v1307_v61  ;;  %v7584_v43 = vld [vmem:[#allocation101_spill] sm:$0xff]  ;;  %v7588_v53 = vld [vmem:[#allocation103_spill] sm:$0xff]  ;;  %v7589_v40 = vld [vmem:[#allocation104_spill] sm:$0xff]  ;;  %s6191_s0 = sld [smem:[#allocation2 + %s2344_s10]]  ;;  %s2609_s10 = sadd.s32 27, %s4032_s11 }
 0x2be   : > { %v1425_v15 = vadd.f32 %v7584_v43, %v1317_v59  ;;  %v1424_v34 = vadd.f32 %v7585_v62, %v1316_v19  ;;  %v6044_v29 = vpop.permute.xlu1 %2315  ;;  %v6046_v30 = vpop.permute.xlu0 %2313  ;;  %v6049_v52 = vadd.f32 %v7588_v53, %v1319_v37  ;;  %v6052_v25 = vadd.f32 %v7589_v40, %v1318_v39  ;;  %v7590_v13 = vld [vmem:[#allocation107_spill] sm:$0xff]  ;;  %v7591_v47 = vld [vmem:[#allocation108_spill] sm:$0xff]  ;;  %v7595_v43 = vld [vmem:[#allocation21_spill] sm:$0xff] }
 0x2bf   : > { %7586 = vst [vmem:[#allocation40_spill] sm:$0xff] %v6044_v29  ;;  %7587 = vst [vmem:[#allocation43_spill] sm:$0xff] %v6046_v30  ;;  %v1454_v6 = vadd.f32 %v7590_v13, %v1346_v41  ;;  %v1453_v57 = vadd.f32 %v7591_v47, %v1345_v1  ;;  %v6057_v61 = vld [vmem:[%s4038_s25 + $0x59] sm:$0xff]  ;;  %v2082_v19 = vstv %s5998_s4  ;;  %v2808_v37 = vmul.f32 %v5598_v55, %v2806_v7  ;;  %v7593_v1 = vld [vmem:[#allocation109_spill] sm:$0xff]  ;;  %s6183_s4 = sld [smem:[#allocation2 + %s2933_s20]] }
 0x2c0   : > { %v6060_v59 = vmul.f32 %v6057_v61, %v2071_v14  ;;  %2794 = vrot.lane.b32.xlu1 %v2783_v36, %s7238_s28  ;;  %v2807_v39 = vmul.f32 %v5602_v0, %v2806_v7  ;;  %v1479_v41 = vadd.f32 %v7593_v1, %v1371_v35  ;;  %v7594_v13 = vld [vmem:[#allocation20_spill] sm:$0xff]  ;;  %v6074_v62 = vadd.f32 %v7595_v43, %v1451_v38  ;;  %v3731_v53 = vld [vmem:[%s4038_s25 + $0x51] sm:$0xff]  ;;  %s6359_s20 = sld [smem:[#allocation2 + %s2598_s23]] }
 0x2c1   : > { %2792 = vrot.lane.b32.xlu0 %v2782_v16, %s7238_s28  ;;  %v6071_v27 = vadd.f32 %v7594_v13, %v1452_v50  ;;  %v6077_v40 = vmul.f32 %v3731_v53, %v2071_v14  ;;  %v7596_v36 = vld [vmem:[#allocation110_spill] sm:$0xff]  ;;  %v7597_v16 = vld [vmem:[#allocation111_spill] sm:$0xff]  ;;  %v3732_v29 = vld [vmem:[%s4038_s25 + $0x69] sm:$0xff] }
 0x2c2   : > { %7592 = vst [vmem:[#allocation44_spill] sm:$0xff] %v6060_v59  ;;  %v1478_v47 = vadd.f32 %v7596_v36, %v1370_v8  ;;  %v1481_v30 = vadd.f32 %v7597_v16, %v1373_v26  ;;  %v6082_v59 = vmul.f32 %v3732_v29, %v2071_v14  ;;  %v3733_v4 = vld [vmem:[%s4038_s25 + $0x61] sm:$0xff]  ;;  %v6087_v35 = vpop.permute.xlu1 %2319  ;;  %v6089_v50 = vpop.permute.xlu0 %2317  ;;  %v6097_v8 = vadd.f32 %v5726_v44, %v1453_v57 }
 0x2c3   : > { %v6085_v20 = vmul.f32 %v3733_v4, %v2071_v14  ;;  %7598 = vst [vmem:[#allocation45_spill] sm:$0xff] %v6087_v35  ;;  %7599 = vst [vmem:[#allocation46_spill] sm:$0xff] %v6089_v50  ;;  %v7600_v38 = vld [vmem:[#allocation112_spill] sm:$0xff]  ;;  %v7601_v13 = vld [vmem:[#allocation23_spill] sm:$0xff]  ;;  %v6100_v26 = vmul.f32 %v6057_v61, %v2082_v19  ;;  %v6102_v14 = vmul.f32 %v3731_v53, %v2082_v19  ;;  %v2093_v36 = vstv %s6027_s1  ;;  %s6233_s1 = sld [smem:[#allocation2 + %s2355_s7]] }
 0x2c4   : > { %v1480_v1 = vadd.f32 %v7600_v38, %v1372_v45  ;;  %v6094_v43 = vadd.f32 %v7601_v13, %v1454_v6  ;;  %2817 = vrot.lane.b32.xlu1 %v2808_v37, %s7238_s28  ;;  %v2810_v16 = vmul.f32 %v5640_v49, %v2806_v7  ;;  %v2809_v45 = vmul.f32 %v5643_v31, %v2806_v7  ;;  %v7604_v6 = vld [vmem:[#allocation113_spill] sm:$0xff]  ;;  %v7605_v13 = vld [vmem:[#allocation114_spill] sm:$0xff] }
 0x2c5   : > { %7602 = vst [vmem:[#allocation191_spill] sm:$0xff] %v6100_v26  ;;  %7603 = vst [vmem:[#allocation192_spill] sm:$0xff] %v6102_v14  ;;  %2815 = vrot.lane.b32.xlu0 %v2807_v39, %s7238_s28  ;;  %v1506_v38 = vadd.f32 %v7604_v6, %v1398_v23  ;;  %v1505_v44 = vadd.f32 %v7605_v13, %v1397_v60  ;;  %v1559_v57 = vadd.f32 %v5735_v56, %v1479_v41  ;;  %v7608_v60 = vld [vmem:[#allocation115_spill] sm:$0xff]  ;;  %v7609_v13 = vld [vmem:[#allocation116_spill] sm:$0xff] }
 0x2c6   : > { %v2833_v50 = vstv %s6038_s9  ;;  %v1558_v35 = vadd.f32 %v5738_v58, %v1478_v47  ;;  %v1561_v37 = vadd.f32 %v5748_v17, %v1481_v30  ;;  %v6117_v14 = vmul.f32 %v3732_v29, %v2082_v19  ;;  %v6122_v7 = vpop.permute.xlu1 %2390  ;;  %v6124_v23 = vpop.permute.xlu0 %2388  ;;  %v7610_v58 = vld [vmem:[#allocation117_spill] sm:$0xff]  ;;  %s2366_s9 = sadd.s32 24, %s4067_s24 }
 0x2c7   : > { %v6119_v39 = vmul.f32 %v3733_v4, %v2082_v19  ;;  %7606 = vst [vmem:[#allocation47_spill] sm:$0xff] %v6122_v7  ;;  %7607 = vst [vmem:[#allocation48_spill] sm:$0xff] %v6124_v23  ;;  %v1508_v6 = vadd.f32 %v7608_v60, %v1400_v11  ;;  %v1507_v56 = vadd.f32 %v7609_v13, %v1399_v24  ;;  %v2104_v30 = vstv %s6063_s6  ;;  %v7611_v11 = vld [vmem:[#allocation118_spill] sm:$0xff]  ;;  %v7612_v24 = vld [vmem:[#allocation183_spill] sm:$0xff]  ;;  %s6264_s6 = sld [smem:[#allocation2 + %s2960_s2]]  ;;  %s3041_s2 = sadd.s32 32, %s4032_s11 }
 0x2c8   : > { %v1560_v41 = vadd.f32 %v5751_v10, %v1480_v1  ;;  %v6130_v26 = vmul.f32 %v6057_v61, %v2093_v36  ;;  %v1533_v17 = vadd.f32 %v7610_v58, %v1425_v15  ;;  %2821 = vrot.lane.b32.xlu1 %v2810_v16, %s7238_s28  ;;  %v2835_v19 = vmul.f32 %v5598_v55, %v2833_v50  ;;  %v7613_v1 = vld [vmem:[#allocation184_spill] sm:$0xff]  ;;  %v7614_v15 = vld [vmem:[#allocation119_spill] sm:$0xff]  ;;  %s6276_s18 = sld [smem:[#allocation2 + %s2366_s9]] }
 0x2c9   : > { %2819 = vrot.lane.b32.xlu0 %v2809_v45, %s7238_s28  ;;  %v2834_v47 = vmul.f32 %v5602_v0, %v2833_v50  ;;  %v1532_v60 = vadd.f32 %v7611_v11, %v1424_v34  ;;  %v1570_v10 = vadd.f32 %v7612_v24, %v1506_v38  ;;  %v1569_v13 = vadd.f32 %v7613_v1, %v1505_v44  ;;  %v7615_v45 = vld [vmem:[#allocation120_spill] sm:$0xff] }
 0x2ca   : > { %v6141_v23 = vmul.f32 %v3731_v53, %v2093_v36  ;;  %v1535_v16 = vadd.f32 %v7614_v15, %v6049_v52  ;;  %v1534_v58 = vadd.f32 %v7615_v45, %v6052_v25  ;;  %v6149_v55 = vmul.f32 %v3732_v29, %v2093_v36  ;;  %v6153_v34 = vpop.permute.xlu1 %2394  ;;  %v6155_v38 = vpop.permute.xlu0 %2392 }
 0x2cb   : > { %v6151_v0 = vmul.f32 %v3733_v4, %v2093_v36  ;;  %7616 = vst [vmem:[#allocation193_spill] sm:$0xff] %v6153_v34  ;;  %7617 = vst [vmem:[#allocation194_spill] sm:$0xff] %v6155_v38  ;;  %v1572_v44 = vadd.f32 %v5795_v48, %v1508_v6  ;;  %v1571_v11 = vadd.f32 %v5797_v21, %v1507_v56  ;;  %v6181_v56 = vld [vmem:[%s4038_s25 + $0x79] sm:$0xff]  ;;  %v2346_v7 = vstv %s6191_s0  ;;  %s6395_s0 = sld [smem:[#allocation2 + %s2609_s10]] }
 0x2cc   : > { %v6161_v52 = vmul.f32 %v6057_v61, %v2104_v30  ;;  %v6163_v25 = vmul.f32 %v3731_v53, %v2104_v30  ;;  %v1581_v36 = vadd.f32 %v5803_v9, %v1533_v17  ;;  %2844 = vrot.lane.b32.xlu1 %v2835_v19, %s7238_s28  ;;  %v2837_v24 = vmul.f32 %v5640_v49, %v2833_v50  ;;  %v6177_v61 = vld [vmem:[%s4038_s25 + $0x81] sm:$0xff]  ;;  %v7619_v9 = vld [vmem:[#allocation121_spill] sm:$0xff]  ;;  %v7620_v19 = vld [vmem:[#allocation122_spill] sm:$0xff] }
 0x2cd   : > { %2842 = vrot.lane.b32.xlu0 %v2834_v47, %s7238_s28  ;;  %v2836_v1 = vmul.f32 %v5643_v31, %v2833_v50  ;;  %v1580_v48 = vadd.f32 %v5806_v18, %v1532_v60  ;;  %v6172_v6 = vmul.f32 %v3732_v29, %v2104_v30  ;;  %v6174_v21 = vmul.f32 %v3733_v4, %v2104_v30  ;;  %v7623_v47 = vld [vmem:[#allocation123_spill] sm:$0xff] }
 0x2ce   : > { %7618 = vst [vmem:[#allocation195_spill] sm:$0xff] %v6177_v61  ;;  %v2908_v53 = vstv %s6113_s22  ;;  %v1608_v17 = vadd.f32 %v7619_v9, %v6071_v27  ;;  %v1607_v50 = vadd.f32 %v7620_v19, %v6074_v62  ;;  %v1583_v18 = vadd.f32 %v5816_v33, %v1535_v16  ;;  %v6193_v4 = vpop.permute.xlu1 %2417  ;;  %v6195_v30 = vpop.permute.xlu0 %2415  ;;  %v7624_v27 = vld [vmem:[#allocation124_spill] sm:$0xff]  ;;  %v7625_v62 = vld [vmem:[#allocation125_spill] sm:$0xff]  ;;  %v7626_v33 = vld [vmem:[#allocation126_spill] sm:$0xff]  ;;  %s2987_s22 = sadd.s32 31, %s4067_s24 }
 0x2cf   : > { %v1582_v29 = vadd.f32 %v5818_v42, %v1534_v58  ;;  %7621 = vst [vmem:[#allocation49_spill] sm:$0xff] %v6193_v4  ;;  %7622 = vst [vmem:[#allocation50_spill] sm:$0xff] %v6195_v30  ;;  %v1610_v60 = vadd.f32 %v7623_v47, %v6094_v43  ;;  %v1609_v15 = vadd.f32 %v7624_v27, %v6097_v8  ;;  %v7627_v42 = vld [vmem:[#allocation127_spill] sm:$0xff]  ;;  %v7628_v43 = vld [vmem:[#allocation128_spill] sm:$0xff] }
 0x2d0   : > { %v1635_v45 = vadd.f32 %v7625_v62, %v1559_v57  ;;  %v1634_v16 = vadd.f32 %v7626_v33, %v1558_v35  ;;  %v1637_v58 = vadd.f32 %v7627_v42, %v1561_v37  ;;  %2848 = vrot.lane.b32.xlu1 %v2837_v24, %s7238_s28  ;;  %v2910_v9 = vmul.f32 %v6177_v61, %v2908_v53  ;;  %v7629_v30 = vld [vmem:[#allocation129_spill] sm:$0xff]  ;;  %v7630_v27 = vld [vmem:[#allocation130_spill] sm:$0xff]  ;;  %v7631_v24 = vld [vmem:[#allocation131_spill] sm:$0xff] }
 0x2d1   : > { %2846 = vrot.lane.b32.xlu0 %v2836_v1, %s7238_s28  ;;  %v2909_v19 = vmul.f32 %v6181_v56, %v2908_v53  ;;  %v1636_v47 = vadd.f32 %v7628_v43, %v1560_v41  ;;  %v1662_v8 = vadd.f32 %v7629_v30, %v1570_v10  ;;  %v1661_v57 = vadd.f32 %v7630_v27, %v1569_v13  ;;  %v6214_v62 = vld [vmem:[%s4038_s25 + $0x91] sm:$0xff]  ;;  %v6217_v37 = vld [vmem:[%s4038_s25 + $0x89] sm:$0xff]  ;;  %v7638_v27 = vld [vmem:[#allocation135_spill] sm:$0xff] }
 0x2d2   : > { %v2335_v35 = vstv %s6143_s21  ;;  %v6220_v1 = vadd.f32 %v7631_v24, %v1572_v44  ;;  %v7632_v33 = vld [vmem:[#allocation132_spill] sm:$0xff]  ;;  %v7633_v4 = vld [vmem:[#allocation133_spill] sm:$0xff]  ;;  %v6229_v30 = vpop.permute.xlu1 %2421  ;;  %v6231_v13 = vpop.permute.xlu0 %2419  ;;  %v7637_v43 = vld [vmem:[#allocation134_spill] sm:$0xff]  ;;  %v6238_v24 = vadd.f32 %v7638_v27, %v1583_v18  ;;  %v2911_v18 = vmul.f32 %v6217_v37, %v2908_v53  ;;  %s6340_s21 = sld [smem:[#allocation2 + %s2987_s22]]  ;;  %s3095_s22 = sadd.s32 32, %s4067_s24 }
 0x2d3   : > { %v6223_v42 = vadd.f32 %v7632_v33, %v1571_v11  ;;  %v6226_v38 = vadd.f32 %v7633_v4, %v1581_v36  ;;  %v7634_v41 = vld [vmem:[#allocation137_spill] sm:$0xff]  ;;  %7635 = vst [vmem:[#allocation51_spill] sm:$0xff] %v6229_v30  ;;  %7636 = vst [vmem:[#allocation52_spill] sm:$0xff] %v6231_v13  ;;  %v1688_v44 = vadd.f32 %v7637_v43, %v1580_v48  ;;  %v7639_v11 = vld [vmem:[#allocation136_spill] sm:$0xff]  ;;  %v2935_v13 = vstv %s6183_s4  ;;  %s3014_s4 = sadd.s32 32, %s4022_s30 }
 0x2d4   : > { %v1716_v10 = vadd.f32 %v7634_v41, %v1608_v17  ;;  %v6241_v33 = vadd.f32 %v7639_v11, %v1582_v29  ;;  %v7640_v36 = vld [vmem:[#allocation138_spill] sm:$0xff]  ;;  %2919 = vrot.lane.b32.xlu1 %v2910_v9, %s7395_s17  ;;  %v2912_v48 = vmul.f32 %v6214_v62, %v2908_v53  ;;  %v7642_v43 = vld [vmem:[#allocation139_spill] sm:$0xff]  ;;  %v7643_v27 = vld [vmem:[#allocation140_spill] sm:$0xff]  ;;  %s6409_s7 = sld [smem:[#allocation2 + %s3014_s4]]  ;;  %s2631_s4 = sadd.s32 27, %s4067_s24 }
 0x2d5   : > { %v1715_v4 = vadd.f32 %v7640_v36, %v1607_v50  ;;  %v6246_v17 = vld [vmem:[%s4038_s25 + $0x5a] sm:$0xff]  ;;  %2917 = vrot.lane.b32.xlu0 %v2909_v19, %s7395_s17  ;;  %v1718_v29 = vadd.f32 %v7642_v43, %v1610_v60  ;;  %v1717_v50 = vadd.f32 %v7643_v27, %v1609_v15  ;;  %v6258_v11 = vld [vmem:[%s4038_s25 + $0x52] sm:$0xff] }
 0x2d6   : > { %v6249_v41 = vmul.f32 %v6246_v17, %v2335_v35  ;;  %v6261_v36 = vmul.f32 %v6258_v11, %v2335_v35  ;;  %v7645_v9 = vld [vmem:[#allocation141_spill] sm:$0xff]  ;;  %v7646_v30 = vld [vmem:[#allocation142_spill] sm:$0xff]  ;;  %v6269_v53 = vadd.f32 %v5883_v32, %v1716_v10  ;;  %v6272_v60 = vpop.permute.xlu1 %2444  ;;  %v6274_v15 = vpop.permute.xlu0 %2442  ;;  %v7649_v43 = vld [vmem:[#allocation143_spill] sm:$0xff] }
 0x2d7   : > { %v1743_v19 = vadd.f32 %v7645_v9, %v1635_v45  ;;  %v1742_v34 = vadd.f32 %v7646_v30, %v1634_v16  ;;  %7647 = vst [vmem:[#allocation55_spill] sm:$0xff] %v6272_v60  ;;  %7648 = vst [vmem:[#allocation56_spill] sm:$0xff] %v6274_v15  ;;  %v1745_v27 = vadd.f32 %v7649_v43, %v1637_v58  ;;  %v6286_v16 = vld [vmem:[%s4038_s25 + $0x62] sm:$0xff] }
 0x2d8   : > { %7641 = vst [vmem:[#allocation53_spill] sm:$0xff] %v6249_v41  ;;  %7644 = vst [vmem:[#allocation54_spill] sm:$0xff] %v6261_v36  ;;  %v6280_v36 = vadd.f32 %v5889_v2, %v1715_v4  ;;  %v3736_v41 = vld [vmem:[%s4038_s25 + $0x6a] sm:$0xff]  ;;  %v6289_v32 = vmul.f32 %v6286_v16, %v2335_v35  ;;  %2923 = vrot.lane.b32.xlu1 %v2912_v48, %s7395_s17  ;;  %v2937_v58 = vmul.f32 %v6177_v61, %v2935_v13 }
 0x2d9   : > { %v6283_v45 = vmul.f32 %v3736_v41, %v2335_v35  ;;  %v7652_v10 = vld [vmem:[#allocation144_spill] sm:$0xff]  ;;  %2921 = vrot.lane.b32.xlu0 %v2911_v18, %s7395_s17  ;;  %v2936_v2 = vmul.f32 %v6181_v56, %v2935_v13  ;;  %v7653_v4 = vld [vmem:[#allocation29_spill] sm:$0xff]  ;;  %v6300_v43 = vadd.f32 %v5917_v12, %v1717_v50  ;;  %v6303_v35 = vmul.f32 %v6246_v17, %v2346_v7 }
 0x2da   : > { %7651 = vst [vmem:[#allocation199_spill] sm:$0xff] %v6289_v32  ;;  %v1744_v30 = vadd.f32 %v7652_v10, %v1636_v47  ;;  %v6297_v9 = vadd.f32 %v7653_v4, %v1718_v29  ;;  %v6306_v15 = vmul.f32 %v6258_v11, %v2346_v7  ;;  %v7656_v47 = vld [vmem:[#allocation32_spill] sm:$0xff]  ;;  %v7657_v10 = vld [vmem:[#allocation33_spill] sm:$0xff]  ;;  %v6312_v60 = vmul.f32 %v3736_v41, %v2346_v7  ;;  %v6315_v29 = vpop.permute.xlu1 %2448  ;;  %v6317_v12 = vpop.permute.xlu0 %2446 }
 0x2db   : > { %7650 = vst [vmem:[#allocation198_spill] sm:$0xff] %v6283_v45  ;;  %7654 = vst [vmem:[#allocation57_spill] sm:$0xff] %v6303_v35  ;;  %v1824_v48 = vadd.f32 %v7656_v47, %v1743_v19  ;;  %v6310_v18 = vadd.f32 %v7657_v10, %v1742_v34  ;;  %v2357_v32 = vstv %s6233_s1  ;;  %v7660_v50 = vld [vmem:[#allocation145_spill] sm:$0xff]  ;;  %v7661_v35 = vld [vmem:[#allocation146_spill] sm:$0xff]  ;;  %v6324_v19 = vmul.f32 %v6286_v16, %v2346_v7  ;;  %s2620_s1 = sadd.s32 27, %s4043_s29 }
 0x2dc   : > { %7655 = vst [vmem:[#allocation58_spill] sm:$0xff] %v6306_v15  ;;  %7658 = vst [vmem:[#allocation59_spill] sm:$0xff] %v6315_v29  ;;  %v1770_v4 = vadd.f32 %v7660_v50, %v1662_v8  ;;  %v1769_v45 = vadd.f32 %v7661_v35, %v1661_v57  ;;  %v1826_v15 = vadd.f32 %v5939_v63, %v1745_v27  ;;  %2946 = vrot.lane.b32.xlu1 %v2937_v58, %s7395_s17  ;;  %v7662_v8 = vld [vmem:[#allocation147_spill] sm:$0xff]  ;;  %v7663_v63 = vld [vmem:[#allocation148_spill] sm:$0xff]  ;;  %s6439_s9 = sld [smem:[#allocation2 + %s2620_s1]] }
 0x2dd   : > { %7659 = vst [vmem:[#allocation60_spill] sm:$0xff] %v6317_v12  ;;  %v1825_v34 = vadd.f32 %v5941_v5, %v1744_v30  ;;  %2944 = vrot.lane.b32.xlu0 %v2936_v2, %s7395_s17  ;;  %v2939_v47 = vmul.f32 %v6214_v62, %v2935_v13  ;;  %v2938_v10 = vmul.f32 %v6217_v37, %v2935_v13  ;;  %v2962_v35 = vstv %s6264_s6  ;;  %v7665_v5 = vld [vmem:[#allocation149_spill] sm:$0xff]  ;;  %v7666_v58 = vld [vmem:[#allocation150_spill] sm:$0xff]  ;;  %v7671_v12 = vld [vmem:[#allocation152_spill] sm:$0xff]  ;;  %s6448_s6 = sld [smem:[#allocation2 + %s3041_s2]]  ;;  %s3224_s2 = sadd.s32 34, %s4043_s29 }
 0x2de   : > { %v1772_v57 = vadd.f32 %v7662_v8, %v6220_v1  ;;  %v1771_v27 = vadd.f32 %v7663_v63, %v6223_v42  ;;  %v6337_v7 = vmul.f32 %v6246_v17, %v2357_v32  ;;  %v1797_v30 = vadd.f32 %v7665_v5, %v6226_v38  ;;  %v6349_v1 = vpop.permute.xlu1 %2471  ;;  %v6351_v8 = vpop.permute.xlu0 %2469  ;;  %v7670_v42 = vld [vmem:[#allocation151_spill] sm:$0xff] }
 0x2df   : > { %v1796_v2 = vadd.f32 %v7666_v58, %v1688_v44  ;;  %v6346_v13 = vmul.f32 %v6258_v11, %v2357_v32  ;;  %v2368_v50 = vstv %s6276_s18  ;;  %7668 = vst [vmem:[#allocation63_spill] sm:$0xff] %v6349_v1  ;;  %7669 = vst [vmem:[#allocation64_spill] sm:$0xff] %v6351_v8  ;;  %v1799_v63 = vadd.f32 %v7670_v42, %v6238_v24  ;;  %v7682_v42 = vld [vmem:[#allocation157_spill] sm:$0xff]  ;;  %s3068_s18 = sadd.s32 32, %s4043_s29 }
 0x2e0   : > { %7664 = vst [vmem:[#allocation61_spill] sm:$0xff] %v6337_v7  ;;  %v1798_v29 = vadd.f32 %v7671_v12, %v6241_v33  ;;  %v1835_v7 = vadd.f32 %v5956_v46, %v1770_v4  ;;  %v1834_v38 = vadd.f32 %v5959_v3, %v1769_v45  ;;  %v6361_v44 = vmul.f32 %v3736_v41, %v2357_v32  ;;  %s6504_s23 = sld [smem:[#allocation2 + %s3068_s18]] }
 0x2e1   : > { %7667 = vst [vmem:[#allocation62_spill] sm:$0xff] %v6346_v13  ;;  %2950 = vrot.lane.b32.xlu1 %v2939_v47, %s7395_s17  ;;  %2948 = vrot.lane.b32.xlu0 %v2938_v10, %s7395_s17  ;;  %v2964_v5 = vmul.f32 %v6177_v61, %v2962_v35  ;;  %v2963_v24 = vmul.f32 %v6181_v56, %v2962_v35  ;;  %v7709_v13 = vld [vmem:[#allocation191_spill] sm:$0xff] }
 0x2e2   : > { %7672 = vst [vmem:[#allocation65_spill] sm:$0xff] %v6361_v44  ;;  %v1837_v33 = vadd.f32 %v5980_v28, %v1772_v57  ;;  %v1836_v46 = vadd.f32 %v5982_v22, %v1771_v27  ;;  %v6371_v3 = vmul.f32 %v6286_v16, %v2357_v32  ;;  %v6374_v45 = vmul.f32 %v6246_v17, %v2368_v50  ;;  %v6383_v58 = vpop.permute.xlu1 %2475  ;;  %v6385_v28 = vpop.permute.xlu0 %2473  ;;  %v7676_v22 = vld [vmem:[#allocation153_spill] sm:$0xff]  ;;  %v7678_v27 = vld [vmem:[#allocation42_spill] sm:$0xff] }
 0x2e3   : > { %v1846_v12 = vadd.f32 %v5991_v54, %v1797_v30  ;;  %v1845_v4 = vadd.f32 %v5994_v51, %v1796_v2  ;;  %v6379_v47 = vmul.f32 %v6258_v11, %v2368_v50  ;;  %v6381_v10 = vmul.f32 %v3736_v41, %v2368_v50  ;;  %v7677_v17 = vld [vmem:[#allocation41_spill] sm:$0xff]  ;;  %v7679_v41 = vld [vmem:[#allocation154_spill] sm:$0xff]  ;;  %v7680_v2 = vld [vmem:[#allocation155_spill] sm:$0xff] }
 0x2e4   : > { %7673 = vst [vmem:[#allocation66_spill] sm:$0xff] %v6371_v3  ;;  %7674 = vst [vmem:[#allocation73_spill] sm:$0xff] %v6374_v45  ;;  %v1873_v32 = vadd.f32 %v7676_v22, %v6269_v53  ;;  %v1848_v57 = vadd.f32 %v7677_v17, %v1799_v63  ;;  %v1847_v54 = vadd.f32 %v7678_v27, %v1798_v29  ;;  %v7684_v22 = vld [vmem:[#allocation159_spill] sm:$0xff]  ;;  %v7685_v27 = vld [vmem:[#allocation160_spill] sm:$0xff]  ;;  %v2600_v45 = vstv %s6359_s20  ;;  %s3170_s20 = sadd.s32 34, %s4022_s30 }
 0x2e5   : > { %7675 = vst [vmem:[#allocation67_spill] sm:$0xff] %v6379_v47  ;;  %v6393_v51 = vmul.f32 %v6286_v16, %v2368_v50  ;;  %v1872_v11 = vadd.f32 %v7679_v41, %v6280_v36  ;;  %2973 = vrot.lane.b32.xlu1 %v2964_v5, %s7395_s17  ;;  %2971 = vrot.lane.b32.xlu0 %v2963_v24, %s7395_s17  ;;  %v7681_v16 = vld [vmem:[#allocation156_spill] sm:$0xff]  ;;  %v2989_v36 = vstv %s6340_s21  ;;  %v7683_v5 = vld [vmem:[#allocation158_spill] sm:$0xff]  ;;  %v7686_v41 = vld [vmem:[#allocation161_spill] sm:$0xff]  ;;  %s6531_s21 = sld [smem:[#allocation2 + %s3095_s22]]  ;;  %s3278_s22 = sadd.s32 35, %s4022_s30 }
 0x2e6   : > { %v2966_v30 = vmul.f32 %v6214_v62, %v2962_v35  ;;  %v2965_v53 = vmul.f32 %v6217_v37, %v2962_v35  ;;  %v1875_v29 = vadd.f32 %v7680_v2, %v6297_v9  ;;  %v1874_v50 = vadd.f32 %v7681_v16, %v6300_v43  ;;  %v6416_v1 = vpop.permute.xlu1 %2498  ;;  %v6418_v9 = vpop.permute.xlu0 %2496  ;;  %v7687_v43 = vld [vmem:[#allocation162_spill] sm:$0xff]  ;;  %s6610_s10 = sld [smem:[#allocation2 + %s3170_s20]] }
 0x2e7   : > { %v1900_v63 = vadd.f32 %v7682_v42, %v1824_v48  ;;  %v1899_v24 = vadd.f32 %v7683_v5, %v6310_v18  ;;  %v1902_v17 = vadd.f32 %v7684_v22, %v1826_v15  ;;  %v1901_v35 = vadd.f32 %v7685_v27, %v1825_v34  ;;  %v7688_v48 = vld [vmem:[#allocation163_spill] sm:$0xff]  ;;  %v7689_v42 = vld [vmem:[#allocation164_spill] sm:$0xff]  ;;  %v7690_v18 = vld [vmem:[#allocation169_spill] sm:$0xff] }
 0x2e8   : > { %v1927_v8 = vadd.f32 %v7686_v41, %v1835_v7  ;;  %v1926_v2 = vadd.f32 %v7687_v43, %v1834_v38  ;;  %v1929_v16 = vadd.f32 %v7688_v48, %v1837_v33  ;;  %v1928_v47 = vadd.f32 %v7689_v42, %v1836_v46  ;;  %v7691_v7 = vld [vmem:[#allocation165_spill] sm:$0xff]  ;;  %v7692_v33 = vld [vmem:[#allocation166_spill] sm:$0xff]  ;;  %v7693_v46 = vld [vmem:[#allocation167_spill] sm:$0xff] }
 0x2e9   : > { %v1981_v5 = vadd.f32 %v7690_v18, %v1873_v32  ;;  %2977 = vrot.lane.b32.xlu1 %v2966_v30, %s7395_s17  ;;  %2975 = vrot.lane.b32.xlu0 %v2965_v53, %s7395_s17  ;;  %v2991_v15 = vmul.f32 %v6177_v61, %v2989_v36  ;;  %v2990_v34 = vmul.f32 %v6181_v56, %v2989_v36  ;;  %v7694_v32 = vld [vmem:[#allocation170_spill] sm:$0xff]  ;;  %v7695_v30 = vld [vmem:[#allocation168_spill] sm:$0xff]  ;;  %v7696_v43 = vld [vmem:[#allocation171_spill] sm:$0xff] }
 0x2ea   : > { %v6432_v38 = vadd.f32 %v7691_v7, %v1846_v12  ;;  %v6435_v22 = vadd.f32 %v7692_v33, %v1845_v4  ;;  %v1956_v27 = vadd.f32 %v7693_v46, %v1848_v57  ;;  %v1980_v41 = vadd.f32 %v7694_v32, %v1872_v11  ;;  %v7697_v42 = vld [vmem:[#allocation172_spill] sm:$0xff]  ;;  %v6444_v3 = vpop.permute.xlu1 %2502  ;;  %v6446_v12 = vpop.permute.xlu0 %2500  ;;  %v6451_v4 = vld [vmem:[%s4038_s25 + $0x80] sm:$0xff]  ;;  %v7699_v11 = vld [vmem:[#allocation173_spill] sm:$0xff] }
 0x2eb   : > { %v1955_v53 = vadd.f32 %v7695_v30, %v1847_v54  ;;  %v1983_v48 = vadd.f32 %v7696_v43, %v1875_v29  ;;  %v1982_v18 = vadd.f32 %v7697_v42, %v1874_v50  ;;  %7698 = vst [vmem:[#allocation68_spill] sm:$0xff] %v6451_v4  ;;  %v6454_v57 = vmul.f32 %v6451_v4, %v2600_v45  ;;  %v7700_v54 = vld [vmem:[#allocation174_spill] sm:$0xff]  ;;  %v7702_v32 = vld [vmem:[#allocation44_spill] sm:$0xff] }
 0x2ec   : > { %v2008_v7 = vadd.f32 %v7699_v11, %v1900_v63  ;;  %v2007_v33 = vadd.f32 %v7700_v54, %v1899_v24  ;;  %v6459_v29 = vld [vmem:[%s4038_s25 + $0x78] sm:$0xff]  ;;  %v2611_v46 = vstv %s6395_s0  ;;  %v2077_v30 = vadd.f32 %v7702_v32, %v1981_v5  ;;  %v7705_v5 = vld [vmem:[#allocation187_spill] sm:$0xff]  ;;  %s3197_s0 = sadd.s32 34, %s4032_s11 }
 0x2ed   : > { %7701 = vst [vmem:[#allocation69_spill] sm:$0xff] %v6459_v29  ;;  %v6462_v50 = vmul.f32 %v6459_v29, %v2600_v45  ;;  %3000 = vrot.lane.b32.xlu1 %v2991_v15, %s7395_s17  ;;  %2998 = vrot.lane.b32.xlu0 %v2990_v34, %s7395_s17  ;;  %v2993_v43 = vmul.f32 %v6214_v62, %v2989_v36  ;;  %v3016_v24 = vstv %s6409_s7  ;;  %s6703_s7 = sld [smem:[#allocation2 + %s2631_s4]]  ;;  %s2862_s4 = sadd.s32 30, %s4022_s30 }
 0x2ee   : > { %v2992_v42 = vmul.f32 %v6217_v37, %v2989_v36  ;;  %v2076_v63 = vadd.f32 %v6077_v40, %v1980_v41  ;;  %v6474_v11 = vmul.f32 %v5640_v49, %v2600_v45  ;;  %v6477_v54 = vmul.f32 %v5643_v31, %v2600_v45  ;;  %v6482_v44 = vpop.permute.xlu1 %2525  ;;  %v7708_v49 = vld [vmem:[#allocation188_spill] sm:$0xff]  ;;  %s6720_s1 = sld [smem:[#allocation2 + %s3197_s0]] }
 0x2ef   : > { %v2010_v32 = vadd.f32 %v7705_v5, %v1902_v17  ;;  %v2079_v15 = vadd.f32 %v6082_v59, %v1983_v48  ;;  %v2078_v34 = vadd.f32 %v6085_v20, %v1982_v18  ;;  %v6484_v36 = vpop.permute.xlu0 %2523  ;;  %v6487_v40 = vmul.f32 %v6451_v4, %v2611_v46  ;;  %v7710_v45 = vld [vmem:[#allocation192_spill] sm:$0xff]  ;;  %s2863_s0 = sld [smem:[#allocation2 + %s2862_s4]]  ;;  %s3159_s4 = sadd.s32 33, %s4067_s24 }
 0x2f0   : > { %7703 = vst [vmem:[#allocation74_spill] sm:$0xff] %v6474_v11  ;;  %7704 = vst [vmem:[#allocation70_spill] sm:$0xff] %v6477_v54  ;;  %v2009_v41 = vadd.f32 %v7708_v49, %v1901_v35  ;;  %v6491_v31 = vadd.f32 %v7709_v13, %v2008_v7  ;;  %v6494_v17 = vadd.f32 %v7710_v45, %v2007_v33  ;;  %v6507_v13 = vld [vmem:[%s4038_s25 + $0x90] sm:$0xff]  ;;  %v7713_v18 = vld [vmem:[#allocation196_spill] sm:$0xff] }
 0x2f1   : > { %7706 = vst [vmem:[#allocation71_spill] sm:$0xff] %v6484_v36  ;;  %7707 = vst [vmem:[#allocation72_spill] sm:$0xff] %v6487_v40  ;;  %v6498_v20 = vmul.f32 %v6459_v29, %v2611_v46  ;;  %3004 = vrot.lane.b32.xlu1 %v2993_v43, %s7395_s17  ;;  %3002 = vrot.lane.b32.xlu0 %v2992_v42, %s7395_s17  ;;  %v3018_v59 = vmul.f32 %v6177_v61, %v3016_v24  ;;  %v7714_v33 = vld [vmem:[#allocation197_spill] sm:$0xff]  ;;  %v6515_v49 = vld [vmem:[%s4038_s25 + $0x88] sm:$0xff]  ;;  %v6521_v42 = vstv %s6439_s9  ;;  %s3225_s9 = sld [smem:[#allocation2 + %s3224_s2]] }
 0x2f2   : > { %v3017_v35 = vmul.f32 %v6181_v56, %v3016_v24  ;;  %7712 = vst [vmem:[#allocation76_spill] sm:$0xff] %v6507_v13  ;;  %v6510_v48 = vmul.f32 %v6507_v13, %v2611_v46  ;;  %v2035_v7 = vadd.f32 %v7713_v18, %v1927_v8  ;;  %v2034_v5 = vadd.f32 %v7714_v33, %v1926_v2  ;;  %v7716_v45 = vld [vmem:[#allocation200_spill] sm:$0xff]  ;;  %v7717_v40 = vld [vmem:[#allocation201_spill] sm:$0xff]  ;;  %v6526_v36 = vpop.permute.xlu1 %2529 }
 0x2f3   : > { %7711 = vst [vmem:[#allocation75_spill] sm:$0xff] %v6498_v20  ;;  %7715 = vst [vmem:[#allocation77_spill] sm:$0xff] %v6515_v49  ;;  %v6518_v43 = vmul.f32 %v6515_v49, %v2611_v46  ;;  %v2037_v20 = vadd.f32 %v7716_v45, %v1929_v16  ;;  %v2036_v54 = vadd.f32 %v7717_v40, %v1928_v47  ;;  %v6528_v13 = vpop.permute.xlu0 %2527  ;;  %v3043_v8 = vstv %s6448_s6  ;;  %v7718_v2 = vld [vmem:[#allocation204_spill] sm:$0xff]  ;;  %v7719_v33 = vld [vmem:[#allocation205_spill] sm:$0xff]  ;;  %s3251_s6 = sadd.s32 34, %s4067_s24 }
 0x2f4   : > { %v2090_v11 = vadd.f32 %v6117_v14, %v2010_v32  ;;  %v2064_v18 = vadd.f32 %v7718_v2, %v1956_v27  ;;  %v2063_v46 = vadd.f32 %v7719_v33, %v1955_v53  ;;  %v6536_v49 = vadd.f32 %v6119_v39, %v2009_v41  ;;  %v7725_v33 = vld [vmem:[#allocation16_spill] sm:$0xff]  ;;  %s3252_s18 = sld [smem:[#allocation2 + %s3251_s6]]  ;;  %s2884_s6 = sadd.s32 30, %s4043_s29 }
 0x2f5   : > { %v3020_v16 = vmul.f32 %v6214_v62, %v3016_v24  ;;  %3027 = vrot.lane.b32.xlu1 %v3018_v59, %s7238_s28  ;;  %3025 = vrot.lane.b32.xlu0 %v3017_v35, %s7238_s28  ;;  %v3019_v14 = vmul.f32 %v6217_v37, %v3016_v24  ;;  %v6544_v47 = vmul.f32 %v6451_v4, %v6521_v42  ;;  %v7722_v24 = vld [vmem:[#allocation202_spill] sm:$0xff]  ;;  %v7723_v59 = vld [vmem:[#allocation203_spill] sm:$0xff] }
 0x2f6   : > { %v6548_v27 = vmul.f32 %v6459_v29, %v6521_v42  ;;  %v6551_v53 = vadd.f32 %v6130_v26, %v2035_v7  ;;  %v6554_v39 = vadd.f32 %v6141_v23, %v2034_v5  ;;  %v3045_v32 = vmul.f32 %v6177_v61, %v3043_v8  ;;  %v6568_v7 = vpop.permute.xlu1 %2552  ;;  %v7724_v5 = vld [vmem:[#allocation15_spill] sm:$0xff] }
 0x2f7   : > { %7720 = vst [vmem:[#allocation78_spill] sm:$0xff] %v6544_v47  ;;  %v3044_v40 = vmul.f32 %v6181_v56, %v3043_v8  ;;  %v2062_v41 = vadd.f32 %v7722_v24, %v6432_v38  ;;  %v2061_v35 = vadd.f32 %v7723_v59, %v6435_v22  ;;  %v6563_v45 = vadd.f32 %v6149_v55, %v2037_v20  ;;  %v6570_v23 = vpop.permute.xlu0 %2550  ;;  %v7726_v22 = vld [vmem:[#allocation175_spill] sm:$0xff]  ;;  %v7727_v20 = vld [vmem:[#allocation189_spill] sm:$0xff] }
 0x2f8   : > { %7721 = vst [vmem:[#allocation79_spill] sm:$0xff] %v6548_v27  ;;  %v6566_v26 = vadd.f32 %v6151_v0, %v2036_v54  ;;  %v2137_v2 = vadd.f32 %v7724_v5, %v2077_v30  ;;  %v2136_v29 = vadd.f32 %v7725_v33, %v2076_v63  ;;  %v2112_v38 = vadd.f32 %v6172_v6, %v2064_v18  ;;  %v7728_v5 = vld [vmem:[#allocation25_spill] sm:$0xff]  ;;  %v7729_v33 = vld [vmem:[#allocation26_spill] sm:$0xff]  ;;  %v7730_v18 = vld [vmem:[#allocation27_spill] sm:$0xff] }
 0x2f9   : > { %v2111_v24 = vadd.f32 %v6174_v21, %v2063_v46  ;;  %v2139_v59 = vadd.f32 %v7726_v22, %v2079_v15  ;;  %3031 = vrot.lane.b32.xlu1 %v3020_v16, %s7238_s28  ;;  %3029 = vrot.lane.b32.xlu0 %v3019_v14, %s7238_s28  ;;  %v3047_v55 = vmul.f32 %v6214_v62, %v3043_v8  ;;  %v3070_v54 = vstv %s6504_s23  ;;  %v7731_v15 = vld [vmem:[#allocation176_spill] sm:$0xff]  ;;  %v7732_v14 = vld [vmem:[#allocation190_spill] sm:$0xff]  ;;  %s3279_s23 = sld [smem:[#allocation2 + %s3278_s22]]  ;;  %s2895_s22 = sadd.s32 30, %s4067_s24 }
 0x2fa   : > { %v3046_v0 = vmul.f32 %v6217_v37, %v3043_v8  ;;  %v2220_v30 = vadd.f32 %v7727_v20, %v2112_v38  ;;  %v2245_v6 = vadd.f32 %v7729_v33, %v2137_v2  ;;  %v2244_v21 = vadd.f32 %v7730_v18, %v2136_v29  ;;  %v6592_v4 = vpop.permute.xlu1 %2556  ;;  %v7735_v2 = vld [vmem:[#allocation45_spill] sm:$0xff]  ;;  %v7736_v29 = vld [vmem:[#allocation46_spill] sm:$0xff] }
 0x2fb   : > { %v2219_v63 = vadd.f32 %v7728_v5, %v2111_v24  ;;  %v2138_v46 = vadd.f32 %v7731_v15, %v2078_v34  ;;  %v6589_v16 = vadd.f32 %v6161_v52, %v2062_v41  ;;  %v2247_v22 = vadd.f32 %v7732_v14, %v2139_v59  ;;  %7733 = vst [vmem:[#allocation80_spill] sm:$0xff] %v6592_v4  ;;  %v6594_v8 = vpop.permute.xlu0 %2554  ;;  %v7737_v5 = vld [vmem:[#allocation28_spill] sm:$0xff]  ;;  %v7739_v33 = vld [vmem:[#allocation54_spill] sm:$0xff]  ;;  %v7742_v14 = vld [vmem:[#allocation179_spill] sm:$0xff] }
 0x2fc   : > { %7734 = vst [vmem:[#allocation81_spill] sm:$0xff] %v6594_v8  ;;  %v6597_v27 = vstv %s6531_s21  ;;  %v6600_v38 = vadd.f32 %v6163_v25, %v2061_v35  ;;  %v2328_v24 = vadd.f32 %v7735_v2, %v2220_v30  ;;  %v3072_v34 = vmul.f32 %v6177_v61, %v3070_v54  ;;  %v7738_v25 = vld [vmem:[#allocation53_spill] sm:$0xff]  ;;  %v7747_v4 = vld [vmem:[#allocation31_spill] sm:$0xff]  ;;  %s3305_s21 = sadd.s32 35, %s4032_s11 }
 0x2fd   : > { %v2327_v20 = vadd.f32 %v7736_v29, %v2219_v63  ;;  %v2246_v52 = vadd.f32 %v7737_v5, %v2138_v46  ;;  %3054 = vrot.lane.b32.xlu1 %v3045_v32, %s7238_s28  ;;  %3052 = vrot.lane.b32.xlu0 %v3044_v40, %s7238_s28  ;;  %v3071_v41 = vmul.f32 %v6181_v56, %v3070_v54  ;;  %v7740_v32 = vld [vmem:[#allocation178_spill] sm:$0xff]  ;;  %v7741_v40 = vld [vmem:[#allocation19_spill] sm:$0xff]  ;;  %s3306_s20 = sld [smem:[#allocation2 + %s3305_s21]]  ;;  %s3137_s21 = sadd.s32 33, %s4032_s11 }
 0x2fe   : > { %v3074_v59 = vmul.f32 %v6214_v62, %v3070_v54  ;;  %v2341_v35 = vadd.f32 %v7738_v25, %v2245_v6  ;;  %v2340_v30 = vadd.f32 %v7739_v33, %v2244_v21  ;;  %v3073_v63 = vmul.f32 %v6217_v37, %v3070_v54  ;;  %v7743_v29 = vld [vmem:[#allocation198_spill] sm:$0xff]  ;;  %v6625_v47 = vpop.permute.xlu1 %2579  ;;  %v7744_v21 = vld [vmem:[#allocation47_spill] sm:$0xff]  ;;  %v7745_v25 = vld [vmem:[#allocation48_spill] sm:$0xff] }
 0x2ff   : > { %v6617_v18 = vmul.f32 %v6177_v61, %v6597_v27  ;;  %v2164_v15 = vadd.f32 %v7740_v32, %v6491_v31  ;;  %v2163_v46 = vadd.f32 %v7741_v40, %v6494_v17  ;;  %v2166_v2 = vadd.f32 %v7742_v14, %v2090_v11  ;;  %v6627_v6 = vpop.permute.xlu0 %2577  ;;  %v7746_v31 = vld [vmem:[#allocation30_spill] sm:$0xff]  ;;  %v7748_v40 = vld [vmem:[#allocation199_spill] sm:$0xff]  ;;  %v7754_v14 = vld [vmem:[#allocation57_spill] sm:$0xff] }
 0x300   : > { %v2343_v5 = vadd.f32 %v7743_v29, %v2247_v22  ;;  %v2401_v54 = vadd.f32 %v7744_v21, %v2341_v35  ;;  %v2400_v33 = vadd.f32 %v7745_v25, %v2340_v30  ;;  %v2376_v61 = vadd.f32 %v6381_v10, %v2328_v24  ;;  %v7755_v29 = vld [vmem:[#allocation58_spill] sm:$0xff] }
 0x301   : > { %v2375_v8 = vadd.f32 %v6393_v51, %v2327_v20  ;;  %v2272_v32 = vadd.f32 %v7746_v31, %v2164_v15  ;;  %v2271_v17 = vadd.f32 %v7747_v4, %v2163_v46  ;;  %v2342_v11 = vadd.f32 %v7748_v40, %v2246_v52  ;;  %3058 = vrot.lane.b32.xlu1 %v3047_v55, %s7238_s28  ;;  %v7749_v51 = vld [vmem:[#allocation180_spill] sm:$0xff]  ;;  %v7750_v20 = vld [vmem:[#allocation34_spill] sm:$0xff] }
 0x302   : > { %3056 = vrot.lane.b32.xlu0 %v3046_v0, %s7238_s28  ;;  %v2484_v22 = vadd.f32 %v6383_v58, %v2376_v61  ;;  %v2509_v30 = vadd.f32 %v6416_v1, %v2401_v54  ;;  %v2508_v10 = vadd.f32 %v6418_v9, %v2400_v33  ;;  %v2165_v24 = vadd.f32 %v7749_v51, %v6536_v49  ;;  %v2584_v15 = vpop.permute.xlu1 %2583  ;;  %v7751_v58 = vld [vmem:[#allocation193_spill] sm:$0xff]  ;;  %v7752_v1 = vld [vmem:[#allocation194_spill] sm:$0xff]  ;;  %v7753_v49 = vld [vmem:[#allocation35_spill] sm:$0xff] }
 0x303   : > { %v2483_v35 = vadd.f32 %v6385_v28, %v2375_v8  ;;  %v2274_v4 = vadd.f32 %v7750_v20, %v2166_v2  ;;  %v2582_v52 = vpop.permute.xlu0 %2581  ;;  %v3098_v55 = vmul.f32 %v6181_v56, %v6597_v27  ;;  %v6649_v61 = vmul.f32 %v6214_v62, %v6597_v27  ;;  %v7762_v20 = vld [vmem:[#allocation37_spill] sm:$0xff] }
 0x304   : > { %v2403_v28 = vadd.f32 %v7751_v58, %v2343_v5  ;;  %v2402_v0 = vadd.f32 %v7752_v1, %v2342_v11  ;;  %v6653_v9 = vadd.f32 %v2584_v15, %v2484_v22  ;;  %v2273_v46 = vadd.f32 %v7753_v49, %v2165_v24  ;;  %v7760_v24 = vld [vmem:[#allocation50_spill] sm:$0xff]  ;;  %v7763_v15 = vld [vmem:[#allocation71_spill] sm:$0xff]  ;;  %v7766_v49 = vld [vmem:[#allocation24_spill] sm:$0xff] }
 0x305   : > { %v6655_v8 = vadd.f32 %v2582_v52, %v2483_v35  ;;  %v2352_v2 = vadd.f32 %v7754_v14, %v2272_v32  ;;  %v2351_v21 = vadd.f32 %v7755_v29, %v2271_v17  ;;  %3081 = vrot.lane.b32.xlu1 %v3072_v34, %s7238_s28  ;;  %v6663_v54 = vstv %s6610_s10  ;;  %v7756_v32 = vld [vmem:[#allocation181_spill] sm:$0xff]  ;;  %v7757_v17 = vld [vmem:[#allocation22_spill] sm:$0xff]  ;;  %s3332_s10 = sadd.s32 35, %s4043_s29 }
 0x306   : > { %3079 = vrot.lane.b32.xlu0 %v3071_v41, %s7238_s28  ;;  %v2511_v5 = vadd.f32 %v6444_v3, %v2403_v28  ;;  %v2510_v25 = vadd.f32 %v6446_v12, %v2402_v0  ;;  %v2606_v33 = vadd.f32 %v6454_v57, %v2509_v30  ;;  %v2605_v31 = vadd.f32 %v6462_v50, %v2508_v10  ;;  %v7758_v41 = vld [vmem:[#allocation182_spill] sm:$0xff]  ;;  %v2656_v35 = vpop.permute.xlu1 %2655  ;;  %v7759_v3 = vld [vmem:[#allocation49_spill] sm:$0xff] }
 0x307   : > { %v2191_v40 = vadd.f32 %v7756_v32, %v6551_v53  ;;  %v2190_v34 = vadd.f32 %v7757_v17, %v6554_v39  ;;  %v2193_v11 = vadd.f32 %v7758_v41, %v6563_v45  ;;  %v2354_v22 = vadd.f32 %v6312_v60, %v2274_v4  ;;  %v2654_v51 = vpop.permute.xlu0 %2653  ;;  %v6683_v53 = vld [vmem:[%s4038_s25 + $0x82] sm:$0xff]  ;;  %v7764_v58 = vld [vmem:[#allocation74_spill] sm:$0xff]  ;;  %v7771_v17 = vld [vmem:[#allocation61_spill] sm:$0xff] }
 0x308   : > { %v2428_v12 = vadd.f32 %v7759_v3, %v2352_v2  ;;  %v2427_v57 = vadd.f32 %v7760_v24, %v2351_v21  ;;  %v6678_v30 = vadd.f32 %v2656_v35, %v2606_v33  ;;  %v6680_v50 = vadd.f32 %v2654_v51, %v2605_v31  ;;  %v7761_v39 = vld [vmem:[#allocation36_spill] sm:$0xff]  ;;  %v7765_v1 = vld [vmem:[#allocation70_spill] sm:$0xff]  ;;  %v7770_v32 = vld [vmem:[#allocation39_spill] sm:$0xff] }
 0x309   : > { %v2299_v10 = vadd.f32 %v7761_v39, %v2191_v40  ;;  %v2298_v45 = vadd.f32 %v7762_v20, %v2190_v34  ;;  %v2353_v60 = vadd.f32 %v6324_v19, %v2273_v46  ;;  %3085 = vrot.lane.b32.xlu1 %v3074_v59, %s7238_s28  ;;  %v2608_v28 = vadd.f32 %v7764_v58, %v2511_v5  ;;  %v7767_v2 = vld [vmem:[#allocation38_spill] sm:$0xff]  ;;  %v7769_v5 = vld [vmem:[#allocation52_spill] sm:$0xff]  ;;  %v7774_v3 = vld [vmem:[#allocation75_spill] sm:$0xff] }
 0x30a   : > { %3083 = vrot.lane.b32.xlu0 %v3073_v63, %s7238_s28  ;;  %v2536_v4 = vadd.f32 %v6482_v44, %v2428_v12  ;;  %v2535_v52 = vadd.f32 %v7763_v15, %v2427_v57  ;;  %v2607_v0 = vadd.f32 %v7765_v1, %v2510_v25  ;;  %v2192_v14 = vadd.f32 %v7766_v49, %v6566_v26  ;;  %v2660_v19 = vpop.permute.xlu1 %2659  ;;  %v7768_v63 = vld [vmem:[#allocation51_spill] sm:$0xff]  ;;  %v7773_v35 = vld [vmem:[#allocation72_spill] sm:$0xff]  ;;  %v7775_v24 = vld [vmem:[#allocation185_spill] sm:$0xff] }
 0x30b   : > { %v2301_v29 = vadd.f32 %v7767_v2, %v2193_v11  ;;  %v2658_v46 = vpop.permute.xlu0 %2657  ;;  %v3100_v59 = vmul.f32 %v6217_v37, %v6597_v27  ;;  %v3174_v44 = vmul.f32 %v6683_v53, %v6663_v54  ;;  %v2430_v21 = vadd.f32 %v7768_v63, %v2354_v22  ;;  %v6712_v26 = vld [vmem:[%s4038_s25 + $0x7a] sm:$0xff]  ;;  %v7779_v15 = vld [vmem:[#allocation56_spill] sm:$0xff] }
 0x30c   : > { %v2429_v25 = vadd.f32 %v7769_v5, %v2353_v60  ;;  %v6707_v33 = vadd.f32 %v2660_v19, %v2608_v28  ;;  %v6709_v31 = vadd.f32 %v2658_v46, %v2607_v0  ;;  %v2300_v40 = vadd.f32 %v7770_v32, %v2192_v14  ;;  %v7772_v27 = vld [vmem:[#allocation62_spill] sm:$0xff]  ;;  %v7778_v60 = vld [vmem:[#allocation55_spill] sm:$0xff]  ;;  %v7780_v28 = vld [vmem:[#allocation40_spill] sm:$0xff] }
 0x30d   : > { %v2363_v34 = vadd.f32 %v7771_v17, %v2299_v10  ;;  %v2362_v41 = vadd.f32 %v7772_v27, %v2298_v45  ;;  %3108 = vrot.lane.b32.xlu1 %v6617_v18, %s7238_s28  ;;  %v2538_v11 = vadd.f32 %v6526_v36, %v2430_v21  ;;  %v2617_v51 = vadd.f32 %v7773_v35, %v2536_v4  ;;  %v7776_v39 = vld [vmem:[#allocation186_spill] sm:$0xff]  ;;  %v7777_v18 = vld [vmem:[#allocation65_spill] sm:$0xff]  ;;  %v7781_v1 = vld [vmem:[#allocation43_spill] sm:$0xff] }
 0x30e   : > { %3106 = vrot.lane.b32.xlu0 %v3098_v55, %s7238_s28  ;;  %v2537_v22 = vadd.f32 %v6528_v13, %v2429_v25  ;;  %v2616_v12 = vadd.f32 %v7774_v3, %v2535_v52  ;;  %v2218_v57 = vadd.f32 %v7775_v24, %v6589_v16  ;;  %v2217_v10 = vadd.f32 %v7776_v39, %v6600_v38  ;;  %v2683_v55 = vpop.permute.xlu1 %2682  ;;  %v6740_v16 = vld [vmem:[%s4038_s25 + $0x92] sm:$0xff]  ;;  %v6753_v63 = vld [vmem:[%s4038_s25 + $0x8a] sm:$0xff] }
 0x30f   : > { %v2365_v20 = vadd.f32 %v7777_v18, %v2301_v29  ;;  %v2681_v45 = vpop.permute.xlu0 %2680  ;;  %v3173_v36 = vmul.f32 %v6712_v26, %v6663_v54  ;;  %v2455_v13 = vadd.f32 %v7778_v60, %v2363_v34  ;;  %v2454_v4 = vadd.f32 %v7779_v15, %v2362_v41  ;;  %v7782_v49 = vld [vmem:[#allocation66_spill] sm:$0xff]  ;;  %v7786_v17 = vld [vmem:[#allocation60_spill] sm:$0xff]  ;;  %v7787_v41 = vld [vmem:[#allocation73_spill] sm:$0xff] }
 0x310   : > { %v6735_v58 = vadd.f32 %v2683_v55, %v2617_v51  ;;  %v6737_v52 = vadd.f32 %v2681_v45, %v2616_v12  ;;  %v2326_v38 = vadd.f32 %v7780_v28, %v2218_v57  ;;  %v2325_v0 = vadd.f32 %v7781_v1, %v2217_v10  ;;  %v7789_v3 = vld [vmem:[#allocation80_spill] sm:$0xff]  ;;  %v7790_v24 = vld [vmem:[#allocation81_spill] sm:$0xff]  ;;  %v7791_v39 = vld [vmem:[#allocation78_spill] sm:$0xff] }
 0x311   : > { %v2364_v14 = vadd.f32 %v7782_v49, %v2300_v40  ;;  %3112 = vrot.lane.b32.xlu1 %v6649_v61, %s7238_s28  ;;  %v2563_v2 = vadd.f32 %v6568_v7, %v2455_v13  ;;  %v2562_v29 = vadd.f32 %v6570_v23, %v2454_v4  ;;  %v2619_v19 = vadd.f32 %v6510_v48, %v2538_v11  ;;  %v7783_v61 = vld [vmem:[#allocation76_spill] sm:$0xff]  ;;  %v7785_v23 = vld [vmem:[#allocation59_spill] sm:$0xff] }
 0x312   : > { %3110 = vrot.lane.b32.xlu0 %v3100_v59, %s7238_s28  ;;  %v2618_v46 = vadd.f32 %v6518_v43, %v2537_v22  ;;  %v2687_v21 = vpop.permute.xlu1 %2686  ;;  %v3176_v25 = vmul.f32 %v6740_v16, %v6663_v54  ;;  %v2626_v32 = vmul.f32 %v7783_v61, %v6521_v42  ;;  %v7784_v59 = vld [vmem:[#allocation77_spill] sm:$0xff]  ;;  %v2633_v40 = vstv %s6703_s7  ;;  %v7788_v22 = vld [vmem:[#allocation67_spill] sm:$0xff]  ;;  %v7793_v60 = vld [vmem:[#allocation68_spill] sm:$0xff]  ;;  %s3359_s7 = sadd.s32 35, %s4067_s24  ;;  %s7045_s24 = sld [smem:[#allocation2 + %s3159_s4]] }
 0x313   : > { %v2685_v5 = vpop.permute.xlu0 %2684  ;;  %v2625_v7 = vmul.f32 %v7784_v59, %v6521_v42  ;;  %v2457_v48 = vadd.f32 %v7785_v23, %v2365_v20  ;;  %v2456_v43 = vadd.f32 %v7786_v17, %v2364_v14  ;;  %v6765_v34 = vadd.f32 %v2687_v21, %v2619_v19  ;;  %v7792_v18 = vld [vmem:[#allocation79_spill] sm:$0xff]  ;;  %v7795_v15 = vld [vmem:[#allocation64_spill] sm:$0xff]  ;;  %s3360_s2 = sld [smem:[#allocation2 + %s3359_s7]] }
 0x314   : > { %v6767_v27 = vadd.f32 %v2685_v5, %v2618_v46  ;;  %v2374_v11 = vadd.f32 %v7787_v41, %v2326_v38  ;;  %v2373_v35 = vadd.f32 %v7788_v22, %v2325_v0  ;;  %v3175_v42 = vmul.f32 %v6753_v63, %v6663_v54  ;;  %v7796_v0 = vld [vmem:[#allocation69_spill] sm:$0xff] }
 0x315   : > { %3183 = vrot.lane.b32.xlu1 %v3174_v44, %s7395_s17  ;;  %v3199_v51 = vstv %s6720_s1  ;;  %v2565_v12 = vadd.f32 %v7789_v3, %v2457_v48  ;;  %v2564_v57 = vadd.f32 %v7790_v24, %v2456_v43  ;;  %v2628_v10 = vadd.f32 %v7791_v39, %v2563_v2  ;;  %v7794_v44 = vld [vmem:[#allocation63_spill] sm:$0xff]  ;;  %s2873_s1 = sadd.s32 30, %s4032_s11 }
 0x316   : > { %3181 = vrot.lane.b32.xlu0 %v3173_v36, %s7395_s17  ;;  %v2627_v20 = vadd.f32 %v7792_v18, %v2562_v29  ;;  %v2710_v55 = vpop.permute.xlu1 %2709  ;;  %v2635_v13 = vmul.f32 %v7793_v60, %v2633_v40  ;;  %v2482_v36 = vadd.f32 %v7794_v44, %v2374_v11  ;;  %v2481_v4 = vadd.f32 %v7795_v15, %v2373_v35 }
 0x317   : > { %v2708_v45 = vpop.permute.xlu0 %2707  ;;  %v6783_v54 = vadd.f32 %v2710_v55, %v2628_v10  ;;  %v3201_v38 = vmul.f32 %v6683_v53, %v3199_v51  ;;  %v3200_v1 = vmul.f32 %v6712_v26, %v3199_v51  ;;  %v2634_v49 = vmul.f32 %v7796_v0, %v2633_v40 }
 0x318   : > { %v6785_v28 = vadd.f32 %v2708_v45, %v2627_v20  ;;  %v2590_v14 = vadd.f32 %v6625_v47, %v2482_v36  ;;  %v2589_v2 = vadd.f32 %v6627_v6, %v2481_v4  ;;  %v2630_v29 = vadd.f32 %v2626_v32, %v2565_v12 }
 0x319   : > { %3187 = vrot.lane.b32.xlu1 %v3176_v25, %s7395_s17  ;;  %v2629_v19 = vadd.f32 %v2625_v7, %v2564_v57  ;;  %v3203_v23 = vmul.f32 %v6740_v16, %v3199_v51  ;;  %v3202_v48 = vmul.f32 %v6753_v63, %v3199_v51  ;;  %v2637_v47 = vmul.f32 %v7783_v61, %v2633_v40 }
 0x31a   : > { %3185 = vrot.lane.b32.xlu0 %v3175_v42, %s7395_s17  ;;  %v2714_v46 = vpop.permute.xlu1 %2713  ;;  %v2639_v6 = vadd.f32 %v2635_v13, %v2590_v14  ;;  %v2638_v32 = vadd.f32 %v2634_v49, %v2589_v2  ;;  %v2636_v7 = vmul.f32 %v7784_v59, %v2633_v40  ;;  %v3226_v17 = vstv %s3225_s9  ;;  %s2874_s9 = sld [smem:[#allocation2 + %s2873_s1]] }
 0x31b   : > { %v2712_v21 = vpop.permute.xlu0 %2711  ;;  %v6795_v5 = vadd.f32 %v2714_v46, %v2630_v29  ;;  %v3228_v35 = vmul.f32 %v6683_v53, %v3226_v17  ;;  %v3227_v61 = vmul.f32 %v6712_v26, %v3226_v17  ;;  %v2641_v42 = vadd.f32 %v2637_v47, %v6653_v9 }
 0x31c   : > { %v6797_v25 = vadd.f32 %v2712_v21, %v2629_v19  ;;  %v2640_v59 = vadd.f32 %v2636_v7, %v6655_v8  ;;  %v3230_v24 = vmul.f32 %v6740_v16, %v3226_v17  ;;  %v3229_v57 = vmul.f32 %v6753_v63, %v3226_v17 }
 0x31d   : > { %3210 = vrot.lane.b32.xlu1 %v3201_v38, %s7395_s17  ;;  %v3253_v39 = vstv %s3252_s18  ;;  %v3280_v36 = vstv %s3279_s23  ;;  %v3307_v29 = vstv %s3306_s20  ;;  %s2885_s18 = sld [smem:[#allocation2 + %s2884_s6]]  ;;  %s7803_s6 = sadd.s32 3, %s4025_s5 }
 0x31e   : > { %3208 = vrot.lane.b32.xlu0 %v3200_v1, %s7395_s17  ;;  %v2737_v43 = vpop.permute.xlu1 %2736  ;;  %v3255_v20 = vmul.f32 %v6683_v53, %v3253_v39  ;;  %v3254_v55 = vmul.f32 %v6712_v26, %v3253_v39  ;;  %v3256_v44 = vmul.f32 %v6753_v63, %v3253_v39  ;;  %v3282_v38 = vmul.f32 %v6683_v53, %v3280_v36  ;;  %s2896_s23 = sld [smem:[#allocation2 + %s2895_s22]]  ;;  %s3608_s22 = sshll.u32 %s3864_s16, 5 }
 0x31f   : > { %v2735_v41 = vpop.permute.xlu0 %2734  ;;  %v6805_v11 = vadd.f32 %v2737_v43, %v2639_v6  ;;  %v3281_v1 = vmul.f32 %v6712_v26, %v3280_v36  ;;  %v3283_v2 = vmul.f32 %v6753_v63, %v3280_v36  ;;  %v3309_v21 = vmul.f32 %v6683_v53, %v3307_v29  ;;  %s3138_s20 = sld [smem:[#allocation2 + %s3137_s21]] }
 0x320   : > { %v6807_v22 = vadd.f32 %v2735_v41, %v2638_v32  ;;  %v3310_v32 = vmul.f32 %v6753_v63, %v3307_v29  ;;  %v2864_v41 = vstv %s2863_s0  ;;  %s7801_s0 = sadd.s32 1, %s4025_s5 }
 0x321   : > { %3214 = vrot.lane.b32.xlu1 %v3203_v23, %s7395_s17  ;;  %v3308_v23 = vmul.f32 %v6712_v26, %v3307_v29  ;;  %s7043_s7 = sld [smem:[#allocation5 + %s7801_s0]] }
 0x322   : > { %3212 = vrot.lane.b32.xlu0 %v3202_v48, %s7395_s17  ;;  %v2741_v40 = vpop.permute.xlu1 %2740 }
 0x323   : > { %v2739_v51 = vpop.permute.xlu0 %2738  ;;  %v6816_v3 = vadd.f32 %v2741_v40, %v2641_v42  ;;  %v7797_v42 = vld [vmem:[#allocation195_spill] sm:$0xff]  ;;  %v2865_v40 = vmul.f32 %v6181_v56, %v2864_v41 }
 0x324   : > { %v6818_v12 = vadd.f32 %v2739_v51, %v2640_v59  ;;  %v2866_v59 = vmul.f32 %v7797_v42, %v2864_v41 }
 0x325   : > { %3237 = vrot.lane.b32.xlu1 %v3228_v35, %s7395_s17 }
 0x326   : > { %3235 = vrot.lane.b32.xlu0 %v3227_v61, %s7395_s17  ;;  %v2764_v9 = vpop.permute.xlu1 %2763 }
 0x327   : > { %v2762_v8 = vpop.permute.xlu0 %2761  ;;  %v6825_v10 = vadd.f32 %v2764_v9, %v6678_v30  ;;  %v2868_v9 = vmul.f32 %v6214_v62, %v2864_v41 }
 0x328   : > { %v6828_v18 = vadd.f32 %v2762_v8, %v6680_v50  ;;  %v3257_v50 = vmul.f32 %v6740_v16, %v3253_v39  ;;  %v2867_v8 = vmul.f32 %v6217_v37, %v2864_v41 }
 0x329   : > { %3241 = vrot.lane.b32.xlu1 %v3230_v24, %s7395_s17  ;;  %v2870_v56 = vadd.f32 %v2866_v59, %v6825_v10 }
 0x32a   : > { %3239 = vrot.lane.b32.xlu0 %v3229_v57, %s7395_s17  ;;  %v2768_v45 = vpop.permute.xlu1 %2767 }
 0x32b   : > { %v2766_v60 = vpop.permute.xlu0 %2765  ;;  %v6836_v13 = vadd.f32 %v2768_v45, %v6707_v33  ;;  %v2875_v45 = vstv %s2874_s9 }
 0x32c   : > { %v6839_v30 = vadd.f32 %v2766_v60, %v6709_v31 }
 0x32d   : > { %3264 = vrot.lane.b32.xlu1 %v3255_v20, %s7395_s17  ;;  %v2872_v37 = vadd.f32 %v2868_v9, %v6836_v13 }
 0x32e   : > { %3262 = vrot.lane.b32.xlu0 %v3254_v55, %s7395_s17  ;;  %v2791_v15 = vpop.permute.xlu1 %2790 }
 0x32f   : > { %v2789_v4 = vpop.permute.xlu0 %2788  ;;  %v6846_v33 = vadd.f32 %v2791_v15, %v6735_v58  ;;  %v3743_v15 = vld [vmem:[%s4038_s25 + $0x79] sm:$0xff] }
 0x330   : > { %v6849_v31 = vadd.f32 %v2789_v4, %v6737_v52  ;;  %v3284_v52 = vmul.f32 %v6740_v16, %v3280_v36  ;;  %v2876_v4 = vmul.f32 %v3743_v15, %v2875_v45 }
 0x331   : > { %3268 = vrot.lane.b32.xlu1 %v3257_v50, %s7395_s17 }
 0x332   : > { %3266 = vrot.lane.b32.xlu0 %v3256_v44, %s7395_s17  ;;  %v2795_v0 = vpop.permute.xlu1 %2794  ;;  %s3333_s17 = sld [smem:[#allocation2 + %s3332_s10]]  ;;  %v3742_v44 = vld [vmem:[%s4038_s25 + $0x81] sm:$0xff]  ;;  %s3148_s10 = sadd.s32 33, %s4043_s29 }
 0x333   : > { %v2793_v49 = vpop.permute.xlu0 %2792  ;;  %v6857_v14 = vadd.f32 %v2795_v0, %v6765_v34  ;;  %v2877_v36 = vmul.f32 %v3742_v44, %v2875_v45  ;;  %s3149_s11 = sld [smem:[#allocation2 + %s3148_s10]]  ;;  %s202_s29 = sand.u32 1, %s3852_s13  }
 0x334   : > { %v6860_v58 = vadd.f32 %v2793_v49, %v6767_v27 }
 0x335   : > { %3291 = vrot.lane.b32.xlu1 %v3282_v38, %s7238_s28 }
 0x336   : > { %3289 = vrot.lane.b32.xlu0 %v3281_v1, %s7238_s28  ;;  %v2818_v19 = vpop.permute.xlu1 %2817 }
 0x337   : > { %v2816_v46 = vpop.permute.xlu0 %2815  ;;  %v6868_v34 = vadd.f32 %v2818_v19, %v6783_v54 }
 0x338   : > { %v6871_v27 = vadd.f32 %v2816_v46, %v6785_v28  ;;  %v3311_v28 = vmul.f32 %v6740_v16, %v3307_v29  ;;  %v3334_v7 = vstv %s3333_s17  ;;  %v3744_v29 = vld [vmem:[%s4038_s25 + $0x91] sm:$0xff]  ;;  %v3745_v46 = vld [vmem:[%s4038_s25 + $0x89] sm:$0xff]  ;;  %s3126_s25 = sadd.s32 33, %s4022_s30  ;;  %s3386_s30 = sld [smem:[#allocation5 + %s4025_s5]] }
 0x339   : > { %3295 = vrot.lane.b32.xlu1 %v3284_v52, %s7238_s28  ;;  %v3336_v35 = vmul.f32 %v6683_v53, %v3334_v7  ;;  %v3335_v61 = vmul.f32 %v6712_v26, %v3334_v7  ;;  %v3338_v57 = vmul.f32 %v6740_v16, %v3334_v7  ;;  %v3337_v39 = vmul.f32 %v6753_v63, %v3334_v7  ;;  %s3554_s17 = sshll.u32 %s202_s29, 7 }
 0x33a   : > { %3293 = vrot.lane.b32.xlu0 %v3283_v2, %s7238_s28  ;;  %v2822_v48 = vpop.permute.xlu1 %2821  ;;  %v2881_v52 = vadd.f32 %v2877_v36, %v6846_v33  ;;  %v2880_v2 = vadd.f32 %v2876_v4, %v6849_v31  ;;  %v2879_v19 = vmul.f32 %v3744_v29, %v2875_v45  ;;  %s7053_s1 = scalar_lea.vmem [#allocation7], %s3554_s17 }
 0x33b   : > { %v2820_v47 = vpop.permute.xlu0 %2819  ;;  %v6879_v6 = vadd.f32 %v2822_v48, %v6795_v5  ;;  %s3447_s16 = sshll.u32 %s7053_s1, 4  ;;  %s7136_s16 = int_to_ptr.vmem [resolvable:$true] %s3447_s16 }
 0x33c   : > { %v6882_v54 = vadd.f32 %v2820_v47, %v6797_v25  ;;  %v2886_v47 = vstv %s2885_s18  ;;  %v2883_v33 = vadd.f32 %v2879_v19, %v6857_v14  ;;  %s3419_s18 = sld [smem:[#allocation5 + %s7803_s6]]  ;;  %s3776_s10 = scalar_lea.vmem %s7136_s16, 2048 }
 0x33d   : > { %3318 = vrot.lane.b32.xlu1 %v3309_v21, %s7238_s28  ;;  %v2878_v21 = vmul.f32 %v3745_v46, %v2875_v45  ;;  %v2888_v7 = vmul.f32 %v3742_v44, %v2886_v47  ;;  %p3777_p8 = scmp.ne.s32.totalorder %s7136_s16, %s3776_s10 }
 0x33e   : > { %3316 = vrot.lane.b32.xlu0 %v3308_v23, %s7238_s28  ;;  %v2845_v17 = vpop.permute.xlu1 %2844 }
 0x33f   : > { %v2843_v43 = vpop.permute.xlu0 %2842  ;;  %v6890_v5 = vadd.f32 %v2845_v17, %v6805_v11  ;;  %v2882_v31 = vadd.f32 %v2878_v21, %v6860_v58  ;;  %v2887_v17 = vmul.f32 %v3743_v15, %v2886_v47  ;;  %v2892_v42 = vadd.f32 %v2888_v7, %v6868_v34  ;;  %p3778_p12 = pnand %p3777_p8, %p7807_p10 }
 0x340   : > { %v6893_v25 = vadd.f32 %v2843_v43, %v6807_v22 }
 0x341   : > { %3322 = vrot.lane.b32.xlu1 %v3311_v28, %s7238_s28  ;;  %v2891_v59 = vadd.f32 %v2887_v17, %v6871_v27  ;;  %p3779_p0 = pneg %p3778_p12 }
 0x342   : > { %3320 = vrot.lane.b32.xlu0 %v3310_v32, %s7238_s28  ;;  %v2849_v51 = vpop.permute.xlu1 %2848 }
 0x343   : > { %v2847_v24 = vpop.permute.xlu0 %2846  ;;  %v6902_v11 = vadd.f32 %v2849_v51, %v6816_v3  ;;  %v2869_v3 = vadd.f32 %v2865_v40, %v6828_v18  ;;  %v2871_v18 = vadd.f32 %v2867_v8, %v6839_v30  ;;  %v2890_v40 = vmul.f32 %v3744_v29, %v2886_v47 }
 0x344   : > { %v6905_v22 = vadd.f32 %v2847_v24, %v6818_v12  ;;  %v3361_v12 = vstv %s3360_s2  ;;  %v2889_v51 = vmul.f32 %v3745_v46, %v2886_v47  ;;  %s7802_s2 = sadd.s32 2, %s4025_s5  ;;  %s3612_s5 = sshll.u32 %s3860_s15, 4 }
 0x345   : > { %3345 = vrot.lane.b32.xlu1 %v3336_v35, %s7238_s28  ;;  %v3363_v62 = vmul.f32 %v6683_v53, %v3361_v12  ;;  %v3362_v10 = vmul.f32 %v6712_v26, %v3361_v12  ;;  %v3365_v13 = vmul.f32 %v6740_v16, %v3361_v12  ;;  %v3364_v30 = vmul.f32 %v6753_v63, %v3361_v12  ;;  %s7070_s9 = sld [smem:[#allocation5 + %s7802_s2]] }
 0x346   : > { %3343 = vrot.lane.b32.xlu0 %v3335_v61, %s7238_s28  ;;  %v2920_v20 = vpop.permute.xlu1 %2919  ;;  %v2894_v9 = vadd.f32 %v2890_v40, %v6879_v6 }
 0x347   : > { %v2918_v55 = vpop.permute.xlu0 %2917  ;;  %v6916_v60 = vadd.f32 %v2920_v20, %v2870_v56  ;;  %v2893_v56 = vadd.f32 %v2889_v51, %v6882_v54 }
 0x348   : > { %v6918_v50 = vadd.f32 %v2918_v55, %v2869_v3 }
 0x349   : > { %3349 = vrot.lane.b32.xlu1 %v3338_v57, %s7238_s28 }
 0x34a   : > { %3347 = vrot.lane.b32.xlu0 %v3337_v39, %s7238_s28  ;;  %v2924_v38 = vpop.permute.xlu1 %2923  ;;  %v2897_v39 = vstv %s2896_s23  ;;  %s3444_s23 = sadd.s32 %s3612_s5, %s3608_s22 }
 0x34b   : > { %v2922_v1 = vpop.permute.xlu0 %2921  ;;  %v6928_v0 = vadd.f32 %v2924_v38, %v2872_v37  ;;  %v2899_v3 = vmul.f32 %v3742_v44, %v2897_v39  ;;  %v2898_v8 = vmul.f32 %v3743_v15, %v2897_v39  ;;  %s3609_s15 = sshll.u32 %s3444_s23, 7 }
 0x34c   : > { %v6930_v49 = vadd.f32 %v2922_v1, %v2871_v18  ;;  %s7134_s21 = scalar_lea.hbm %s7198_s3, %s3609_s15 }
 0x34d   : > { %3372 = vrot.lane.b32.xlu1 %v3363_v62, %s7238_s28  ;;  %v2903_v55 = vadd.f32 %v2899_v3, %v6890_v5  ;;  %v2902_v45 = vadd.f32 %v2898_v8, %v6893_v25  ;;  %v2901_v62 = vmul.f32 %v3744_v29, %v2897_v39 }
 0x34e   : > { %3370 = vrot.lane.b32.xlu0 %v3362_v10, %s7238_s28  ;;  %v2947_v23 = vpop.permute.xlu1 %2946  ;;  %v2900_v10 = vmul.f32 %v3745_v46, %v2897_v39 }
 0x34f   : > { %v2945_v48 = vpop.permute.xlu0 %2944  ;;  %v6941_v28 = vadd.f32 %v2947_v23, %v2881_v52  ;;  %v2905_v54 = vadd.f32 %v2901_v62, %v6902_v11 }
 0x350   : > { %v6943_v32 = vadd.f32 %v2945_v48, %v2880_v2  ;;  %v2904_v44 = vadd.f32 %v2900_v10, %v6905_v22  ;;  %v3139_v10 = vstv %s3138_s20  ;;  %s7144_s20 = scalar_lea.sflag [#allocation3], %s202_s29 }
 0x351   : > { %3376 = vrot.lane.b32.xlu1 %v3365_v13, %s7238_s28 }
 0x352   : > { %3374 = vrot.lane.b32.xlu0 %v3364_v30, %s7238_s28  ;;  %s3127_s28 = sld [smem:[#allocation2 + %s3126_s25]] }
 0x353   : > { %v2951_v43 = vpop.permute.xlu1 %2950  ;;  %v2949_v41 = vpop.permute.xlu0 %2948 }
 0x354   : > { %v6949_v35 = vadd.f32 %v2951_v43, %v2883_v33  ;;  %v6951_v61 = vadd.f32 %v2949_v41, %v2882_v31 }
 0x357   : > { %v2974_v24 = vpop.permute.xlu1 %2973  ;;  %v2972_v57 = vpop.permute.xlu0 %2971 }
 0x358   : > { %v6955_v14 = vadd.f32 %v2974_v24, %v2892_v42  ;;  %v6957_v58 = vadd.f32 %v2972_v57, %v2891_v59 }
 0x35b   : > { %v2978_v12 = vpop.permute.xlu1 %2977  ;;  %v2976_v20 = vpop.permute.xlu0 %2975 }
 0x35c   : > { %v6961_v34 = vadd.f32 %v2978_v12, %v2894_v9  ;;  %v6963_v27 = vadd.f32 %v2976_v20, %v2893_v56  ;;  %v3128_v9 = vstv %s3127_s28 }
 0x35d   : > { %v3130_v20 = vmul.f32 %v6683_v53, %v3128_v9  ;;  %v3131_v62 = vmul.f32 %v6753_v63, %v3128_v9 }
 0x35f   : > { %v3001_v37 = vpop.permute.xlu1 %3000  ;;  %v2999_v18 = vpop.permute.xlu0 %2998 }
 0x360   : > { %v6967_v36 = vadd.f32 %v3001_v37, %v2903_v55  ;;  %v6969_v6 = vadd.f32 %v2999_v18, %v2902_v45  ;;  %v3129_v55 = vmul.f32 %v6712_v26, %v3128_v9  ;;  %v3132_v45 = vmul.f32 %v6740_v16, %v3128_v9 }
 0x363   : > { %v3005_v15 = vpop.permute.xlu1 %3004  ;;  %v3003_v4 = vpop.permute.xlu0 %3002 }
 0x364   : > { %v6973_v38 = vadd.f32 %v3005_v15, %v2905_v54  ;;  %v6975_v1 = vadd.f32 %v3003_v4, %v2904_v44 }
 0x367   : > { %v3028_v5 = vpop.permute.xlu1 %3027  ;;  %v3026_v25 = vpop.permute.xlu0 %3025 }
 0x368   : > { %v3038_v8 = vadd.f32 %v3028_v5, %v6916_v60  ;;  %v3037_v12 = vadd.f32 %v3026_v25, %v6918_v50  ;;  %v3141_v5 = vmul.f32 %v6683_v53, %v3139_v10 }
 0x36a   : > { %v3134_v54 = vadd.f32 %v3130_v20, %v3038_v8  ;;  %v3133_v44 = vadd.f32 %v3129_v55, %v3037_v12  ;;  %v3143_v20 = vmul.f32 %v6740_v16, %v3139_v10  ;;  %v3142_v55 = vmul.f32 %v6753_v63, %v3139_v10 }
 0x36b   : > { %v3032_v13 = vpop.permute.xlu1 %3031  ;;  %v3030_v30 = vpop.permute.xlu0 %3029 }
 0x36c   : > { %v3040_v60 = vadd.f32 %v3032_v13, %v6928_v0  ;;  %v3039_v50 = vadd.f32 %v3030_v30, %v6930_v49 }
 0x36e   : > { %v3136_v49 = vadd.f32 %v3132_v45, %v3040_v60  ;;  %v3135_v13 = vadd.f32 %v3131_v62, %v3039_v50  ;;  %v3398_v50 = vstv %s7043_s7 }
 0x36f   : > { %v3055_v52 = vpop.permute.xlu1 %3054  ;;  %v3053_v2 = vpop.permute.xlu0 %3052 }
 0x370   : > { %v3065_v25 = vadd.f32 %v3055_v52, %v6941_v28  ;;  %v3064_v9 = vadd.f32 %v3053_v2, %v6943_v32 }
 0x372   : > { %v3145_v2 = vadd.f32 %v3141_v5, %v3065_v25 }
 0x373   : > { %v6977_v29 = vpop.permute.xlu1 %3058 }
 0x374   : > { %v6979_v19 = vpop.permute.xlu0 %3056 }
 0x375   : > { %v3066_v45 = vadd.f32 %v6979_v19, %v6951_v61 }
 0x377   : > { %v6981_v11 = vpop.permute.xlu1 %3081  ;;  %v3146_v5 = vadd.f32 %v3142_v55, %v3066_v45 }
 0x378   : > { %v6983_v22 = vpop.permute.xlu0 %3079 }
 0x37b   : > { %v6985_v46 = vpop.permute.xlu1 %3085 }
 0x37c   : > { %v6987_v21 = vpop.permute.xlu0 %3083 }
 0x37f   : > { %v6989_v23 = vpop.permute.xlu1 %3108 }
 0x380   : > { %v6991_v48 = vpop.permute.xlu0 %3106 }
 0x383   : > { %v6993_v47 = vpop.permute.xlu1 %3112 }
 0x384   : > { %v6995_v33 = vpop.permute.xlu0 %3110 }
 0x387   : > { %v3184_v31 = vpop.permute.xlu1 %3183 }
 0x388   : > { %v3182_v7 = vpop.permute.xlu0 %3181  ;;  %v3194_v15 = vadd.f32 %v3184_v31, %v3134_v54 }
 0x389   : > { %v3193_v4 = vadd.f32 %v3182_v7, %v3133_v44  ;;  %v3150_v7 = vstv %s3149_s11 }
 0x38a   : > { %v3152_v62 = vmul.f32 %v6683_v53, %v3150_v7  ;;  %v3151_v60 = vmul.f32 %v6712_v26, %v3150_v7 }
 0x38b   : > { %v3188_v17 = vpop.permute.xlu1 %3187 }
 0x38c   : > { %v3186_v43 = vpop.permute.xlu0 %3185  ;;  %v3196_v8 = vadd.f32 %v3188_v17, %v3136_v49  ;;  %v3154_v49 = vmul.f32 %v6740_v16, %v3150_v7 }
 0x38d   : > { %v3195_v28 = vadd.f32 %v3186_v43, %v3135_v13  ;;  %v3153_v13 = vmul.f32 %v6753_v63, %v3150_v7 }
 0x38f   : > { %v6997_v41 = vpop.permute.xlu1 %3210 }
 0x390   : > { %v6999_v42 = vpop.permute.xlu0 %3208 }
 0x393   : > { %v7002_v59 = vpop.permute.xlu1 %3214 }
 0x394   : > { %v7004_v40 = vpop.permute.xlu0 %3212 }
 0x397   : > { %v7006_v51 = vpop.permute.xlu1 %3237 }
 0x398   : > { %v7008_v24 = vpop.permute.xlu0 %3235 }
 0x39b   : > { %v7011_v57 = vpop.permute.xlu1 %3241 }
 0x39c   : > { %v7013_v39 = vpop.permute.xlu0 %3239 }
 0x39f   : > { %v7016_v56 = vpop.permute.xlu1 %3264 }
 0x3a0   : > { %v7018_v3 = vpop.permute.xlu0 %3262 }
 0x3a1   : > { %7798 = vst [vmem:[#allocation82_spill] sm:$0xff] %v7018_v3 }
 0x3a3   : > { %v7027_v37 = vpop.permute.xlu1 %3268 }
 0x3a4   : > { %7799 = vst [vmem:[#allocation83_spill] sm:$0xff] %v7027_v37  ;;  %v7029_v18 = vpop.permute.xlu0 %3266  ;;  %v3387_v37 = vstv %s3386_s30  ;;  %s3882_s30 = smov [#allocation7]  }
 0x3a5   : > { %7800 = vst [vmem:[#allocation84_spill] sm:$0xff] %v7029_v18  ;;  %v3140_v18 = vmul.f32 %v6712_v26, %v3139_v10  ;;  %v3092_v10 = vadd.f32 %v6981_v11, %v6955_v14  ;;  %v3161_v11 = vstv %s7045_s24  ;;  %s3780_s11 = sshll.u32 %s3882_s30, 4  ;;  %s3781_s11 = int_to_ptr.vmem [resolvable:$false] %s3780_s11 }
 0x3a6   : > { %v3163_v7 = vmul.f32 %v6683_v53, %v3161_v11  ;;  %v3164_v45 = vmul.f32 %v6753_v63, %v3161_v11  ;;  %s3782_s4 = scalar_lea.vmem %s3781_s11, 4096  ;;  %p3783_p2 = scmp.lt.s32.totalorder %s7136_s16, %s3781_s11 }
 0x3a7   : > { %v3292_v3 = vpop.permute.xlu1 %3291  ;;  %v3144_v12 = vadd.f32 %v3140_v18, %v3064_v9  ;;  %v3091_v18 = vadd.f32 %v6983_v22, %v6957_v58  ;;  %v3222_v22 = vadd.f32 %v7004_v40, %v3146_v5  ;;  %v3156_v9 = vadd.f32 %v3152_v62, %v3092_v10  ;;  %p3784_p7 = scmp.lt.s32.totalorder %s3782_s4, %s3776_s10 }
 0x3a8   : > { %v3290_v0 = vpop.permute.xlu0 %3289  ;;  %v3302_v30 = vadd.f32 %v3292_v3, %v3194_v15  ;;  %v3067_v3 = vadd.f32 %v6977_v29, %v6949_v35  ;;  %v3221_v35 = vadd.f32 %v6997_v41, %v3145_v2  ;;  %v3121_v62 = vadd.f32 %v6993_v47, %v6973_v38  ;;  %v7804_v63 = vld [vmem:[#allocation82_spill] sm:$0xff] }
 0x3a9   : > { %v3301_v31 = vadd.f32 %v3290_v0, %v3193_v4  ;;  %v3220_v29 = vadd.f32 %v6999_v42, %v3144_v12  ;;  %v3155_v0 = vadd.f32 %v3151_v60, %v3091_v18  ;;  %v3409_v12 = vstv %s7070_s9  ;;  %p3785_p9 = por %p3784_p7, %p3783_p2 }
 0x3aa   : > { %v3389_v52 = vadd.f32 %v3387_v37, %v3302_v30  ;;  %v3147_v41 = vadd.f32 %v3143_v20, %v3067_v3  ;;  %v3165_v3 = vmul.f32 %v6740_v16, %v3161_v11  ;;  %v3420_v38 = vstv %s3419_s18 }
 0x3ab   : > { %v3388_v32 = vadd.f32 %v3387_v37, %v3301_v31  ;;  %v3296_v54 = vpop.permute.xlu1 %3295  ;;  %p3786_p11 = pnand %p3785_p9, %p3779_p0 }
 0x3ac   : > { %v3294_v44 = vpop.permute.xlu0 %3293  ;;  %3394 = vst.msk [vmem:[%s7053_s1 + $0x8] sm:$0xff] %vm3392_vm0, %v3389_v52  ;;  %v3304_v17 = vadd.f32 %v3296_v54, %v3196_v8  ;;  %v3223_v58 = vadd.f32 %v7002_v59, %v3147_v41  ;;  %v3094_v8 = vadd.f32 %v6985_v46, %v6961_v34  ;;  %v3248_v52 = vadd.f32 %v7006_v51, %v3156_v9 }
 0x3ad   : > { %3393 = vst.msk [vmem:[%s7053_s1] sm:$0xff] %vm3392_vm0, %v3388_v32  ;;  %v3303_v43 = vadd.f32 %v3294_v44, %v3195_v28  ;;  %v3093_v28 = vadd.f32 %v6987_v21, %v6963_v27  ;;  %v3247_v32 = vadd.f32 %v7008_v24, %v3155_v0  ;;  %v3119_v27 = vadd.f32 %v6989_v23, %v6967_v36 }
 0x3ae   : > { %v3391_v61 = vadd.f32 %v3387_v37, %v3304_v17  ;;  %v3118_v46 = vadd.f32 %v6991_v48, %v6969_v6  ;;  %v3162_v21 = vmul.f32 %v6712_v26, %v3161_v11  ;;  %v3158_v53 = vadd.f32 %v3154_v49, %v3094_v8 }
 0x3af   : > { %v3390_v19 = vadd.f32 %v3387_v37, %v3303_v43  ;;  %v3319_v15 = vpop.permute.xlu1 %3318  ;;  %v3157_v54 = vadd.f32 %v3153_v13, %v3093_v28  ;;  %v3167_v24 = vadd.f32 %v3163_v7, %v3119_v27 }
 0x3b0   : > { %v3317_v4 = vpop.permute.xlu0 %3316  ;;  %3396 = vst.msk [vmem:[%s7053_s1 + $0x18] sm:$0xff] %vm3392_vm0, %v3391_v61  ;;  %v3329_v42 = vadd.f32 %v3319_v15, %v3221_v35  ;;  %v3250_v23 = vadd.f32 %v7011_v57, %v3158_v53  ;;  %v3166_v44 = vadd.f32 %v3162_v21, %v3118_v46  ;;  %v3120_v57 = vadd.f32 %v6995_v33, %v6975_v1  ;;  %v7806_v15 = vld [vmem:[#allocation84_spill] sm:$0xff] }
 0x3b1   : > { %3395 = vst.msk [vmem:[%s7053_s1 + $0x10] sm:$0xff] %vm3392_vm0, %v3390_v19  ;;  %v3328_v14 = vadd.f32 %v3317_v4, %v3220_v29  ;;  %v3249_v26 = vadd.f32 %v7013_v39, %v3157_v54  ;;  %v3275_v16 = vadd.f32 %v7016_v56, %v3167_v24  ;;  %v3169_v33 = vadd.f32 %v3165_v3, %v3121_v62  ;;  %v7805_v56 = vld [vmem:[#allocation83_spill] sm:$0xff] }
 0x3b2   : > { %v3400_v37 = vadd.f32 %v3398_v50, %v3329_v42  ;;  %v3274_v29 = vadd.f32 %v7804_v63, %v3166_v44  ;;  %v3168_v10 = vadd.f32 %v3164_v45, %v3120_v57 }
 0x3b3   : > { %v3399_v25 = vadd.f32 %v3398_v50, %v3328_v14  ;;  %v3323_v30 = vpop.permute.xlu1 %3322 }
 0x3b4   : > { %v3321_v31 = vpop.permute.xlu0 %3320  ;;  %3594 = vst.msk [vmem:[%s7053_s1 + $0x28] sm:$0xff] %vm3392_vm0, %v3400_v37  ;;  %v3331_v59 = vadd.f32 %v3323_v30, %v3223_v58  ;;  %v3276_v4 = vadd.f32 %v7806_v15, %v3168_v10 }
 0x3b5   : > { %3593 = vst.msk [vmem:[%s7053_s1 + $0x20] sm:$0xff] %vm3392_vm0, %v3399_v25  ;;  %v3330_v40 = vadd.f32 %v3321_v31, %v3222_v22 }
 0x3b6   : > { %v3402_v2 = vadd.f32 %v3398_v50, %v3331_v59 }
 0x3b7   : > { %v3401_v34 = vadd.f32 %v3398_v50, %v3330_v40  ;;  %v3346_v20 = vpop.permute.xlu1 %3345  ;;  %v3277_v50 = vadd.f32 %v7805_v56, %v3169_v33 }
 0x3b8   : > { %v3344_v55 = vpop.permute.xlu0 %3343  ;;  %3596 = vst.msk [vmem:[%s7053_s1 + $0x38] sm:$0xff] %vm3392_vm0, %v3402_v2  ;;  %v3356_v51 = vadd.f32 %v3346_v20, %v3248_v52 }
 0x3b9   : > { %3595 = vst.msk [vmem:[%s7053_s1 + $0x30] sm:$0xff] %vm3392_vm0, %v3401_v34  ;;  %v3355_v36 = vadd.f32 %v3344_v55, %v3247_v32 }
 0x3ba   : > { %v3411_v6 = vadd.f32 %v3409_v12, %v3356_v51 }
 0x3bb   : > { %v3410_v48 = vadd.f32 %v3409_v12, %v3355_v36  ;;  %v3350_v17 = vpop.permute.xlu1 %3349 }
 0x3bc   : > { %v3348_v43 = vpop.permute.xlu0 %3347  ;;  %3598 = vst.msk [vmem:[%s7053_s1 + $0x48] sm:$0xff] %vm3392_vm0, %v3411_v6  ;;  %v3358_v39 = vadd.f32 %v3350_v17, %v3250_v23 }
 0x3bd   : > { %3597 = vst.msk [vmem:[%s7053_s1 + $0x40] sm:$0xff] %vm3392_vm0, %v3410_v48  ;;  %v3357_v35 = vadd.f32 %v3348_v43, %v3249_v26 }
 0x3be   : > { %v3413_v61 = vadd.f32 %v3409_v12, %v3358_v39 }
 0x3bf   : > { %v3412_v19 = vadd.f32 %v3409_v12, %v3357_v35  ;;  %v3373_v47 = vpop.permute.xlu1 %3372 }
 0x3c0   : > { %v3371_v1 = vpop.permute.xlu0 %3370  ;;  %3600 = vst.msk [vmem:[%s7053_s1 + $0x58] sm:$0xff] %vm3392_vm0, %v3413_v61  ;;  %v3383_v18 = vadd.f32 %v3373_v47, %v3275_v16 }
 0x3c1   : > { %3599 = vst.msk [vmem:[%s7053_s1 + $0x50] sm:$0xff] %vm3392_vm0, %v3412_v19  ;;  %v3382_v60 = vadd.f32 %v3371_v1, %v3274_v29 }
 0x3c2   : > { %v3422_v41 = vadd.f32 %v3420_v38, %v3383_v18 }
 0x3c3   : > { %v3421_v5 = vadd.f32 %v3420_v38, %v3382_v60  ;;  %v3377_v42 = vpop.permute.xlu1 %3376 }
 0x3c4   : > { %v3375_v14 = vpop.permute.xlu0 %3374  ;;  %3602 = vst.msk [vmem:[%s7053_s1 + $0x68] sm:$0xff] %vm3392_vm0, %v3422_v41  ;;  %v3385_v11 = vadd.f32 %v3377_v42, %v3277_v50 }
 0x3c5   : > { %3601 = vst.msk [vmem:[%s7053_s1 + $0x60] sm:$0xff] %vm3392_vm0, %v3421_v5  ;;  %v3384_v58 = vadd.f32 %v3375_v14, %v3276_v4 }
 0x3c6   : > { %v3424_v22 = vadd.f32 %v3420_v38, %v3385_v11 }
 0x3c7   : > { %v3423_v37 = vadd.f32 %v3420_v38, %v3384_v58 }
 0x3c8   : > { %3604 = vst.msk [vmem:[%s7053_s1 + $0x78] sm:$0xff] %vm3392_vm0, %v3424_v22 }
 0x3c9   : > { %3603 = vst.msk [vmem:[%s7053_s1 + $0x70] sm:$0xff] %vm3392_vm0, %v3423_v37 }
 0x3ca   : > { %3789 = shalt.err (!%p3786_p11)
}
 0x3cb   : > { %s3790_s29 = scalar_lea.hbm %s7134_s21, 2048  ;;  %s3794_s7 = scalar_lea.hbm %s7198_s3, 8192 }
 0x3cc   : > { %p3791_p13 = scmp.ne.s32.totalorder %s7134_s21, %s3790_s29  ;;  %p3795_p5 = scmp.lt.s32.totalorder %s7134_s21, %s7198_s3 }
 0x3cd   : > { %p3796_p6 = scmp.lt.s32.totalorder %s3794_s7, %s3790_s29 }
 0x3ce   : > { %p3792_p1 = pnand %p3791_p13, %p7807_p10 }
 0x3cf   : > { %p3797_p3 = por %p3796_p6, %p3795_p5 }
 0x3d0   : > { %p3793_p4 = pneg %p3792_p1 }
 0x3d2   : > { %p3798_p8 = pnand %p3797_p3, %p3793_p4 }
 0x3d4   : > { %3801 = shalt.err (!%p3798_p8)
}
 0x3d5   : > { %s3883_s2 = smov 128   ;;  %s3884_s9 = smov 8  }
 0x3d6   : > { %3622 = dma.vmem_to_hbm [thread:$0]  (%p7807_p10), %s7136_s16, 2048, %s7134_s21, %s7144_s20, %s3883_s2, %s3883_s2, %s3884_s9  }
 0x3d7 PF: > { %p3639_p12 = scmp.ge.s32.totalorder %s3876_s19, 2  ;;  %s3462_s6 = sand.u32 1, %s3848_s12  }
 0x3d8   : > { %p7808_p0 = scmp.ne.s32.totalorder %s7229_s27, 0  ;;  %s3463_s18 = scalar_lea.sflag [#allocation3], %s3462_s6 }
 0x3da   : > { %p3632_p2 = pnand %p3639_p12, %p7808_p0 }
 0x3dc   : > { %p3633_p7 = pneg %p3632_p2 }
 0x3de   : > { %3843 = dma.done.wait (%p3633_p7), %s3463_s18, 2048  }
 0x3df   : > { %3845 = vsyncadd (%p3633_p7), %s3463_s18, 4294965248  ;;  %s18_s19 = sadd.s32 1, %s3876_s19   ;;  %s7809_s15 = sld [smem:[#allocation11_spill]] }
 0x3e0   : > { %p15_p9 = scmp.ge.s32.totalorder %s18_s19, 6   ;;  %s7810_s16 = sld [smem:[#allocation12_spill]] }
 0x3e1   : > { %s7811_s17 = sld [smem:[#allocation13_spill]]  ;;  %s7813_s12 = smov %s3852_s13 }
 0x3e2   : > { %s7812_s18 = sld [smem:[#allocation14_spill]]  ;;  %s7814_s13 = smov %s3856_s14 }
 0x3e3   : > { %s7815_s14 = smov %s3987_s8  ;;  %17 = sbr.rel (!%p15_p9) target bundleno = 11 (0xb), region = 82 }
 0x3e8   :  { %3468 = vsyncpa [#allocation3], 1 }
 0x3e9   :  { %3470 = vsyncpa [#allocation3 + $0x1], 1 }
 0x3ea   :  { %3471 = vsyncpa [#allocation4], 1 }
 0x3eb   :  { %3473 = vsyncpa [#allocation4 + $0x1], 1 }
 0x3ec   :  { %3474 = vsyncpa [#allocation6], 1 }

</bundles_post_ra>
